<compile_context>
chip_gen: v5e
topology: v5e:2x2
jax: 0.10.0
libtpu: 0.0.40
codegen_flags: <defaults>
</compile_context>

<pallas_src>
import functools

import numpy as np
import jax
import jax.numpy as jnp
from jax.experimental import pallas as pl
from jax.experimental.pallas import tpu as pltpu


# ----------------------------------------------------------------------------- kernels


def encoder_kernel(x_ref, w1_ref, b1_ref, h_ref, acc_ref, *, num_items, block_k):
    """Grid = (batch_tiles, k_tiles); k axis is innermost and 'arbitrary' because it
    carries the f32 accumulator scratch.  Computes h = sigmoid(x @ W1 + b1) in f32
    and stores it as bf16 (feeds the decoder MXU)."""
    k = pl.program_id(1)

    @pl.when(k == 0)
    def _init():
        acc_ref[...] = jnp.zeros_like(acc_ref)

    x = x_ref[...].astype(jnp.bfloat16)  # per-tile cast; x stays f32 in HBM
    w1 = w1_ref[...]
    if num_items % block_k:  # static: mask the ragged last K block (keeps accum exact)
        base = k * block_k
        col = jax.lax.broadcasted_iota(jnp.int32, x.shape, 1) + base
        x = jnp.where(col < num_items, x, 0)
        row = jax.lax.broadcasted_iota(jnp.int32, w1.shape, 0) + base
        w1 = jnp.where(row < num_items, w1, 0)

    acc_ref[...] += jnp.dot(x, w1, preferred_element_type=jnp.float32)

    @pl.when(k == pl.num_programs(1) - 1)
    def _finish():
        z = acc_ref[...] + b1_ref[...]                     # bias add in f32
        h = pl.reciprocal(1.0 + jnp.exp(-z), approx=True)  # sigmoid on the EUP slot
        h_ref[...] = h.astype(h_ref.dtype)


def decoder_kernel(h_ref, w2_ref, b2_ref, o_ref):
    """Grid = (batch_tiles, item_tiles); no carried state, both axes 'parallel'."""
    y = jnp.dot(h_ref[...], w2_ref[...], preferred_element_type=jnp.float32)
    o_ref[...] = (y + b2_ref[...]).astype(o_ref.dtype)


# ----------------------------------------------------------------------------- helpers


def _round_up(x, m):
    return ((x + m - 1) // m) * m


def _vmem_capacity_bytes():
    """Generation-aware VMEM capacity; conservative v7x fallback if the query fails."""
    try:
        info = pltpu.get_tpu_info()
        cap = getattr(info, "vmem_capacity_bytes", None)
        if cap:
            return int(cap)
    except Exception:
        pass
    return 64 << 20


def _vmem_limit(needed, cap):
    return int(min(max(needed * 3 // 2 + (1 << 20), 32 << 20), int(cap * 0.85)))


# ----------------------------------------------------------------------------- wrapper


@functools.partial(
    jax.jit, static_argnames=("block_b", "block_k", "block_i", "out_dtype")
)
def autorec_forward(
    x, w1, b1, w2, b2, *, block_b=512, block_k=2048, block_i=2048,
    out_dtype=jnp.float32,
):
    """AutoRec forward: decoder(encoder(x)).

    x: (B, I) f32 ratings; w1: (I, H) bf16; b1: (1, H) f32; w2: (H, I) bf16;
    b2: (1, I) f32.  Returns (B, I) out_dtype (default f32, like the nn.Module).
    """
    B, I = x.shape
    H = w1.shape[1]
    out_size = np.dtype(out_dtype).itemsize

    cap = _vmem_capacity_bytes()
    budget = int(cap * 0.8)

    # ---- tile sizing: clamp to shape, (8,128) alignment, keep >=2 batch tiles for
    # megacore sharding on v7x, then shrink the streamed dims to fit the VMEM budget.
    block_b = min(block_b, _round_up(B, 8))
    if B >= 16:
        block_b = min(block_b, _round_up((B + 1) // 2, 8))
    block_b = max(8, block_b)
    block_k = max(128, min(block_k, _round_up(I, 128)))
    block_i = max(128, min(block_i, _round_up(I, 128)))

    def enc_bytes(bk):
        return (
            2 * block_b * bk * 4      # x tiles (f32, double-buffered)
            + 2 * bk * H * 2          # W1 tiles (bf16)
            + 2 * H * 4               # b1
            + 2 * block_b * H * 2     # h output tiles (bf16)
            + block_b * H * 4         # f32 accumulator scratch
        )

    while block_k > 128 and enc_bytes(block_k) > budget:
        block_k = max(128, _round_up(block_k // 2, 128))

    def dec_bytes(bi):
        return (
            2 * block_b * H * 2               # h tiles (bf16)
            + 2 * H * bi * 2                  # W2 tiles (bf16)
            + 2 * bi * 4                      # b2 tiles
            + 2 * block_b * bi * out_size     # output tiles
        )

    while block_i > 128 and dec_bytes(block_i) > budget:
        block_i = max(128, _round_up(block_i // 2, 128))

    b_tiles = pl.cdiv(B, block_b)
    k_tiles = pl.cdiv(I, block_k)
    i_tiles = pl.cdiv(I, block_i)

    # Weights already stored in bf16 / biases in f32 => these are no-ops in the hot path.
    w1b = w1.astype(jnp.bfloat16)
    w2b = w2.astype(jnp.bfloat16)
    b1f = b1.astype(jnp.float32)
    b2f = b2.astype(jnp.float32)

    # ---- encoder: h = sigmoid(x @ W1 + b1), K-tiled over num_items -----------------
    enc_cost = pl.CostEstimate(
        flops=2 * B * I * H,
        transcendentals=2 * B * H,
        bytes_accessed=B * I * 4 + I * H * 2 + H * 4 + B * H * 2,
    )
    h = pl.pallas_call(
        functools.partial(encoder_kernel, num_items=I, block_k=block_k),
        out_shape=jax.ShapeDtypeStruct((B, H), jnp.bfloat16),
        grid_spec=pltpu.PrefetchScalarGridSpec(
            num_scalar_prefetch=0,
            grid=(b_tiles, k_tiles),
            in_specs=[
                pl.BlockSpec((block_b, block_k), lambda b, k: (b, k)),  # x tile (f32)
                pl.BlockSpec((block_k, H), lambda b, k: (k, 0)),        # W1 K-stream
                pl.BlockSpec((1, H), lambda b, k: (0, 0)),              # b1
            ],
            out_specs=pl.BlockSpec((block_b, H), lambda b, k: (b, 0)),
            scratch_shapes=[pltpu.VMEM((block_b, H), jnp.float32)],     # f32 accumulator
        ),
        compiler_params=pltpu.CompilerParams(
            dimension_semantics=("parallel", "arbitrary"),
            vmem_limit_bytes=_vmem_limit(enc_bytes(block_k), cap),
        ),
        cost_estimate=enc_cost,
    )(x, w1b, b1f)

    # ---- decoder: y = h @ W2 + b2, item-tiled over num_items -----------------------
    dec_cost = pl.CostEstimate(
        flops=2 * B * H * I,
        transcendentals=0,
        bytes_accessed=B * H * 2 + H * I * 2 + I * 4 + B * I * out_size,
    )
    out = pl.pallas_call(
        decoder_kernel,
        out_shape=jax.ShapeDtypeStruct((B, I), out_dtype),
        grid_spec=pltpu.PrefetchScalarGridSpec(
            num_scalar_prefetch=0,
            grid=(b_tiles, i_tiles),
            in_specs=[
                pl.BlockSpec((block_b, H), lambda b, j: (b, 0)),        # h batch tile
                pl.BlockSpec((H, block_i), lambda b, j: (0, j)),        # W2 item tile
                pl.BlockSpec((1, block_i), lambda b, j: (0, j)),        # b2 item tile
            ],
            out_specs=pl.BlockSpec((block_b, block_i), lambda b, j: (b, j)),
        ),
        compiler_params=pltpu.CompilerParams(
            dimension_semantics=("parallel", "parallel"),
            vmem_limit_bytes=_vmem_limit(dec_bytes(block_i), cap),
        ),
        cost_estimate=dec_cost,
    )(h, w2b, b2f)

    return out


# ----------------------------------------------------------------------------- params


def init_autorec_params(key, num_items, hidden_units):
    """nn.Linear-style U(-1/sqrt(fan_in), 1/sqrt(fan_in)) init.
    Weights stored pre-transposed (in_features, out_features) and already in bf16
    so no dtype-convert kernels run in the forward hot path; biases stay f32."""
    k1, k2, k3, k4 = jax.random.split(key, 4)
    bound_enc = 1.0 / float(np.sqrt(num_items))
    bound_dec = 1.0 / float(np.sqrt(hidden_units))
    w1 = jax.random.uniform(k1, (num_items, hidden_units), jnp.float32,
                            minval=-bound_enc, maxval=bound_enc).astype(jnp.bfloat16)
    b1 = jax.random.uniform(k2, (1, hidden_units), jnp.float32,
                            minval=-bound_enc, maxval=bound_enc)
    w2 = jax.random.uniform(k3, (hidden_units, num_items), jnp.float32,
                            minval=-bound_dec, maxval=bound_dec).astype(jnp.bfloat16)
    b2 = jax.random.uniform(k4, (1, num_items), jnp.float32,
                            minval=-bound_dec, maxval=bound_dec)
    return w1, b1, w2, b2


# ----------------------------------------------------------------------------- main

if __name__ == "__main__":
    # Small but multi-tile: batch axis splits into 2 tiles (v7x megacore sharding),
    # item/K axes exercise the streamed BlockSpecs while staying a few MiB total.
    batch = 512
    num_items = 1024
    hidden_units = 256

    key = jax.random.PRNGKey(0)
    kx, kp = jax.random.split(key)
    x = jax.random.uniform(kx, (batch, num_items), jnp.float32)  # rating vectors
    w1, b1, w2, b2 = init_autorec_params(kp, num_items, hidden_units)

    out = autorec_forward(x, w1, b1, w2, b2)
    jax.block_until_ready(out)

    # Pure-JAX reference in the kernel's mixed precision (bf16 MXU operands, f32
    # accumulation / bias; bf16 hidden activation).  The kernel's approx-reciprocal
    # sigmoid adds a small extra deviation, hence the slightly relaxed tolerance.
    xb = x.astype(jnp.bfloat16)
    h_ref = jax.nn.sigmoid(jnp.dot(xb, w1, preferred_element_type=jnp.float32) + b1)
    ref = jnp.dot(h_ref.astype(jnp.bfloat16), w2, preferred_element_type=jnp.float32) + b2

    assert out.shape == (batch, num_items)
    assert out.dtype == jnp.float32
    max_err = float(jnp.max(jnp.abs(out - ref)))
    assert jnp.allclose(out, ref, atol=5e-3, rtol=5e-3), max_err

    print("KERNEL_OK")
</pallas_src>

<mosaic_0001>
module attributes {stable_mosaic.version = 11 : i64} {
  func.func @encoder_kernel(%arg0: i32, %arg1: i32, %arg2: memref<256x1024xf32, #tpu.memory_space<vmem>>, %arg3: memref<1024x256xbf16, #tpu.memory_space<vmem>>, %arg4: memref<1x256xf32, #tpu.memory_space<vmem>>, %arg5: memref<256x256xbf16, #tpu.memory_space<vmem>>, %arg6: memref<256x256xf32, #tpu.memory_space<vmem>>) attributes {dimension_semantics = [#tpu.dimension_semantics<parallel>, #tpu.dimension_semantics<arbitrary>], iteration_bounds = array<i64: 2, 1>, scalar_prefetch = 0 : i64, scratch_operands = 1 : i64, tpu.core_type = #tpu.core_type<tc>, window_params = [{transform_indices = @transform_0, window_bounds = array<i64: 256, 1024>}, {transform_indices = @transform_1, window_bounds = array<i64: 1024, 256>}, {pipeline_mode = #tpu.pipeline_mode<synchronous>, transform_indices = @transform_2, window_bounds = array<i64: 1, 256>}, {transform_indices = @transform_3, window_bounds = array<i64: 256, 256>}]} {
    %c0_i32 = arith.constant 0 : i32
    %0 = arith.cmpi eq, %arg1, %c0_i32 : i32
    %1 = arith.extui %0 : i1 to i32
    %c0_i32_0 = arith.constant 0 : i32
    %2 = arith.cmpi ne, %1, %c0_i32_0 : i32
    scf.if %2 {
      %cst_10 = arith.constant 0.000000e+00 : f32
      %13 = vector.broadcast %cst_10 : f32 to vector<256x256xf32>
      %c0_11 = arith.constant 0 : index
      %c0_12 = arith.constant 0 : index
      %14 = vector.load %arg6[%c0_11, %c0_12] : memref<256x256xf32, #tpu.memory_space<vmem>>, vector<256x256xf32>
      tpu.vector_store %arg6[%c0_11, %c0_12], %13 {strides = array<i32>} : memref<256x256xf32, #tpu.memory_space<vmem>>, vector<256x256xf32>,
    } else {
    }
    %c0 = arith.constant 0 : index
    %c0_1 = arith.constant 0 : index
    %3 = vector.load %arg2[%c0, %c0_1] : memref<256x1024xf32, #tpu.memory_space<vmem>>, vector<256x1024xf32>
    %4 = arith.truncf %3 : vector<256x1024xf32> to vector<256x1024xbf16>
    %c0_2 = arith.constant 0 : index
    %c0_3 = arith.constant 0 : index
    %5 = vector.load %arg3[%c0_2, %c0_3] : memref<1024x256xbf16, #tpu.memory_space<vmem>>, vector<1024x256xbf16>
    %c0_4 = arith.constant 0 : index
    %c0_5 = arith.constant 0 : index
    %6 = vector.load %arg6[%c0_4, %c0_5] : memref<256x256xf32, #tpu.memory_space<vmem>>, vector<256x256xf32>
    %cst = arith.constant dense<0.000000e+00> : vector<256x256xf32>
    %7 = tpu.matmul %4, %5, %cst {dimension_numbers = #tpu.dot_dimension_numbers<[1], [0], [0], [1], [0, 0, 1, 1], [], []>} : vector<256x1024xbf16>, vector<1024x256xbf16>, vector<256x256xf32> -> vector<256x256xf32>
    %8 = arith.addf %6, %7 : vector<256x256xf32>
    %c0_6 = arith.constant 0 : index
    %c0_7 = arith.constant 0 : index
    %9 = vector.load %arg6[%c0_6, %c0_7] : memref<256x256xf32, #tpu.memory_space<vmem>>, vector<256x256xf32>
    tpu.vector_store %arg6[%c0_6, %c0_7], %8 {strides = array<i32>} : memref<256x256xf32, #tpu.memory_space<vmem>>, vector<256x256xf32>,
    %c0_i32_8 = arith.constant 0 : i32
    %10 = arith.cmpi eq, %arg1, %c0_i32_8 : i32
    %11 = arith.extui %10 : i1 to i32
    %c0_i32_9 = arith.constant 0 : i32
    %12 = arith.cmpi ne, %11, %c0_i32_9 : i32
    scf.if %12 {
      %c0_10 = arith.constant 0 : index
      %c0_11 = arith.constant 0 : index
      %13 = vector.load %arg6[%c0_10, %c0_11] : memref<256x256xf32, #tpu.memory_space<vmem>>, vector<256x256xf32>
      %c0_12 = arith.constant 0 : index
      %c0_13 = arith.constant 0 : index
      %14 = vector.load %arg4[%c0_12, %c0_13] : memref<1x256xf32, #tpu.memory_space<vmem>>, vector<1x256xf32>
      %15 = vector.broadcast %14 : vector<1x256xf32> to vector<256x256xf32>
      %16 = arith.addf %13, %15 : vector<256x256xf32>
      %cst_14 = arith.constant 0.000000e+00 : f32
      %17 = vector.broadcast %cst_14 : f32 to vector<256x256xf32>
      %18 = arith.subf %17, %16 : vector<256x256xf32>
      %19 = math.exp %18 : vector<256x256xf32>
      %cst_15 = arith.constant 1.000000e+00 : f32
      %20 = vector.broadcast %cst_15 : f32 to vector<256x256xf32>
      %21 = arith.addf %20, %19 : vector<256x256xf32>
      %22 = tpu.reciprocal %21 {approx = true} : vector<256x256xf32> -> vector<256x256xf32>
      %23 = arith.truncf %22 : vector<256x256xf32> to vector<256x256xbf16>
      %c0_16 = arith.constant 0 : index
      %c0_17 = arith.constant 0 : index
      %24 = vector.load %arg5[%c0_16, %c0_17] : memref<256x256xbf16, #tpu.memory_space<vmem>>, vector<256x256xbf16>
      tpu.vector_store %arg5[%c0_16, %c0_17], %23 {strides = array<i32>} : memref<256x256xbf16, #tpu.memory_space<vmem>>, vector<256x256xbf16>,
    } else {
    }
    return
  }
  func.func @transform_0(%arg0: i32, %arg1: i32) -> (i32, i32) {
    %c0_i32 = arith.constant 0 : i32
    return %arg0, %arg1 : i32, i32
  }
  func.func @transform_1(%arg0: i32, %arg1: i32) -> (i32, i32) {
    %c0_i32 = arith.constant 0 : i32
    %c0_i32_0 = arith.constant 0 : i32
    return %arg1, %c0_i32 : i32, i32
  }
  func.func @transform_2(%arg0: i32, %arg1: i32) -> (i32, i32) {
    %c0_i32 = arith.constant 0 : i32
    %c0_i32_0 = arith.constant 0 : i32
    %c0_i32_1 = arith.constant 0 : i32
    return %c0_i32, %c0_i32_0 : i32, i32
  }
  func.func @transform_3(%arg0: i32, %arg1: i32) -> (i32, i32) {
    %c0_i32 = arith.constant 0 : i32
    %c0_i32_0 = arith.constant 0 : i32
    return %arg0, %c0_i32 : i32, i32
  }
}

module attributes {stable_mosaic.version = 11 : i64} {
  func.func @decoder_kernel(%arg0: i32, %arg1: i32, %arg2: memref<256x256xbf16, #tpu.memory_space<vmem>>, %arg3: memref<256x1024xbf16, #tpu.memory_space<vmem>>, %arg4: memref<1x1024xf32, #tpu.memory_space<vmem>>, %arg5: memref<256x1024xf32, #tpu.memory_space<vmem>>) attributes {dimension_semantics = [#tpu.dimension_semantics<parallel>, #tpu.dimension_semantics<parallel>], iteration_bounds = array<i64: 2, 1>, scalar_prefetch = 0 : i64, scratch_operands = 0 : i64, tpu.core_type = #tpu.core_type<tc>, window_params = [{transform_indices = @transform_0, window_bounds = array<i64: 256, 256>}, {transform_indices = @transform_1, window_bounds = array<i64: 256, 1024>}, {transform_indices = @transform_2, window_bounds = array<i64: 1, 1024>}, {transform_indices = @transform_3, window_bounds = array<i64: 256, 1024>}]} {
    %c0 = arith.constant 0 : index
    %c0_0 = arith.constant 0 : index
    %0 = vector.load %arg2[%c0, %c0_0] : memref<256x256xbf16, #tpu.memory_space<vmem>>, vector<256x256xbf16>
    %c0_1 = arith.constant 0 : index
    %c0_2 = arith.constant 0 : index
    %1 = vector.load %arg3[%c0_1, %c0_2] : memref<256x1024xbf16, #tpu.memory_space<vmem>>, vector<256x1024xbf16>
    %cst = arith.constant dense<0.000000e+00> : vector<256x1024xf32>
    %2 = tpu.matmul %0, %1, %cst {dimension_numbers = #tpu.dot_dimension_numbers<[1], [0], [0], [1], [0, 0, 1, 1], [], []>} : vector<256x256xbf16>, vector<256x1024xbf16>, vector<256x1024xf32> -> vector<256x1024xf32>
    %c0_3 = arith.constant 0 : index
    %c0_4 = arith.constant 0 : index
    %3 = vector.load %arg4[%c0_3, %c0_4] : memref<1x1024xf32, #tpu.memory_space<vmem>>, vector<1x1024xf32>
    %4 = vector.broadcast %3 : vector<1x1024xf32> to vector<256x1024xf32>
    %5 = arith.addf %2, %4 : vector<256x1024xf32>
    %c0_5 = arith.constant 0 : index
    %c0_6 = arith.constant 0 : index
    %6 = vector.load %arg5[%c0_5, %c0_6] : memref<256x1024xf32, #tpu.memory_space<vmem>>, vector<256x1024xf32>
    tpu.vector_store %arg5[%c0_5, %c0_6], %5 {strides = array<i32>} : memref<256x1024xf32, #tpu.memory_space<vmem>>, vector<256x1024xf32>,
    return
  }
  func.func @transform_0(%arg0: i32, %arg1: i32) -> (i32, i32) {
    %c0_i32 = arith.constant 0 : i32
    %c0_i32_0 = arith.constant 0 : i32
    return %arg0, %c0_i32 : i32, i32
  }
  func.func @transform_1(%arg0: i32, %arg1: i32) -> (i32, i32) {
    %c0_i32 = arith.constant 0 : i32
    %c0_i32_0 = arith.constant 0 : i32
    return %c0_i32, %arg1 : i32, i32
  }
  func.func @transform_2(%arg0: i32, %arg1: i32) -> (i32, i32) {
    %c0_i32 = arith.constant 0 : i32
    %c0_i32_0 = arith.constant 0 : i32
    return %c0_i32, %arg1 : i32, i32
  }
  func.func @transform_3(%arg0: i32, %arg1: i32) -> (i32, i32) {
    %c0_i32 = arith.constant 0 : i32
    return %arg0, %arg1 : i32, i32
  }
}

</mosaic_0001>

<bundles_post_ra>
// kernel: autorec_forward.3
= control target key start
LH: loop header
LB: loop body
LE: loop exit
PB: predicated region body
PF: predicated region fallthrough
CT: control target
= control target key end

     0   :  { %8 = vsyncpa [#allocation3], 0  ;;  %s5789_s0 = inlined_call_operand.vmem [shape: bf16[512,256], index: 0, kind: input, shape index: {}]   ;;  %s5790_s1 = inlined_call_operand.vmem [shape: bf16[256,1024], index: 1, kind: input, shape index: {}]   ;;  %s5791_s2 = inlined_call_operand.vmem [shape: f32[1,1024], index: 2, kind: input, shape index: {}]   ;;  %s5792_s3 = inlined_call_operand.hbm [shape: f32[512,1024], index: 3, kind: output, shape index: {}]  }
   0x1   :  { %10 = vsyncpa [#allocation3 + $0x1], 0  ;;  %s3989_s12 = smov 0   ;;  %s3991_s13 = smov 0  }
   0x2   :  { %s3993_s14 = smov 0   ;;  %s3995_s15 = smov 0  }
   0x3   :  { %s3997_s16 = smov 0   ;;  %s3999_s17 = smov 0  }
   0x4 LB: > { %s3008_s18 = sadd.s32 4294967295, %s3965_s17   ;;  %s3009_s19 = sadd.s32 4294967294, %s3965_s17   ;;  %s3965_s17 = sphi %s3999_s17, %s16_s17   ;;  %s3961_s16 = sphi %s3997_s16, %s5799_s16   ;;  %s3957_s15 = sphi %s3995_s15, %s5798_s15   ;;  %s3953_s14 = sphi %s3993_s14, %s5797_s14   ;;  %s3949_s13 = sphi %s3991_s13, %s5796_s13   ;;  %s3945_s12 = sphi %s3989_s12, %s5795_s12  }
   0x5   : > { %s28_s20 = sadd.s32 1, %s3961_s16  ;;  %s115_s21 = sadd.s32 1, %s3953_s14 }
   0x6   : > { %p30_p0 = scmp.ge.s32.totalorder %s28_s20, 2  ;;  %p125_p1 = scmp.ne.s32.totalorder %s3953_s14, %s3949_s13 }
   0x7   : > { %p126_p2 = scmp.eq.s32.totalorder %s3008_s18, 1  ;;  %p131_p3 = scmp.ne.s32.totalorder %s3949_s13, %s3945_s12 }
   0x8   : > { %s5801_s20 = smov (%p30_p0, %s28_s20), 0  ;;  %p132_p5 = scmp.eq.s32.totalorder %s3009_s19, 1 }
   0x9   : > { %p4029_p4 = por %p126_p2, %p125_p1  ;;  %s110_s23 = ssub.s32 %s3961_s16, %s5801_s20 }
   0xa   : > { %p3014_p6 = scmp.ge.s32.totalorder %s3965_s17, 1  ;;  %p113_p7 = scmp.eq.s32.totalorder %s110_s23, 0 }
   0xb   : > { %p4036_p8 = por %p132_p5, %p131_p3  ;;  %p177_p9 = scmp.lt.s32.totalorder %s3965_s17, 3 }
   0xc   : > { %s4042_s25 = scalar_select %p113_p7, %s3953_s14, %s115_s21  }
   0xd   : > { %p178_p10 = pnand %p3014_p6, %p177_p9 }
   0xe   : > { %s3016_s5 = sshll.u32 (!%p178_p10), %s3957_s15, 5  ;;  %s208_s23 = sand.u32 (!%p178_p10), 1, %s3949_s13  }
   0xf   : > { %181 = sbr.rel (%p178_p10) target bundleno = 1211 (0x4bb), region = 32  ;;  %p212_p11 = scmp.lt.s32.totalorder (!%p178_p10), %s3016_s5, 63 }
  0x10   : > { %s3015_s26 = sshll.u32 (!%p178_p10), %s208_s23, 11  ;;  %s3827_s19 = sshll.u32 (!%p178_p10), %s3957_s15, 11 }
  0x11   : > { %s4480_s28 = scalar_lea.vmem (!%p178_p10), [#allocation2], %s3015_s26  ;;  %s2904_s29 = scalar_lea.hbm (!%p178_p10), %s5792_s3, %s3827_s19 }
  0x12   : > { %s2907_s30 = sshll.u32 (!%p178_p10), %s2904_s29, 4  ;;  %s2890_s15 = scalar_lea.sflag (!%p178_p10), [#allocation3], %s208_s23  ;;  %s2908_s30 = int_to_ptr.hbm [resolvable:$true] %s2907_s30 }
  0x13   : > { %s3901_s4 = sshra.s32 (!%p178_p10), %s2908_s30, 4  ;;  %s3907_s9 = scalar_lea.hbm (!%p178_p10), %s5792_s3, 4096  ;;  %s3902_s4 = int_to_ptr.hbm [resolvable:$true] %s3901_s4 }
  0x14   : > { %v3373_v0 = vld [vmem:[%s5790_s1 + $0x1c0] sm:$0xf]  ;;  %v3754_v5 = vld [vmem:[%s5790_s1 + $0x1c4] sm:$0xf]  ;;  %s5803_s5 = smov (!%p212_p11, %s3016_s5), 63  ;;  %s3903_s6 = scalar_lea.hbm %s3902_s4, 2048 }
  0x15   : > { %v3758_v1 = vld [vmem:[%s5790_s1 + $0x1dc] sm:$0xf0]  ;;  %v3375_v6 = vld [vmem:[%s5790_s1 + $0x1e0] sm:$0xf0]  ;;  %s3665_s10 = sshll.u32 %s5803_s5, 3  ;;  %s2905_s5 = sshll.u32 %s4480_s28, 4  ;;  %s2906_s5 = int_to_ptr.vmem [resolvable:$true] %s2905_s5 }
  0x16   : > { %v3629_v2 = vld [vmem:[%s5790_s1 + $0x3c0] sm:$0xf]  ;;  %v3374_v3 = vor.u32 %v3758_v1, %v3373_v0  ;;  %v3378_v8 = vor.u32 %v3754_v5, %v3375_v6  ;;  %v3818_v9 = vld [vmem:[%s5790_s1 + $0x3c4] sm:$0xf]  ;;  %s4246_s27 = scalar_lea.vmem %s5789_s0, %s3665_s10  ;;  %p3904_p12 = scmp.ne.s32.totalorder %s3902_s4, %s3903_s6 }
  0x17   : > { %v3822_v4 = vld [vmem:[%s5790_s1 + $0x3dc] sm:$0xf0]  ;;  %v3631_v10 = vld [vmem:[%s5790_s1 + $0x3e0] sm:$0xf0]  ;;  %p3908_p1 = scmp.lt.s32.totalorder %s3902_s4, %s5792_s3  ;;  %p3909_p2 = scmp.lt.s32.totalorder %s3907_s9, %s3903_s6 }
  0x18   : > { %v3630_v7 = vor.u32 %v3822_v4, %v3629_v2  ;;  %v3341_v11 = vld [vmem:[%s5790_s1 + $0x180] sm:$0xf]  ;;  %1209 = vmatpush.bf16.msra.mxu0 %v3374_v3  ;;  %v3634_v12 = vor.u32 %v3818_v9, %v3631_v10  ;;  %1387 = vmatpush.bf16.msra.mxu2 %v3378_v8  ;;  %v3746_v18 = vld [vmem:[%s5790_s1 + $0x184] sm:$0xf]  ;;  %p3905_p13 = pnand %p3904_p12, %p4029_p4 }
  0x19   : > { %v3750_v13 = vld [vmem:[%s5790_s1 + $0x19c] sm:$0xf0]  ;;  %v3343_v19 = vld [vmem:[%s5790_s1 + $0x1a0] sm:$0xf0]  ;;  %p3910_p3 = por %p3909_p2, %p3908_p1 }
  0x1a   : > { %v3597_v14 = vld [vmem:[%s5790_s1 + $0x380] sm:$0xf]  ;;  %1298 = vmatpush.bf16.msra.mxu1 %v3630_v7  ;;  %v3342_v16 = vor.u32 %v3750_v13, %v3341_v11  ;;  %v3810_v20 = vld [vmem:[%s5790_s1 + $0x384] sm:$0xf]  ;;  %1476 = vmatpush.bf16.msra.mxu3 %v3634_v12  ;;  %v3346_v21 = vor.u32 %v3746_v18, %v3343_v19  ;;  %p3906_p0 = pneg %p3905_p13 }
  0x1b   : > { %v3814_v15 = vld [vmem:[%s5790_s1 + $0x39c] sm:$0xf0]  ;;  %v3599_v22 = vld [vmem:[%s5790_s1 + $0x3a0] sm:$0xf0] }
  0x1c   : > { %v3598_v17 = vor.u32 %v3814_v15, %v3597_v14  ;;  %v3309_v23 = vld [vmem:[%s5790_s1 + $0x140] sm:$0xf]  ;;  %v3602_v25 = vor.u32 %v3810_v20, %v3599_v22  ;;  %v3738_v28 = vld [vmem:[%s5790_s1 + $0x144] sm:$0xf]  ;;  %1210 = vmatpush.bf16.msra.mxu0 %v3342_v16  ;;  %1388 = vmatpush.bf16.msra.mxu2 %v3346_v21  ;;  %p3911_p5 = pnand %p3910_p3, %p3906_p0 }
  0x1d   : > { %v3742_v24 = vld [vmem:[%s5790_s1 + $0x15c] sm:$0xf0]  ;;  %v3311_v30 = vld [vmem:[%s5790_s1 + $0x160] sm:$0xf0] }
  0x1e   : > { %v3565_v26 = vld [vmem:[%s5790_s1 + $0x340] sm:$0xf]  ;;  %v3310_v29 = vor.u32 %v3742_v24, %v3309_v23  ;;  %v3802_v31 = vld [vmem:[%s5790_s1 + $0x344] sm:$0xf]  ;;  %1299 = vmatpush.bf16.msra.mxu1 %v3598_v17  ;;  %v3314_v34 = vor.u32 %v3738_v28, %v3311_v30  ;;  %1477 = vmatpush.bf16.msra.mxu3 %v3602_v25  ;;  %v3755_v28 = vld [vmem:[%s5790_s1 + $0x1cc] sm:$0xf] }
  0x1f   : > { %v3806_v27 = vld [vmem:[%s5790_s1 + $0x35c] sm:$0xf0]  ;;  %v3567_v32 = vld [vmem:[%s5790_s1 + $0x360] sm:$0xf0] }
  0x20   : > { %v3566_v33 = vor.u32 %v3806_v27, %v3565_v26  ;;  %v3277_v35 = vld [vmem:[%s5790_s1 + $0x100] sm:$0xf]  ;;  %v3570_v38 = vor.u32 %v3802_v31, %v3567_v32  ;;  %v3730_v40 = vld [vmem:[%s5790_s1 + $0x104] sm:$0xf]  ;;  %1211 = vmatpush.bf16.msra.mxu0 %v3310_v29  ;;  %1389 = vmatpush.bf16.msra.mxu2 %v3314_v34  ;;  %v3383_v29 = vld [vmem:[%s5790_s1 + $0x1e8] sm:$0xf0] }
  0x21   : > { %v3734_v36 = vld [vmem:[%s5790_s1 + $0x11c] sm:$0xf0]  ;;  %v3279_v41 = vld [vmem:[%s5790_s1 + $0x120] sm:$0xf0]  ;;  %v3819_v31 = vld [vmem:[%s5790_s1 + $0x3cc] sm:$0xf] }
  0x22   : > { %v3533_v37 = vld [vmem:[%s5790_s1 + $0x300] sm:$0xf]  ;;  %v3794_v42 = vld [vmem:[%s5790_s1 + $0x304] sm:$0xf]  ;;  %v3278_v44 = vor.u32 %v3734_v36, %v3277_v35  ;;  %1300 = vmatpush.bf16.msra.mxu1 %v3566_v33  ;;  %v3282_v46 = vor.u32 %v3730_v40, %v3279_v41  ;;  %1478 = vmatpush.bf16.msra.mxu3 %v3570_v38  ;;  %v3639_v32 = vld [vmem:[%s5790_s1 + $0x3e8] sm:$0xf0]  ;;  %v3386_v40 = vor.u32 %v3755_v28, %v3383_v29 }
  0x23   : > { %v3798_v39 = vld [vmem:[%s5790_s1 + $0x31c] sm:$0xf0]  ;;  %v3535_v43 = vld [vmem:[%s5790_s1 + $0x320] sm:$0xf0]  ;;  %v3667_v36 = vld [vmem:[%s4246_s27 + $0x4] sm:$0xf0] }
  0x24   : > { %v3534_v45 = vor.u32 %v3798_v39, %v3533_v37  ;;  %v3245_v47 = vld [vmem:[%s5790_s1 + $0xc0] sm:$0xf]  ;;  %v3538_v50 = vor.u32 %v3794_v42, %v3535_v43  ;;  %v3722_v52 = vld [vmem:[%s5790_s1 + $0xc4] sm:$0xf]  ;;  %1212 = vmatpush.bf16.msra.mxu0 %v3278_v44  ;;  %1390 = vmatpush.bf16.msra.mxu2 %v3282_v46  ;;  %v3023_v39 = vld [vmem:[%s4246_s27 + $0x8] sm:$0xf0]  ;;  %v3642_v44 = vor.u32 %v3819_v31, %v3639_v32 }
  0x25   : > { %v3726_v48 = vld [vmem:[%s5790_s1 + $0xdc] sm:$0xf0]  ;;  %v3247_v53 = vld [vmem:[%s5790_s1 + $0xe0] sm:$0xf0]  ;;  %v3381_v41 = vld [vmem:[%s5790_s1 + $0x1c8] sm:$0xf] }
  0x26   : > { %v3501_v49 = vld [vmem:[%s5790_s1 + $0x2c0] sm:$0xf]  ;;  %v3786_v54 = vld [vmem:[%s5790_s1 + $0x2c4] sm:$0xf]  ;;  %v3246_v56 = vor.u32 %v3726_v48, %v3245_v47  ;;  %1301 = vmatpush.bf16.msra.mxu1 %v3534_v45  ;;  %v3250_v58 = vor.u32 %v3722_v52, %v3247_v53  ;;  %1479 = vmatpush.bf16.msra.mxu3 %v3538_v50  ;;  %v3759_v42 = vld [vmem:[%s5790_s1 + $0x1e4] sm:$0xf0] }
  0x27   : > { %v3790_v51 = vld [vmem:[%s5790_s1 + $0x2dc] sm:$0xf0]  ;;  %v3503_v55 = vld [vmem:[%s5790_s1 + $0x2e0] sm:$0xf0]  ;;  %v3637_v45 = vld [vmem:[%s5790_s1 + $0x3c8] sm:$0xf]  ;;  %v3382_v48 = vor.u32 %v3759_v42, %v3381_v41 }
  0x28   : > { %v3502_v57 = vor.u32 %v3790_v51, %v3501_v49  ;;  %v3213_v59 = vld [vmem:[%s5790_s1 + $0x80] sm:$0xf]  ;;  %v3506_v62 = vor.u32 %v3786_v54, %v3503_v55  ;;  %v3714_v0 = vld [vmem:[%s5790_s1 + $0x84] sm:$0xf]  ;;  %1213 = vmatpush.bf16.msra.mxu0 %v3246_v56  ;;  %1391 = vmatpush.bf16.msra.mxu2 %v3250_v58  ;;  %v3823_v46 = vld [vmem:[%s5790_s1 + $0x3e4] sm:$0xf0] }
  0x29   : > { %v3718_v60 = vld [vmem:[%s5790_s1 + $0x9c] sm:$0xf0]  ;;  %v3215_v1 = vld [vmem:[%s5790_s1 + $0xa0] sm:$0xf0]  ;;  %v3638_v49 = vor.u32 %v3823_v46, %v3637_v45  ;;  %v3747_v50 = vld [vmem:[%s5790_s1 + $0x18c] sm:$0xf] }
  0x2a   : > { %v3469_v61 = vld [vmem:[%s5790_s1 + $0x280] sm:$0xf]  ;;  %v3778_v2 = vld [vmem:[%s5790_s1 + $0x284] sm:$0xf]  ;;  %v3214_v4 = vor.u32 %v3718_v60, %v3213_v59  ;;  %1302 = vmatpush.bf16.msra.mxu1 %v3502_v57  ;;  %v3218_v7 = vor.u32 %v3714_v0, %v3215_v1  ;;  %1480 = vmatpush.bf16.msra.mxu3 %v3506_v62  ;;  %v3351_v51 = vld [vmem:[%s5790_s1 + $0x1a8] sm:$0xf0] }
  0x2b   : > { %v3782_v63 = vld [vmem:[%s5790_s1 + $0x29c] sm:$0xf0]  ;;  %v3471_v3 = vld [vmem:[%s5790_s1 + $0x2a0] sm:$0xf0]  ;;  %v3811_v52 = vld [vmem:[%s5790_s1 + $0x38c] sm:$0xf]  ;;  %v3354_v53 = vor.u32 %v3747_v50, %v3351_v51 }
  0x2c   : > { %v3181_v5 = vld [vmem:[%s5790_s1 + $0x40] sm:$0xf]  ;;  %v3470_v6 = vor.u32 %v3782_v63, %v3469_v61  ;;  %v3474_v11 = vor.u32 %v3778_v2, %v3471_v3  ;;  %v3706_v12 = vld [vmem:[%s5790_s1 + $0x44] sm:$0xf]  ;;  %1214 = vmatpush.bf16.msra.mxu0 %v3214_v4  ;;  %1392 = vmatpush.bf16.msra.mxu2 %v3218_v7  ;;  %v3607_v54 = vld [vmem:[%s5790_s1 + $0x3a8] sm:$0xf0] }
  0x2d   : > { %v3710_v8 = vld [vmem:[%s5790_s1 + $0x5c] sm:$0xf0]  ;;  %v3183_v13 = vld [vmem:[%s5790_s1 + $0x60] sm:$0xf0]  ;;  %v3349_v55 = vld [vmem:[%s5790_s1 + $0x188] sm:$0xf]  ;;  %v3610_v57 = vor.u32 %v3811_v52, %v3607_v54 }
  0x2e   : > { %v3437_v9 = vld [vmem:[%s5790_s1 + $0x240] sm:$0xf]  ;;  %v3770_v14 = vld [vmem:[%s5790_s1 + $0x244] sm:$0xf]  ;;  %v3182_v16 = vor.u32 %v3710_v8, %v3181_v5  ;;  %1303 = vmatpush.bf16.msra.mxu1 %v3470_v6  ;;  %v3186_v21 = vor.u32 %v3706_v12, %v3183_v13  ;;  %1481 = vmatpush.bf16.msra.mxu3 %v3474_v11  ;;  %v3751_v56 = vld [vmem:[%s5790_s1 + $0x1a4] sm:$0xf0] }
  0x2f   : > { %v3774_v10 = vld [vmem:[%s5790_s1 + $0x25c] sm:$0xf0]  ;;  %v3439_v15 = vld [vmem:[%s5790_s1 + $0x260] sm:$0xf0]  ;;  %v3350_v58 = vor.u32 %v3751_v56, %v3349_v55  ;;  %v3605_v59 = vld [vmem:[%s5790_s1 + $0x388] sm:$0xf] }
  0x30   : > { %v3149_v17 = vld [vmem:[%s5790_s1] sm:$0xf]  ;;  %v3438_v20 = vor.u32 %v3774_v10, %v3437_v9  ;;  %v3698_v23 = vld [vmem:[%s5790_s1 + $0x4] sm:$0xf]  ;;  %v3442_v24 = vor.u32 %v3770_v14, %v3439_v15  ;;  %1215 = vmatpush.bf16.msra.mxu0 %v3182_v16  ;;  %1393 = vmatpush.bf16.msra.mxu2 %v3186_v21  ;;  %v3815_v60 = vld [vmem:[%s5790_s1 + $0x3a4] sm:$0xf0] }
  0x31   : > { %v3702_v18 = vld [vmem:[%s5790_s1 + $0x1c] sm:$0xf0]  ;;  %v3151_v25 = vld [vmem:[%s5790_s1 + $0x20] sm:$0xf0]  ;;  %v3606_v61 = vor.u32 %v3815_v60, %v3605_v59  ;;  %v3029_v62 = vld [vmem:[%s4246_s27 + $0x10] sm:$0xf] }
  0x32   : > { %v3405_v19 = vld [vmem:[%s5790_s1 + $0x200] sm:$0xf]  ;;  %v3762_v26 = vld [vmem:[%s5790_s1 + $0x204] sm:$0xf]  ;;  %v3150_v30 = vor.u32 %v3702_v18, %v3149_v17  ;;  %1304 = vmatpush.bf16.msra.mxu1 %v3438_v20  ;;  %v3154_v34 = vor.u32 %v3698_v23, %v3151_v25  ;;  %1482 = vmatpush.bf16.msra.mxu3 %v3442_v24  ;;  %v3669_v63 = vld [vmem:[%s4246_s27 + $0x14] sm:$0xf0] }
  0x33   : > { %v3766_v22 = vld [vmem:[%s5790_s1 + $0x21c] sm:$0xf0]  ;;  %v3407_v27 = vld [vmem:[%s5790_s1 + $0x220] sm:$0xf0]  ;;  %v3668_v0 = vld [vmem:[%s4246_s27 + $0x14] sm:$0xf]  ;;  %v4306_v2 = vor.u32 %v3669_v63, %v3029_v62 }
  0x34   : > { %v3406_v33 = vor.u32 %v3766_v22, %v3405_v19  ;;  %v3021_v35 = vld [vmem:[%s4246_s27] sm:$0xf]  ;;  %v3666_v37 = vld [vmem:[%s4246_s27 + $0x4] sm:$0xf]  ;;  %v3410_v38 = vor.u32 %v3762_v26, %v3407_v27  ;;  %1216 = vmatpush.bf16.msra.mxu0 %v3150_v30  ;;  %1394 = vmatpush.bf16.msra.mxu2 %v3154_v34  ;;  %v3031_v1 = vld [vmem:[%s4246_s27 + $0x18] sm:$0xf0] }
  0x35   : > { %v4264_v43 = vor.u32 %v3667_v36, %v3021_v35  ;;  %v4272_v47 = vor.u32 %v3666_v37, %v3023_v39  ;;  %v4308_v3 = vor.u32 %v3668_v0, %v3031_v1  ;;  %v3037_v4 = vld [vmem:[%s4246_s27 + $0x20] sm:$0xf]  ;;  %v3671_v5 = vld [vmem:[%s4246_s27 + $0x24] sm:$0xf0]  ;;  %v3670_v6 = vld [vmem:[%s4246_s27 + $0x24] sm:$0xf] }
  0x36   : > { %1305 = vmatpush.bf16.msra.mxu1 %v3406_v33  ;;  %1483 = vmatpush.bf16.msra.mxu3 %v3410_v38  ;;  %v3039_v7 = vld [vmem:[%s4246_s27 + $0x28] sm:$0xf0]  ;;  %v4318_v8 = vor.u32 %v3671_v5, %v3037_v4  ;;  %v3317_v15 = vld [vmem:[%s5790_s1 + $0x148] sm:$0xf]  ;;  %v3045_v22 = vld [vmem:[%s4246_s27 + $0x30] sm:$0xf] }
  0x37   : > { %1217 = vmatmul.bf16.vlgmr.msra.gmra.mxu0 %v4264_v43  ;;  %1395 = vmatmul.bf16.vlgmr.msra.gmra.mxu2 %v4264_v43  ;;  %v4320_v9 = vor.u32 %v3670_v6, %v3039_v7  ;;  %v3739_v10 = vld [vmem:[%s5790_s1 + $0x14c] sm:$0xf]  ;;  %v3743_v16 = vld [vmem:[%s5790_s1 + $0x164] sm:$0xf0]  ;;  %v3673_v23 = vld [vmem:[%s4246_s27 + $0x34] sm:$0xf0] }
  0x38   : > { %1743 = vmatpush.bf16.msrb.mxu2 %v3386_v40  ;;  %1565 = vmatpush.bf16.msrb.mxu0 %v3382_v48  ;;  %v3319_v11 = vld [vmem:[%s5790_s1 + $0x168] sm:$0xf0]  ;;  %v3318_v18 = vor.u32 %v3743_v16, %v3317_v15  ;;  %v3573_v19 = vld [vmem:[%s5790_s1 + $0x348] sm:$0xf]  ;;  %v3672_v24 = vld [vmem:[%s4246_s27 + $0x34] sm:$0xf]  ;;  %v4354_v26 = vor.u32 %v3673_v23, %v3045_v22 }
  0x39   : > { %1306 = vmatmul.bf16.vlgmr.msra.gmra.mxu1 %v4272_v47  ;;  %1484 = vmatmul.bf16.vlgmr.msra.gmra.mxu3 %v4272_v47  ;;  %v3803_v12 = vld [vmem:[%s5790_s1 + $0x34c] sm:$0xf]  ;;  %v3322_v13 = vor.u32 %v3739_v10, %v3319_v11  ;;  %v3807_v20 = vld [vmem:[%s5790_s1 + $0x364] sm:$0xf0]  ;;  %v3047_v25 = vld [vmem:[%s4246_s27 + $0x38] sm:$0xf0] }
  0x3a   : > { %1832 = vmatpush.bf16.msrb.mxu3 %v3642_v44  ;;  %1654 = vmatpush.bf16.msrb.mxu1 %v3638_v49  ;;  %v3575_v14 = vld [vmem:[%s5790_s1 + $0x368] sm:$0xf0]  ;;  %v3574_v21 = vor.u32 %v3807_v20, %v3573_v19  ;;  %v4356_v27 = vor.u32 %v3672_v24, %v3047_v25  ;;  %v3053_v28 = vld [vmem:[%s4246_s27 + $0x40] sm:$0xf]  ;;  %v3675_v29 = vld [vmem:[%s4246_s27 + $0x44] sm:$0xf0] }
  0x3b   : > { %v3578_v17 = vor.u32 %v3803_v12, %v3575_v14  ;;  %v3674_v30 = vld [vmem:[%s4246_s27 + $0x44] sm:$0xf]  ;;  %v3055_v31 = vld [vmem:[%s4246_s27 + $0x48] sm:$0xf0]  ;;  %v4366_v32 = vor.u32 %v3675_v29, %v3053_v28  ;;  %v3285_v39 = vld [vmem:[%s5790_s1 + $0x108] sm:$0xf] }
  0x3c   : > { %1744 = vmatpush.bf16.msrb.mxu2 %v3354_v53  ;;  %1566 = vmatpush.bf16.msrb.mxu0 %v3350_v58  ;;  %v4368_v33 = vor.u32 %v3674_v30, %v3055_v31  ;;  %v3731_v34 = vld [vmem:[%s5790_s1 + $0x10c] sm:$0xf]  ;;  %v3735_v40 = vld [vmem:[%s5790_s1 + $0x124] sm:$0xf0]  ;;  %v3061_v48 = vld [vmem:[%s4246_s27 + $0x50] sm:$0xf] }
  0x3d   : > { %v3287_v35 = vld [vmem:[%s5790_s1 + $0x128] sm:$0xf0]  ;;  %v3286_v42 = vor.u32 %v3735_v40, %v3285_v39  ;;  %v3541_v44 = vld [vmem:[%s5790_s1 + $0x308] sm:$0xf]  ;;  %v3677_v49 = vld [vmem:[%s4246_s27 + $0x54] sm:$0xf0] }
  0x3e   : > { %1833 = vmatpush.bf16.msrb.mxu3 %v3610_v57  ;;  %1655 = vmatpush.bf16.msrb.mxu1 %v3606_v61  ;;  %v3795_v36 = vld [vmem:[%s5790_s1 + $0x30c] sm:$0xf]  ;;  %v3290_v37 = vor.u32 %v3731_v34, %v3287_v35  ;;  %v3799_v45 = vld [vmem:[%s5790_s1 + $0x324] sm:$0xf0]  ;;  %v3676_v50 = vld [vmem:[%s4246_s27 + $0x54] sm:$0xf]  ;;  %v4402_v52 = vor.u32 %v3677_v49, %v3061_v48 }
  0x3f   : > { %v3543_v38 = vld [vmem:[%s5790_s1 + $0x328] sm:$0xf0]  ;;  %v3542_v46 = vor.u32 %v3799_v45, %v3541_v44  ;;  %v3063_v51 = vld [vmem:[%s4246_s27 + $0x58] sm:$0xf0]  ;;  %v3069_v54 = vld [vmem:[%s4246_s27 + $0x60] sm:$0xf] }
  0x40   : > { %1745 = vmatpush.bf16.msrb.mxu2 %v3322_v13  ;;  %1567 = vmatpush.bf16.msrb.mxu0 %v3318_v18  ;;  %v3546_v41 = vor.u32 %v3795_v36, %v3543_v38  ;;  %v4404_v53 = vor.u32 %v3676_v50, %v3063_v51  ;;  %v3679_v55 = vld [vmem:[%s4246_s27 + $0x64] sm:$0xf0]  ;;  %v3678_v56 = vld [vmem:[%s4246_s27 + $0x64] sm:$0xf]  ;;  %v3071_v57 = vld [vmem:[%s4246_s27 + $0x68] sm:$0xf0] }
  0x41   : > { %v4414_v58 = vor.u32 %v3679_v55, %v3069_v54  ;;  %v4416_v59 = vor.u32 %v3678_v56, %v3071_v57  ;;  %v3723_v60 = vld [vmem:[%s5790_s1 + $0xcc] sm:$0xf]  ;;  %v3077_v4 = vld [vmem:[%s4246_s27 + $0x70] sm:$0xf]  ;;  %v3681_v5 = vld [vmem:[%s4246_s27 + $0x74] sm:$0xf0] }
  0x42   : > { %1834 = vmatpush.bf16.msrb.mxu3 %v3578_v17  ;;  %1656 = vmatpush.bf16.msrb.mxu1 %v3574_v21  ;;  %v3255_v61 = vld [vmem:[%s5790_s1 + $0xe8] sm:$0xf0]  ;;  %v3680_v6 = vld [vmem:[%s4246_s27 + $0x74] sm:$0xf]  ;;  %v3079_v7 = vld [vmem:[%s4246_s27 + $0x78] sm:$0xf0]  ;;  %v4450_v15 = vor.u32 %v3681_v5, %v3077_v4 }
  0x43   : > { %v3787_v62 = vld [vmem:[%s5790_s1 + $0x2cc] sm:$0xf]  ;;  %v3258_v63 = vor.u32 %v3723_v60, %v3255_v61  ;;  %v3253_v10 = vld [vmem:[%s5790_s1 + $0xc8] sm:$0xf]  ;;  %v4452_v17 = vor.u32 %v3680_v6, %v3079_v7  ;;  %v391_v18 = vld [vmem:[%s5791_s2] sm:$0xff] }
  0x44   : > { %1746 = vmatpush.bf16.msrb.mxu2 %v3290_v37  ;;  %1568 = vmatpush.bf16.msrb.mxu0 %v3286_v42  ;;  %v3511_v0 = vld [vmem:[%s5790_s1 + $0x2e8] sm:$0xf0]  ;;  %v3727_v11 = vld [vmem:[%s5790_s1 + $0xe4] sm:$0xf0]  ;;  %v3085_v19 = vld [vmem:[%s4246_s27 + $0x80] sm:$0xf] }
  0x45   : > { %v3514_v1 = vor.u32 %v3787_v62, %v3511_v0  ;;  %v3509_v12 = vld [vmem:[%s5790_s1 + $0x2c8] sm:$0xf]  ;;  %v3254_v13 = vor.u32 %v3727_v11, %v3253_v10  ;;  %v4464_v21 = vperm.slane %v391_v18, 0  ;;  %v3682_v22 = vld [vmem:[%s4246_s27 + $0x84] sm:$0xf]  ;;  %v4478_v34 = vperm.slane %v391_v18, 1 }
  0x46   : > { %1835 = vmatpush.bf16.msrb.mxu3 %v3546_v41  ;;  %1657 = vmatpush.bf16.msrb.mxu1 %v3542_v46  ;;  %v3791_v14 = vld [vmem:[%s5790_s1 + $0x2e4] sm:$0xf0]  ;;  %v3087_v23 = vld [vmem:[%s4246_s27 + $0x88] sm:$0xf0]  ;;  %v3093_v51 = vld [vmem:[%s4246_s27 + $0x90] sm:$0xf] }
  0x47   : > { %1222 = vmatmul.bf16.gmra.mxu0 %v4306_v2  ;;  %1400 = vmatmul.bf16.gmra.mxu2 %v4306_v2  ;;  %v3510_v16 = vor.u32 %v3791_v14, %v3509_v12  ;;  %v3683_v20 = vld [vmem:[%s4246_s27 + $0x84] sm:$0xf0]  ;;  %v4472_v28 = vor.u32 %v3682_v22, %v3087_v23  ;;  %v3715_v35 = vld [vmem:[%s5790_s1 + $0x8c] sm:$0xf]  ;;  %v3685_v54 = vld [vmem:[%s4246_s27 + $0x94] sm:$0xf0] }
  0x48   : > { %1747 = vmatpush.bf16.msrb.mxu2 %v3258_v63  ;;  %1569 = vmatpush.bf16.msrb.mxu0 %v3254_v13  ;;  %v4470_v24 = vor.u32 %v3683_v20, %v3085_v19  ;;  %v3223_v36 = vld [vmem:[%s5790_s1 + $0xa8] sm:$0xf0]  ;;  %v3684_v55 = vld [vmem:[%s4246_s27 + $0x94] sm:$0xf]  ;;  %v3095_v56 = vld [vmem:[%s4246_s27 + $0x98] sm:$0xf0] }
  0x49   : > { %1311 = vmatmul.bf16.gmra.mxu1 %v4308_v3  ;;  %1489 = vmatmul.bf16.gmra.mxu3 %v4308_v3  ;;  %v3779_v37 = vld [vmem:[%s5790_s1 + $0x28c] sm:$0xf]  ;;  %v3226_v38 = vor.u32 %v3715_v35, %v3223_v36  ;;  %v3221_v57 = vld [vmem:[%s5790_s1 + $0x88] sm:$0xf]  ;;  %v4519_v10 = vor.u32 %v3684_v55, %v3095_v56  ;;  %v3686_v35 = vld [vmem:[%s4246_s27 + $0xa4] sm:$0xf] }
  0x4a   : > { %1836 = vmatpush.bf16.msrb.mxu3 %v3514_v1  ;;  %1658 = vmatpush.bf16.msrb.mxu1 %v3510_v16  ;;  %v3479_v39 = vld [vmem:[%s5790_s1 + $0x2a8] sm:$0xf0]  ;;  %v3719_v60 = vld [vmem:[%s5790_s1 + $0xa4] sm:$0xf0]  ;;  %v4516_v1 = vor.u32 %v3685_v54, %v3093_v51 }
  0x4b   : > { %v3482_v41 = vor.u32 %v3779_v37, %v3479_v39  ;;  %v3222_v61 = vor.u32 %v3719_v60, %v3221_v57  ;;  %v3477_v62 = vld [vmem:[%s5790_s1 + $0x288] sm:$0xf]  ;;  %v3103_v36 = vld [vmem:[%s4246_s27 + $0xa8] sm:$0xf0] }
  0x4c   : > { %1748 = vmatpush.bf16.msrb.mxu2 %v3226_v38  ;;  %v3783_v63 = vld [vmem:[%s5790_s1 + $0x2a4] sm:$0xf0]  ;;  %v3771_v54 = vld [vmem:[%s5790_s1 + $0x24c] sm:$0xf] }
  0x4d   : > { %v3478_v4 = vor.u32 %v3783_v63, %v3477_v62  ;;  %1570 = vmatpush.bf16.msrb.mxu0 %v3222_v61  ;;  %v3447_v55 = vld [vmem:[%s5790_s1 + $0x268] sm:$0xf0] }
  0x4e   : > { %1837 = vmatpush.bf16.msrb.mxu3 %v3482_v41  ;;  %v3450_v57 = vor.u32 %v3771_v54, %v3447_v55  ;;  %v3691_v54 = vld [vmem:[%s4246_s27 + $0xc4] sm:$0xf0]  ;;  %v3690_v55 = vld [vmem:[%s4246_s27 + $0xc4] sm:$0xf] }
  0x4f   : > { %1659 = vmatpush.bf16.msrb.mxu1 %v3478_v4 }
  0x52   : > { %1838 = vmatpush.bf16.msrb.mxu3 %v3450_v57 }
  0x57   : > { %1227 = vmatmul.bf16.gmra.mxu0 %v4318_v8  ;;  %1405 = vmatmul.bf16.gmra.mxu2 %v4318_v8 }
  0x59   : > { %1316 = vmatmul.bf16.gmra.mxu1 %v4320_v9  ;;  %1494 = vmatmul.bf16.gmra.mxu3 %v4320_v9 }
  0x67   : > { %1232 = vmatmul.bf16.gmra.mxu0 %v4354_v26  ;;  %1410 = vmatmul.bf16.gmra.mxu2 %v4354_v26 }
  0x69   : > { %1321 = vmatmul.bf16.gmra.mxu1 %v4356_v27  ;;  %1499 = vmatmul.bf16.gmra.mxu3 %v4356_v27 }
  0x77   : > { %1237 = vmatmul.bf16.gmra.mxu0 %v4366_v32  ;;  %1415 = vmatmul.bf16.gmra.mxu2 %v4366_v32 }
  0x79   : > { %1326 = vmatmul.bf16.gmra.mxu1 %v4368_v33  ;;  %1504 = vmatmul.bf16.gmra.mxu3 %v4368_v33 }
  0x87   : > { %1242 = vmatmul.bf16.gmra.mxu0 %v4402_v52  ;;  %1420 = vmatmul.bf16.gmra.mxu2 %v4402_v52 }
  0x89   : > { %1331 = vmatmul.bf16.gmra.mxu1 %v4404_v53  ;;  %1509 = vmatmul.bf16.gmra.mxu3 %v4404_v53 }
  0x97   : > { %1247 = vmatmul.bf16.gmra.mxu0 %v4414_v58  ;;  %1425 = vmatmul.bf16.gmra.mxu2 %v4414_v58 }
  0x99   : > { %1336 = vmatmul.bf16.gmra.mxu1 %v4416_v59  ;;  %1514 = vmatmul.bf16.gmra.mxu3 %v4416_v59 }
  0xa7   : > { %1252 = vmatmul.bf16.gmra.mxu0 %v4450_v15  ;;  %1430 = vmatmul.bf16.gmra.mxu2 %v4450_v15 }
  0xa9   : > { %1341 = vmatmul.bf16.gmra.mxu1 %v4452_v17  ;;  %1519 = vmatmul.bf16.gmra.mxu3 %v4452_v17 }
  0xb4   : > { %v1218_v25 = vpop.f32.mrf.mxu0 }
  0xb5   : > { %v1219_v29 = vadd.f32 %v1218_v25, %v4464_v21 }
  0xb6   : > { %v1307_v30 = vpop.f32.mrf.mxu1 }
  0xb7   : > { %v1308_v31 = vadd.f32 %v1307_v30, %v1219_v29  ;;  %1257 = vmatmul.bf16.gmra.mxu0 %v4470_v24  ;;  %1435 = vmatmul.bf16.gmra.mxu2 %v4470_v24  ;;  %v3101_v30 = vld [vmem:[%s4246_s27 + $0xa0] sm:$0xf] }
  0xb9   : > { %1346 = vmatmul.bf16.gmra.mxu1 %v4472_v28  ;;  %2633 = vst [vmem:[%s4480_s28] sm:$0xff] %v1308_v31  ;;  %1524 = vmatmul.bf16.gmra.mxu3 %v4472_v28  ;;  %v3687_v31 = vld [vmem:[%s4246_s27 + $0xa4] sm:$0xf0] }
  0xba   : > { %v1396_v40 = vpop.f32.mrf.mxu2  ;;  %v4536_v38 = vor.u32 %v3687_v31, %v3101_v30 }
  0xbb   : > { %v1397_v42 = vadd.f32 %v1396_v40, %v4478_v34 }
  0xbc   : > { %v1485_v44 = vpop.f32.mrf.mxu3  ;;  %v1220_v45 = vpop.f32.mrf.mxu0 }
  0xbd   : > { %v1221_v46 = vadd.f32 %v1220_v45, %v4464_v21  ;;  %v1486_v49 = vadd.f32 %v1485_v44, %v1397_v42  ;;  %v4539_v42 = vor.u32 %v3686_v35, %v3103_v36 }
  0xbe   : > { %v1309_v48 = vpop.f32.mrf.mxu1 }
  0xbf   : > { %v1310_v50 = vadd.f32 %v1309_v48, %v1221_v46  ;;  %2634 = vst [vmem:[%s4480_s28 + $0x8] sm:$0xff] %v1486_v49  ;;  %v3707_v49 = vld [vmem:[%s5790_s1 + $0x4c] sm:$0xf] }
  0xc1   : > { %2641 = vst [vmem:[%s4480_s28 + $0x40] sm:$0xff] %v1310_v50  ;;  %v3191_v50 = vld [vmem:[%s5790_s1 + $0x68] sm:$0xf0] }
  0xc2   : > { %v1398_v0 = vpop.f32.mrf.mxu2  ;;  %v3194_v51 = vor.u32 %v3707_v49, %v3191_v50 }
  0xc3   : > { %v1399_v5 = vadd.f32 %v1398_v0, %v4478_v34 }
  0xc4   : > { %v1487_v6 = vpop.f32.mrf.mxu3  ;;  %v1223_v7 = vpop.f32.mrf.mxu0  ;;  %1749 = vmatpush.bf16.msrb.mxu2 %v3194_v51  ;;  %v3117_v51 = vld [vmem:[%s4246_s27 + $0xc0] sm:$0xf] }
  0xc5   : > { %v1224_v11 = vadd.f32 %v1223_v7, %v4464_v21  ;;  %v1488_v13 = vadd.f32 %v1487_v6, %v1399_v5  ;;  %v3109_v6 = vld [vmem:[%s4246_s27 + $0xb0] sm:$0xf]  ;;  %v3689_v7 = vld [vmem:[%s4246_s27 + $0xb4] sm:$0xf0] }
  0xc6   : > { %v1312_v12 = vpop.f32.mrf.mxu1 }
  0xc7   : > { %v1313_v14 = vadd.f32 %v1312_v12, %v1224_v11  ;;  %1262 = vmatmul.bf16.gmra.mxu0 %v4516_v1  ;;  %2642 = vst [vmem:[%s4480_s28 + $0x48] sm:$0xff] %v1488_v13  ;;  %1440 = vmatmul.bf16.gmra.mxu2 %v4516_v1  ;;  %v3688_v11 = vld [vmem:[%s4246_s27 + $0xb4] sm:$0xf]  ;;  %v3111_v12 = vld [vmem:[%s4246_s27 + $0xb8] sm:$0xf0] }
  0xc8   : > { %v3189_v13 = vld [vmem:[%s5790_s1 + $0x48] sm:$0xf]  ;;  %v4583_v31 = vor.u32 %v3688_v11, %v3111_v12  ;;  %v3699_v11 = vld [vmem:[%s5790_s1 + $0xc] sm:$0xf] }
  0xc9   : > { %1351 = vmatmul.bf16.gmra.mxu1 %v4519_v10  ;;  %2649 = vst [vmem:[%s4480_s28 + $0x80] sm:$0xff] %v1313_v14  ;;  %1529 = vmatmul.bf16.gmra.mxu3 %v4519_v10  ;;  %v3711_v14 = vld [vmem:[%s5790_s1 + $0x64] sm:$0xf0]  ;;  %v3159_v12 = vld [vmem:[%s5790_s1 + $0x28] sm:$0xf0] }
  0xca   : > { %v1401_v16 = vpop.f32.mrf.mxu2 }
  0xcb   : > { %v1402_v18 = vadd.f32 %v1401_v16, %v4478_v34  ;;  %v3190_v16 = vor.u32 %v3711_v14, %v3189_v13  ;;  %v3162_v13 = vor.u32 %v3699_v11, %v3159_v12  ;;  %v3763_v14 = vld [vmem:[%s5790_s1 + $0x20c] sm:$0xf] }
  0xcc   : > { %v1490_v19 = vpop.f32.mrf.mxu3  ;;  %v1225_v20 = vpop.f32.mrf.mxu0 }
  0xcd   : > { %v1226_v22 = vadd.f32 %v1225_v20, %v4464_v21  ;;  %v1491_v25 = vadd.f32 %v1490_v19, %v1402_v18  ;;  %v3445_v18 = vld [vmem:[%s5790_s1 + $0x248] sm:$0xf]  ;;  %1571 = vmatpush.bf16.msrb.mxu0 %v3190_v16  ;;  %v3415_v16 = vld [vmem:[%s5790_s1 + $0x228] sm:$0xf0]  ;;  %1750 = vmatpush.bf16.msrb.mxu2 %v3162_v13 }
  0xce   : > { %v1314_v23 = vpop.f32.mrf.mxu1  ;;  %v3775_v19 = vld [vmem:[%s5790_s1 + $0x264] sm:$0xf0] }
  0xcf   : > { %v1315_v29 = vadd.f32 %v1314_v23, %v1226_v22  ;;  %2650 = vst [vmem:[%s4480_s28 + $0x88] sm:$0xff] %v1491_v25  ;;  %v4580_v22 = vor.u32 %v3689_v7, %v3109_v6  ;;  %v3446_v23 = vor.u32 %v3775_v19, %v3445_v18  ;;  %v3418_v19 = vor.u32 %v3763_v14, %v3415_v16 }
  0xd1   : > { %2657 = vst [vmem:[%s4480_s28 + $0xc0] sm:$0xff] %v1315_v29  ;;  %1660 = vmatpush.bf16.msrb.mxu1 %v3446_v23  ;;  %1839 = vmatpush.bf16.msrb.mxu3 %v3418_v19  ;;  %v3133_v19 = vld [vmem:[%s4246_s27 + $0xe0] sm:$0xf] }
  0xd2   : > { %v1403_v37 = vpop.f32.mrf.mxu2 }
  0xd3   : > { %v1404_v39 = vadd.f32 %v1403_v37, %v4478_v34 }
  0xd4   : > { %v1492_v40 = vpop.f32.mrf.mxu3  ;;  %v1228_v41 = vpop.f32.mrf.mxu0 }
  0xd5   : > { %v1229_v44 = vadd.f32 %v1228_v41, %v4464_v21  ;;  %v1493_v46 = vadd.f32 %v1492_v40, %v1404_v39 }
  0xd6   : > { %v1317_v45 = vpop.f32.mrf.mxu1 }
  0xd7   : > { %v1318_v48 = vadd.f32 %v1317_v45, %v1229_v44  ;;  %1267 = vmatmul.bf16.gmra.mxu0 %v4536_v38  ;;  %2658 = vst [vmem:[%s4480_s28 + $0xc8] sm:$0xff] %v1493_v46  ;;  %1445 = vmatmul.bf16.gmra.mxu2 %v4536_v38 }
  0xd9   : > { %1356 = vmatmul.bf16.gmra.mxu1 %v4539_v42  ;;  %2665 = vst [vmem:[%s4480_s28 + $0x100] sm:$0xff] %v1318_v48  ;;  %1534 = vmatmul.bf16.gmra.mxu3 %v4539_v42 }
  0xda   : > { %v1406_v56 = vpop.f32.mrf.mxu2 }
  0xdb   : > { %v1407_v60 = vadd.f32 %v1406_v56, %v4478_v34  ;;  %v3119_v56 = vld [vmem:[%s4246_s27 + $0xc8] sm:$0xf0] }
  0xdc   : > { %v1495_v61 = vpop.f32.mrf.mxu3  ;;  %v1230_v62 = vpop.f32.mrf.mxu0 }
  0xdd   : > { %v1231_v63 = vadd.f32 %v1230_v62, %v4464_v21  ;;  %v1496_v4 = vadd.f32 %v1495_v61, %v1407_v60  ;;  %v4600_v60 = vor.u32 %v3691_v54, %v3117_v51 }
  0xde   : > { %v1319_v0 = vpop.f32.mrf.mxu1 }
  0xdf   : > { %v1320_v5 = vadd.f32 %v1319_v0, %v1231_v63  ;;  %2666 = vst [vmem:[%s4480_s28 + $0x108] sm:$0xff] %v1496_v4  ;;  %v4603_v0 = vor.u32 %v3690_v55, %v3119_v56 }
  0xe1   : > { %2673 = vst [vmem:[%s4480_s28 + $0x140] sm:$0xff] %v1320_v5 }
  0xe2   : > { %v1408_v20 = vpop.f32.mrf.mxu2 }
  0xe3   : > { %v1409_v25 = vadd.f32 %v1408_v20, %v4478_v34 }
  0xe4   : > { %v1497_v29 = vpop.f32.mrf.mxu3  ;;  %v1233_v30 = vpop.f32.mrf.mxu0 }
  0xe5   : > { %v1234_v35 = vadd.f32 %v1233_v30, %v4464_v21  ;;  %v1498_v37 = vadd.f32 %v1497_v29, %v1409_v25 }
  0xe6   : > { %v1322_v36 = vpop.f32.mrf.mxu1 }
  0xe7   : > { %v1323_v39 = vadd.f32 %v1322_v36, %v1234_v35  ;;  %1272 = vmatmul.bf16.gmra.mxu0 %v4580_v22  ;;  %2674 = vst [vmem:[%s4480_s28 + $0x148] sm:$0xff] %v1498_v37  ;;  %1450 = vmatmul.bf16.gmra.mxu2 %v4580_v22  ;;  %v3125_v37 = vld [vmem:[%s4246_s27 + $0xd0] sm:$0xf] }
  0xe9   : > { %1361 = vmatmul.bf16.gmra.mxu1 %v4583_v31  ;;  %2681 = vst [vmem:[%s4480_s28 + $0x180] sm:$0xff] %v1323_v39  ;;  %1539 = vmatmul.bf16.gmra.mxu3 %v4583_v31  ;;  %v3693_v39 = vld [vmem:[%s4246_s27 + $0xd4] sm:$0xf0] }
  0xea   : > { %v1411_v40 = vpop.f32.mrf.mxu2  ;;  %v4644_v51 = vor.u32 %v3693_v39, %v3125_v37 }
  0xeb   : > { %v1412_v41 = vadd.f32 %v1411_v40, %v4478_v34  ;;  %v3692_v40 = vld [vmem:[%s4246_s27 + $0xd4] sm:$0xf] }
  0xec   : > { %v1500_v44 = vpop.f32.mrf.mxu3  ;;  %v1235_v45 = vpop.f32.mrf.mxu0 }
  0xed   : > { %v1236_v46 = vadd.f32 %v1235_v45, %v4464_v21  ;;  %v1501_v49 = vadd.f32 %v1500_v44, %v1412_v41  ;;  %v3127_v41 = vld [vmem:[%s4246_s27 + $0xd8] sm:$0xf0]  ;;  %v3157_v44 = vld [vmem:[%s5790_s1 + $0x8] sm:$0xf] }
  0xee   : > { %v1324_v48 = vpop.f32.mrf.mxu1  ;;  %v3703_v45 = vld [vmem:[%s5790_s1 + $0x24] sm:$0xf0] }
  0xef   : > { %v1325_v50 = vadd.f32 %v1324_v48, %v1236_v46  ;;  %2682 = vst [vmem:[%s4480_s28 + $0x188] sm:$0xff] %v1501_v49  ;;  %v3158_v46 = vor.u32 %v3703_v45, %v3157_v44  ;;  %v3413_v48 = vld [vmem:[%s5790_s1 + $0x208] sm:$0xf] }
  0xf0   : > { %v3767_v49 = vld [vmem:[%s5790_s1 + $0x224] sm:$0xf0] }
  0xf1   : > { %2689 = vst [vmem:[%s4480_s28 + $0x1c0] sm:$0xff] %v1325_v50  ;;  %v3414_v54 = vor.u32 %v3767_v49, %v3413_v48  ;;  %1572 = vmatpush.bf16.msrb.mxu0 %v3158_v46  ;;  %v3756_v46 = vld [vmem:[%s5790_s1 + $0x1d4] sm:$0xf] }
  0xf2   : > { %v1413_v57 = vpop.f32.mrf.mxu2  ;;  %v3391_v48 = vld [vmem:[%s5790_s1 + $0x1f0] sm:$0xf0] }
  0xf3   : > { %v1414_v61 = vadd.f32 %v1413_v57, %v4478_v34  ;;  %1661 = vmatpush.bf16.msrb.mxu1 %v3414_v54  ;;  %v3394_v49 = vor.u32 %v3756_v46, %v3391_v48  ;;  %v3647_v54 = vld [vmem:[%s5790_s1 + $0x3f0] sm:$0xf0] }
  0xf4   : > { %v1502_v62 = vpop.f32.mrf.mxu3  ;;  %v1238_v63 = vpop.f32.mrf.mxu0 }
  0xf5   : > { %v1239_v4 = vadd.f32 %v1238_v63, %v4464_v21  ;;  %v1503_v6 = vadd.f32 %v1502_v62, %v1414_v61  ;;  %v4647_v61 = vor.u32 %v3692_v40, %v3127_v41  ;;  %2099 = vmatpush.bf16.msra.mxu2 %v3394_v49 }
  0xf6   : > { %v1327_v5 = vpop.f32.mrf.mxu1 }
  0xf7   : > { %v1328_v7 = vadd.f32 %v1327_v5, %v1239_v4  ;;  %1277 = vmatmul.bf16.gmra.mxu0 %v4600_v60  ;;  %2690 = vst [vmem:[%s4480_s28 + $0x1c8] sm:$0xff] %v1503_v6  ;;  %1455 = vmatmul.bf16.gmra.mxu2 %v4600_v60 }
  0xf9   : > { %1366 = vmatmul.bf16.gmra.mxu1 %v4603_v0  ;;  %2697 = vst [vmem:[%s4480_s28 + $0x200] sm:$0xff] %v1328_v7  ;;  %1544 = vmatmul.bf16.gmra.mxu3 %v4603_v0 }
  0xfa   : > { %v1416_v18 = vpop.f32.mrf.mxu2 }
  0xfb   : > { %v1417_v20 = vadd.f32 %v1416_v18, %v4478_v34 }
  0xfc   : > { %v1505_v23 = vpop.f32.mrf.mxu3  ;;  %v1240_v25 = vpop.f32.mrf.mxu0 }
  0xfd   : > { %v1241_v29 = vadd.f32 %v1240_v25, %v4464_v21  ;;  %v1506_v35 = vadd.f32 %v1505_v23, %v1417_v20  ;;  %v3695_v20 = vld [vmem:[%s4246_s27 + $0xe4] sm:$0xf0]  ;;  %v3694_v23 = vld [vmem:[%s4246_s27 + $0xe4] sm:$0xf]  ;;  %v3135_v25 = vld [vmem:[%s4246_s27 + $0xe8] sm:$0xf0] }
  0xfe   : > { %v1329_v30 = vpop.f32.mrf.mxu1  ;;  %v4667_v39 = vor.u32 %v3694_v23, %v3135_v25  ;;  %v3824_v23 = vld [vmem:[%s5790_s1 + $0x3ec] sm:$0xf0] }
  0xff   : > { %v1330_v36 = vadd.f32 %v1329_v30, %v1241_v29  ;;  %2698 = vst [vmem:[%s4480_s28 + $0x208] sm:$0xff] %v1506_v35  ;;  %v4664_v30 = vor.u32 %v3695_v20, %v3133_v19  ;;  %v3645_v20 = vld [vmem:[%s5790_s1 + $0x3d0] sm:$0xf] }
 0x101   : > { %2705 = vst [vmem:[%s4480_s28 + $0x240] sm:$0xff] %v1330_v36 }
 0x102   : > { %v1418_v50 = vpop.f32.mrf.mxu2 }
 0x103   : > { %v1419_v55 = vadd.f32 %v1418_v50, %v4478_v34  ;;  %v3820_v50 = vld [vmem:[%s5790_s1 + $0x3d4] sm:$0xf] }
 0x104   : > { %v1507_v56 = vpop.f32.mrf.mxu3  ;;  %v1243_v57 = vpop.f32.mrf.mxu0 }
 0x105   : > { %v1244_v62 = vadd.f32 %v1243_v57, %v4464_v21  ;;  %v1508_v4 = vadd.f32 %v1507_v56, %v1419_v55  ;;  %v3650_v56 = vor.u32 %v3820_v50, %v3647_v54 }
 0x106   : > { %v1332_v63 = vpop.f32.mrf.mxu1 }
 0x107   : > { %v1333_v5 = vadd.f32 %v1332_v63, %v1244_v62  ;;  %1282 = vmatmul.bf16.gmra.mxu0 %v4644_v51  ;;  %2706 = vst [vmem:[%s4480_s28 + $0x248] sm:$0xff] %v1508_v4  ;;  %1460 = vmatmul.bf16.gmra.mxu2 %v4644_v51 }
 0x108   : > { %2188 = vmatpush.bf16.msra.mxu3 %v3650_v56 }
 0x109   : > { %1371 = vmatmul.bf16.gmra.mxu1 %v4647_v61  ;;  %2713 = vst [vmem:[%s4480_s28 + $0x280] sm:$0xff] %v1333_v5  ;;  %1549 = vmatmul.bf16.gmra.mxu3 %v4647_v61 }
 0x10a   : > { %v1421_v6 = vpop.f32.mrf.mxu2 }
 0x10b   : > { %v1422_v7 = vadd.f32 %v1421_v6, %v4478_v34 }
 0x10c   : > { %v1510_v11 = vpop.f32.mrf.mxu3  ;;  %v1245_v12 = vpop.f32.mrf.mxu0 }
 0x10d   : > { %v1246_v13 = vadd.f32 %v1245_v12, %v4464_v21  ;;  %v1511_v16 = vadd.f32 %v1510_v11, %v1422_v7  ;;  %v3141_v11 = vld [vmem:[%s4246_s27 + $0xf0] sm:$0xf]  ;;  %v3697_v12 = vld [vmem:[%s4246_s27 + $0xf4] sm:$0xf0] }
 0x10e   : > { %v1334_v14 = vpop.f32.mrf.mxu1 }
 0x10f   : > { %v1335_v18 = vadd.f32 %v1334_v14, %v1246_v13  ;;  %2714 = vst [vmem:[%s4480_s28 + $0x288] sm:$0xff] %v1511_v16  ;;  %v3696_v13 = vld [vmem:[%s4246_s27 + $0xf4] sm:$0xf]  ;;  %v3143_v14 = vld [vmem:[%s4246_s27 + $0xf8] sm:$0xf0] }
 0x110   : > { %v3389_v16 = vld [vmem:[%s5790_s1 + $0x1d0] sm:$0xf] }
 0x111   : > { %2721 = vst [vmem:[%s4480_s28 + $0x2c0] sm:$0xff] %v1335_v18  ;;  %v3760_v18 = vld [vmem:[%s5790_s1 + $0x1ec] sm:$0xf0] }
 0x112   : > { %v1423_v29 = vpop.f32.mrf.mxu2  ;;  %v3390_v19 = vor.u32 %v3760_v18, %v3389_v16  ;;  %v3748_v16 = vld [vmem:[%s5790_s1 + $0x194] sm:$0xf] }
 0x113   : > { %v1424_v35 = vadd.f32 %v1423_v29, %v4478_v34  ;;  %v4708_v29 = vor.u32 %v3697_v12, %v3141_v11  ;;  %v3359_v18 = vld [vmem:[%s5790_s1 + $0x1b0] sm:$0xf0] }
 0x114   : > { %v1512_v36 = vpop.f32.mrf.mxu3  ;;  %v1248_v37 = vpop.f32.mrf.mxu0  ;;  %1921 = vmatpush.bf16.msra.mxu0 %v3390_v19  ;;  %v3362_v19 = vor.u32 %v3748_v16, %v3359_v18 }
 0x115   : > { %v1249_v40 = vadd.f32 %v1248_v37, %v4464_v21  ;;  %v1513_v44 = vadd.f32 %v1512_v36, %v1424_v35  ;;  %v3646_v35 = vor.u32 %v3824_v23, %v3645_v20  ;;  %v3812_v20 = vld [vmem:[%s5790_s1 + $0x394] sm:$0xf] }
 0x116   : > { %v1337_v41 = vpop.f32.mrf.mxu1  ;;  %v3615_v23 = vld [vmem:[%s5790_s1 + $0x3b0] sm:$0xf0]  ;;  %2100 = vmatpush.bf16.msra.mxu2 %v3362_v19 }
 0x117   : > { %v1338_v45 = vadd.f32 %v1337_v41, %v1249_v40  ;;  %1287 = vmatmul.bf16.gmra.mxu0 %v4664_v30  ;;  %2722 = vst [vmem:[%s4480_s28 + $0x2c8] sm:$0xff] %v1513_v44  ;;  %1465 = vmatmul.bf16.gmra.mxu2 %v4664_v30  ;;  %v4711_v41 = vor.u32 %v3696_v13, %v3143_v14 }
 0x118   : > { %2010 = vmatpush.bf16.msra.mxu1 %v3646_v35  ;;  %v3618_v35 = vor.u32 %v3812_v20, %v3615_v23 }
 0x119   : > { %1376 = vmatmul.bf16.gmra.mxu1 %v4667_v39  ;;  %2729 = vst [vmem:[%s4480_s28 + $0x300] sm:$0xff] %v1338_v45  ;;  %1554 = vmatmul.bf16.gmra.mxu3 %v4667_v39 }
 0x11a   : > { %v1426_v55 = vpop.f32.mrf.mxu2  ;;  %2189 = vmatpush.bf16.msra.mxu3 %v3618_v35 }
 0x11b   : > { %v1427_v57 = vadd.f32 %v1426_v55, %v4478_v34 }
 0x11c   : > { %v1515_v62 = vpop.f32.mrf.mxu3  ;;  %v1250_v63 = vpop.f32.mrf.mxu0 }
 0x11d   : > { %v1251_v4 = vadd.f32 %v1250_v63, %v4464_v21  ;;  %v1516_v6 = vadd.f32 %v1515_v62, %v1427_v57 }
 0x11e   : > { %v1339_v5 = vpop.f32.mrf.mxu1 }
 0x11f   : > { %v1340_v7 = vadd.f32 %v1339_v5, %v1251_v4  ;;  %2730 = vst [vmem:[%s4480_s28 + $0x308] sm:$0xff] %v1516_v6 }
 0x121   : > { %2737 = vst [vmem:[%s4480_s28 + $0x340] sm:$0xff] %v1340_v7 }
 0x122   : > { %v1428_v25 = vpop.f32.mrf.mxu2 }
 0x123   : > { %v1429_v36 = vadd.f32 %v1428_v25, %v4478_v34 }
 0x124   : > { %v1517_v37 = vpop.f32.mrf.mxu3  ;;  %v1253_v40 = vpop.f32.mrf.mxu0 }
 0x125   : > { %v1254_v44 = vadd.f32 %v1253_v40, %v4464_v21  ;;  %v1518_v46 = vadd.f32 %v1517_v37, %v1429_v36 }
 0x126   : > { %v1342_v45 = vpop.f32.mrf.mxu1 }
 0x127   : > { %v1343_v48 = vadd.f32 %v1342_v45, %v1254_v44  ;;  %1292 = vmatmul.bf16.gmra.mxu0 %v4708_v29  ;;  %2738 = vst [vmem:[%s4480_s28 + $0x348] sm:$0xff] %v1518_v46  ;;  %1470 = vmatmul.bf16.gmra.mxu2 %v4708_v29 }
 0x129   : > { %1381 = vmatmul.bf16.gmra.mxu1 %v4711_v41  ;;  %2745 = vst [vmem:[%s4480_s28 + $0x380] sm:$0xff] %v1343_v48  ;;  %1559 = vmatmul.bf16.gmra.mxu3 %v4711_v41 }
 0x12a   : > { %v1431_v49 = vpop.f32.mrf.mxu2 }
 0x12b   : > { %v1432_v50 = vadd.f32 %v1431_v49, %v4478_v34  ;;  %v3357_v49 = vld [vmem:[%s5790_s1 + $0x190] sm:$0xf] }
 0x12c   : > { %v1520_v54 = vpop.f32.mrf.mxu3  ;;  %v1255_v55 = vpop.f32.mrf.mxu0 }
 0x12d   : > { %v1256_v56 = vadd.f32 %v1255_v55, %v4464_v21  ;;  %v1521_v62 = vadd.f32 %v1520_v54, %v1432_v50  ;;  %v3752_v50 = vld [vmem:[%s5790_s1 + $0x1ac] sm:$0xf0] }
 0x12e   : > { %v1344_v57 = vpop.f32.mrf.mxu1  ;;  %v3358_v54 = vor.u32 %v3752_v50, %v3357_v49  ;;  %v3613_v55 = vld [vmem:[%s5790_s1 + $0x390] sm:$0xf]  ;;  %v3740_v49 = vld [vmem:[%s5790_s1 + $0x154] sm:$0xf] }
 0x12f   : > { %v1345_v63 = vadd.f32 %v1344_v57, %v1256_v56  ;;  %2746 = vst [vmem:[%s4480_s28 + $0x388] sm:$0xff] %v1521_v62  ;;  %v3816_v56 = vld [vmem:[%s5790_s1 + $0x3ac] sm:$0xf0]  ;;  %v3327_v50 = vld [vmem:[%s5790_s1 + $0x170] sm:$0xf0] }
 0x130   : > { %v3614_v62 = vor.u32 %v3816_v56, %v3613_v55  ;;  %1922 = vmatpush.bf16.msra.mxu0 %v3358_v54  ;;  %v3330_v54 = vor.u32 %v3740_v49, %v3327_v50  ;;  %v3804_v55 = vld [vmem:[%s5790_s1 + $0x354] sm:$0xf] }
 0x131   : > { %2753 = vst [vmem:[%s4480_s28 + $0x3c0] sm:$0xff] %v1345_v63  ;;  %v3583_v56 = vld [vmem:[%s5790_s1 + $0x370] sm:$0xf0] }
 0x132   : > { %v1433_v4 = vpop.f32.mrf.mxu2  ;;  %2011 = vmatpush.bf16.msra.mxu1 %v3614_v62  ;;  %v3586_v62 = vor.u32 %v3804_v55, %v3583_v56  ;;  %2101 = vmatpush.bf16.msra.mxu2 %v3330_v54 }
 0x133   : > { %v1434_v5 = vadd.f32 %v1433_v4, %v4478_v34 }
 0x134   : > { %v1522_v6 = vpop.f32.mrf.mxu3  ;;  %v1258_v7 = vpop.f32.mrf.mxu0  ;;  %2190 = vmatpush.bf16.msra.mxu3 %v3586_v62 }
 0x135   : > { %v1259_v11 = vadd.f32 %v1258_v7, %v4464_v21  ;;  %v1523_v13 = vadd.f32 %v1522_v6, %v1434_v5 }
 0x136   : > { %v1347_v12 = vpop.f32.mrf.mxu1 }
 0x137   : > { %v1348_v14 = vadd.f32 %v1347_v12, %v1259_v11  ;;  %1573 = vmatmul.bf16.vlgmr.msrb.gmra.mxu0 %v4264_v43  ;;  %2754 = vst [vmem:[%s4480_s28 + $0x3c8] sm:$0xff] %v1523_v13  ;;  %1751 = vmatmul.bf16.vlgmr.msrb.gmra.mxu2 %v4264_v43 }
 0x139   : > { %1662 = vmatmul.bf16.vlgmr.msrb.gmra.mxu1 %v4272_v47  ;;  %2761 = vst [vmem:[%s4480_s28 + $0x400] sm:$0xff] %v1348_v14  ;;  %1840 = vmatmul.bf16.vlgmr.msrb.gmra.mxu3 %v4272_v47 }
 0x13a   : > { %v1436_v25 = vpop.f32.mrf.mxu2 }
 0x13b   : > { %v1437_v36 = vadd.f32 %v1436_v25, %v4478_v34 }
 0x13c   : > { %v1525_v37 = vpop.f32.mrf.mxu3  ;;  %v1260_v40 = vpop.f32.mrf.mxu0 }
 0x13d   : > { %v1261_v44 = vadd.f32 %v1260_v40, %v4464_v21  ;;  %v1526_v46 = vadd.f32 %v1525_v37, %v1437_v36 }
 0x13e   : > { %v1349_v45 = vpop.f32.mrf.mxu1 }
 0x13f   : > { %v1350_v48 = vadd.f32 %v1349_v45, %v1261_v44  ;;  %2762 = vst [vmem:[%s4480_s28 + $0x408] sm:$0xff] %v1526_v46 }
 0x141   : > { %2769 = vst [vmem:[%s4480_s28 + $0x440] sm:$0xff] %v1350_v48 }
 0x142   : > { %v1438_v57 = vpop.f32.mrf.mxu2 }
 0x143   : > { %v1439_v63 = vadd.f32 %v1438_v57, %v4478_v34 }
 0x144   : > { %v1527_v4 = vpop.f32.mrf.mxu3  ;;  %v1263_v5 = vpop.f32.mrf.mxu0 }
 0x145   : > { %v1264_v6 = vadd.f32 %v1263_v5, %v4464_v21  ;;  %v1528_v11 = vadd.f32 %v1527_v4, %v1439_v63 }
 0x146   : > { %v1352_v7 = vpop.f32.mrf.mxu1 }
 0x147   : > { %v1353_v12 = vadd.f32 %v1352_v7, %v1264_v6  ;;  %1578 = vmatmul.bf16.gmra.mxu0 %v4306_v2  ;;  %2770 = vst [vmem:[%s4480_s28 + $0x448] sm:$0xff] %v1528_v11  ;;  %1756 = vmatmul.bf16.gmra.mxu2 %v4306_v2 }
 0x149   : > { %1667 = vmatmul.bf16.gmra.mxu1 %v4308_v3  ;;  %2777 = vst [vmem:[%s4480_s28 + $0x480] sm:$0xff] %v1353_v12  ;;  %1845 = vmatmul.bf16.gmra.mxu3 %v4308_v3 }
 0x14a   : > { %v1441_v13 = vpop.f32.mrf.mxu2 }
 0x14b   : > { %v1442_v14 = vadd.f32 %v1441_v13, %v4478_v34  ;;  %v3325_v13 = vld [vmem:[%s5790_s1 + $0x150] sm:$0xf] }
 0x14c   : > { %v1530_v16 = vpop.f32.mrf.mxu3  ;;  %v1265_v18 = vpop.f32.mrf.mxu0 }
 0x14d   : > { %v1266_v19 = vadd.f32 %v1265_v18, %v4464_v21  ;;  %v1531_v23 = vadd.f32 %v1530_v16, %v1442_v14  ;;  %v3744_v14 = vld [vmem:[%s5790_s1 + $0x16c] sm:$0xf0] }
 0x14e   : > { %v1354_v20 = vpop.f32.mrf.mxu1  ;;  %v3326_v16 = vor.u32 %v3744_v14, %v3325_v13  ;;  %v3581_v18 = vld [vmem:[%s5790_s1 + $0x350] sm:$0xf]  ;;  %v3732_v13 = vld [vmem:[%s5790_s1 + $0x114] sm:$0xf] }
 0x14f   : > { %v1355_v25 = vadd.f32 %v1354_v20, %v1266_v19  ;;  %2778 = vst [vmem:[%s4480_s28 + $0x488] sm:$0xff] %v1531_v23  ;;  %v3808_v19 = vld [vmem:[%s5790_s1 + $0x36c] sm:$0xf0]  ;;  %v3295_v14 = vld [vmem:[%s5790_s1 + $0x130] sm:$0xf0] }
 0x150   : > { %v3582_v23 = vor.u32 %v3808_v19, %v3581_v18  ;;  %1923 = vmatpush.bf16.msra.mxu0 %v3326_v16  ;;  %v3298_v16 = vor.u32 %v3732_v13, %v3295_v14  ;;  %v3796_v18 = vld [vmem:[%s5790_s1 + $0x314] sm:$0xf] }
 0x151   : > { %2785 = vst [vmem:[%s4480_s28 + $0x4c0] sm:$0xff] %v1355_v25  ;;  %v3551_v19 = vld [vmem:[%s5790_s1 + $0x330] sm:$0xf0] }
 0x152   : > { %v1443_v35 = vpop.f32.mrf.mxu2  ;;  %2012 = vmatpush.bf16.msra.mxu1 %v3582_v23  ;;  %v3554_v23 = vor.u32 %v3796_v18, %v3551_v19  ;;  %2102 = vmatpush.bf16.msra.mxu2 %v3298_v16 }
 0x153   : > { %v1444_v36 = vadd.f32 %v1443_v35, %v4478_v34 }
 0x154   : > { %v1532_v37 = vpop.f32.mrf.mxu3  ;;  %v1268_v40 = vpop.f32.mrf.mxu0  ;;  %2191 = vmatpush.bf16.msra.mxu3 %v3554_v23 }
 0x155   : > { %v1269_v44 = vadd.f32 %v1268_v40, %v4464_v21  ;;  %v1533_v46 = vadd.f32 %v1532_v37, %v1444_v36 }
 0x156   : > { %v1357_v45 = vpop.f32.mrf.mxu1 }
 0x157   : > { %v1358_v48 = vadd.f32 %v1357_v45, %v1269_v44  ;;  %1583 = vmatmul.bf16.gmra.mxu0 %v4318_v8  ;;  %2786 = vst [vmem:[%s4480_s28 + $0x4c8] sm:$0xff] %v1533_v46  ;;  %1761 = vmatmul.bf16.gmra.mxu2 %v4318_v8 }
 0x159   : > { %1672 = vmatmul.bf16.gmra.mxu1 %v4320_v9  ;;  %2793 = vst [vmem:[%s4480_s28 + $0x500] sm:$0xff] %v1358_v48  ;;  %1850 = vmatmul.bf16.gmra.mxu3 %v4320_v9 }
 0x15a   : > { %v1446_v57 = vpop.f32.mrf.mxu2 }
 0x15b   : > { %v1447_v63 = vadd.f32 %v1446_v57, %v4478_v34 }
 0x15c   : > { %v1535_v4 = vpop.f32.mrf.mxu3  ;;  %v1270_v5 = vpop.f32.mrf.mxu0 }
 0x15d   : > { %v1271_v6 = vadd.f32 %v1270_v5, %v4464_v21  ;;  %v1536_v11 = vadd.f32 %v1535_v4, %v1447_v63 }
 0x15e   : > { %v1359_v7 = vpop.f32.mrf.mxu1 }
 0x15f   : > { %v1360_v12 = vadd.f32 %v1359_v7, %v1271_v6  ;;  %2794 = vst [vmem:[%s4480_s28 + $0x508] sm:$0xff] %v1536_v11 }
 0x161   : > { %2801 = vst [vmem:[%s4480_s28 + $0x540] sm:$0xff] %v1360_v12 }
 0x162   : > { %v1448_v20 = vpop.f32.mrf.mxu2 }
 0x163   : > { %v1449_v25 = vadd.f32 %v1448_v20, %v4478_v34 }
 0x164   : > { %v1537_v35 = vpop.f32.mrf.mxu3  ;;  %v1273_v36 = vpop.f32.mrf.mxu0 }
 0x165   : > { %v1274_v37 = vadd.f32 %v1273_v36, %v4464_v21  ;;  %v1538_v44 = vadd.f32 %v1537_v35, %v1449_v25 }
 0x166   : > { %v1362_v40 = vpop.f32.mrf.mxu1 }
 0x167   : > { %v1363_v45 = vadd.f32 %v1362_v40, %v1274_v37  ;;  %1588 = vmatmul.bf16.gmra.mxu0 %v4354_v26  ;;  %2802 = vst [vmem:[%s4480_s28 + $0x548] sm:$0xff] %v1538_v44  ;;  %1766 = vmatmul.bf16.gmra.mxu2 %v4354_v26 }
 0x169   : > { %1677 = vmatmul.bf16.gmra.mxu1 %v4356_v27  ;;  %2809 = vst [vmem:[%s4480_s28 + $0x580] sm:$0xff] %v1363_v45  ;;  %1855 = vmatmul.bf16.gmra.mxu3 %v4356_v27 }
 0x16a   : > { %v1451_v46 = vpop.f32.mrf.mxu2 }
 0x16b   : > { %v1452_v48 = vadd.f32 %v1451_v46, %v4478_v34  ;;  %v3293_v46 = vld [vmem:[%s5790_s1 + $0x110] sm:$0xf] }
 0x16c   : > { %v1540_v49 = vpop.f32.mrf.mxu3  ;;  %v1275_v50 = vpop.f32.mrf.mxu0 }
 0x16d   : > { %v1276_v54 = vadd.f32 %v1275_v50, %v4464_v21  ;;  %v1541_v56 = vadd.f32 %v1540_v49, %v1452_v48  ;;  %v3736_v48 = vld [vmem:[%s5790_s1 + $0x12c] sm:$0xf0] }
 0x16e   : > { %v1364_v55 = vpop.f32.mrf.mxu1  ;;  %v3294_v49 = vor.u32 %v3736_v48, %v3293_v46  ;;  %v3549_v50 = vld [vmem:[%s5790_s1 + $0x310] sm:$0xf]  ;;  %v3724_v46 = vld [vmem:[%s5790_s1 + $0xd4] sm:$0xf] }
 0x16f   : > { %v1365_v57 = vadd.f32 %v1364_v55, %v1276_v54  ;;  %2810 = vst [vmem:[%s4480_s28 + $0x588] sm:$0xff] %v1541_v56  ;;  %v3800_v54 = vld [vmem:[%s5790_s1 + $0x32c] sm:$0xf0]  ;;  %v3263_v48 = vld [vmem:[%s5790_s1 + $0xf0] sm:$0xf0] }
 0x170   : > { %v3550_v56 = vor.u32 %v3800_v54, %v3549_v50  ;;  %1924 = vmatpush.bf16.msra.mxu0 %v3294_v49  ;;  %v3266_v49 = vor.u32 %v3724_v46, %v3263_v48  ;;  %v3788_v50 = vld [vmem:[%s5790_s1 + $0x2d4] sm:$0xf] }
 0x171   : > { %2817 = vst [vmem:[%s4480_s28 + $0x5c0] sm:$0xff] %v1365_v57  ;;  %v3519_v54 = vld [vmem:[%s5790_s1 + $0x2f0] sm:$0xf0] }
 0x172   : > { %v1453_v62 = vpop.f32.mrf.mxu2  ;;  %2013 = vmatpush.bf16.msra.mxu1 %v3550_v56  ;;  %v3522_v56 = vor.u32 %v3788_v50, %v3519_v54  ;;  %2103 = vmatpush.bf16.msra.mxu2 %v3266_v49 }
 0x173   : > { %v1454_v63 = vadd.f32 %v1453_v62, %v4478_v34 }
 0x174   : > { %v1542_v4 = vpop.f32.mrf.mxu3  ;;  %v1278_v5 = vpop.f32.mrf.mxu0  ;;  %2192 = vmatpush.bf16.msra.mxu3 %v3522_v56  ;;  %v3885_v56 = vld [vmem:[%s5791_s2] sm:$0xff] }
 0x175   : > { %v1279_v6 = vadd.f32 %v1278_v5, %v4464_v21  ;;  %v1543_v11 = vadd.f32 %v1542_v4, %v1454_v63 }
 0x176   : > { %v1367_v7 = vpop.f32.mrf.mxu1 }
 0x177   : > { %v1368_v12 = vadd.f32 %v1367_v7, %v1279_v6  ;;  %1593 = vmatmul.bf16.gmra.mxu0 %v4366_v32  ;;  %2818 = vst [vmem:[%s4480_s28 + $0x5c8] sm:$0xff] %v1543_v11  ;;  %1771 = vmatmul.bf16.gmra.mxu2 %v4366_v32 }
 0x179   : > { %1682 = vmatmul.bf16.gmra.mxu1 %v4368_v33  ;;  %2825 = vst [vmem:[%s4480_s28 + $0x600] sm:$0xff] %v1368_v12  ;;  %1860 = vmatmul.bf16.gmra.mxu3 %v4368_v33 }
 0x17a   : > { %v1456_v20 = vpop.f32.mrf.mxu2 }
 0x17b   : > { %v1457_v25 = vadd.f32 %v1456_v20, %v4478_v34 }
 0x17c   : > { %v1545_v35 = vpop.f32.mrf.mxu3  ;;  %v1280_v36 = vpop.f32.mrf.mxu0 }
 0x17d   : > { %v1281_v37 = vadd.f32 %v1280_v36, %v4464_v21  ;;  %v1546_v44 = vadd.f32 %v1545_v35, %v1457_v25 }
 0x17e   : > { %v1369_v40 = vpop.f32.mrf.mxu1 }
 0x17f   : > { %v1370_v45 = vadd.f32 %v1369_v40, %v1281_v37  ;;  %2826 = vst [vmem:[%s4480_s28 + $0x608] sm:$0xff] %v1546_v44 }
 0x181   : > { %2833 = vst [vmem:[%s4480_s28 + $0x640] sm:$0xff] %v1370_v45 }
 0x182   : > { %v1458_v55 = vpop.f32.mrf.mxu2 }
 0x183   : > { %v1459_v57 = vadd.f32 %v1458_v55, %v4478_v34 }
 0x184   : > { %v1547_v62 = vpop.f32.mrf.mxu3  ;;  %v1283_v63 = vpop.f32.mrf.mxu0 }
 0x185   : > { %v1284_v4 = vadd.f32 %v1283_v63, %v4464_v21  ;;  %v1548_v6 = vadd.f32 %v1547_v62, %v1459_v57 }
 0x186   : > { %v1372_v5 = vpop.f32.mrf.mxu1 }
 0x187   : > { %v1373_v7 = vadd.f32 %v1372_v5, %v1284_v4  ;;  %1598 = vmatmul.bf16.gmra.mxu0 %v4402_v52  ;;  %2834 = vst [vmem:[%s4480_s28 + $0x648] sm:$0xff] %v1548_v6  ;;  %1776 = vmatmul.bf16.gmra.mxu2 %v4402_v52 }
 0x189   : > { %1687 = vmatmul.bf16.gmra.mxu1 %v4404_v53  ;;  %2841 = vst [vmem:[%s4480_s28 + $0x680] sm:$0xff] %v1373_v7  ;;  %1865 = vmatmul.bf16.gmra.mxu3 %v4404_v53 }
 0x18a   : > { %v1461_v11 = vpop.f32.mrf.mxu2 }
 0x18b   : > { %v1462_v12 = vadd.f32 %v1461_v11, %v4478_v34  ;;  %v3261_v11 = vld [vmem:[%s5790_s1 + $0xd0] sm:$0xf] }
 0x18c   : > { %v1550_v13 = vpop.f32.mrf.mxu3  ;;  %v1285_v14 = vpop.f32.mrf.mxu0 }
 0x18d   : > { %v1286_v16 = vadd.f32 %v1285_v14, %v4464_v21  ;;  %v1551_v19 = vadd.f32 %v1550_v13, %v1462_v12  ;;  %v3728_v12 = vld [vmem:[%s5790_s1 + $0xec] sm:$0xf0] }
 0x18e   : > { %v1374_v18 = vpop.f32.mrf.mxu1  ;;  %v3262_v13 = vor.u32 %v3728_v12, %v3261_v11  ;;  %v3517_v14 = vld [vmem:[%s5790_s1 + $0x2d0] sm:$0xf]  ;;  %v4927_v12 = vperm.slane %v3885_v56, 3 }
 0x18f   : > { %v1375_v20 = vadd.f32 %v1374_v18, %v1286_v16  ;;  %2842 = vst [vmem:[%s4480_s28 + $0x688] sm:$0xff] %v1551_v19  ;;  %v3792_v16 = vld [vmem:[%s5790_s1 + $0x2ec] sm:$0xf0] }
 0x190   : > { %v3518_v19 = vor.u32 %v3792_v16, %v3517_v14  ;;  %1925 = vmatpush.bf16.msra.mxu0 %v3262_v13  ;;  %v3231_v13 = vld [vmem:[%s5790_s1 + $0xb0] sm:$0xf0] }
 0x191   : > { %2849 = vst [vmem:[%s4480_s28 + $0x6c0] sm:$0xff] %v1375_v20  ;;  %v3780_v16 = vld [vmem:[%s5790_s1 + $0x294] sm:$0xf] }
 0x192   : > { %v1463_v23 = vpop.f32.mrf.mxu2  ;;  %2014 = vmatpush.bf16.msra.mxu1 %v3518_v19 }
 0x193   : > { %v1464_v25 = vadd.f32 %v1463_v23, %v4478_v34 }
 0x194   : > { %v1552_v35 = vpop.f32.mrf.mxu3  ;;  %v1288_v36 = vpop.f32.mrf.mxu0 }
 0x195   : > { %v1289_v37 = vadd.f32 %v1288_v36, %v4464_v21  ;;  %v1553_v44 = vadd.f32 %v1552_v35, %v1464_v25 }
 0x196   : > { %v1377_v40 = vpop.f32.mrf.mxu1 }
 0x197   : > { %v1378_v45 = vadd.f32 %v1377_v40, %v1289_v37  ;;  %1603 = vmatmul.bf16.gmra.mxu0 %v4414_v58  ;;  %2850 = vst [vmem:[%s4480_s28 + $0x6c8] sm:$0xff] %v1553_v44  ;;  %1781 = vmatmul.bf16.gmra.mxu2 %v4414_v58 }
 0x199   : > { %1692 = vmatmul.bf16.gmra.mxu1 %v4416_v59  ;;  %2857 = vst [vmem:[%s4480_s28 + $0x700] sm:$0xff] %v1378_v45  ;;  %1870 = vmatmul.bf16.gmra.mxu3 %v4416_v59 }
 0x19a   : > { %v1466_v55 = vpop.f32.mrf.mxu2 }
 0x19b   : > { %v1467_v57 = vadd.f32 %v1466_v55, %v4478_v34 }
 0x19c   : > { %v1555_v62 = vpop.f32.mrf.mxu3  ;;  %v1290_v63 = vpop.f32.mrf.mxu0 }
 0x19d   : > { %v1291_v4 = vadd.f32 %v1290_v63, %v4464_v21  ;;  %v1556_v6 = vadd.f32 %v1555_v62, %v1467_v57  ;;  %v4919_v57 = vperm.slane %v3885_v56, 2 }
 0x19e   : > { %v1379_v5 = vpop.f32.mrf.mxu1 }
 0x19f   : > { %v1380_v7 = vadd.f32 %v1379_v5, %v1291_v4  ;;  %2858 = vst [vmem:[%s4480_s28 + $0x708] sm:$0xff] %v1556_v6 }
 0x1a1   : > { %2865 = vst [vmem:[%s4480_s28 + $0x740] sm:$0xff] %v1380_v7 }
 0x1a2   : > { %v1468_v18 = vpop.f32.mrf.mxu2 }
 0x1a3   : > { %v1469_v20 = vadd.f32 %v1468_v18, %v4478_v34  ;;  %v3487_v18 = vld [vmem:[%s5790_s1 + $0x2b0] sm:$0xf0] }
 0x1a4   : > { %v1557_v23 = vpop.f32.mrf.mxu3  ;;  %v1293_v25 = vpop.f32.mrf.mxu0 }
 0x1a5   : > { %v1294_v35 = vadd.f32 %v1293_v25, %v4464_v21  ;;  %v1558_v37 = vadd.f32 %v1557_v23, %v1469_v20  ;;  %v3490_v20 = vor.u32 %v3780_v16, %v3487_v18 }
 0x1a6   : > { %v1382_v36 = vpop.f32.mrf.mxu1 }
 0x1a7   : > { %v1383_v40 = vadd.f32 %v1382_v36, %v1294_v35  ;;  %1608 = vmatmul.bf16.gmra.mxu0 %v4450_v15  ;;  %2866 = vst [vmem:[%s4480_s28 + $0x748] sm:$0xff] %v1558_v37  ;;  %1786 = vmatmul.bf16.gmra.mxu2 %v4450_v15 }
 0x1a8   : > { %2193 = vmatpush.bf16.msra.mxu3 %v3490_v20 }
 0x1a9   : > { %1697 = vmatmul.bf16.gmra.mxu1 %v4452_v17  ;;  %2873 = vst [vmem:[%s4480_s28 + $0x780] sm:$0xff] %v1383_v40  ;;  %1875 = vmatmul.bf16.gmra.mxu3 %v4452_v17 }
 0x1aa   : > { %v1471_v44 = vpop.f32.mrf.mxu2 }
 0x1ab   : > { %v1472_v45 = vadd.f32 %v1471_v44, %v4478_v34 }
 0x1ac   : > { %v1560_v46 = vpop.f32.mrf.mxu3  ;;  %v1295_v48 = vpop.f32.mrf.mxu0 }
 0x1ad   : > { %v1296_v49 = vadd.f32 %v1295_v48, %v4464_v21  ;;  %v1561_v54 = vadd.f32 %v1560_v46, %v1472_v45  ;;  %v3229_v45 = vld [vmem:[%s5790_s1 + $0x90] sm:$0xf] }
 0x1ae   : > { %v1384_v50 = vpop.f32.mrf.mxu1  ;;  %v3720_v46 = vld [vmem:[%s5790_s1 + $0xac] sm:$0xf0] }
 0x1af   : > { %v1385_v55 = vadd.f32 %v1384_v50, %v1296_v49  ;;  %2874 = vst [vmem:[%s4480_s28 + $0x788] sm:$0xff] %v1561_v54  ;;  %v3230_v48 = vor.u32 %v3720_v46, %v3229_v45  ;;  %v3485_v49 = vld [vmem:[%s5790_s1 + $0x290] sm:$0xf]  ;;  %v3708_v45 = vld [vmem:[%s5790_s1 + $0x54] sm:$0xf] }
 0x1b0   : > { %v3784_v50 = vld [vmem:[%s5790_s1 + $0x2ac] sm:$0xf0]  ;;  %v3199_v46 = vld [vmem:[%s5790_s1 + $0x70] sm:$0xf0] }
 0x1b1   : > { %2881 = vst [vmem:[%s4480_s28 + $0x7c0] sm:$0xff] %v1385_v55  ;;  %v3486_v55 = vor.u32 %v3784_v50, %v3485_v49  ;;  %1926 = vmatpush.bf16.msra.mxu0 %v3230_v48  ;;  %v3202_v48 = vor.u32 %v3708_v45, %v3199_v46  ;;  %v3772_v49 = vld [vmem:[%s5790_s1 + $0x254] sm:$0xf] }
 0x1b2   : > { %v1473_v62 = vpop.f32.mrf.mxu2  ;;  %v3455_v50 = vld [vmem:[%s5790_s1 + $0x270] sm:$0xf0] }
 0x1b3   : > { %v1474_v63 = vadd.f32 %v1473_v62, %v4478_v34  ;;  %v3716_v34 = vld [vmem:[%s5790_s1 + $0x94] sm:$0xf]  ;;  %2015 = vmatpush.bf16.msra.mxu1 %v3486_v55  ;;  %v3458_v55 = vor.u32 %v3772_v49, %v3455_v50 }
 0x1b4   : > { %v1562_v4 = vpop.f32.mrf.mxu3  ;;  %v1574_v5 = vpop.f32.mrf.mxu0  ;;  %v3234_v14 = vor.u32 %v3716_v34, %v3231_v13 }
 0x1b5   : > { %v1575_v21 = vadd.f32 %v1574_v5, %v4919_v57  ;;  %v1563_v7 = vadd.f32 %v1562_v4, %v1474_v63  ;;  %2194 = vmatpush.bf16.msra.mxu3 %v3458_v55 }
 0x1b6   : > { %v1663_v6 = vpop.f32.mrf.mxu1  ;;  %2104 = vmatpush.bf16.msra.mxu2 %v3234_v14 }
 0x1b7   : > { %v1664_v11 = vadd.f32 %v1663_v6, %v1575_v21  ;;  %1613 = vmatmul.bf16.gmra.mxu0 %v4470_v24  ;;  %2882 = vst [vmem:[%s4480_s28 + $0x7c8] sm:$0xff] %v1563_v7  ;;  %1791 = vmatmul.bf16.gmra.mxu2 %v4470_v24 }
 0x1b9   : > { %1702 = vmatmul.bf16.gmra.mxu1 %v4472_v28  ;;  %2635 = vst [vmem:[%s4480_s28 + $0x10] sm:$0xff] %v1664_v11  ;;  %1880 = vmatmul.bf16.gmra.mxu3 %v4472_v28 }
 0x1ba   : > { %v1752_v19 = vpop.f32.mrf.mxu2  ;;  %2105 = vmatpush.bf16.msra.mxu2 %v3202_v48 }
 0x1bb   : > { %v1753_v23 = vadd.f32 %v1752_v19, %v4927_v12 }
 0x1bc   : > { %v1841_v25 = vpop.f32.mrf.mxu3  ;;  %v1576_v35 = vpop.f32.mrf.mxu0 }
 0x1bd   : > { %v1577_v36 = vadd.f32 %v1576_v35, %v4919_v57  ;;  %v1842_v40 = vadd.f32 %v1841_v25, %v1753_v23 }
 0x1be   : > { %v1665_v37 = vpop.f32.mrf.mxu1 }
 0x1bf   : > { %v1666_v44 = vadd.f32 %v1665_v37, %v1577_v36  ;;  %2636 = vst [vmem:[%s4480_s28 + $0x18] sm:$0xff] %v1842_v40 }
 0x1c1   : > { %2643 = vst [vmem:[%s4480_s28 + $0x50] sm:$0xff] %v1666_v44 }
 0x1c2   : > { %v1754_v54 = vpop.f32.mrf.mxu2 }
 0x1c3   : > { %v1755_v56 = vadd.f32 %v1754_v54, %v4927_v12 }
 0x1c4   : > { %v1843_v62 = vpop.f32.mrf.mxu3  ;;  %v1579_v63 = vpop.f32.mrf.mxu0 }
 0x1c5   : > { %v1580_v4 = vadd.f32 %v1579_v63, %v4919_v57  ;;  %v1844_v21 = vadd.f32 %v1843_v62, %v1755_v56 }
 0x1c6   : > { %v1668_v5 = vpop.f32.mrf.mxu1 }
 0x1c7   : > { %v1669_v6 = vadd.f32 %v1668_v5, %v1580_v4  ;;  %1618 = vmatmul.bf16.gmra.mxu0 %v4516_v1  ;;  %2644 = vst [vmem:[%s4480_s28 + $0x58] sm:$0xff] %v1844_v21  ;;  %1796 = vmatmul.bf16.gmra.mxu2 %v4516_v1 }
 0x1c9   : > { %1707 = vmatmul.bf16.gmra.mxu1 %v4519_v10  ;;  %2651 = vst [vmem:[%s4480_s28 + $0x90] sm:$0xff] %v1669_v6  ;;  %1885 = vmatmul.bf16.gmra.mxu3 %v4519_v10 }
 0x1ca   : > { %v1757_v7 = vpop.f32.mrf.mxu2 }
 0x1cb   : > { %v1758_v11 = vadd.f32 %v1757_v7, %v4927_v12  ;;  %v3197_v7 = vld [vmem:[%s5790_s1 + $0x50] sm:$0xf] }
 0x1cc   : > { %v1846_v34 = vpop.f32.mrf.mxu3  ;;  %v1581_v13 = vpop.f32.mrf.mxu0 }
 0x1cd   : > { %v1582_v14 = vadd.f32 %v1581_v13, %v4919_v57  ;;  %v1847_v18 = vadd.f32 %v1846_v34, %v1758_v11  ;;  %v3712_v11 = vld [vmem:[%s5790_s1 + $0x6c] sm:$0xf0] }
 0x1ce   : > { %v1670_v16 = vpop.f32.mrf.mxu1  ;;  %v3198_v34 = vor.u32 %v3712_v11, %v3197_v7  ;;  %v3453_v13 = vld [vmem:[%s5790_s1 + $0x250] sm:$0xf]  ;;  %v3700_v7 = vld [vmem:[%s5790_s1 + $0x14] sm:$0xf] }
 0x1cf   : > { %v1671_v19 = vadd.f32 %v1670_v16, %v1582_v14  ;;  %2652 = vst [vmem:[%s4480_s28 + $0x98] sm:$0xff] %v1847_v18  ;;  %v3776_v14 = vld [vmem:[%s5790_s1 + $0x26c] sm:$0xf0]  ;;  %v3167_v11 = vld [vmem:[%s5790_s1 + $0x30] sm:$0xf0] }
 0x1d0   : > { %v3454_v18 = vor.u32 %v3776_v14, %v3453_v13  ;;  %1927 = vmatpush.bf16.msra.mxu0 %v3198_v34  ;;  %v3170_v34 = vor.u32 %v3700_v7, %v3167_v11  ;;  %v3764_v13 = vld [vmem:[%s5790_s1 + $0x214] sm:$0xf] }
 0x1d1   : > { %2659 = vst [vmem:[%s4480_s28 + $0xd0] sm:$0xff] %v1671_v19  ;;  %v3423_v14 = vld [vmem:[%s5790_s1 + $0x230] sm:$0xf0] }
 0x1d2   : > { %v1759_v20 = vpop.f32.mrf.mxu2  ;;  %2016 = vmatpush.bf16.msra.mxu1 %v3454_v18  ;;  %v3426_v18 = vor.u32 %v3764_v13, %v3423_v14  ;;  %2106 = vmatpush.bf16.msra.mxu2 %v3170_v34 }
 0x1d3   : > { %v1760_v23 = vadd.f32 %v1759_v20, %v4927_v12 }
 0x1d4   : > { %v1848_v25 = vpop.f32.mrf.mxu3  ;;  %v1584_v35 = vpop.f32.mrf.mxu0  ;;  %2195 = vmatpush.bf16.msra.mxu3 %v3426_v18 }
 0x1d5   : > { %v1585_v36 = vadd.f32 %v1584_v35, %v4919_v57  ;;  %v1849_v40 = vadd.f32 %v1848_v25, %v1760_v23 }
 0x1d6   : > { %v1673_v37 = vpop.f32.mrf.mxu1 }
 0x1d7   : > { %v1674_v44 = vadd.f32 %v1673_v37, %v1585_v36  ;;  %1623 = vmatmul.bf16.gmra.mxu0 %v4536_v38  ;;  %2660 = vst [vmem:[%s4480_s28 + $0xd8] sm:$0xff] %v1849_v40  ;;  %1801 = vmatmul.bf16.gmra.mxu2 %v4536_v38 }
 0x1d9   : > { %1712 = vmatmul.bf16.gmra.mxu1 %v4539_v42  ;;  %2667 = vst [vmem:[%s4480_s28 + $0x110] sm:$0xff] %v1674_v44  ;;  %1890 = vmatmul.bf16.gmra.mxu3 %v4539_v42 }
 0x1da   : > { %v1762_v54 = vpop.f32.mrf.mxu2 }
 0x1db   : > { %v1763_v56 = vadd.f32 %v1762_v54, %v4927_v12 }
 0x1dc   : > { %v1851_v62 = vpop.f32.mrf.mxu3  ;;  %v1586_v63 = vpop.f32.mrf.mxu0 }
 0x1dd   : > { %v1587_v4 = vadd.f32 %v1586_v63, %v4919_v57  ;;  %v1852_v21 = vadd.f32 %v1851_v62, %v1763_v56 }
 0x1de   : > { %v1675_v5 = vpop.f32.mrf.mxu1 }
 0x1df   : > { %v1676_v6 = vadd.f32 %v1675_v5, %v1587_v4  ;;  %2668 = vst [vmem:[%s4480_s28 + $0x118] sm:$0xff] %v1852_v21 }
 0x1e1   : > { %2675 = vst [vmem:[%s4480_s28 + $0x150] sm:$0xff] %v1676_v6 }
 0x1e2   : > { %v1764_v16 = vpop.f32.mrf.mxu2 }
 0x1e3   : > { %v1765_v19 = vadd.f32 %v1764_v16, %v4927_v12 }
 0x1e4   : > { %v1853_v20 = vpop.f32.mrf.mxu3  ;;  %v1589_v23 = vpop.f32.mrf.mxu0 }
 0x1e5   : > { %v1590_v25 = vadd.f32 %v1589_v23, %v4919_v57  ;;  %v1854_v36 = vadd.f32 %v1853_v20, %v1765_v19 }
 0x1e6   : > { %v1678_v35 = vpop.f32.mrf.mxu1 }
 0x1e7   : > { %v1679_v37 = vadd.f32 %v1678_v35, %v1590_v25  ;;  %1628 = vmatmul.bf16.gmra.mxu0 %v4580_v22  ;;  %2676 = vst [vmem:[%s4480_s28 + $0x158] sm:$0xff] %v1854_v36  ;;  %1806 = vmatmul.bf16.gmra.mxu2 %v4580_v22 }
 0x1e9   : > { %1717 = vmatmul.bf16.gmra.mxu1 %v4583_v31  ;;  %2683 = vst [vmem:[%s4480_s28 + $0x190] sm:$0xff] %v1679_v37  ;;  %1895 = vmatmul.bf16.gmra.mxu3 %v4583_v31 }
 0x1ea   : > { %v1767_v40 = vpop.f32.mrf.mxu2 }
 0x1eb   : > { %v1768_v44 = vadd.f32 %v1767_v40, %v4927_v12  ;;  %v3165_v40 = vld [vmem:[%s5790_s1 + $0x10] sm:$0xf] }
 0x1ec   : > { %v1856_v45 = vpop.f32.mrf.mxu3  ;;  %v1591_v46 = vpop.f32.mrf.mxu0 }
 0x1ed   : > { %v1592_v48 = vadd.f32 %v1591_v46, %v4919_v57  ;;  %v1857_v50 = vadd.f32 %v1856_v45, %v1768_v44  ;;  %v3704_v44 = vld [vmem:[%s5790_s1 + $0x2c] sm:$0xf0] }
 0x1ee   : > { %v1680_v49 = vpop.f32.mrf.mxu1  ;;  %v3166_v45 = vor.u32 %v3704_v44, %v3165_v40  ;;  %v3421_v46 = vld [vmem:[%s5790_s1 + $0x210] sm:$0xf]  ;;  %v3757_v40 = vld [vmem:[%s5790_s1 + $0x1dc] sm:$0xf] }
 0x1ef   : > { %v1681_v54 = vadd.f32 %v1680_v49, %v1592_v48  ;;  %2684 = vst [vmem:[%s4480_s28 + $0x198] sm:$0xff] %v1857_v50  ;;  %v3768_v48 = vld [vmem:[%s5790_s1 + $0x22c] sm:$0xf0]  ;;  %v3399_v44 = vld [vmem:[%s5790_s1 + $0x1f8] sm:$0xf0] }
 0x1f0   : > { %v3422_v50 = vor.u32 %v3768_v48, %v3421_v46  ;;  %1928 = vmatpush.bf16.msra.mxu0 %v3166_v45  ;;  %v3402_v45 = vor.u32 %v3757_v40, %v3399_v44  ;;  %v3821_v46 = vld [vmem:[%s5790_s1 + $0x3dc] sm:$0xf] }
 0x1f1   : > { %2691 = vst [vmem:[%s4480_s28 + $0x1d0] sm:$0xff] %v1681_v54  ;;  %v3655_v48 = vld [vmem:[%s5790_s1 + $0x3f8] sm:$0xf0] }
 0x1f2   : > { %v1769_v55 = vpop.f32.mrf.mxu2  ;;  %2017 = vmatpush.bf16.msra.mxu1 %v3422_v50  ;;  %v3658_v50 = vor.u32 %v3821_v46, %v3655_v48  ;;  %2455 = vmatpush.bf16.msrb.mxu2 %v3402_v45 }
 0x1f3   : > { %v1770_v56 = vadd.f32 %v1769_v55, %v4927_v12 }
 0x1f4   : > { %v1858_v62 = vpop.f32.mrf.mxu3  ;;  %v1594_v63 = vpop.f32.mrf.mxu0  ;;  %2544 = vmatpush.bf16.msrb.mxu3 %v3658_v50 }
 0x1f5   : > { %v1595_v4 = vadd.f32 %v1594_v63, %v4919_v57  ;;  %v1859_v21 = vadd.f32 %v1858_v62, %v1770_v56 }
 0x1f6   : > { %v1683_v5 = vpop.f32.mrf.mxu1 }
 0x1f7   : > { %v1684_v6 = vadd.f32 %v1683_v5, %v1595_v4  ;;  %1633 = vmatmul.bf16.gmra.mxu0 %v4600_v60  ;;  %2692 = vst [vmem:[%s4480_s28 + $0x1d8] sm:$0xff] %v1859_v21  ;;  %1811 = vmatmul.bf16.gmra.mxu2 %v4600_v60 }
 0x1f9   : > { %1722 = vmatmul.bf16.gmra.mxu1 %v4603_v0  ;;  %2699 = vst [vmem:[%s4480_s28 + $0x210] sm:$0xff] %v1684_v6  ;;  %1900 = vmatmul.bf16.gmra.mxu3 %v4603_v0 }
 0x1fa   : > { %v1772_v16 = vpop.f32.mrf.mxu2 }
 0x1fb   : > { %v1773_v19 = vadd.f32 %v1772_v16, %v4927_v12 }
 0x1fc   : > { %v1861_v20 = vpop.f32.mrf.mxu3  ;;  %v1596_v23 = vpop.f32.mrf.mxu0 }
 0x1fd   : > { %v1597_v25 = vadd.f32 %v1596_v23, %v4919_v57  ;;  %v1862_v36 = vadd.f32 %v1861_v20, %v1773_v19 }
 0x1fe   : > { %v1685_v35 = vpop.f32.mrf.mxu1 }
 0x1ff   : > { %v1686_v37 = vadd.f32 %v1685_v35, %v1597_v25  ;;  %2700 = vst [vmem:[%s4480_s28 + $0x218] sm:$0xff] %v1862_v36 }
 0x201   : > { %2707 = vst [vmem:[%s4480_s28 + $0x250] sm:$0xff] %v1686_v37 }
 0x202   : > { %v1774_v49 = vpop.f32.mrf.mxu2 }
 0x203   : > { %v1775_v54 = vadd.f32 %v1774_v49, %v4927_v12 }
 0x204   : > { %v1863_v55 = vpop.f32.mrf.mxu3  ;;  %v1599_v56 = vpop.f32.mrf.mxu0 }
 0x205   : > { %v1600_v62 = vadd.f32 %v1599_v56, %v4919_v57  ;;  %v1864_v4 = vadd.f32 %v1863_v55, %v1775_v54 }
 0x206   : > { %v1688_v63 = vpop.f32.mrf.mxu1 }
 0x207   : > { %v1689_v5 = vadd.f32 %v1688_v63, %v1600_v62  ;;  %1638 = vmatmul.bf16.gmra.mxu0 %v4644_v51  ;;  %2708 = vst [vmem:[%s4480_s28 + $0x258] sm:$0xff] %v1864_v4  ;;  %1816 = vmatmul.bf16.gmra.mxu2 %v4644_v51 }
 0x209   : > { %1727 = vmatmul.bf16.gmra.mxu1 %v4647_v61  ;;  %2715 = vst [vmem:[%s4480_s28 + $0x290] sm:$0xff] %v1689_v5  ;;  %1905 = vmatmul.bf16.gmra.mxu3 %v4647_v61 }
 0x20a   : > { %v1777_v21 = vpop.f32.mrf.mxu2 }
 0x20b   : > { %v1778_v6 = vadd.f32 %v1777_v21, %v4927_v12  ;;  %v3397_v21 = vld [vmem:[%s5790_s1 + $0x1d8] sm:$0xf] }
 0x20c   : > { %v1866_v7 = vpop.f32.mrf.mxu3  ;;  %v1601_v11 = vpop.f32.mrf.mxu0 }
 0x20d   : > { %v1602_v34 = vadd.f32 %v1601_v11, %v4919_v57  ;;  %v1867_v14 = vadd.f32 %v1866_v7, %v1778_v6  ;;  %v3761_v6 = vld [vmem:[%s5790_s1 + $0x1f4] sm:$0xf0] }
 0x20e   : > { %v1690_v13 = vpop.f32.mrf.mxu1  ;;  %v3398_v7 = vor.u32 %v3761_v6, %v3397_v21  ;;  %v3653_v11 = vld [vmem:[%s5790_s1 + $0x3d8] sm:$0xf]  ;;  %v3749_v21 = vld [vmem:[%s5790_s1 + $0x19c] sm:$0xf] }
 0x20f   : > { %v1691_v16 = vadd.f32 %v1690_v13, %v1602_v34  ;;  %2716 = vst [vmem:[%s4480_s28 + $0x298] sm:$0xff] %v1867_v14  ;;  %v3825_v34 = vld [vmem:[%s5790_s1 + $0x3f4] sm:$0xf0]  ;;  %v3367_v6 = vld [vmem:[%s5790_s1 + $0x1b8] sm:$0xf0] }
 0x210   : > { %v3654_v14 = vor.u32 %v3825_v34, %v3653_v11  ;;  %2277 = vmatpush.bf16.msrb.mxu0 %v3398_v7  ;;  %v3370_v7 = vor.u32 %v3749_v21, %v3367_v6  ;;  %v3813_v11 = vld [vmem:[%s5790_s1 + $0x39c] sm:$0xf] }
 0x211   : > { %2723 = vst [vmem:[%s4480_s28 + $0x2d0] sm:$0xff] %v1691_v16  ;;  %v3623_v34 = vld [vmem:[%s5790_s1 + $0x3b8] sm:$0xf0] }
 0x212   : > { %v1779_v18 = vpop.f32.mrf.mxu2  ;;  %2366 = vmatpush.bf16.msrb.mxu1 %v3654_v14  ;;  %v3626_v14 = vor.u32 %v3813_v11, %v3623_v34  ;;  %2456 = vmatpush.bf16.msrb.mxu2 %v3370_v7 }
 0x213   : > { %v1780_v19 = vadd.f32 %v1779_v18, %v4927_v12 }
 0x214   : > { %v1868_v20 = vpop.f32.mrf.mxu3  ;;  %v1604_v23 = vpop.f32.mrf.mxu0  ;;  %2545 = vmatpush.bf16.msrb.mxu3 %v3626_v14 }
 0x215   : > { %v1605_v25 = vadd.f32 %v1604_v23, %v4919_v57  ;;  %v1869_v36 = vadd.f32 %v1868_v20, %v1780_v19 }
 0x216   : > { %v1693_v35 = vpop.f32.mrf.mxu1 }
 0x217   : > { %v1694_v37 = vadd.f32 %v1693_v35, %v1605_v25  ;;  %1643 = vmatmul.bf16.gmra.mxu0 %v4664_v30  ;;  %2724 = vst [vmem:[%s4480_s28 + $0x2d8] sm:$0xff] %v1869_v36  ;;  %1821 = vmatmul.bf16.gmra.mxu2 %v4664_v30 }
 0x219   : > { %1732 = vmatmul.bf16.gmra.mxu1 %v4667_v39  ;;  %2731 = vst [vmem:[%s4480_s28 + $0x310] sm:$0xff] %v1694_v37  ;;  %1910 = vmatmul.bf16.gmra.mxu3 %v4667_v39 }
 0x21a   : > { %v1782_v49 = vpop.f32.mrf.mxu2 }
 0x21b   : > { %v1783_v54 = vadd.f32 %v1782_v49, %v4927_v12 }
 0x21c   : > { %v1871_v55 = vpop.f32.mrf.mxu3  ;;  %v1606_v56 = vpop.f32.mrf.mxu0 }
 0x21d   : > { %v1607_v62 = vadd.f32 %v1606_v56, %v4919_v57  ;;  %v1872_v4 = vadd.f32 %v1871_v55, %v1783_v54 }
 0x21e   : > { %v1695_v63 = vpop.f32.mrf.mxu1 }
 0x21f   : > { %v1696_v5 = vadd.f32 %v1695_v63, %v1607_v62  ;;  %2732 = vst [vmem:[%s4480_s28 + $0x318] sm:$0xff] %v1872_v4 }
 0x221   : > { %2739 = vst [vmem:[%s4480_s28 + $0x350] sm:$0xff] %v1696_v5 }
 0x222   : > { %v1784_v13 = vpop.f32.mrf.mxu2 }
 0x223   : > { %v1785_v16 = vadd.f32 %v1784_v13, %v4927_v12 }
 0x224   : > { %v1873_v18 = vpop.f32.mrf.mxu3  ;;  %v1609_v19 = vpop.f32.mrf.mxu0 }
 0x225   : > { %v1610_v20 = vadd.f32 %v1609_v19, %v4919_v57  ;;  %v1874_v25 = vadd.f32 %v1873_v18, %v1785_v16 }
 0x226   : > { %v1698_v23 = vpop.f32.mrf.mxu1 }
 0x227   : > { %v1699_v35 = vadd.f32 %v1698_v23, %v1610_v20  ;;  %1648 = vmatmul.bf16.gmra.mxu0 %v4708_v29  ;;  %2740 = vst [vmem:[%s4480_s28 + $0x358] sm:$0xff] %v1874_v25  ;;  %1826 = vmatmul.bf16.gmra.mxu2 %v4708_v29 }
 0x229   : > { %1737 = vmatmul.bf16.gmra.mxu1 %v4711_v41  ;;  %2747 = vst [vmem:[%s4480_s28 + $0x390] sm:$0xff] %v1699_v35  ;;  %1915 = vmatmul.bf16.gmra.mxu3 %v4711_v41 }
 0x22a   : > { %v1787_v36 = vpop.f32.mrf.mxu2 }
 0x22b   : > { %v1788_v37 = vadd.f32 %v1787_v36, %v4927_v12  ;;  %v3365_v36 = vld [vmem:[%s5790_s1 + $0x198] sm:$0xf] }
 0x22c   : > { %v1876_v40 = vpop.f32.mrf.mxu3  ;;  %v1611_v44 = vpop.f32.mrf.mxu0 }
 0x22d   : > { %v1612_v45 = vadd.f32 %v1611_v44, %v4919_v57  ;;  %v1877_v48 = vadd.f32 %v1876_v40, %v1788_v37  ;;  %v3753_v37 = vld [vmem:[%s5790_s1 + $0x1b4] sm:$0xf0] }
 0x22e   : > { %v1700_v46 = vpop.f32.mrf.mxu1  ;;  %v3366_v40 = vor.u32 %v3753_v37, %v3365_v36  ;;  %v3621_v44 = vld [vmem:[%s5790_s1 + $0x398] sm:$0xf]  ;;  %v3741_v36 = vld [vmem:[%s5790_s1 + $0x15c] sm:$0xf] }
 0x22f   : > { %v1701_v49 = vadd.f32 %v1700_v46, %v1612_v45  ;;  %2748 = vst [vmem:[%s4480_s28 + $0x398] sm:$0xff] %v1877_v48  ;;  %v3817_v45 = vld [vmem:[%s5790_s1 + $0x3b4] sm:$0xf0]  ;;  %v3335_v37 = vld [vmem:[%s5790_s1 + $0x178] sm:$0xf0] }
 0x230   : > { %v3622_v48 = vor.u32 %v3817_v45, %v3621_v44  ;;  %2278 = vmatpush.bf16.msrb.mxu0 %v3366_v40  ;;  %v3338_v40 = vor.u32 %v3741_v36, %v3335_v37  ;;  %v3805_v44 = vld [vmem:[%s5790_s1 + $0x35c] sm:$0xf] }
 0x231   : > { %2755 = vst [vmem:[%s4480_s28 + $0x3d0] sm:$0xff] %v1701_v49  ;;  %v3591_v45 = vld [vmem:[%s5790_s1 + $0x378] sm:$0xf0] }
 0x232   : > { %v1789_v50 = vpop.f32.mrf.mxu2  ;;  %2367 = vmatpush.bf16.msrb.mxu1 %v3622_v48  ;;  %v3594_v48 = vor.u32 %v3805_v44, %v3591_v45  ;;  %2457 = vmatpush.bf16.msrb.mxu2 %v3338_v40 }
 0x233   : > { %v1790_v54 = vadd.f32 %v1789_v50, %v4927_v12 }
 0x234   : > { %v1878_v55 = vpop.f32.mrf.mxu3  ;;  %v1614_v56 = vpop.f32.mrf.mxu0  ;;  %2546 = vmatpush.bf16.msrb.mxu3 %v3594_v48 }
 0x235   : > { %v1615_v62 = vadd.f32 %v1614_v56, %v4919_v57  ;;  %v1879_v4 = vadd.f32 %v1878_v55, %v1790_v54 }
 0x236   : > { %v1703_v63 = vpop.f32.mrf.mxu1 }
 0x237   : > { %v1704_v5 = vadd.f32 %v1703_v63, %v1615_v62  ;;  %1929 = vmatmul.bf16.vlgmr.msra.gmra.mxu0 %v4264_v43  ;;  %2756 = vst [vmem:[%s4480_s28 + $0x3d8] sm:$0xff] %v1879_v4  ;;  %2107 = vmatmul.bf16.vlgmr.msra.gmra.mxu2 %v4264_v43 }
 0x239   : > { %2018 = vmatmul.bf16.vlgmr.msra.gmra.mxu1 %v4272_v47  ;;  %2763 = vst [vmem:[%s4480_s28 + $0x410] sm:$0xff] %v1704_v5  ;;  %2196 = vmatmul.bf16.vlgmr.msra.gmra.mxu3 %v4272_v47 }
 0x23a   : > { %v1792_v13 = vpop.f32.mrf.mxu2 }
 0x23b   : > { %v1793_v16 = vadd.f32 %v1792_v13, %v4927_v12 }
 0x23c   : > { %v1881_v18 = vpop.f32.mrf.mxu3  ;;  %v1616_v19 = vpop.f32.mrf.mxu0 }
 0x23d   : > { %v1617_v20 = vadd.f32 %v1616_v19, %v4919_v57  ;;  %v1882_v25 = vadd.f32 %v1881_v18, %v1793_v16 }
 0x23e   : > { %v1705_v23 = vpop.f32.mrf.mxu1 }
 0x23f   : > { %v1706_v35 = vadd.f32 %v1705_v23, %v1617_v20  ;;  %2764 = vst [vmem:[%s4480_s28 + $0x418] sm:$0xff] %v1882_v25 }
 0x241   : > { %2771 = vst [vmem:[%s4480_s28 + $0x450] sm:$0xff] %v1706_v35 }
 0x242   : > { %v1794_v46 = vpop.f32.mrf.mxu2 }
 0x243   : > { %v1795_v49 = vadd.f32 %v1794_v46, %v4927_v12 }
 0x244   : > { %v1883_v50 = vpop.f32.mrf.mxu3  ;;  %v1619_v54 = vpop.f32.mrf.mxu0 }
 0x245   : > { %v1620_v55 = vadd.f32 %v1619_v54, %v4919_v57  ;;  %v1884_v62 = vadd.f32 %v1883_v50, %v1795_v49 }
 0x246   : > { %v1708_v56 = vpop.f32.mrf.mxu1 }
 0x247   : > { %v1709_v63 = vadd.f32 %v1708_v56, %v1620_v55  ;;  %1934 = vmatmul.bf16.gmra.mxu0 %v4306_v2  ;;  %2772 = vst [vmem:[%s4480_s28 + $0x458] sm:$0xff] %v1884_v62  ;;  %2112 = vmatmul.bf16.gmra.mxu2 %v4306_v2 }
 0x249   : > { %2023 = vmatmul.bf16.gmra.mxu1 %v4308_v3  ;;  %2779 = vst [vmem:[%s4480_s28 + $0x490] sm:$0xff] %v1709_v63  ;;  %2201 = vmatmul.bf16.gmra.mxu3 %v4308_v3 }
 0x24a   : > { %v1797_v4 = vpop.f32.mrf.mxu2 }
 0x24b   : > { %v1798_v5 = vadd.f32 %v1797_v4, %v4927_v12  ;;  %v3333_v4 = vld [vmem:[%s5790_s1 + $0x158] sm:$0xf] }
 0x24c   : > { %v1886_v21 = vpop.f32.mrf.mxu3  ;;  %v1621_v6 = vpop.f32.mrf.mxu0 }
 0x24d   : > { %v1622_v7 = vadd.f32 %v1621_v6, %v4919_v57  ;;  %v1887_v34 = vadd.f32 %v1886_v21, %v1798_v5  ;;  %v3745_v5 = vld [vmem:[%s5790_s1 + $0x174] sm:$0xf0] }
 0x24e   : > { %v1710_v11 = vpop.f32.mrf.mxu1  ;;  %v3334_v21 = vor.u32 %v3745_v5, %v3333_v4  ;;  %v3589_v6 = vld [vmem:[%s5790_s1 + $0x358] sm:$0xf]  ;;  %v3733_v4 = vld [vmem:[%s5790_s1 + $0x11c] sm:$0xf] }
 0x24f   : > { %v1711_v13 = vadd.f32 %v1710_v11, %v1622_v7  ;;  %2780 = vst [vmem:[%s4480_s28 + $0x498] sm:$0xff] %v1887_v34  ;;  %v3809_v7 = vld [vmem:[%s5790_s1 + $0x374] sm:$0xf0]  ;;  %v3303_v5 = vld [vmem:[%s5790_s1 + $0x138] sm:$0xf0] }
 0x250   : > { %v3590_v34 = vor.u32 %v3809_v7, %v3589_v6  ;;  %2279 = vmatpush.bf16.msrb.mxu0 %v3334_v21  ;;  %v3306_v21 = vor.u32 %v3733_v4, %v3303_v5  ;;  %v3797_v6 = vld [vmem:[%s5790_s1 + $0x31c] sm:$0xf] }
 0x251   : > { %2787 = vst [vmem:[%s4480_s28 + $0x4d0] sm:$0xff] %v1711_v13  ;;  %v3559_v7 = vld [vmem:[%s5790_s1 + $0x338] sm:$0xf0] }
 0x252   : > { %v1799_v14 = vpop.f32.mrf.mxu2  ;;  %2368 = vmatpush.bf16.msrb.mxu1 %v3590_v34  ;;  %v3562_v34 = vor.u32 %v3797_v6, %v3559_v7  ;;  %2458 = vmatpush.bf16.msrb.mxu2 %v3306_v21 }
 0x253   : > { %v1800_v16 = vadd.f32 %v1799_v14, %v4927_v12 }
 0x254   : > { %v1888_v18 = vpop.f32.mrf.mxu3  ;;  %v1624_v19 = vpop.f32.mrf.mxu0  ;;  %2547 = vmatpush.bf16.msrb.mxu3 %v3562_v34 }
 0x255   : > { %v1625_v20 = vadd.f32 %v1624_v19, %v4919_v57  ;;  %v1889_v25 = vadd.f32 %v1888_v18, %v1800_v16 }
 0x256   : > { %v1713_v23 = vpop.f32.mrf.mxu1 }
 0x257   : > { %v1714_v35 = vadd.f32 %v1713_v23, %v1625_v20  ;;  %1939 = vmatmul.bf16.gmra.mxu0 %v4318_v8  ;;  %2788 = vst [vmem:[%s4480_s28 + $0x4d8] sm:$0xff] %v1889_v25  ;;  %2117 = vmatmul.bf16.gmra.mxu2 %v4318_v8 }
 0x259   : > { %2028 = vmatmul.bf16.gmra.mxu1 %v4320_v9  ;;  %2795 = vst [vmem:[%s4480_s28 + $0x510] sm:$0xff] %v1714_v35  ;;  %2206 = vmatmul.bf16.gmra.mxu3 %v4320_v9 }
 0x25a   : > { %v1802_v46 = vpop.f32.mrf.mxu2 }
 0x25b   : > { %v1803_v49 = vadd.f32 %v1802_v46, %v4927_v12 }
 0x25c   : > { %v1891_v50 = vpop.f32.mrf.mxu3  ;;  %v1626_v54 = vpop.f32.mrf.mxu0 }
 0x25d   : > { %v1627_v55 = vadd.f32 %v1626_v54, %v4919_v57  ;;  %v1892_v62 = vadd.f32 %v1891_v50, %v1803_v49 }
 0x25e   : > { %v1715_v56 = vpop.f32.mrf.mxu1 }
 0x25f   : > { %v1716_v63 = vadd.f32 %v1715_v56, %v1627_v55  ;;  %2796 = vst [vmem:[%s4480_s28 + $0x518] sm:$0xff] %v1892_v62 }
 0x261   : > { %2803 = vst [vmem:[%s4480_s28 + $0x550] sm:$0xff] %v1716_v63 }
 0x262   : > { %v1804_v11 = vpop.f32.mrf.mxu2 }
 0x263   : > { %v1805_v13 = vadd.f32 %v1804_v11, %v4927_v12 }
 0x264   : > { %v1893_v14 = vpop.f32.mrf.mxu3  ;;  %v1629_v16 = vpop.f32.mrf.mxu0 }
 0x265   : > { %v1630_v18 = vadd.f32 %v1629_v16, %v4919_v57  ;;  %v1894_v20 = vadd.f32 %v1893_v14, %v1805_v13 }
 0x266   : > { %v1718_v19 = vpop.f32.mrf.mxu1 }
 0x267   : > { %v1719_v23 = vadd.f32 %v1718_v19, %v1630_v18  ;;  %1944 = vmatmul.bf16.gmra.mxu0 %v4354_v26  ;;  %2804 = vst [vmem:[%s4480_s28 + $0x558] sm:$0xff] %v1894_v20  ;;  %2122 = vmatmul.bf16.gmra.mxu2 %v4354_v26 }
 0x269   : > { %2033 = vmatmul.bf16.gmra.mxu1 %v4356_v27  ;;  %2811 = vst [vmem:[%s4480_s28 + $0x590] sm:$0xff] %v1719_v23  ;;  %2211 = vmatmul.bf16.gmra.mxu3 %v4356_v27 }
 0x26a   : > { %v1807_v25 = vpop.f32.mrf.mxu2 }
 0x26b   : > { %v1808_v35 = vadd.f32 %v1807_v25, %v4927_v12  ;;  %v3301_v25 = vld [vmem:[%s5790_s1 + $0x118] sm:$0xf] }
 0x26c   : > { %v1896_v36 = vpop.f32.mrf.mxu3  ;;  %v1631_v37 = vpop.f32.mrf.mxu0 }
 0x26d   : > { %v1632_v40 = vadd.f32 %v1631_v37, %v4919_v57  ;;  %v1897_v45 = vadd.f32 %v1896_v36, %v1808_v35  ;;  %v3737_v35 = vld [vmem:[%s5790_s1 + $0x134] sm:$0xf0] }
 0x26e   : > { %v1720_v44 = vpop.f32.mrf.mxu1  ;;  %v3302_v36 = vor.u32 %v3737_v35, %v3301_v25  ;;  %v3557_v37 = vld [vmem:[%s5790_s1 + $0x318] sm:$0xf]  ;;  %v3725_v25 = vld [vmem:[%s5790_s1 + $0xdc] sm:$0xf] }
 0x26f   : > { %v1721_v46 = vadd.f32 %v1720_v44, %v1632_v40  ;;  %2812 = vst [vmem:[%s4480_s28 + $0x598] sm:$0xff] %v1897_v45  ;;  %v3801_v40 = vld [vmem:[%s5790_s1 + $0x334] sm:$0xf0]  ;;  %v3271_v35 = vld [vmem:[%s5790_s1 + $0xf8] sm:$0xf0] }
 0x270   : > { %v3558_v45 = vor.u32 %v3801_v40, %v3557_v37  ;;  %2280 = vmatpush.bf16.msrb.mxu0 %v3302_v36  ;;  %v3274_v36 = vor.u32 %v3725_v25, %v3271_v35  ;;  %v3789_v37 = vld [vmem:[%s5790_s1 + $0x2dc] sm:$0xf] }
 0x271   : > { %2819 = vst [vmem:[%s4480_s28 + $0x5d0] sm:$0xff] %v1721_v46  ;;  %v3527_v40 = vld [vmem:[%s5790_s1 + $0x2f8] sm:$0xf0] }
 0x272   : > { %v1809_v48 = vpop.f32.mrf.mxu2  ;;  %2369 = vmatpush.bf16.msrb.mxu1 %v3558_v45  ;;  %v3530_v45 = vor.u32 %v3789_v37, %v3527_v40  ;;  %2459 = vmatpush.bf16.msrb.mxu2 %v3274_v36 }
 0x273   : > { %v1810_v49 = vadd.f32 %v1809_v48, %v4927_v12 }
 0x274   : > { %v1898_v50 = vpop.f32.mrf.mxu3  ;;  %v1634_v54 = vpop.f32.mrf.mxu0  ;;  %2548 = vmatpush.bf16.msrb.mxu3 %v3530_v45  ;;  %v5310_v45 = vld [vmem:[%s5791_s2] sm:$0xff] }
 0x275   : > { %v1635_v55 = vadd.f32 %v1634_v54, %v4919_v57  ;;  %v1899_v62 = vadd.f32 %v1898_v50, %v1810_v49 }
 0x276   : > { %v1723_v56 = vpop.f32.mrf.mxu1 }
 0x277   : > { %v1724_v63 = vadd.f32 %v1723_v56, %v1635_v55  ;;  %1949 = vmatmul.bf16.gmra.mxu0 %v4366_v32  ;;  %2820 = vst [vmem:[%s4480_s28 + $0x5d8] sm:$0xff] %v1899_v62  ;;  %2127 = vmatmul.bf16.gmra.mxu2 %v4366_v32 }
 0x279   : > { %2038 = vmatmul.bf16.gmra.mxu1 %v4368_v33  ;;  %2827 = vst [vmem:[%s4480_s28 + $0x610] sm:$0xff] %v1724_v63  ;;  %2216 = vmatmul.bf16.gmra.mxu3 %v4368_v33 }
 0x27a   : > { %v1812_v11 = vpop.f32.mrf.mxu2 }
 0x27b   : > { %v1813_v13 = vadd.f32 %v1812_v11, %v4927_v12 }
 0x27c   : > { %v1901_v14 = vpop.f32.mrf.mxu3  ;;  %v1636_v16 = vpop.f32.mrf.mxu0 }
 0x27d   : > { %v1637_v18 = vadd.f32 %v1636_v16, %v4919_v57  ;;  %v1902_v20 = vadd.f32 %v1901_v14, %v1813_v13 }
 0x27e   : > { %v1725_v19 = vpop.f32.mrf.mxu1 }
 0x27f   : > { %v1726_v23 = vadd.f32 %v1725_v19, %v1637_v18  ;;  %2828 = vst [vmem:[%s4480_s28 + $0x618] sm:$0xff] %v1902_v20 }
 0x281   : > { %2835 = vst [vmem:[%s4480_s28 + $0x650] sm:$0xff] %v1726_v23 }
 0x282   : > { %v1814_v44 = vpop.f32.mrf.mxu2 }
 0x283   : > { %v1815_v46 = vadd.f32 %v1814_v44, %v4927_v12 }
 0x284   : > { %v1903_v48 = vpop.f32.mrf.mxu3  ;;  %v1639_v49 = vpop.f32.mrf.mxu0 }
 0x285   : > { %v1640_v50 = vadd.f32 %v1639_v49, %v4919_v57  ;;  %v1904_v55 = vadd.f32 %v1903_v48, %v1815_v46 }
 0x286   : > { %v1728_v54 = vpop.f32.mrf.mxu1 }
 0x287   : > { %v1729_v56 = vadd.f32 %v1728_v54, %v1640_v50  ;;  %1954 = vmatmul.bf16.gmra.mxu0 %v4402_v52  ;;  %2836 = vst [vmem:[%s4480_s28 + $0x658] sm:$0xff] %v1904_v55  ;;  %2132 = vmatmul.bf16.gmra.mxu2 %v4402_v52 }
 0x289   : > { %2043 = vmatmul.bf16.gmra.mxu1 %v4404_v53  ;;  %2843 = vst [vmem:[%s4480_s28 + $0x690] sm:$0xff] %v1729_v56  ;;  %2221 = vmatmul.bf16.gmra.mxu3 %v4404_v53 }
 0x28a   : > { %v1817_v62 = vpop.f32.mrf.mxu2 }
 0x28b   : > { %v1818_v63 = vadd.f32 %v1817_v62, %v4927_v12  ;;  %v3269_v62 = vld [vmem:[%s5790_s1 + $0xd8] sm:$0xf] }
 0x28c   : > { %v1906_v4 = vpop.f32.mrf.mxu3  ;;  %v1641_v5 = vpop.f32.mrf.mxu0 }
 0x28d   : > { %v1642_v21 = vadd.f32 %v1641_v5, %v4919_v57  ;;  %v1907_v7 = vadd.f32 %v1906_v4, %v1818_v63  ;;  %v3729_v63 = vld [vmem:[%s5790_s1 + $0xf4] sm:$0xf0] }
 0x28e   : > { %v1730_v6 = vpop.f32.mrf.mxu1  ;;  %v3270_v4 = vor.u32 %v3729_v63, %v3269_v62  ;;  %v3525_v5 = vld [vmem:[%s5790_s1 + $0x2d8] sm:$0xf]  ;;  %v5322_v63 = vperm.slane %v5310_v45, 5 }
 0x28f   : > { %v1731_v11 = vadd.f32 %v1730_v6, %v1642_v21  ;;  %2844 = vst [vmem:[%s4480_s28 + $0x698] sm:$0xff] %v1907_v7  ;;  %v3793_v21 = vld [vmem:[%s5790_s1 + $0x2f4] sm:$0xf0] }
 0x290   : > { %v3526_v7 = vor.u32 %v3793_v21, %v3525_v5  ;;  %2281 = vmatpush.bf16.msrb.mxu0 %v3270_v4  ;;  %v3239_v4 = vld [vmem:[%s5790_s1 + $0xb8] sm:$0xf0] }
 0x291   : > { %2851 = vst [vmem:[%s4480_s28 + $0x6d0] sm:$0xff] %v1731_v11  ;;  %v3781_v21 = vld [vmem:[%s5790_s1 + $0x29c] sm:$0xf] }
 0x292   : > { %v1819_v34 = vpop.f32.mrf.mxu2  ;;  %2370 = vmatpush.bf16.msrb.mxu1 %v3526_v7 }
 0x293   : > { %v1820_v13 = vadd.f32 %v1819_v34, %v4927_v12 }
 0x294   : > { %v1908_v14 = vpop.f32.mrf.mxu3  ;;  %v1644_v16 = vpop.f32.mrf.mxu0 }
 0x295   : > { %v1645_v18 = vadd.f32 %v1644_v16, %v4919_v57  ;;  %v1909_v20 = vadd.f32 %v1908_v14, %v1820_v13 }
 0x296   : > { %v1733_v19 = vpop.f32.mrf.mxu1 }
 0x297   : > { %v1734_v23 = vadd.f32 %v1733_v19, %v1645_v18  ;;  %1959 = vmatmul.bf16.gmra.mxu0 %v4414_v58  ;;  %2852 = vst [vmem:[%s4480_s28 + $0x6d8] sm:$0xff] %v1909_v20  ;;  %2137 = vmatmul.bf16.gmra.mxu2 %v4414_v58 }
 0x299   : > { %2048 = vmatmul.bf16.gmra.mxu1 %v4416_v59  ;;  %2859 = vst [vmem:[%s4480_s28 + $0x710] sm:$0xff] %v1734_v23  ;;  %2226 = vmatmul.bf16.gmra.mxu3 %v4416_v59 }
 0x29a   : > { %v1822_v44 = vpop.f32.mrf.mxu2 }
 0x29b   : > { %v1823_v46 = vadd.f32 %v1822_v44, %v4927_v12 }
 0x29c   : > { %v1911_v48 = vpop.f32.mrf.mxu3  ;;  %v1646_v49 = vpop.f32.mrf.mxu0 }
 0x29d   : > { %v1647_v50 = vadd.f32 %v1646_v49, %v4919_v57  ;;  %v1912_v55 = vadd.f32 %v1911_v48, %v1823_v46  ;;  %v5313_v46 = vperm.slane %v5310_v45, 4 }
 0x29e   : > { %v1735_v54 = vpop.f32.mrf.mxu1 }
 0x29f   : > { %v1736_v56 = vadd.f32 %v1735_v54, %v1647_v50  ;;  %2860 = vst [vmem:[%s4480_s28 + $0x718] sm:$0xff] %v1912_v55 }
 0x2a1   : > { %2867 = vst [vmem:[%s4480_s28 + $0x750] sm:$0xff] %v1736_v56 }
 0x2a2   : > { %v1824_v6 = vpop.f32.mrf.mxu2 }
 0x2a3   : > { %v1825_v11 = vadd.f32 %v1824_v6, %v4927_v12  ;;  %v3495_v6 = vld [vmem:[%s5790_s1 + $0x2b8] sm:$0xf0] }
 0x2a4   : > { %v1913_v34 = vpop.f32.mrf.mxu3  ;;  %v1649_v13 = vpop.f32.mrf.mxu0 }
 0x2a5   : > { %v1650_v14 = vadd.f32 %v1649_v13, %v4919_v57  ;;  %v1914_v18 = vadd.f32 %v1913_v34, %v1825_v11  ;;  %v3498_v11 = vor.u32 %v3781_v21, %v3495_v6 }
 0x2a6   : > { %v1738_v16 = vpop.f32.mrf.mxu1 }
 0x2a7   : > { %v1739_v19 = vadd.f32 %v1738_v16, %v1650_v14  ;;  %1964 = vmatmul.bf16.gmra.mxu0 %v4450_v15  ;;  %2868 = vst [vmem:[%s4480_s28 + $0x758] sm:$0xff] %v1914_v18  ;;  %2142 = vmatmul.bf16.gmra.mxu2 %v4450_v15 }
 0x2a8   : > { %2549 = vmatpush.bf16.msrb.mxu3 %v3498_v11 }
 0x2a9   : > { %2053 = vmatmul.bf16.gmra.mxu1 %v4452_v17  ;;  %2875 = vst [vmem:[%s4480_s28 + $0x790] sm:$0xff] %v1739_v19  ;;  %2231 = vmatmul.bf16.gmra.mxu3 %v4452_v17 }
 0x2aa   : > { %v1827_v20 = vpop.f32.mrf.mxu2 }
 0x2ab   : > { %v1828_v23 = vadd.f32 %v1827_v20, %v4927_v12 }
 0x2ac   : > { %v1916_v25 = vpop.f32.mrf.mxu3  ;;  %v1651_v35 = vpop.f32.mrf.mxu0 }
 0x2ad   : > { %v1652_v36 = vadd.f32 %v1651_v35, %v4919_v57  ;;  %v1917_v40 = vadd.f32 %v1916_v25, %v1828_v23  ;;  %v3237_v23 = vld [vmem:[%s5790_s1 + $0x98] sm:$0xf] }
 0x2ae   : > { %v1740_v37 = vpop.f32.mrf.mxu1  ;;  %v3721_v25 = vld [vmem:[%s5790_s1 + $0xb4] sm:$0xf0] }
 0x2af   : > { %v1741_v44 = vadd.f32 %v1740_v37, %v1652_v36  ;;  %2876 = vst [vmem:[%s4480_s28 + $0x798] sm:$0xff] %v1917_v40  ;;  %v3238_v35 = vor.u32 %v3721_v25, %v3237_v23  ;;  %v3493_v36 = vld [vmem:[%s5790_s1 + $0x298] sm:$0xf]  ;;  %v3709_v25 = vld [vmem:[%s5790_s1 + $0x5c] sm:$0xf] }
 0x2b0   : > { %v3785_v37 = vld [vmem:[%s5790_s1 + $0x2b4] sm:$0xf0] }
 0x2b1   : > { %2883 = vst [vmem:[%s4480_s28 + $0x7d0] sm:$0xff] %v1741_v44  ;;  %v3494_v44 = vor.u32 %v3785_v37, %v3493_v36  ;;  %2282 = vmatpush.bf16.msrb.mxu0 %v3238_v35  ;;  %v3207_v35 = vld [vmem:[%s5790_s1 + $0x78] sm:$0xf0] }
 0x2b2   : > { %v1829_v48 = vpop.f32.mrf.mxu2  ;;  %v3210_v36 = vor.u32 %v3709_v25, %v3207_v35  ;;  %v3773_v37 = vld [vmem:[%s5790_s1 + $0x25c] sm:$0xf] }
 0x2b3   : > { %v1830_v49 = vadd.f32 %v1829_v48, %v4927_v12  ;;  %v3717_v12 = vld [vmem:[%s5790_s1 + $0x9c] sm:$0xf]  ;;  %2371 = vmatpush.bf16.msrb.mxu1 %v3494_v44 }
 0x2b4   : > { %v1918_v50 = vpop.f32.mrf.mxu3  ;;  %v1930_v57 = vpop.f32.mrf.mxu0  ;;  %v3242_v5 = vor.u32 %v3717_v12, %v3239_v4 }
 0x2b5   : > { %v1931_v54 = vadd.f32 %v1930_v57, %v5313_v46  ;;  %v1919_v56 = vadd.f32 %v1918_v50, %v1830_v49 }
 0x2b6   : > { %v2019_v55 = vpop.f32.mrf.mxu1  ;;  %2460 = vmatpush.bf16.msrb.mxu2 %v3242_v5 }
 0x2b7   : > { %v2020_v62 = vadd.f32 %v2019_v55, %v1931_v54  ;;  %1969 = vmatmul.bf16.gmra.mxu0 %v4470_v24  ;;  %2884 = vst [vmem:[%s4480_s28 + $0x7d8] sm:$0xff] %v1919_v56  ;;  %2147 = vmatmul.bf16.gmra.mxu2 %v4470_v24 }
 0x2b9   : > { %2058 = vmatmul.bf16.gmra.mxu1 %v4472_v28  ;;  %2637 = vst [vmem:[%s4480_s28 + $0x20] sm:$0xff] %v2020_v62  ;;  %2236 = vmatmul.bf16.gmra.mxu3 %v4472_v28 }
 0x2ba   : > { %v2108_v7 = vpop.f32.mrf.mxu2  ;;  %2461 = vmatpush.bf16.msrb.mxu2 %v3210_v36 }
 0x2bb   : > { %v2109_v34 = vadd.f32 %v2108_v7, %v5322_v63 }
 0x2bc   : > { %v2197_v13 = vpop.f32.mrf.mxu3  ;;  %v1932_v14 = vpop.f32.mrf.mxu0 }
 0x2bd   : > { %v1933_v16 = vadd.f32 %v1932_v14, %v5313_v46  ;;  %v2198_v19 = vadd.f32 %v2197_v13, %v2109_v34 }
 0x2be   : > { %v2021_v18 = vpop.f32.mrf.mxu1 }
 0x2bf   : > { %v2022_v20 = vadd.f32 %v2021_v18, %v1933_v16  ;;  %2638 = vst [vmem:[%s4480_s28 + $0x28] sm:$0xff] %v2198_v19 }
 0x2c1   : > { %2645 = vst [vmem:[%s4480_s28 + $0x60] sm:$0xff] %v2022_v20 }
 0x2c2   : > { %v2110_v40 = vpop.f32.mrf.mxu2 }
 0x2c3   : > { %v2111_v48 = vadd.f32 %v2110_v40, %v5322_v63  ;;  %v3463_v40 = vld [vmem:[%s5790_s1 + $0x278] sm:$0xf0] }
 0x2c4   : > { %v2199_v49 = vpop.f32.mrf.mxu3  ;;  %v1935_v50 = vpop.f32.mrf.mxu0 }
 0x2c5   : > { %v1936_v57 = vadd.f32 %v1935_v50, %v5313_v46  ;;  %v2200_v55 = vadd.f32 %v2199_v49, %v2111_v48  ;;  %v3466_v48 = vor.u32 %v3773_v37, %v3463_v40 }
 0x2c6   : > { %v2024_v54 = vpop.f32.mrf.mxu1 }
 0x2c7   : > { %v2025_v56 = vadd.f32 %v2024_v54, %v1936_v57  ;;  %1974 = vmatmul.bf16.gmra.mxu0 %v4516_v1  ;;  %2646 = vst [vmem:[%s4480_s28 + $0x68] sm:$0xff] %v2200_v55  ;;  %2152 = vmatmul.bf16.gmra.mxu2 %v4516_v1 }
 0x2c8   : > { %2550 = vmatpush.bf16.msrb.mxu3 %v3466_v48 }
 0x2c9   : > { %2063 = vmatmul.bf16.gmra.mxu1 %v4519_v10  ;;  %2653 = vst [vmem:[%s4480_s28 + $0xa0] sm:$0xff] %v2025_v56  ;;  %2241 = vmatmul.bf16.gmra.mxu3 %v4519_v10 }
 0x2ca   : > { %v2113_v62 = vpop.f32.mrf.mxu2 }
 0x2cb   : > { %v2114_v12 = vadd.f32 %v2113_v62, %v5322_v63 }
 0x2cc   : > { %v2202_v4 = vpop.f32.mrf.mxu3  ;;  %v1937_v5 = vpop.f32.mrf.mxu0 }
 0x2cd   : > { %v1938_v21 = vadd.f32 %v1937_v5, %v5313_v46  ;;  %v2203_v7 = vadd.f32 %v2202_v4, %v2114_v12  ;;  %v3205_v12 = vld [vmem:[%s5790_s1 + $0x58] sm:$0xf] }
 0x2ce   : > { %v2026_v6 = vpop.f32.mrf.mxu1  ;;  %v3713_v4 = vld [vmem:[%s5790_s1 + $0x74] sm:$0xf0] }
 0x2cf   : > { %v2027_v11 = vadd.f32 %v2026_v6, %v1938_v21  ;;  %2654 = vst [vmem:[%s4480_s28 + $0xa8] sm:$0xff] %v2203_v7  ;;  %v3206_v5 = vor.u32 %v3713_v4, %v3205_v12  ;;  %v3461_v21 = vld [vmem:[%s5790_s1 + $0x258] sm:$0xf]  ;;  %v3701_v4 = vld [vmem:[%s5790_s1 + $0x1c] sm:$0xf] }
 0x2d0   : > { %v3777_v6 = vld [vmem:[%s5790_s1 + $0x274] sm:$0xf0] }
 0x2d1   : > { %2661 = vst [vmem:[%s4480_s28 + $0xe0] sm:$0xff] %v2027_v11  ;;  %v3462_v11 = vor.u32 %v3777_v6, %v3461_v21  ;;  %2283 = vmatpush.bf16.msrb.mxu0 %v3206_v5  ;;  %v3175_v5 = vld [vmem:[%s5790_s1 + $0x38] sm:$0xf0] }
 0x2d2   : > { %v2115_v34 = vpop.f32.mrf.mxu2  ;;  %v3178_v21 = vor.u32 %v3701_v4, %v3175_v5  ;;  %v3765_v6 = vld [vmem:[%s5790_s1 + $0x21c] sm:$0xf] }
 0x2d3   : > { %v2116_v13 = vadd.f32 %v2115_v34, %v5322_v63  ;;  %2372 = vmatpush.bf16.msrb.mxu1 %v3462_v11 }
 0x2d4   : > { %v2204_v14 = vpop.f32.mrf.mxu3  ;;  %v1940_v16 = vpop.f32.mrf.mxu0  ;;  %2462 = vmatpush.bf16.msrb.mxu2 %v3178_v21 }
 0x2d5   : > { %v1941_v18 = vadd.f32 %v1940_v16, %v5313_v46  ;;  %v2205_v20 = vadd.f32 %v2204_v14, %v2116_v13 }
 0x2d6   : > { %v2029_v19 = vpop.f32.mrf.mxu1 }
 0x2d7   : > { %v2030_v23 = vadd.f32 %v2029_v19, %v1941_v18  ;;  %1979 = vmatmul.bf16.gmra.mxu0 %v4536_v38  ;;  %2662 = vst [vmem:[%s4480_s28 + $0xe8] sm:$0xff] %v2205_v20  ;;  %2157 = vmatmul.bf16.gmra.mxu2 %v4536_v38 }
 0x2d9   : > { %2068 = vmatmul.bf16.gmra.mxu1 %v4539_v42  ;;  %2669 = vst [vmem:[%s4480_s28 + $0x120] sm:$0xff] %v2030_v23  ;;  %2246 = vmatmul.bf16.gmra.mxu3 %v4539_v42 }
 0x2da   : > { %v2118_v44 = vpop.f32.mrf.mxu2 }
 0x2db   : > { %v2119_v49 = vadd.f32 %v2118_v44, %v5322_v63 }
 0x2dc   : > { %v2207_v50 = vpop.f32.mrf.mxu3  ;;  %v1942_v57 = vpop.f32.mrf.mxu0 }
 0x2dd   : > { %v1943_v54 = vadd.f32 %v1942_v57, %v5313_v46  ;;  %v2208_v56 = vadd.f32 %v2207_v50, %v2119_v49 }
 0x2de   : > { %v2031_v55 = vpop.f32.mrf.mxu1 }
 0x2df   : > { %v2032_v62 = vadd.f32 %v2031_v55, %v1943_v54  ;;  %2670 = vst [vmem:[%s4480_s28 + $0x128] sm:$0xff] %v2208_v56 }
 0x2e1   : > { %2677 = vst [vmem:[%s4480_s28 + $0x160] sm:$0xff] %v2032_v62 }
 0x2e2   : > { %v2120_v7 = vpop.f32.mrf.mxu2 }
 0x2e3   : > { %v2121_v34 = vadd.f32 %v2120_v7, %v5322_v63  ;;  %v3431_v7 = vld [vmem:[%s5790_s1 + $0x238] sm:$0xf0] }
 0x2e4   : > { %v2209_v13 = vpop.f32.mrf.mxu3  ;;  %v1945_v14 = vpop.f32.mrf.mxu0 }
 0x2e5   : > { %v1946_v16 = vadd.f32 %v1945_v14, %v5313_v46  ;;  %v2210_v19 = vadd.f32 %v2209_v13, %v2121_v34  ;;  %v3434_v34 = vor.u32 %v3765_v6, %v3431_v7 }
 0x2e6   : > { %v2034_v18 = vpop.f32.mrf.mxu1 }
 0x2e7   : > { %v2035_v20 = vadd.f32 %v2034_v18, %v1946_v16  ;;  %1984 = vmatmul.bf16.gmra.mxu0 %v4580_v22  ;;  %2678 = vst [vmem:[%s4480_s28 + $0x168] sm:$0xff] %v2210_v19  ;;  %2162 = vmatmul.bf16.gmra.mxu2 %v4580_v22 }
 0x2e8   : > { %2551 = vmatpush.bf16.msrb.mxu3 %v3434_v34 }
 0x2e9   : > { %2073 = vmatmul.bf16.gmra.mxu1 %v4583_v31  ;;  %2685 = vst [vmem:[%s4480_s28 + $0x1a0] sm:$0xff] %v2035_v20  ;;  %2251 = vmatmul.bf16.gmra.mxu3 %v4583_v31 }
 0x2ea   : > { %v2123_v23 = vpop.f32.mrf.mxu2 }
 0x2eb   : > { %v2124_v25 = vadd.f32 %v2123_v23, %v5322_v63 }
 0x2ec   : > { %v2212_v35 = vpop.f32.mrf.mxu3  ;;  %v1947_v36 = vpop.f32.mrf.mxu0 }
 0x2ed   : > { %v1948_v37 = vadd.f32 %v1947_v36, %v5313_v46  ;;  %v2213_v44 = vadd.f32 %v2212_v35, %v2124_v25  ;;  %v3173_v25 = vld [vmem:[%s5790_s1 + $0x18] sm:$0xf] }
 0x2ee   : > { %v2036_v40 = vpop.f32.mrf.mxu1  ;;  %v3705_v35 = vld [vmem:[%s5790_s1 + $0x34] sm:$0xf0] }
 0x2ef   : > { %v2037_v48 = vadd.f32 %v2036_v40, %v1948_v37  ;;  %2686 = vst [vmem:[%s4480_s28 + $0x1a8] sm:$0xff] %v2213_v44  ;;  %v3174_v36 = vor.u32 %v3705_v35, %v3173_v25  ;;  %v3429_v37 = vld [vmem:[%s5790_s1 + $0x218] sm:$0xf] }
 0x2f0   : > { %v3769_v40 = vld [vmem:[%s5790_s1 + $0x234] sm:$0xf0] }
 0x2f1   : > { %2693 = vst [vmem:[%s4480_s28 + $0x1e0] sm:$0xff] %v2037_v48  ;;  %v3430_v48 = vor.u32 %v3769_v40, %v3429_v37  ;;  %2284 = vmatpush.bf16.msrb.mxu0 %v3174_v36 }
 0x2f2   : > { %v2125_v49 = vpop.f32.mrf.mxu2 }
 0x2f3   : > { %v2126_v50 = vadd.f32 %v2125_v49, %v5322_v63  ;;  %2373 = vmatpush.bf16.msrb.mxu1 %v3430_v48 }
 0x2f4   : > { %v2214_v57 = vpop.f32.mrf.mxu3  ;;  %v1950_v54 = vpop.f32.mrf.mxu0 }
 0x2f5   : > { %v1951_v55 = vadd.f32 %v1950_v54, %v5313_v46  ;;  %v2215_v62 = vadd.f32 %v2214_v57, %v2126_v50 }
 0x2f6   : > { %v2039_v56 = vpop.f32.mrf.mxu1 }
 0x2f7   : > { %v2040_v12 = vadd.f32 %v2039_v56, %v1951_v55  ;;  %1989 = vmatmul.bf16.gmra.mxu0 %v4600_v60  ;;  %2694 = vst [vmem:[%s4480_s28 + $0x1e8] sm:$0xff] %v2215_v62  ;;  %2167 = vmatmul.bf16.gmra.mxu2 %v4600_v60 }
 0x2f9   : > { %2078 = vmatmul.bf16.gmra.mxu1 %v4603_v0  ;;  %2701 = vst [vmem:[%s4480_s28 + $0x220] sm:$0xff] %v2040_v12  ;;  %2256 = vmatmul.bf16.gmra.mxu3 %v4603_v0 }
 0x2fa   : > { %v2128_v11 = vpop.f32.mrf.mxu2 }
 0x2fb   : > { %v2129_v13 = vadd.f32 %v2128_v11, %v5322_v63 }
 0x2fc   : > { %v2217_v14 = vpop.f32.mrf.mxu3  ;;  %v1952_v16 = vpop.f32.mrf.mxu0 }
 0x2fd   : > { %v1953_v18 = vadd.f32 %v1952_v16, %v5313_v46  ;;  %v2218_v20 = vadd.f32 %v2217_v14, %v2129_v13 }
 0x2fe   : > { %v2041_v19 = vpop.f32.mrf.mxu1 }
 0x2ff   : > { %v2042_v23 = vadd.f32 %v2041_v19, %v1953_v18  ;;  %2702 = vst [vmem:[%s4480_s28 + $0x228] sm:$0xff] %v2218_v20 }
 0x301   : > { %2709 = vst [vmem:[%s4480_s28 + $0x260] sm:$0xff] %v2042_v23 }
 0x302   : > { %v2130_v44 = vpop.f32.mrf.mxu2 }
 0x303   : > { %v2131_v49 = vadd.f32 %v2130_v44, %v5322_v63 }
 0x304   : > { %v2219_v50 = vpop.f32.mrf.mxu3  ;;  %v1955_v57 = vpop.f32.mrf.mxu0 }
 0x305   : > { %v1956_v54 = vadd.f32 %v1955_v57, %v5313_v46  ;;  %v2220_v56 = vadd.f32 %v2219_v50, %v2131_v49 }
 0x306   : > { %v2044_v55 = vpop.f32.mrf.mxu1 }
 0x307   : > { %v2045_v62 = vadd.f32 %v2044_v55, %v1956_v54  ;;  %1994 = vmatmul.bf16.gmra.mxu0 %v4644_v51  ;;  %2710 = vst [vmem:[%s4480_s28 + $0x268] sm:$0xff] %v2220_v56  ;;  %2172 = vmatmul.bf16.gmra.mxu2 %v4644_v51 }
 0x309   : > { %2083 = vmatmul.bf16.gmra.mxu1 %v4647_v61  ;;  %2717 = vst [vmem:[%s4480_s28 + $0x2a0] sm:$0xff] %v2045_v62  ;;  %2261 = vmatmul.bf16.gmra.mxu3 %v4647_v61 }
 0x30a   : > { %v2133_v12 = vpop.f32.mrf.mxu2 }
 0x30b   : > { %v2134_v4 = vadd.f32 %v2133_v12, %v5322_v63 }
 0x30c   : > { %v2222_v5 = vpop.f32.mrf.mxu3  ;;  %v1957_v21 = vpop.f32.mrf.mxu0 }
 0x30d   : > { %v1958_v6 = vadd.f32 %v1957_v21, %v5313_v46  ;;  %v2223_v11 = vadd.f32 %v2222_v5, %v2134_v4 }
 0x30e   : > { %v2046_v7 = vpop.f32.mrf.mxu1 }
 0x30f   : > { %v2047_v34 = vadd.f32 %v2046_v7, %v1958_v6  ;;  %2718 = vst [vmem:[%s4480_s28 + $0x2a8] sm:$0xff] %v2223_v11 }
 0x311   : > { %2725 = vst [vmem:[%s4480_s28 + $0x2e0] sm:$0xff] %v2047_v34 }
 0x312   : > { %v2135_v13 = vpop.f32.mrf.mxu2 }
 0x313   : > { %v2136_v14 = vadd.f32 %v2135_v13, %v5322_v63 }
 0x314   : > { %v2224_v16 = vpop.f32.mrf.mxu3  ;;  %v1960_v18 = vpop.f32.mrf.mxu0 }
 0x315   : > { %v1961_v19 = vadd.f32 %v1960_v18, %v5313_v46  ;;  %v2225_v23 = vadd.f32 %v2224_v16, %v2136_v14 }
 0x316   : > { %v2049_v20 = vpop.f32.mrf.mxu1 }
 0x317   : > { %v2050_v25 = vadd.f32 %v2049_v20, %v1961_v19  ;;  %1999 = vmatmul.bf16.gmra.mxu0 %v4664_v30  ;;  %2726 = vst [vmem:[%s4480_s28 + $0x2e8] sm:$0xff] %v2225_v23  ;;  %2177 = vmatmul.bf16.gmra.mxu2 %v4664_v30 }
 0x319   : > { %2088 = vmatmul.bf16.gmra.mxu1 %v4667_v39  ;;  %2733 = vst [vmem:[%s4480_s28 + $0x320] sm:$0xff] %v2050_v25  ;;  %2266 = vmatmul.bf16.gmra.mxu3 %v4667_v39 }
 0x31a   : > { %v2138_v35 = vpop.f32.mrf.mxu2 }
 0x31b   : > { %v2139_v36 = vadd.f32 %v2138_v35, %v5322_v63 }
 0x31c   : > { %v2227_v37 = vpop.f32.mrf.mxu3  ;;  %v1962_v40 = vpop.f32.mrf.mxu0 }
 0x31d   : > { %v1963_v44 = vadd.f32 %v1962_v40, %v5313_v46  ;;  %v2228_v49 = vadd.f32 %v2227_v37, %v2139_v36 }
 0x31e   : > { %v2051_v48 = vpop.f32.mrf.mxu1 }
 0x31f   : > { %v2052_v50 = vadd.f32 %v2051_v48, %v1963_v44  ;;  %2734 = vst [vmem:[%s4480_s28 + $0x328] sm:$0xff] %v2228_v49 }
 0x321   : > { %2741 = vst [vmem:[%s4480_s28 + $0x360] sm:$0xff] %v2052_v50 }
 0x322   : > { %v2140_v57 = vpop.f32.mrf.mxu2 }
 0x323   : > { %v2141_v54 = vadd.f32 %v2140_v57, %v5322_v63 }
 0x324   : > { %v2229_v55 = vpop.f32.mrf.mxu3  ;;  %v1965_v56 = vpop.f32.mrf.mxu0 }
 0x325   : > { %v1966_v62 = vadd.f32 %v1965_v56, %v5313_v46  ;;  %v2230_v4 = vadd.f32 %v2229_v55, %v2141_v54 }
 0x326   : > { %v2054_v12 = vpop.f32.mrf.mxu1 }
 0x327   : > { %v2055_v5 = vadd.f32 %v2054_v12, %v1966_v62  ;;  %2004 = vmatmul.bf16.gmra.mxu0 %v4708_v29  ;;  %2742 = vst [vmem:[%s4480_s28 + $0x368] sm:$0xff] %v2230_v4  ;;  %2182 = vmatmul.bf16.gmra.mxu2 %v4708_v29 }
 0x329   : > { %2093 = vmatmul.bf16.gmra.mxu1 %v4711_v41  ;;  %2749 = vst [vmem:[%s4480_s28 + $0x3a0] sm:$0xff] %v2055_v5  ;;  %2271 = vmatmul.bf16.gmra.mxu3 %v4711_v41 }
 0x32a   : > { %v2143_v21 = vpop.f32.mrf.mxu2 }
 0x32b   : > { %v2144_v6 = vadd.f32 %v2143_v21, %v5322_v63 }
 0x32c   : > { %v2232_v7 = vpop.f32.mrf.mxu3  ;;  %v1967_v11 = vpop.f32.mrf.mxu0 }
 0x32d   : > { %v1968_v34 = vadd.f32 %v1967_v11, %v5313_v46  ;;  %v2233_v14 = vadd.f32 %v2232_v7, %v2144_v6 }
 0x32e   : > { %v2056_v13 = vpop.f32.mrf.mxu1 }
 0x32f   : > { %v2057_v16 = vadd.f32 %v2056_v13, %v1968_v34  ;;  %2750 = vst [vmem:[%s4480_s28 + $0x3a8] sm:$0xff] %v2233_v14 }
 0x331   : > { %2757 = vst [vmem:[%s4480_s28 + $0x3e0] sm:$0xff] %v2057_v16 }
 0x332   : > { %v2145_v18 = vpop.f32.mrf.mxu2 }
 0x333   : > { %v2146_v19 = vadd.f32 %v2145_v18, %v5322_v63 }
 0x334   : > { %v2234_v20 = vpop.f32.mrf.mxu3  ;;  %v1970_v23 = vpop.f32.mrf.mxu0 }
 0x335   : > { %v1971_v25 = vadd.f32 %v1970_v23, %v5313_v46  ;;  %v2235_v36 = vadd.f32 %v2234_v20, %v2146_v19 }
 0x336   : > { %v2059_v35 = vpop.f32.mrf.mxu1 }
 0x337   : > { %v2060_v37 = vadd.f32 %v2059_v35, %v1971_v25  ;;  %2285 = vmatmul.bf16.vlgmr.msrb.gmra.mxu0 %v4264_v43  ;;  %2758 = vst [vmem:[%s4480_s28 + $0x3e8] sm:$0xff] %v2235_v36  ;;  %2463 = vmatmul.bf16.vlgmr.msrb.gmra.mxu2 %v4264_v43 }
 0x339   : > { %2374 = vmatmul.bf16.vlgmr.msrb.gmra.mxu1 %v4272_v47  ;;  %2765 = vst [vmem:[%s4480_s28 + $0x420] sm:$0xff] %v2060_v37  ;;  %2552 = vmatmul.bf16.vlgmr.msrb.gmra.mxu3 %v4272_v47 }
 0x33a   : > { %v2148_v40 = vpop.f32.mrf.mxu2 }
 0x33b   : > { %v2149_v44 = vadd.f32 %v2148_v40, %v5322_v63 }
 0x33c   : > { %v2237_v48 = vpop.f32.mrf.mxu3  ;;  %v1972_v49 = vpop.f32.mrf.mxu0 }
 0x33d   : > { %v1973_v50 = vadd.f32 %v1972_v49, %v5313_v46  ;;  %v2238_v54 = vadd.f32 %v2237_v48, %v2149_v44 }
 0x33e   : > { %v2061_v57 = vpop.f32.mrf.mxu1 }
 0x33f   : > { %v2062_v55 = vadd.f32 %v2061_v57, %v1973_v50  ;;  %2766 = vst [vmem:[%s4480_s28 + $0x428] sm:$0xff] %v2238_v54 }
 0x341   : > { %2773 = vst [vmem:[%s4480_s28 + $0x460] sm:$0xff] %v2062_v55 }
 0x342   : > { %v2150_v56 = vpop.f32.mrf.mxu2 }
 0x343   : > { %v2151_v43 = vadd.f32 %v2150_v56, %v5322_v63 }
 0x344   : > { %v2239_v62 = vpop.f32.mrf.mxu3  ;;  %v1975_v12 = vpop.f32.mrf.mxu0 }
 0x345   : > { %v1976_v47 = vadd.f32 %v1975_v12, %v5313_v46  ;;  %v2240_v5 = vadd.f32 %v2239_v62, %v2151_v43 }
 0x346   : > { %v2064_v4 = vpop.f32.mrf.mxu1 }
 0x347   : > { %v2065_v21 = vadd.f32 %v2064_v4, %v1976_v47  ;;  %2290 = vmatmul.bf16.gmra.mxu0 %v4306_v2  ;;  %2774 = vst [vmem:[%s4480_s28 + $0x468] sm:$0xff] %v2240_v5  ;;  %2468 = vmatmul.bf16.gmra.mxu2 %v4306_v2 }
 0x349   : > { %2379 = vmatmul.bf16.gmra.mxu1 %v4308_v3  ;;  %2781 = vst [vmem:[%s4480_s28 + $0x4a0] sm:$0xff] %v2065_v21  ;;  %2557 = vmatmul.bf16.gmra.mxu3 %v4308_v3 }
 0x34a   : > { %v2153_v6 = vpop.f32.mrf.mxu2 }
 0x34b   : > { %v2154_v7 = vadd.f32 %v2153_v6, %v5322_v63 }
 0x34c   : > { %v2242_v11 = vpop.f32.mrf.mxu3  ;;  %v1977_v34 = vpop.f32.mrf.mxu0 }
 0x34d   : > { %v1978_v13 = vadd.f32 %v1977_v34, %v5313_v46  ;;  %v2243_v16 = vadd.f32 %v2242_v11, %v2154_v7 }
 0x34e   : > { %v2066_v14 = vpop.f32.mrf.mxu1 }
 0x34f   : > { %v2067_v18 = vadd.f32 %v2066_v14, %v1978_v13  ;;  %2782 = vst [vmem:[%s4480_s28 + $0x4a8] sm:$0xff] %v2243_v16 }
 0x351   : > { %2789 = vst [vmem:[%s4480_s28 + $0x4e0] sm:$0xff] %v2067_v18 }
 0x352   : > { %v2155_v19 = vpop.f32.mrf.mxu2 }
 0x353   : > { %v2156_v2 = vadd.f32 %v2155_v19, %v5322_v63 }
 0x354   : > { %v2244_v20 = vpop.f32.mrf.mxu3  ;;  %v1980_v23 = vpop.f32.mrf.mxu0 }
 0x355   : > { %v1981_v3 = vadd.f32 %v1980_v23, %v5313_v46  ;;  %v2245_v35 = vadd.f32 %v2244_v20, %v2156_v2 }
 0x356   : > { %v2069_v25 = vpop.f32.mrf.mxu1 }
 0x357   : > { %v2070_v36 = vadd.f32 %v2069_v25, %v1981_v3  ;;  %2295 = vmatmul.bf16.gmra.mxu0 %v4318_v8  ;;  %2790 = vst [vmem:[%s4480_s28 + $0x4e8] sm:$0xff] %v2245_v35  ;;  %2473 = vmatmul.bf16.gmra.mxu2 %v4318_v8 }
 0x359   : > { %2384 = vmatmul.bf16.gmra.mxu1 %v4320_v9  ;;  %2797 = vst [vmem:[%s4480_s28 + $0x520] sm:$0xff] %v2070_v36  ;;  %2562 = vmatmul.bf16.gmra.mxu3 %v4320_v9 }
 0x35a   : > { %v2158_v37 = vpop.f32.mrf.mxu2 }
 0x35b   : > { %v2159_v40 = vadd.f32 %v2158_v37, %v5322_v63 }
 0x35c   : > { %v2247_v44 = vpop.f32.mrf.mxu3  ;;  %v1982_v48 = vpop.f32.mrf.mxu0 }
 0x35d   : > { %v1983_v49 = vadd.f32 %v1982_v48, %v5313_v46  ;;  %v2248_v57 = vadd.f32 %v2247_v44, %v2159_v40 }
 0x35e   : > { %v2071_v50 = vpop.f32.mrf.mxu1 }
 0x35f   : > { %v2072_v54 = vadd.f32 %v2071_v50, %v1983_v49  ;;  %2798 = vst [vmem:[%s4480_s28 + $0x528] sm:$0xff] %v2248_v57 }
 0x361   : > { %2805 = vst [vmem:[%s4480_s28 + $0x560] sm:$0xff] %v2072_v54 }
 0x362   : > { %v2160_v55 = vpop.f32.mrf.mxu2 }
 0x363   : > { %v2161_v8 = vadd.f32 %v2160_v55, %v5322_v63 }
 0x364   : > { %v2249_v56 = vpop.f32.mrf.mxu3  ;;  %v1985_v43 = vpop.f32.mrf.mxu0 }
 0x365   : > { %v1986_v9 = vadd.f32 %v1985_v43, %v5313_v46  ;;  %v2250_v12 = vadd.f32 %v2249_v56, %v2161_v8 }
 0x366   : > { %v2074_v62 = vpop.f32.mrf.mxu1 }
 0x367   : > { %v2075_v47 = vadd.f32 %v2074_v62, %v1986_v9  ;;  %2300 = vmatmul.bf16.gmra.mxu0 %v4354_v26  ;;  %2806 = vst [vmem:[%s4480_s28 + $0x568] sm:$0xff] %v2250_v12  ;;  %2478 = vmatmul.bf16.gmra.mxu2 %v4354_v26 }
 0x369   : > { %2389 = vmatmul.bf16.gmra.mxu1 %v4356_v27  ;;  %2813 = vst [vmem:[%s4480_s28 + $0x5a0] sm:$0xff] %v2075_v47  ;;  %2567 = vmatmul.bf16.gmra.mxu3 %v4356_v27 }
 0x36a   : > { %v2163_v4 = vpop.f32.mrf.mxu2 }
 0x36b   : > { %v2164_v5 = vadd.f32 %v2163_v4, %v5322_v63 }
 0x36c   : > { %v2252_v21 = vpop.f32.mrf.mxu3  ;;  %v1987_v6 = vpop.f32.mrf.mxu0 }
 0x36d   : > { %v1988_v7 = vadd.f32 %v1987_v6, %v5313_v46  ;;  %v2253_v34 = vadd.f32 %v2252_v21, %v2164_v5 }
 0x36e   : > { %v2076_v11 = vpop.f32.mrf.mxu1 }
 0x36f   : > { %v2077_v13 = vadd.f32 %v2076_v11, %v1988_v7  ;;  %2814 = vst [vmem:[%s4480_s28 + $0x5a8] sm:$0xff] %v2253_v34 }
 0x371   : > { %2821 = vst [vmem:[%s4480_s28 + $0x5e0] sm:$0xff] %v2077_v13 }
 0x372   : > { %v2165_v14 = vpop.f32.mrf.mxu2 }
 0x373   : > { %v2166_v26 = vadd.f32 %v2165_v14, %v5322_v63 }
 0x374   : > { %v2254_v16 = vpop.f32.mrf.mxu3  ;;  %v1990_v18 = vpop.f32.mrf.mxu0 }
 0x375   : > { %v1991_v27 = vadd.f32 %v1990_v18, %v5313_v46  ;;  %v2255_v2 = vadd.f32 %v2254_v16, %v2166_v26 }
 0x376   : > { %v2079_v19 = vpop.f32.mrf.mxu1 }
 0x377   : > { %v2080_v20 = vadd.f32 %v2079_v19, %v1991_v27  ;;  %2305 = vmatmul.bf16.gmra.mxu0 %v4366_v32  ;;  %2822 = vst [vmem:[%s4480_s28 + $0x5e8] sm:$0xff] %v2255_v2  ;;  %2483 = vmatmul.bf16.gmra.mxu2 %v4366_v32 }
 0x379   : > { %2394 = vmatmul.bf16.gmra.mxu1 %v4368_v33  ;;  %2829 = vst [vmem:[%s4480_s28 + $0x620] sm:$0xff] %v2080_v20  ;;  %2572 = vmatmul.bf16.gmra.mxu3 %v4368_v33 }
 0x37a   : > { %v2168_v23 = vpop.f32.mrf.mxu2 }
 0x37b   : > { %v2169_v3 = vadd.f32 %v2168_v23, %v5322_v63 }
 0x37c   : > { %v2257_v25 = vpop.f32.mrf.mxu3  ;;  %v1992_v35 = vpop.f32.mrf.mxu0 }
 0x37d   : > { %v1993_v36 = vadd.f32 %v1992_v35, %v5313_v46  ;;  %v2258_v40 = vadd.f32 %v2257_v25, %v2169_v3 }
 0x37e   : > { %v2081_v37 = vpop.f32.mrf.mxu1 }
 0x37f   : > { %v2082_v44 = vadd.f32 %v2081_v37, %v1993_v36  ;;  %2830 = vst [vmem:[%s4480_s28 + $0x628] sm:$0xff] %v2258_v40 }
 0x381   : > { %2837 = vst [vmem:[%s4480_s28 + $0x660] sm:$0xff] %v2082_v44 }
 0x382   : > { %v2170_v48 = vpop.f32.mrf.mxu2 }
 0x383   : > { %v2171_v32 = vadd.f32 %v2170_v48, %v5322_v63 }
 0x384   : > { %v2259_v49 = vpop.f32.mrf.mxu3  ;;  %v1995_v50 = vpop.f32.mrf.mxu0 }
 0x385   : > { %v1996_v33 = vadd.f32 %v1995_v50, %v5313_v46  ;;  %v2260_v54 = vadd.f32 %v2259_v49, %v2171_v32 }
 0x386   : > { %v2084_v57 = vpop.f32.mrf.mxu1 }
 0x387   : > { %v2085_v55 = vadd.f32 %v2084_v57, %v1996_v33  ;;  %2310 = vmatmul.bf16.gmra.mxu0 %v4402_v52  ;;  %2838 = vst [vmem:[%s4480_s28 + $0x668] sm:$0xff] %v2260_v54  ;;  %2488 = vmatmul.bf16.gmra.mxu2 %v4402_v52  ;;  %v5583_v57 = vperm.slane %v5310_v45, 6 }
 0x389   : > { %2399 = vmatmul.bf16.gmra.mxu1 %v4404_v53  ;;  %2845 = vst [vmem:[%s4480_s28 + $0x6a0] sm:$0xff] %v2085_v55  ;;  %2577 = vmatmul.bf16.gmra.mxu3 %v4404_v53 }
 0x38a   : > { %v2173_v8 = vpop.f32.mrf.mxu2 }
 0x38b   : > { %v2174_v56 = vadd.f32 %v2173_v8, %v5322_v63 }
 0x38c   : > { %v2262_v43 = vpop.f32.mrf.mxu3  ;;  %v1997_v9 = vpop.f32.mrf.mxu0 }
 0x38d   : > { %v1998_v62 = vadd.f32 %v1997_v9, %v5313_v46  ;;  %v2263_v47 = vadd.f32 %v2262_v43, %v2174_v56  ;;  %v5592_v9 = vperm.slane %v5310_v45, 7 }
 0x38e   : > { %v2086_v12 = vpop.f32.mrf.mxu1 }
 0x38f   : > { %v2087_v4 = vadd.f32 %v2086_v12, %v1998_v62  ;;  %2846 = vst [vmem:[%s4480_s28 + $0x6a8] sm:$0xff] %v2263_v47 }
 0x391   : > { %2853 = vst [vmem:[%s4480_s28 + $0x6e0] sm:$0xff] %v2087_v4 }
 0x392   : > { %v2175_v5 = vpop.f32.mrf.mxu2 }
 0x393   : > { %v2176_v52 = vadd.f32 %v2175_v5, %v5322_v63 }
 0x394   : > { %v2264_v21 = vpop.f32.mrf.mxu3  ;;  %v2000_v6 = vpop.f32.mrf.mxu0 }
 0x395   : > { %v2001_v53 = vadd.f32 %v2000_v6, %v5313_v46  ;;  %v2265_v11 = vadd.f32 %v2264_v21, %v2176_v52 }
 0x396   : > { %v2089_v7 = vpop.f32.mrf.mxu1 }
 0x397   : > { %v2090_v34 = vadd.f32 %v2089_v7, %v2001_v53  ;;  %2315 = vmatmul.bf16.gmra.mxu0 %v4414_v58  ;;  %2854 = vst [vmem:[%s4480_s28 + $0x6e8] sm:$0xff] %v2265_v11  ;;  %2493 = vmatmul.bf16.gmra.mxu2 %v4414_v58 }
 0x399   : > { %2404 = vmatmul.bf16.gmra.mxu1 %v4416_v59  ;;  %2861 = vst [vmem:[%s4480_s28 + $0x720] sm:$0xff] %v2090_v34  ;;  %2582 = vmatmul.bf16.gmra.mxu3 %v4416_v59 }
 0x39a   : > { %v2178_v13 = vpop.f32.mrf.mxu2 }
 0x39b   : > { %v2179_v14 = vadd.f32 %v2178_v13, %v5322_v63 }
 0x39c   : > { %v2267_v26 = vpop.f32.mrf.mxu3  ;;  %v2002_v16 = vpop.f32.mrf.mxu0 }
 0x39d   : > { %v2003_v18 = vadd.f32 %v2002_v16, %v5313_v46  ;;  %v2268_v19 = vadd.f32 %v2267_v26, %v2179_v14 }
 0x39e   : > { %v2091_v27 = vpop.f32.mrf.mxu1 }
 0x39f   : > { %v2092_v2 = vadd.f32 %v2091_v27, %v2003_v18  ;;  %2862 = vst [vmem:[%s4480_s28 + $0x728] sm:$0xff] %v2268_v19 }
 0x3a1   : > { %2869 = vst [vmem:[%s4480_s28 + $0x760] sm:$0xff] %v2092_v2 }
 0x3a2   : > { %v2180_v20 = vpop.f32.mrf.mxu2 }
 0x3a3   : > { %v2181_v58 = vadd.f32 %v2180_v20, %v5322_v63 }
 0x3a4   : > { %v2269_v23 = vpop.f32.mrf.mxu3  ;;  %v2005_v3 = vpop.f32.mrf.mxu0 }
 0x3a5   : > { %v2006_v59 = vadd.f32 %v2005_v3, %v5313_v46  ;;  %v2270_v35 = vadd.f32 %v2269_v23, %v2181_v58 }
 0x3a6   : > { %v2094_v25 = vpop.f32.mrf.mxu1 }
 0x3a7   : > { %v2095_v36 = vadd.f32 %v2094_v25, %v2006_v59  ;;  %2320 = vmatmul.bf16.gmra.mxu0 %v4450_v15  ;;  %2870 = vst [vmem:[%s4480_s28 + $0x768] sm:$0xff] %v2270_v35  ;;  %2498 = vmatmul.bf16.gmra.mxu2 %v4450_v15 }
 0x3a9   : > { %2409 = vmatmul.bf16.gmra.mxu1 %v4452_v17  ;;  %2877 = vst [vmem:[%s4480_s28 + $0x7a0] sm:$0xff] %v2095_v36  ;;  %2587 = vmatmul.bf16.gmra.mxu3 %v4452_v17 }
 0x3aa   : > { %v2183_v37 = vpop.f32.mrf.mxu2 }
 0x3ab   : > { %v2184_v40 = vadd.f32 %v2183_v37, %v5322_v63 }
 0x3ac   : > { %v2272_v44 = vpop.f32.mrf.mxu3  ;;  %v2007_v48 = vpop.f32.mrf.mxu0 }
 0x3ad   : > { %v2008_v32 = vadd.f32 %v2007_v48, %v5313_v46  ;;  %v2273_v50 = vadd.f32 %v2272_v44, %v2184_v40 }
 0x3ae   : > { %v2096_v49 = vpop.f32.mrf.mxu1 }
 0x3af   : > { %v2097_v33 = vadd.f32 %v2096_v49, %v2008_v32  ;;  %2878 = vst [vmem:[%s4480_s28 + $0x7a8] sm:$0xff] %v2273_v50 }
 0x3b1   : > { %2885 = vst [vmem:[%s4480_s28 + $0x7e0] sm:$0xff] %v2097_v33 }
 0x3b2   : > { %v2185_v15 = vpop.f32.mrf.mxu2 }
 0x3b3   : > { %v2186_v17 = vadd.f32 %v2185_v15, %v5322_v63 }
 0x3b4   : > { %v2274_v54 = vpop.f32.mrf.mxu3  ;;  %v2286_v55 = vpop.f32.mrf.mxu0 }
 0x3b5   : > { %v2287_v8 = vadd.f32 %v2286_v55, %v5583_v57  ;;  %v2275_v43 = vadd.f32 %v2274_v54, %v2186_v17 }
 0x3b6   : > { %v2375_v56 = vpop.f32.mrf.mxu1 }
 0x3b7   : > { %v2376_v46 = vadd.f32 %v2375_v56, %v2287_v8  ;;  %2325 = vmatmul.bf16.gmra.mxu0 %v4470_v24  ;;  %2886 = vst [vmem:[%s4480_s28 + $0x7e8] sm:$0xff] %v2275_v43  ;;  %2503 = vmatmul.bf16.gmra.mxu2 %v4470_v24 }
 0x3b9   : > { %2414 = vmatmul.bf16.gmra.mxu1 %v4472_v28  ;;  %2639 = vst [vmem:[%s4480_s28 + $0x30] sm:$0xff] %v2376_v46  ;;  %2592 = vmatmul.bf16.gmra.mxu3 %v4472_v28 }
 0x3ba   : > { %v2464_v63 = vpop.f32.mrf.mxu2 }
 0x3bb   : > { %v2465_v62 = vadd.f32 %v2464_v63, %v5592_v9 }
 0x3bc   : > { %v2553_v12 = vpop.f32.mrf.mxu3  ;;  %v2288_v47 = vpop.f32.mrf.mxu0 }
 0x3bd   : > { %v2289_v4 = vadd.f32 %v2288_v47, %v5583_v57  ;;  %v2554_v52 = vadd.f32 %v2553_v12, %v2465_v62 }
 0x3be   : > { %v2377_v5 = vpop.f32.mrf.mxu1 }
 0x3bf   : > { %v2378_v21 = vadd.f32 %v2377_v5, %v2289_v4  ;;  %2640 = vst [vmem:[%s4480_s28 + $0x38] sm:$0xff] %v2554_v52 }
 0x3c1   : > { %2647 = vst [vmem:[%s4480_s28 + $0x70] sm:$0xff] %v2378_v21 }
 0x3c2   : > { %v2466_v24 = vpop.f32.mrf.mxu2 }
 0x3c3   : > { %v2467_v45 = vadd.f32 %v2466_v24, %v5592_v9 }
 0x3c4   : > { %v2555_v6 = vpop.f32.mrf.mxu3  ;;  %v2291_v53 = vpop.f32.mrf.mxu0 }
 0x3c5   : > { %v2292_v28 = vadd.f32 %v2291_v53, %v5583_v57  ;;  %v2556_v11 = vadd.f32 %v2555_v6, %v2467_v45 }
 0x3c6   : > { %v2380_v7 = vpop.f32.mrf.mxu1 }
 0x3c7   : > { %v2381_v34 = vadd.f32 %v2380_v7, %v2292_v28  ;;  %2330 = vmatmul.bf16.gmra.mxu0 %v4516_v1  ;;  %2648 = vst [vmem:[%s4480_s28 + $0x78] sm:$0xff] %v2556_v11  ;;  %2508 = vmatmul.bf16.gmra.mxu2 %v4516_v1 }
 0x3c9   : > { %2419 = vmatmul.bf16.gmra.mxu1 %v4519_v10  ;;  %2655 = vst [vmem:[%s4480_s28 + $0xb0] sm:$0xff] %v2381_v34  ;;  %2597 = vmatmul.bf16.gmra.mxu3 %v4519_v10 }
 0x3ca   : > { %v2469_v13 = vpop.f32.mrf.mxu2 }
 0x3cb   : > { %v2470_v14 = vadd.f32 %v2469_v13, %v5592_v9 }
 0x3cc   : > { %v2558_v26 = vpop.f32.mrf.mxu3  ;;  %v2293_v16 = vpop.f32.mrf.mxu0 }
 0x3cd   : > { %v2294_v18 = vadd.f32 %v2293_v16, %v5583_v57  ;;  %v2559_v19 = vadd.f32 %v2558_v26, %v2470_v14 }
 0x3ce   : > { %v2382_v27 = vpop.f32.mrf.mxu1 }
 0x3cf   : > { %v2383_v2 = vadd.f32 %v2382_v27, %v2294_v18  ;;  %2656 = vst [vmem:[%s4480_s28 + $0xb8] sm:$0xff] %v2559_v19 }
 0x3d1   : > { %2663 = vst [vmem:[%s4480_s28 + $0xf0] sm:$0xff] %v2383_v2 }
 0x3d2   : > { %v2471_v20 = vpop.f32.mrf.mxu2 }
 0x3d3   : > { %v2472_v1 = vadd.f32 %v2471_v20, %v5592_v9 }
 0x3d4   : > { %v2560_v58 = vpop.f32.mrf.mxu3  ;;  %v2296_v23 = vpop.f32.mrf.mxu0 }
 0x3d5   : > { %v2297_v10 = vadd.f32 %v2296_v23, %v5583_v57  ;;  %v2561_v59 = vadd.f32 %v2560_v58, %v2472_v1 }
 0x3d6   : > { %v2385_v3 = vpop.f32.mrf.mxu1 }
 0x3d7   : > { %v2386_v25 = vadd.f32 %v2385_v3, %v2297_v10  ;;  %2335 = vmatmul.bf16.gmra.mxu0 %v4536_v38  ;;  %2664 = vst [vmem:[%s4480_s28 + $0xf8] sm:$0xff] %v2561_v59  ;;  %2513 = vmatmul.bf16.gmra.mxu2 %v4536_v38 }
 0x3d9   : > { %2424 = vmatmul.bf16.gmra.mxu1 %v4539_v42  ;;  %2671 = vst [vmem:[%s4480_s28 + $0x130] sm:$0xff] %v2386_v25  ;;  %2602 = vmatmul.bf16.gmra.mxu3 %v4539_v42 }
 0x3da   : > { %v2474_v35 = vpop.f32.mrf.mxu2 }
 0x3db   : > { %v2475_v36 = vadd.f32 %v2474_v35, %v5592_v9 }
 0x3dc   : > { %v2563_v37 = vpop.f32.mrf.mxu3  ;;  %v2298_v40 = vpop.f32.mrf.mxu0 }
 0x3dd   : > { %v2299_v44 = vadd.f32 %v2298_v40, %v5583_v57  ;;  %v2564_v32 = vadd.f32 %v2563_v37, %v2475_v36 }
 0x3de   : > { %v2387_v48 = vpop.f32.mrf.mxu1 }
 0x3df   : > { %v2388_v49 = vadd.f32 %v2387_v48, %v2299_v44  ;;  %2672 = vst [vmem:[%s4480_s28 + $0x138] sm:$0xff] %v2564_v32 }
 0x3e1   : > { %2679 = vst [vmem:[%s4480_s28 + $0x170] sm:$0xff] %v2388_v49 }
 0x3e2   : > { %v2476_v50 = vpop.f32.mrf.mxu2 }
 0x3e3   : > { %v2477_v38 = vadd.f32 %v2476_v50, %v5592_v9 }
 0x3e4   : > { %v2565_v33 = vpop.f32.mrf.mxu3  ;;  %v2301_v15 = vpop.f32.mrf.mxu0 }
 0x3e5   : > { %v2302_v42 = vadd.f32 %v2301_v15, %v5583_v57  ;;  %v2566_v54 = vadd.f32 %v2565_v33, %v2477_v38 }
 0x3e6   : > { %v2390_v17 = vpop.f32.mrf.mxu1 }
 0x3e7   : > { %v2391_v55 = vadd.f32 %v2390_v17, %v2302_v42  ;;  %2340 = vmatmul.bf16.gmra.mxu0 %v4580_v22  ;;  %2680 = vst [vmem:[%s4480_s28 + $0x178] sm:$0xff] %v2566_v54  ;;  %2518 = vmatmul.bf16.gmra.mxu2 %v4580_v22 }
 0x3e9   : > { %2429 = vmatmul.bf16.gmra.mxu1 %v4583_v31  ;;  %2687 = vst [vmem:[%s4480_s28 + $0x1b0] sm:$0xff] %v2391_v55  ;;  %2607 = vmatmul.bf16.gmra.mxu3 %v4583_v31 }
 0x3ea   : > { %v2479_v8 = vpop.f32.mrf.mxu2 }
 0x3eb   : > { %v2480_v56 = vadd.f32 %v2479_v8, %v5592_v9 }
 0x3ec   : > { %v2568_v43 = vpop.f32.mrf.mxu3  ;;  %v2303_v46 = vpop.f32.mrf.mxu0 }
 0x3ed   : > { %v2304_v63 = vadd.f32 %v2303_v46, %v5583_v57  ;;  %v2569_v12 = vadd.f32 %v2568_v43, %v2480_v56 }
 0x3ee   : > { %v2392_v62 = vpop.f32.mrf.mxu1 }
 0x3ef   : > { %v2393_v47 = vadd.f32 %v2392_v62, %v2304_v63  ;;  %2688 = vst [vmem:[%s4480_s28 + $0x1b8] sm:$0xff] %v2569_v12 }
 0x3f1   : > { %2695 = vst [vmem:[%s4480_s28 + $0x1f0] sm:$0xff] %v2393_v47 }
 0x3f2   : > { %v2481_v4 = vpop.f32.mrf.mxu2 }
 0x3f3   : > { %v2482_v22 = vadd.f32 %v2481_v4, %v5592_v9 }
 0x3f4   : > { %v2570_v5 = vpop.f32.mrf.mxu3  ;;  %v2306_v52 = vpop.f32.mrf.mxu0 }
 0x3f5   : > { %v2307_v31 = vadd.f32 %v2306_v52, %v5583_v57  ;;  %v2571_v24 = vadd.f32 %v2570_v5, %v2482_v22 }
 0x3f6   : > { %v2395_v21 = vpop.f32.mrf.mxu1 }
 0x3f7   : > { %v2396_v45 = vadd.f32 %v2395_v21, %v2307_v31  ;;  %2345 = vmatmul.bf16.gmra.mxu0 %v4600_v60  ;;  %2696 = vst [vmem:[%s4480_s28 + $0x1f8] sm:$0xff] %v2571_v24  ;;  %2523 = vmatmul.bf16.gmra.mxu2 %v4600_v60 }
 0x3f9   : > { %2434 = vmatmul.bf16.gmra.mxu1 %v4603_v0  ;;  %2703 = vst [vmem:[%s4480_s28 + $0x230] sm:$0xff] %v2396_v45  ;;  %2612 = vmatmul.bf16.gmra.mxu3 %v4603_v0 }
 0x3fa   : > { %v2484_v6 = vpop.f32.mrf.mxu2 }
 0x3fb   : > { %v2485_v53 = vadd.f32 %v2484_v6, %v5592_v9 }
 0x3fc   : > { %v2573_v28 = vpop.f32.mrf.mxu3  ;;  %v2308_v7 = vpop.f32.mrf.mxu0 }
 0x3fd   : > { %v2309_v11 = vadd.f32 %v2308_v7, %v5583_v57  ;;  %v2574_v13 = vadd.f32 %v2573_v28, %v2485_v53 }
 0x3fe   : > { %v2397_v34 = vpop.f32.mrf.mxu1 }
 0x3ff   : > { %v2398_v14 = vadd.f32 %v2397_v34, %v2309_v11  ;;  %2704 = vst [vmem:[%s4480_s28 + $0x238] sm:$0xff] %v2574_v13 }
 0x401   : > { %2711 = vst [vmem:[%s4480_s28 + $0x270] sm:$0xff] %v2398_v14 }
 0x402   : > { %v2486_v26 = vpop.f32.mrf.mxu2 }
 0x403   : > { %v2487_v60 = vadd.f32 %v2486_v26, %v5592_v9 }
 0x404   : > { %v2575_v16 = vpop.f32.mrf.mxu3  ;;  %v2311_v18 = vpop.f32.mrf.mxu0 }
 0x405   : > { %v2312_v0 = vadd.f32 %v2311_v18, %v5583_v57  ;;  %v2576_v19 = vadd.f32 %v2575_v16, %v2487_v60 }
 0x406   : > { %v2400_v27 = vpop.f32.mrf.mxu1 }
 0x407   : > { %v2401_v2 = vadd.f32 %v2400_v27, %v2312_v0  ;;  %2350 = vmatmul.bf16.gmra.mxu0 %v4644_v51  ;;  %2712 = vst [vmem:[%s4480_s28 + $0x278] sm:$0xff] %v2576_v19  ;;  %2528 = vmatmul.bf16.gmra.mxu2 %v4644_v51 }
 0x409   : > { %2439 = vmatmul.bf16.gmra.mxu1 %v4647_v61  ;;  %2719 = vst [vmem:[%s4480_s28 + $0x2b0] sm:$0xff] %v2401_v2  ;;  %2617 = vmatmul.bf16.gmra.mxu3 %v4647_v61 }
 0x40a   : > { %v2489_v20 = vpop.f32.mrf.mxu2 }
 0x40b   : > { %v2490_v1 = vadd.f32 %v2489_v20, %v5592_v9 }
 0x40c   : > { %v2578_v58 = vpop.f32.mrf.mxu3  ;;  %v2313_v23 = vpop.f32.mrf.mxu0 }
 0x40d   : > { %v2314_v10 = vadd.f32 %v2313_v23, %v5583_v57  ;;  %v2579_v59 = vadd.f32 %v2578_v58, %v2490_v1 }
 0x40e   : > { %v2402_v3 = vpop.f32.mrf.mxu1 }
 0x40f   : > { %v2403_v25 = vadd.f32 %v2402_v3, %v2314_v10  ;;  %2720 = vst [vmem:[%s4480_s28 + $0x2b8] sm:$0xff] %v2579_v59 }
 0x411   : > { %2727 = vst [vmem:[%s4480_s28 + $0x2f0] sm:$0xff] %v2403_v25 }
 0x412   : > { %v2491_v35 = vpop.f32.mrf.mxu2 }
 0x413   : > { %v2492_v51 = vadd.f32 %v2491_v35, %v5592_v9 }
 0x414   : > { %v2580_v36 = vpop.f32.mrf.mxu3  ;;  %v2316_v37 = vpop.f32.mrf.mxu0 }
 0x415   : > { %v2317_v61 = vadd.f32 %v2316_v37, %v5583_v57  ;;  %v2581_v44 = vadd.f32 %v2580_v36, %v2492_v51 }
 0x416   : > { %v2405_v40 = vpop.f32.mrf.mxu1 }
 0x417   : > { %v2406_v48 = vadd.f32 %v2405_v40, %v2317_v61  ;;  %2355 = vmatmul.bf16.gmra.mxu0 %v4664_v30  ;;  %2728 = vst [vmem:[%s4480_s28 + $0x2f8] sm:$0xff] %v2581_v44  ;;  %2533 = vmatmul.bf16.gmra.mxu2 %v4664_v30 }
 0x419   : > { %2444 = vmatmul.bf16.gmra.mxu1 %v4667_v39  ;;  %2735 = vst [vmem:[%s4480_s28 + $0x330] sm:$0xff] %v2406_v48  ;;  %2622 = vmatmul.bf16.gmra.mxu3 %v4667_v39 }
 0x41a   : > { %v2494_v32 = vpop.f32.mrf.mxu2 }
 0x41b   : > { %v2495_v49 = vadd.f32 %v2494_v32, %v5592_v9 }
 0x41c   : > { %v2583_v50 = vpop.f32.mrf.mxu3  ;;  %v2318_v38 = vpop.f32.mrf.mxu0 }
 0x41d   : > { %v2319_v33 = vadd.f32 %v2318_v38, %v5583_v57  ;;  %v2584_v42 = vadd.f32 %v2583_v50, %v2495_v49 }
 0x41e   : > { %v2407_v15 = vpop.f32.mrf.mxu1 }
 0x41f   : > { %v2408_v17 = vadd.f32 %v2407_v15, %v2319_v33  ;;  %2736 = vst [vmem:[%s4480_s28 + $0x338] sm:$0xff] %v2584_v42 }
 0x421   : > { %2743 = vst [vmem:[%s4480_s28 + $0x370] sm:$0xff] %v2408_v17 }
 0x422   : > { %v2496_v54 = vpop.f32.mrf.mxu2 }
 0x423   : > { %v2497_v30 = vadd.f32 %v2496_v54, %v5592_v9 }
 0x424   : > { %v2585_v55 = vpop.f32.mrf.mxu3  ;;  %v2321_v8 = vpop.f32.mrf.mxu0 }
 0x425   : > { %v2322_v39 = vadd.f32 %v2321_v8, %v5583_v57  ;;  %v2586_v43 = vadd.f32 %v2585_v55, %v2497_v30 }
 0x426   : > { %v2410_v56 = vpop.f32.mrf.mxu1 }
 0x427   : > { %v2411_v46 = vadd.f32 %v2410_v56, %v2322_v39  ;;  %2360 = vmatmul.bf16.gmra.mxu0 %v4708_v29  ;;  %2744 = vst [vmem:[%s4480_s28 + $0x378] sm:$0xff] %v2586_v43  ;;  %2538 = vmatmul.bf16.gmra.mxu2 %v4708_v29 }
 0x429   : > { %2449 = vmatmul.bf16.gmra.mxu1 %v4711_v41  ;;  %2751 = vst [vmem:[%s4480_s28 + $0x3b0] sm:$0xff] %v2411_v46  ;;  %2627 = vmatmul.bf16.gmra.mxu3 %v4711_v41 }
 0x42a   : > { %v2499_v63 = vpop.f32.mrf.mxu2 }
 0x42b   : > { %v2500_v62 = vadd.f32 %v2499_v63, %v5592_v9 }
 0x42c   : > { %v2588_v12 = vpop.f32.mrf.mxu3  ;;  %v2323_v47 = vpop.f32.mrf.mxu0 }
 0x42d   : > { %v2324_v4 = vadd.f32 %v2323_v47, %v5583_v57  ;;  %v2589_v5 = vadd.f32 %v2588_v12, %v2500_v62 }
 0x42e   : > { %v2412_v22 = vpop.f32.mrf.mxu1 }
 0x42f   : > { %v2413_v52 = vadd.f32 %v2412_v22, %v2324_v4  ;;  %2752 = vst [vmem:[%s4480_s28 + $0x3b8] sm:$0xff] %v2589_v5 }
 0x431   : > { %2759 = vst [vmem:[%s4480_s28 + $0x3f0] sm:$0xff] %v2413_v52 }
 0x432   : > { %v2501_v31 = vpop.f32.mrf.mxu2 }
 0x433   : > { %v2502_v29 = vadd.f32 %v2501_v31, %v5592_v9 }
 0x434   : > { %v2590_v21 = vpop.f32.mrf.mxu3  ;;  %v2326_v41 = vpop.f32.mrf.mxu0 }
 0x435   : > { %v2327_v24 = vadd.f32 %v2326_v41, %v5583_v57  ;;  %v2591_v6 = vadd.f32 %v2590_v21, %v2502_v29 }
 0x436   : > { %v2415_v45 = vpop.f32.mrf.mxu1 }
 0x437   : > { %v2416_v53 = vadd.f32 %v2415_v45, %v2327_v24  ;;  %2760 = vst [vmem:[%s4480_s28 + $0x3f8] sm:$0xff] %v2591_v6 }
 0x439   : > { %2767 = vst [vmem:[%s4480_s28 + $0x430] sm:$0xff] %v2416_v53 }
 0x43a   : > { %v2504_v28 = vpop.f32.mrf.mxu2 }
 0x43b   : > { %v2505_v7 = vadd.f32 %v2504_v28, %v5592_v9 }
 0x43c   : > { %v2593_v11 = vpop.f32.mrf.mxu3  ;;  %v2328_v34 = vpop.f32.mrf.mxu0 }
 0x43d   : > { %v2329_v13 = vadd.f32 %v2328_v34, %v5583_v57  ;;  %v2594_v26 = vadd.f32 %v2593_v11, %v2505_v7 }
 0x43e   : > { %v2417_v14 = vpop.f32.mrf.mxu1 }
 0x43f   : > { %v2418_v60 = vadd.f32 %v2417_v14, %v2329_v13  ;;  %2768 = vst [vmem:[%s4480_s28 + $0x438] sm:$0xff] %v2594_v26 }
 0x441   : > { %2775 = vst [vmem:[%s4480_s28 + $0x470] sm:$0xff] %v2418_v60 }
 0x442   : > { %v2506_v16 = vpop.f32.mrf.mxu2 }
 0x443   : > { %v2507_v18 = vadd.f32 %v2506_v16, %v5592_v9 }
 0x444   : > { %v2595_v0 = vpop.f32.mrf.mxu3  ;;  %v2331_v27 = vpop.f32.mrf.mxu0 }
 0x445   : > { %v2332_v19 = vadd.f32 %v2331_v27, %v5583_v57  ;;  %v2596_v20 = vadd.f32 %v2595_v0, %v2507_v18 }
 0x446   : > { %v2420_v2 = vpop.f32.mrf.mxu1 }
 0x447   : > { %v2421_v1 = vadd.f32 %v2420_v2, %v2332_v19  ;;  %2776 = vst [vmem:[%s4480_s28 + $0x478] sm:$0xff] %v2596_v20 }
 0x449   : > { %2783 = vst [vmem:[%s4480_s28 + $0x4b0] sm:$0xff] %v2421_v1 }
 0x44a   : > { %v2509_v58 = vpop.f32.mrf.mxu2 }
 0x44b   : > { %v2510_v23 = vadd.f32 %v2509_v58, %v5592_v9 }
 0x44c   : > { %v2598_v10 = vpop.f32.mrf.mxu3  ;;  %v2333_v3 = vpop.f32.mrf.mxu0 }
 0x44d   : > { %v2334_v59 = vadd.f32 %v2333_v3, %v5583_v57  ;;  %v2599_v35 = vadd.f32 %v2598_v10, %v2510_v23 }
 0x44e   : > { %v2422_v25 = vpop.f32.mrf.mxu1 }
 0x44f   : > { %v2423_v51 = vadd.f32 %v2422_v25, %v2334_v59  ;;  %2784 = vst [vmem:[%s4480_s28 + $0x4b8] sm:$0xff] %v2599_v35 }
 0x451   : > { %2791 = vst [vmem:[%s4480_s28 + $0x4f0] sm:$0xff] %v2423_v51 }
 0x452   : > { %v2511_v36 = vpop.f32.mrf.mxu2 }
 0x453   : > { %v2512_v37 = vadd.f32 %v2511_v36, %v5592_v9 }
 0x454   : > { %v2600_v61 = vpop.f32.mrf.mxu3  ;;  %v2336_v40 = vpop.f32.mrf.mxu0 }
 0x455   : > { %v2337_v44 = vadd.f32 %v2336_v40, %v5583_v57  ;;  %v2601_v32 = vadd.f32 %v2600_v61, %v2512_v37 }
 0x456   : > { %v2425_v48 = vpop.f32.mrf.mxu1 }
 0x457   : > { %v2426_v49 = vadd.f32 %v2425_v48, %v2337_v44  ;;  %2792 = vst [vmem:[%s4480_s28 + $0x4f8] sm:$0xff] %v2601_v32 }
 0x459   : > { %2799 = vst [vmem:[%s4480_s28 + $0x530] sm:$0xff] %v2426_v49 }
 0x45a   : > { %v2514_v50 = vpop.f32.mrf.mxu2 }
 0x45b   : > { %v2515_v38 = vadd.f32 %v2514_v50, %v5592_v9 }
 0x45c   : > { %v2603_v33 = vpop.f32.mrf.mxu3  ;;  %v2338_v15 = vpop.f32.mrf.mxu0 }
 0x45d   : > { %v2339_v42 = vadd.f32 %v2338_v15, %v5583_v57  ;;  %v2604_v54 = vadd.f32 %v2603_v33, %v2515_v38 }
 0x45e   : > { %v2427_v17 = vpop.f32.mrf.mxu1 }
 0x45f   : > { %v2428_v30 = vadd.f32 %v2427_v17, %v2339_v42  ;;  %2800 = vst [vmem:[%s4480_s28 + $0x538] sm:$0xff] %v2604_v54 }
 0x461   : > { %2807 = vst [vmem:[%s4480_s28 + $0x570] sm:$0xff] %v2428_v30 }
 0x462   : > { %v2516_v55 = vpop.f32.mrf.mxu2 }
 0x463   : > { %v2517_v8 = vadd.f32 %v2516_v55, %v5592_v9 }
 0x464   : > { %v2605_v39 = vpop.f32.mrf.mxu3  ;;  %v2341_v56 = vpop.f32.mrf.mxu0 }
 0x465   : > { %v2342_v43 = vadd.f32 %v2341_v56, %v5583_v57  ;;  %v2606_v63 = vadd.f32 %v2605_v39, %v2517_v8 }
 0x466   : > { %v2430_v46 = vpop.f32.mrf.mxu1 }
 0x467   : > { %v2431_v62 = vadd.f32 %v2430_v46, %v2342_v43  ;;  %2808 = vst [vmem:[%s4480_s28 + $0x578] sm:$0xff] %v2606_v63 }
 0x469   : > { %2815 = vst [vmem:[%s4480_s28 + $0x5b0] sm:$0xff] %v2431_v62 }
 0x46a   : > { %v2519_v12 = vpop.f32.mrf.mxu2 }
 0x46b   : > { %v2520_v47 = vadd.f32 %v2519_v12, %v5592_v9 }
 0x46c   : > { %v2608_v4 = vpop.f32.mrf.mxu3  ;;  %v2343_v22 = vpop.f32.mrf.mxu0 }
 0x46d   : > { %v2344_v5 = vadd.f32 %v2343_v22, %v5583_v57  ;;  %v2609_v31 = vadd.f32 %v2608_v4, %v2520_v47 }
 0x46e   : > { %v2432_v52 = vpop.f32.mrf.mxu1 }
 0x46f   : > { %v2433_v29 = vadd.f32 %v2432_v52, %v2344_v5  ;;  %2816 = vst [vmem:[%s4480_s28 + $0x5b8] sm:$0xff] %v2609_v31 }
 0x471   : > { %2823 = vst [vmem:[%s4480_s28 + $0x5f0] sm:$0xff] %v2433_v29 }
 0x472   : > { %v2521_v21 = vpop.f32.mrf.mxu2 }
 0x473   : > { %v2522_v41 = vadd.f32 %v2521_v21, %v5592_v9 }
 0x474   : > { %v2610_v24 = vpop.f32.mrf.mxu3  ;;  %v2346_v45 = vpop.f32.mrf.mxu0 }
 0x475   : > { %v2347_v6 = vadd.f32 %v2346_v45, %v5583_v57  ;;  %v2611_v28 = vadd.f32 %v2610_v24, %v2522_v41 }
 0x476   : > { %v2435_v53 = vpop.f32.mrf.mxu1 }
 0x477   : > { %v2436_v7 = vadd.f32 %v2435_v53, %v2347_v6  ;;  %2824 = vst [vmem:[%s4480_s28 + $0x5f8] sm:$0xff] %v2611_v28 }
 0x479   : > { %2831 = vst [vmem:[%s4480_s28 + $0x630] sm:$0xff] %v2436_v7 }
 0x47a   : > { %v2524_v11 = vpop.f32.mrf.mxu2 }
 0x47b   : > { %v2525_v34 = vadd.f32 %v2524_v11, %v5592_v9 }
 0x47c   : > { %v2613_v13 = vpop.f32.mrf.mxu3  ;;  %v2348_v14 = vpop.f32.mrf.mxu0 }
 0x47d   : > { %v2349_v26 = vadd.f32 %v2348_v14, %v5583_v57  ;;  %v2614_v16 = vadd.f32 %v2613_v13, %v2525_v34 }
 0x47e   : > { %v2437_v60 = vpop.f32.mrf.mxu1 }
 0x47f   : > { %v2438_v18 = vadd.f32 %v2437_v60, %v2349_v26  ;;  %2832 = vst [vmem:[%s4480_s28 + $0x638] sm:$0xff] %v2614_v16 }
 0x481   : > { %2839 = vst [vmem:[%s4480_s28 + $0x670] sm:$0xff] %v2438_v18 }
 0x482   : > { %v2526_v0 = vpop.f32.mrf.mxu2 }
 0x483   : > { %v2527_v27 = vadd.f32 %v2526_v0, %v5592_v9 }
 0x484   : > { %v2615_v19 = vpop.f32.mrf.mxu3  ;;  %v2351_v2 = vpop.f32.mrf.mxu0 }
 0x485   : > { %v2352_v20 = vadd.f32 %v2351_v2, %v5583_v57  ;;  %v2616_v58 = vadd.f32 %v2615_v19, %v2527_v27 }
 0x486   : > { %v2440_v1 = vpop.f32.mrf.mxu1 }
 0x487   : > { %v2441_v23 = vadd.f32 %v2440_v1, %v2352_v20  ;;  %2840 = vst [vmem:[%s4480_s28 + $0x678] sm:$0xff] %v2616_v58 }
 0x489   : > { %2847 = vst [vmem:[%s4480_s28 + $0x6b0] sm:$0xff] %v2441_v23 }
 0x48a   : > { %v2529_v10 = vpop.f32.mrf.mxu2 }
 0x48b   : > { %v2530_v3 = vadd.f32 %v2529_v10, %v5592_v9 }
 0x48c   : > { %v2618_v59 = vpop.f32.mrf.mxu3  ;;  %v2353_v25 = vpop.f32.mrf.mxu0 }
 0x48d   : > { %v2354_v35 = vadd.f32 %v2353_v25, %v5583_v57  ;;  %v2619_v36 = vadd.f32 %v2618_v59, %v2530_v3 }
 0x48e   : > { %v2442_v51 = vpop.f32.mrf.mxu1 }
 0x48f   : > { %v2443_v37 = vadd.f32 %v2442_v51, %v2354_v35  ;;  %2848 = vst [vmem:[%s4480_s28 + $0x6b8] sm:$0xff] %v2619_v36 }
 0x491   : > { %2855 = vst [vmem:[%s4480_s28 + $0x6f0] sm:$0xff] %v2443_v37 }
 0x492   : > { %v2531_v61 = vpop.f32.mrf.mxu2 }
 0x493   : > { %v2532_v40 = vadd.f32 %v2531_v61, %v5592_v9 }
 0x494   : > { %v2620_v44 = vpop.f32.mrf.mxu3  ;;  %v2356_v48 = vpop.f32.mrf.mxu0 }
 0x495   : > { %v2357_v32 = vadd.f32 %v2356_v48, %v5583_v57  ;;  %v2621_v50 = vadd.f32 %v2620_v44, %v2532_v40 }
 0x496   : > { %v2445_v49 = vpop.f32.mrf.mxu1 }
 0x497   : > { %v2446_v38 = vadd.f32 %v2445_v49, %v2357_v32  ;;  %2856 = vst [vmem:[%s4480_s28 + $0x6f8] sm:$0xff] %v2621_v50 }
 0x499   : > { %2863 = vst [vmem:[%s4480_s28 + $0x730] sm:$0xff] %v2446_v38 }
 0x49a   : > { %v2534_v33 = vpop.f32.mrf.mxu2 }
 0x49b   : > { %v2535_v15 = vadd.f32 %v2534_v33, %v5592_v9 }
 0x49c   : > { %v2623_v42 = vpop.f32.mrf.mxu3  ;;  %v2358_v17 = vpop.f32.mrf.mxu0 }
 0x49d   : > { %v2359_v54 = vadd.f32 %v2358_v17, %v5583_v57  ;;  %v2624_v55 = vadd.f32 %v2623_v42, %v2535_v15 }
 0x49e   : > { %v2447_v30 = vpop.f32.mrf.mxu1 }
 0x49f   : > { %v2448_v8 = vadd.f32 %v2447_v30, %v2359_v54  ;;  %2864 = vst [vmem:[%s4480_s28 + $0x738] sm:$0xff] %v2624_v55 }
 0x4a1   : > { %2871 = vst [vmem:[%s4480_s28 + $0x770] sm:$0xff] %v2448_v8 }
 0x4a2   : > { %v2536_v39 = vpop.f32.mrf.mxu2 }
 0x4a3   : > { %v2537_v56 = vadd.f32 %v2536_v39, %v5592_v9 }
 0x4a4   : > { %v2625_v43 = vpop.f32.mrf.mxu3  ;;  %v2361_v46 = vpop.f32.mrf.mxu0 }
 0x4a5   : > { %v2362_v63 = vadd.f32 %v2361_v46, %v5583_v57  ;;  %v2626_v12 = vadd.f32 %v2625_v43, %v2537_v56 }
 0x4a6   : > { %v2450_v62 = vpop.f32.mrf.mxu1 }
 0x4a7   : > { %v2451_v47 = vadd.f32 %v2450_v62, %v2362_v63  ;;  %2872 = vst [vmem:[%s4480_s28 + $0x778] sm:$0xff] %v2626_v12 }
 0x4a9   : > { %2879 = vst [vmem:[%s4480_s28 + $0x7b0] sm:$0xff] %v2451_v47 }
 0x4aa   : > { %v2539_v4 = vpop.f32.mrf.mxu2 }
 0x4ab   : > { %v2540_v22 = vadd.f32 %v2539_v4, %v5592_v9 }
 0x4ac   : > { %v2628_v5 = vpop.f32.mrf.mxu3  ;;  %v2363_v52 = vpop.f32.mrf.mxu0 }
 0x4ad   : > { %v2364_v31 = vadd.f32 %v2363_v52, %v5583_v57  ;;  %v2629_v29 = vadd.f32 %v2628_v5, %v2540_v22 }
 0x4ae   : > { %v2452_v21 = vpop.f32.mrf.mxu1 }
 0x4af   : > { %v2453_v41 = vadd.f32 %v2452_v21, %v2364_v31  ;;  %2880 = vst [vmem:[%s4480_s28 + $0x7b8] sm:$0xff] %v2629_v29 }
 0x4b1   : > { %2887 = vst [vmem:[%s4480_s28 + $0x7f0] sm:$0xff] %v2453_v41 }
 0x4b2   : > { %v2541_v24 = vpop.f32.mrf.mxu2 }
 0x4b3   : > { %v2542_v45 = vadd.f32 %v2541_v24, %v5592_v9 }
 0x4b4   : > { %v2630_v6 = vpop.f32.mrf.mxu3 }
 0x4b5   : > { %v2631_v57 = vadd.f32 %v2630_v6, %v2542_v45 }
 0x4b7   : > { %2888 = vst [vmem:[%s4480_s28 + $0x7f8] sm:$0xff] %v2631_v57 }
 0x4b8   : > { %3914 = shalt.err (!%p3911_p5)
}
 0x4b9   : > { %s3967_s23 = smov 1024   ;;  %s3968_s28 = smov 64  }
 0x4ba   : > { %3828 = dma.vmem_to_hbm [thread:$0]  (%p4029_p4), %s2906_s5, 32768, %s2908_s30, %s2890_s15, %s3967_s23, %s3967_s23, %s3968_s28  }
 0x4bb PF: > { %p3834_p6 = scmp.ge.s32.totalorder %s3965_s17, 2  ;;  %s2922_s11 = sand.u32 1, %s3945_s12  }
 0x4bc   : > { %s2923_s18 = scalar_lea.sflag [#allocation3], %s2922_s11 }
 0x4bd   : > { %p3831_p7 = pnand %p3834_p6, %p4036_p8 }
 0x4bf   : > { %p3832_p9 = pneg %p3831_p7 }
 0x4c1   : > { %3940 = dma.done.wait (%p3832_p9), %s2923_s18, 32768  }
 0x4c2   : > { %3942 = vsyncadd (%p3832_p9), %s2923_s18, 4294934528  ;;  %s16_s17 = sadd.s32 1, %s3965_s17   ;;  %s5795_s12 = smov %s3949_s13 }
 0x4c3   : > { %p13_p10 = scmp.ge.s32.totalorder %s16_s17, 4   ;;  %s5796_s13 = smov %s3953_s14 }
 0x4c4   : > { %s5797_s14 = smov %s4042_s25  ;;  %s5798_s15 = smov %s3961_s16 }
 0x4c5   : > { %s5799_s16 = smov %s5801_s20  ;;  %15 = sbr.rel (!%p13_p10) target bundleno = 4 (0x4), region = 73 }
 0x4ca   :  { %2929 = vsyncpa [#allocation3], 1 }
 0x4cb   :  { %2931 = vsyncpa [#allocation3 + $0x1], 1 }

// kernel: autorec_forward.2
= control target key start
LH: loop header
LB: loop body
LE: loop exit
PB: predicated region body
PF: predicated region fallthrough
CT: control target
= control target key end

     0   :  { %8 = vsyncpa [#allocation4], 0  ;;  %s6166_s0 = inlined_call_operand.hbm [shape: f32[512,1024], index: 0, kind: input, shape index: {}]   ;;  %s6167_s1 = inlined_call_operand.hbm [shape: bf16[1024,256], index: 1, kind: input, shape index: {}]   ;;  %s6168_s2 = inlined_call_operand.hbm [shape: f32[1,256], index: 2, kind: input, shape index: {}]   ;;  %s6169_s3 = inlined_call_operand.vmem [shape: bf16[512,256], index: 3, kind: output, shape index: {}]  }
   0x1   :  { %10 = vsyncpa [#allocation4 + $0x1], 0 }
   0x2   :  { %11 = vsyncpa [#allocation6], 0  ;;  %s4885_s12 = smov 0   ;;  %s4887_s13 = smov 0  }
   0x3   :  { %s4889_s14 = smov 0   ;;  %s4891_s15 = smov 0  }
   0x4   :  { %s4893_s16 = smov 0   ;;  %s4895_s17 = smov 0  }
   0x5 LB: > { %s3715_s18 = sadd.s32 4294967295, %s4857_s17   ;;  %p51_p0 = scmp.ne.s32.totalorder %s4841_s13, %s4837_s12  ;;  %s4857_s17 = sphi %s4895_s17, %s17_s17   ;;  %s4853_s16 = sphi %s4893_s16, %s6557_s16   ;;  %s4849_s15 = sphi %s4891_s15, %s6556_s15   ;;  %s4845_s14 = sphi %s4889_s14, %s6555_s14   ;;  %s4841_s13 = sphi %s4887_s13, %s6554_s13   ;;  %s4837_s12 = sphi %s4885_s12, %s6553_s12  }
   0x6   : > { %p4915_p1 = scmp.eq.s32.totalorder %s3715_s18, 0  ;;  %p3717_p2 = scmp.ge.s32.totalorder %s4857_s17, 1 }
   0x7   : > { %p135_p3 = scmp.lt.s32.totalorder %s4857_s17, 3  ;;  %s150_s23 = sshll.u32 %s6167_s1, 4  ;;  %s151_s23 = int_to_ptr.hbm [resolvable:$true] %s150_s23 }
   0x8   : > { %p4923_p4 = por %p4915_p1, %p51_p0  ;;  %s4859_s25 = smov [#allocation5]  }
   0x9   : > { %p4930_p5 = pnand %p3717_p2, %p135_p3  ;;  %s152_s26 = sshll.u32 %s4859_s25, 4  ;;  %s153_s26 = int_to_ptr.vmem [resolvable:$true] %s152_s26 }
   0xa   : > { %s165_s29 = sshll.u32 %s6168_s2, 4  ;;  %s4860_s30 = smov 128   ;;  %s166_s29 = int_to_ptr.hbm [resolvable:$true] %s165_s29 }
   0xb   : > { %p4387_p6 = pneg %p4930_p5  ;;  %s4861_s4 = smov 8  }
   0xc   : > { %s4862_s5 = smov [#allocation7]   ;;  %s29_s7 = sadd.s32 1, %s4853_s16 }
   0xd   : > { %p4388_p7 = pnand %p4387_p6, %p4915_p1  ;;  %s167_s6 = sshll.u32 %s4862_s5, 4  ;;  %s168_s6 = int_to_ptr.vmem [resolvable:$true] %s167_s6 }
   0xe   : > { %s38_s8 = sadd.s32 1, %s4845_s14  ;;  %p31_p8 = scmp.ge.s32.totalorder %s29_s7, 2 }
   0xf   : > { %4390 = dma.hbm_to_vmem [thread:$0]  (!%p4388_p7), %s151_s23, 16384, %s153_s26, [#allocation6], %s4860_s30, %s4860_s30, %s4861_s4  }
  0x10   : > { %4393 = dma.hbm_to_vmem [thread:$0]  (!%p4388_p7), %s166_s29, 32, %s168_s6, [#allocation6]  }
  0x11   : > { %p45_p9 = scmp.ne.s32.totalorder %s4845_s14, %s4841_s13  ;;  %p46_p10 = scmp.eq.s32.totalorder %s4857_s17, 0 }
  0x12   : > { %p4400_p11 = scmp.lt.s32.totalorder %s4857_s17, 2  ;;  %s6559_s7 = smov (%p31_p8, %s29_s7), 0 }
  0x13   : > { %p4949_p12 = por %p46_p10, %p45_p9  ;;  %s178_s10 = sand.u32 1, %s4845_s14  }
  0x14   : > { %s33_s11 = ssub.s32 %s4853_s16, %s6559_s7  ;;  %s3721_s12 = sshll.u32 %s178_s10, 11 }
  0x15   : > { %p36_p13 = scmp.eq.s32.totalorder %s33_s11, 0  ;;  %s4247_s18 = sshll.u32 %s4853_s16, 11 }
  0x16   : > { %s190_s25 = scalar_lea.hbm %s6166_s0, %s4247_s18  ;;  %s182_s26 = scalar_lea.vmem [#allocation3], %s3721_s12 }
  0x17   : > { %s4958_s21 = scalar_select %p36_p13, %s4845_s14, %s38_s8  }
  0x18   : > { %s193_s27 = sshll.u32 %s182_s26, 4  ;;  %s191_s28 = sshll.u32 %s190_s25, 4  ;;  %s194_s27 = int_to_ptr.vmem [resolvable:$true] %s193_s27  ;;  %s192_s28 = int_to_ptr.hbm [resolvable:$true] %s191_s28 }
  0x19   : > { %p4395_p0 = pnand %p4400_p11, %p4949_p12  ;;  %s179_s29 = scalar_lea.sflag [#allocation4], %s178_s10 }
  0x1a   : > { %s4863_s30 = smov 1024   ;;  %s4864_s4 = smov 64  }
  0x1b   : > { %4397 = dma.hbm_to_vmem [thread:$0]  (!%p4395_p0), %s192_s28, 32768, %s194_s27, %s179_s29, %s4863_s30, %s4863_s30, %s4864_s4  }
  0x1c   : > { %205 = sbr.rel (%p4930_p5) target bundleno = 1252 (0x4e4), region = 32 }
  0x21   : > { %s207_s5 = sand.u32 1, %s4841_s13  }
  0x22   : > { %s3726_s6 = sshll.u32 %s207_s5, 11  ;;  %s208_s8 = scalar_lea.sflag [#allocation4], %s207_s5 }
  0x23   : > { %s4970_s11 = scalar_lea.vmem [#allocation3], %s3726_s6 }
  0x24   : > { %4828 = dma.done.wait (%p4923_p4), %s208_s8, 32768  }
  0x25   : > { %4830 = vsyncadd (%p4923_p4), %s208_s8, 4294934528 }
  0x26   : > { %4832 = dma.done.wait (%p4915_p1), [#allocation6], 16416  }
  0x27   : > { %4834 = vsyncadd (%p4915_p1), [#allocation6], 4294950880  ;;  %v3790_v0 = vld [vmem:[#allocation5 + $0x70] sm:$0xf]  ;;  %v4264_v1 = vld [vmem:[#allocation5 + $0x74] sm:$0xf0] }
  0x28   : > { %v3854_v2 = vld [vmem:[#allocation5 + $0xf0] sm:$0xf]  ;;  %v3791_v3 = vor.u32 %v4264_v1, %v3790_v0  ;;  %v4280_v4 = vld [vmem:[#allocation5 + $0xf4] sm:$0xf0]  ;;  %v3782_v11 = vld [vmem:[#allocation5 + $0x60] sm:$0xf] }
  0x29   : > { %v3918_v5 = vld [vmem:[#allocation5 + $0x170] sm:$0xf]  ;;  %v4296_v6 = vld [vmem:[#allocation5 + $0x174] sm:$0xf0]  ;;  %v3855_v7 = vor.u32 %v4280_v4, %v3854_v2  ;;  %v4262_v13 = vld [vmem:[#allocation5 + $0x64] sm:$0xf0] }
  0x2a   : > { %v3919_v8 = vor.u32 %v4296_v6, %v3918_v5  ;;  %v3982_v9 = vld [vmem:[#allocation5 + $0x1f0] sm:$0xf]  ;;  %v4312_v10 = vld [vmem:[#allocation5 + $0x1f4] sm:$0xf0]  ;;  %1540 = vmatpush.bf16.msra.mxu0 %v3791_v3  ;;  %v3846_v14 = vld [vmem:[#allocation5 + $0xe0] sm:$0xf]  ;;  %v3783_v16 = vor.u32 %v4262_v13, %v3782_v11 }
  0x2b   : > { %v3983_v12 = vor.u32 %v4312_v10, %v3982_v9  ;;  %v4278_v15 = vld [vmem:[#allocation5 + $0xe4] sm:$0xf0]  ;;  %1629 = vmatpush.bf16.msra.mxu1 %v3855_v7  ;;  %v3910_v18 = vld [vmem:[#allocation5 + $0x160] sm:$0xf]  ;;  %v3774_v23 = vld [vmem:[#allocation5 + $0x50] sm:$0xf] }
  0x2c   : > { %1718 = vmatpush.bf16.msra.mxu2 %v3919_v8  ;;  %v3847_v17 = vor.u32 %v4278_v15, %v3846_v14  ;;  %v4294_v19 = vld [vmem:[#allocation5 + $0x164] sm:$0xf0]  ;;  %v3974_v20 = vld [vmem:[#allocation5 + $0x1e0] sm:$0xf]  ;;  %v4260_v24 = vld [vmem:[#allocation5 + $0x54] sm:$0xf0] }
  0x2d   : > { %1807 = vmatpush.bf16.msra.mxu3 %v3983_v12  ;;  %v3911_v21 = vor.u32 %v4294_v19, %v3910_v18  ;;  %v4310_v22 = vld [vmem:[#allocation5 + $0x1e4] sm:$0xf0]  ;;  %v3838_v26 = vld [vmem:[#allocation5 + $0xd0] sm:$0xf]  ;;  %v4276_v27 = vld [vmem:[#allocation5 + $0xd4] sm:$0xf0]  ;;  %v3775_v29 = vor.u32 %v4260_v24, %v3774_v23 }
  0x2e   : > { %v3975_v25 = vor.u32 %v4310_v22, %v3974_v20  ;;  %v3902_v28 = vld [vmem:[#allocation5 + $0x150] sm:$0xf]  ;;  %1541 = vmatpush.bf16.msra.mxu0 %v3783_v16  ;;  %v4292_v30 = vld [vmem:[#allocation5 + $0x154] sm:$0xf0]  ;;  %v3839_v33 = vor.u32 %v4276_v27, %v3838_v26  ;;  %v3766_v35 = vld [vmem:[#allocation5 + $0x40] sm:$0xf] }
  0x2f   : > { %v3966_v31 = vld [vmem:[#allocation5 + $0x1d0] sm:$0xf]  ;;  %v4308_v32 = vld [vmem:[#allocation5 + $0x1d4] sm:$0xf0]  ;;  %1630 = vmatpush.bf16.msra.mxu1 %v3847_v17  ;;  %v3903_v34 = vor.u32 %v4292_v30, %v3902_v28  ;;  %v4258_v36 = vld [vmem:[#allocation5 + $0x44] sm:$0xf0] }
  0x30   : > { %1719 = vmatpush.bf16.msra.mxu2 %v3911_v21  ;;  %v3830_v37 = vld [vmem:[#allocation5 + $0xc0] sm:$0xf]  ;;  %v3967_v38 = vor.u32 %v4308_v32, %v3966_v31  ;;  %v4274_v39 = vld [vmem:[#allocation5 + $0xc4] sm:$0xf0]  ;;  %v3767_v44 = vor.u32 %v4258_v36, %v3766_v35  ;;  %v3758_v47 = vld [vmem:[#allocation5 + $0x30] sm:$0xf] }
  0x31   : > { %1808 = vmatpush.bf16.msra.mxu3 %v3975_v25  ;;  %v3894_v40 = vld [vmem:[#allocation5 + $0x140] sm:$0xf]  ;;  %v4290_v41 = vld [vmem:[#allocation5 + $0x144] sm:$0xf0]  ;;  %v3831_v45 = vor.u32 %v4274_v39, %v3830_v37  ;;  %v4256_v48 = vld [vmem:[#allocation5 + $0x34] sm:$0xf0] }
  0x32   : > { %v3958_v42 = vld [vmem:[#allocation5 + $0x1c0] sm:$0xf]  ;;  %v4306_v43 = vld [vmem:[#allocation5 + $0x1c4] sm:$0xf0]  ;;  %1542 = vmatpush.bf16.msra.mxu0 %v3775_v29  ;;  %v3895_v46 = vor.u32 %v4290_v41, %v3894_v40  ;;  %v3822_v49 = vld [vmem:[#allocation5 + $0xb0] sm:$0xf]  ;;  %v3759_v56 = vor.u32 %v4256_v48, %v3758_v47 }
  0x33   : > { %1631 = vmatpush.bf16.msra.mxu1 %v3839_v33  ;;  %v3959_v50 = vor.u32 %v4306_v43, %v3958_v42  ;;  %v4272_v51 = vld [vmem:[#allocation5 + $0xb4] sm:$0xf0]  ;;  %v3886_v52 = vld [vmem:[#allocation5 + $0x130] sm:$0xf]  ;;  %v3750_v59 = vld [vmem:[#allocation5 + $0x20] sm:$0xf] }
  0x34   : > { %1720 = vmatpush.bf16.msra.mxu2 %v3903_v34  ;;  %v4288_v53 = vld [vmem:[#allocation5 + $0x134] sm:$0xf0]  ;;  %v3950_v54 = vld [vmem:[#allocation5 + $0x1b0] sm:$0xf]  ;;  %v3823_v57 = vor.u32 %v4272_v51, %v3822_v49  ;;  %v4254_v60 = vld [vmem:[#allocation5 + $0x24] sm:$0xf0] }
  0x35   : > { %1809 = vmatpush.bf16.msra.mxu3 %v3967_v38  ;;  %v4304_v55 = vld [vmem:[#allocation5 + $0x1b4] sm:$0xf0]  ;;  %v3887_v58 = vor.u32 %v4288_v53, %v3886_v52  ;;  %v3814_v61 = vld [vmem:[#allocation5 + $0xa0] sm:$0xf]  ;;  %v4270_v63 = vld [vmem:[#allocation5 + $0xa4] sm:$0xf0]  ;;  %v3751_v4 = vor.u32 %v4254_v60, %v3750_v59 }
  0x36   : > { %1543 = vmatpush.bf16.msra.mxu0 %v3767_v44  ;;  %v3951_v62 = vor.u32 %v4304_v55, %v3950_v54  ;;  %v3878_v0 = vld [vmem:[#allocation5 + $0x120] sm:$0xf]  ;;  %v4286_v1 = vld [vmem:[#allocation5 + $0x124] sm:$0xf0]  ;;  %v3815_v5 = vor.u32 %v4270_v63, %v3814_v61  ;;  %v3742_v7 = vld [vmem:[#allocation5 + $0x10] sm:$0xf] }
  0x37   : > { %1632 = vmatpush.bf16.msra.mxu1 %v3831_v45  ;;  %v3942_v2 = vld [vmem:[#allocation5 + $0x1a0] sm:$0xf]  ;;  %v4302_v3 = vld [vmem:[#allocation5 + $0x1a4] sm:$0xf0]  ;;  %v3879_v6 = vor.u32 %v4286_v1, %v3878_v0  ;;  %v4252_v8 = vld [vmem:[#allocation5 + $0x14] sm:$0xf0] }
  0x38   : > { %1721 = vmatpush.bf16.msra.mxu2 %v3895_v46  ;;  %v3806_v9 = vld [vmem:[#allocation5 + $0x90] sm:$0xf]  ;;  %v3943_v10 = vor.u32 %v4302_v3, %v3942_v2  ;;  %v4268_v11 = vld [vmem:[#allocation5 + $0x94] sm:$0xf0]  ;;  %v3734_v16 = vld [vmem:[#allocation5] sm:$0xf]  ;;  %v3743_v17 = vor.u32 %v4252_v8, %v3742_v7 }
  0x39   : > { %1810 = vmatpush.bf16.msra.mxu3 %v3959_v50  ;;  %v3870_v12 = vld [vmem:[#allocation5 + $0x110] sm:$0xf]  ;;  %v4284_v13 = vld [vmem:[#allocation5 + $0x114] sm:$0xf0]  ;;  %v4250_v18 = vld [vmem:[#allocation5 + $0x4] sm:$0xf0]  ;;  %v3807_v21 = vor.u32 %v4268_v11, %v3806_v9 }
  0x3a   : > { %1544 = vmatpush.bf16.msra.mxu0 %v3759_v56  ;;  %v3934_v14 = vld [vmem:[#allocation5 + $0x190] sm:$0xf]  ;;  %v4300_v15 = vld [vmem:[#allocation5 + $0x194] sm:$0xf0]  ;;  %v3798_v19 = vld [vmem:[#allocation5 + $0x80] sm:$0xf]  ;;  %v3871_v22 = vor.u32 %v4284_v13, %v3870_v12  ;;  %v3735_v33 = vor.u32 %v4250_v18, %v3734_v16 }
  0x3b   : > { %1633 = vmatpush.bf16.msra.mxu1 %v3823_v57  ;;  %v4266_v20 = vld [vmem:[#allocation5 + $0x84] sm:$0xf0]  ;;  %v3862_v23 = vld [vmem:[#allocation5 + $0x100] sm:$0xf]  ;;  %v3935_v26 = vor.u32 %v4300_v15, %v3934_v14  ;;  %v4174_v31 = vld [vmem:[#allocation5 + $0x370] sm:$0xf] }
  0x3c   : > { %1722 = vmatpush.bf16.msra.mxu2 %v3887_v58  ;;  %v4282_v24 = vld [vmem:[#allocation5 + $0x104] sm:$0xf0]  ;;  %v3926_v25 = vld [vmem:[#allocation5 + $0x180] sm:$0xf]  ;;  %v4360_v32 = vld [vmem:[#allocation5 + $0x374] sm:$0xf0]  ;;  %v3799_v37 = vor.u32 %v4266_v20, %v3798_v19 }
  0x3d   : > { %1811 = vmatpush.bf16.msra.mxu3 %v3951_v62  ;;  %v4298_v27 = vld [vmem:[#allocation5 + $0x184] sm:$0xf0]  ;;  %v324_v28 = vld [vmem:[%s4970_s11] sm:$0xff]  ;;  %v4238_v35 = vld [vmem:[#allocation5 + $0x3f0] sm:$0xf]  ;;  %v3863_v38 = vor.u32 %v4282_v24, %v3862_v23  ;;  %v4175_v44 = vor.u32 %v4360_v32, %v4174_v31  ;;  %s3729_s19 = sshll.u32 %s4849_s15, 5 }
  0x3e   : > { %1545 = vmatpush.bf16.msra.mxu0 %v3751_v4  ;;  %v332_v29 = vld [vmem:[%s4970_s11 + $0x40] sm:$0xff]  ;;  %v325_v30 = vld [vmem:[%s4970_s11 + $0x8] sm:$0xff]  ;;  %v4376_v36 = vld [vmem:[#allocation5 + $0x3f4] sm:$0xf0]  ;;  %v3927_v42 = vor.u32 %v4298_v27, %v3926_v25  ;;  %p5964_p1 = scmp.lt.s32.totalorder %s3729_s19, 63 }
  0x3f   : > { %1634 = vmatpush.bf16.msra.mxu1 %v3815_v5  ;;  %v333_v34 = vld [vmem:[%s4970_s11 + $0x48] sm:$0xff]  ;;  %v326_v39 = vld [vmem:[%s4970_s11 + $0x10] sm:$0xff]  ;;  %v327_v41 = vld [vmem:[%s4970_s11 + $0x18] sm:$0xff]  ;;  %v4988_v47 = vpack.c.bf16 %v332_v29, %v324_v28  ;;  %v4239_v48 = vor.u32 %v4376_v36, %v4238_v35 }
  0x40   : > { %1723 = vmatpush.bf16.msra.mxu2 %v3879_v6  ;;  %v334_v40 = vld [vmem:[%s4970_s11 + $0x50] sm:$0xff]  ;;  %v335_v43 = vld [vmem:[%s4970_s11 + $0x58] sm:$0xff]  ;;  %v4990_v51 = vpack.c.bf16 %v333_v34, %v325_v30  ;;  %v4166_v56 = vld [vmem:[#allocation5 + $0x360] sm:$0xf]  ;;  %s6561_s19 = smov (!%p5964_p1, %s3729_s19), 63 }
  0x41   : > { %1812 = vmatpush.bf16.msra.mxu3 %v3943_v10  ;;  %v4046_v45 = vld [vmem:[#allocation5 + $0x270] sm:$0xf]  ;;  %v4328_v46 = vld [vmem:[#allocation5 + $0x274] sm:$0xf0]  ;;  %v4992_v52 = vpack.c.bf16 %v334_v40, %v326_v39  ;;  %v4994_v53 = vpack.c.bf16 %v335_v43, %v327_v41  ;;  %v4358_v57 = vld [vmem:[#allocation5 + $0x364] sm:$0xf0] }
  0x42   : > { %1546 = vmatpush.bf16.msra.mxu0 %v3743_v17  ;;  %v4110_v49 = vld [vmem:[#allocation5 + $0x2f0] sm:$0xf]  ;;  %v4344_v50 = vld [vmem:[#allocation5 + $0x2f4] sm:$0xf0]  ;;  %v4047_v54 = vor.u32 %v4328_v46, %v4046_v45  ;;  %v4038_v58 = vld [vmem:[#allocation5 + $0x260] sm:$0xf]  ;;  %v4167_v59 = vor.u32 %v4358_v57, %v4166_v56 }
  0x43   : > { %1635 = vmatpush.bf16.msra.mxu1 %v3807_v21  ;;  %v4111_v55 = vor.u32 %v4344_v50, %v4110_v49  ;;  %v4326_v60 = vld [vmem:[#allocation5 + $0x264] sm:$0xf0]  ;;  %v4230_v61 = vld [vmem:[#allocation5 + $0x3e0] sm:$0xf]  ;;  %v342_v8 = vld [vmem:[%s4970_s11 + $0x90] sm:$0xff]  ;;  %s4248_s15 = sshll.u32 %s6561_s19, 3 }
  0x44   : > { %1724 = vmatpush.bf16.msra.mxu2 %v3871_v22  ;;  %v4374_v62 = vld [vmem:[#allocation5 + $0x3e4] sm:$0xf0]  ;;  %v4039_v63 = vor.u32 %v4326_v60, %v4038_v58  ;;  %v4102_v1 = vld [vmem:[#allocation5 + $0x2e0] sm:$0xf]  ;;  %v350_v9 = vld [vmem:[%s4970_s11 + $0xd0] sm:$0xff]  ;;  %s5979_s10 = scalar_lea.vmem %s6169_s3, %s4248_s15 }
  0x45   : > { %1813 = vmatpush.bf16.msra.mxu3 %v3935_v26  ;;  %v4231_v0 = vor.u32 %v4374_v62, %v4230_v61  ;;  %v4342_v2 = vld [vmem:[#allocation5 + $0x2e4] sm:$0xf0]  ;;  %v340_v4 = vld [vmem:[%s4970_s11 + $0x80] sm:$0xff]  ;;  %v343_v10 = vld [vmem:[%s4970_s11 + $0x98] sm:$0xff]  ;;  %v5012_v14 = vpack.c.bf16 %v350_v9, %v342_v8 }
  0x46   : > { %1547 = vmatpush.bf16.msra.mxu0 %v3735_v33  ;;  %v4103_v3 = vor.u32 %v4342_v2, %v4102_v1  ;;  %v348_v5 = vld [vmem:[%s4970_s11 + $0xc0] sm:$0xff]  ;;  %v341_v6 = vld [vmem:[%s4970_s11 + $0x88] sm:$0xff]  ;;  %v351_v11 = vld [vmem:[%s4970_s11 + $0xd8] sm:$0xff] }
  0x47   : > { %1636 = vmatpush.bf16.msra.mxu1 %v3799_v37  ;;  %v349_v7 = vld [vmem:[%s4970_s11 + $0xc8] sm:$0xff]  ;;  %v5008_v12 = vpack.c.bf16 %v348_v5, %v340_v4  ;;  %v5014_v15 = vpack.c.bf16 %v351_v11, %v343_v10  ;;  %v356_v16 = vld [vmem:[%s4970_s11 + $0x100] sm:$0xff]  ;;  %v358_v20 = vld [vmem:[%s4970_s11 + $0x110] sm:$0xff] }
  0x48   : > { %1725 = vmatpush.bf16.msra.mxu2 %v3863_v38  ;;  %v5010_v13 = vpack.c.bf16 %v349_v7, %v341_v6  ;;  %v364_v17 = vld [vmem:[%s4970_s11 + $0x140] sm:$0xff]  ;;  %v357_v18 = vld [vmem:[%s4970_s11 + $0x108] sm:$0xff]  ;;  %v366_v21 = vld [vmem:[%s4970_s11 + $0x150] sm:$0xff] }
  0x49   : > { %1814 = vmatpush.bf16.msra.mxu3 %v3927_v42  ;;  %1548 = vmatmul.bf16.vlgmr.msra.gmra.mxu0 %v4988_v47  ;;  %v365_v19 = vld [vmem:[%s4970_s11 + $0x148] sm:$0xff]  ;;  %v359_v22 = vld [vmem:[%s4970_s11 + $0x118] sm:$0xff]  ;;  %v5028_v24 = vpack.c.bf16 %v364_v17, %v356_v16  ;;  %v5032_v26 = vpack.c.bf16 %v366_v21, %v358_v20  ;;  %v4158_v28 = vld [vmem:[#allocation5 + $0x350] sm:$0xf] }
  0x4a   : > { %1637 = vmatmul.bf16.vlgmr.msra.gmra.mxu1 %v4990_v51  ;;  %1896 = vmatpush.bf16.msrb.mxu0 %v4047_v54  ;;  %v367_v23 = vld [vmem:[%s4970_s11 + $0x158] sm:$0xff]  ;;  %v5030_v25 = vpack.c.bf16 %v365_v19, %v357_v18  ;;  %v4030_v30 = vld [vmem:[#allocation5 + $0x250] sm:$0xf]  ;;  %v372_v40 = vld [vmem:[%s4970_s11 + $0x180] sm:$0xff] }
  0x4b   : > { %1726 = vmatmul.bf16.vlgmr.msra.gmra.mxu2 %v4992_v52  ;;  %1985 = vmatpush.bf16.msrb.mxu1 %v4111_v55  ;;  %v5034_v27 = vpack.c.bf16 %v367_v23, %v359_v22  ;;  %v4356_v29 = vld [vmem:[#allocation5 + $0x354] sm:$0xf0]  ;;  %v4222_v33 = vld [vmem:[#allocation5 + $0x3d0] sm:$0xf]  ;;  %v380_v41 = vld [vmem:[%s4970_s11 + $0x1c0] sm:$0xff] }
  0x4c   : > { %2074 = vmatpush.bf16.msrb.mxu2 %v4175_v44  ;;  %1815 = vmatmul.bf16.vlgmr.msra.gmra.mxu3 %v4994_v53  ;;  %v4159_v31 = vor.u32 %v4356_v29, %v4158_v28  ;;  %v4324_v32 = vld [vmem:[#allocation5 + $0x254] sm:$0xf0]  ;;  %v4094_v37 = vld [vmem:[#allocation5 + $0x2d0] sm:$0xf]  ;;  %v373_v42 = vld [vmem:[%s4970_s11 + $0x188] sm:$0xff]  ;;  %v5048_v49 = vpack.c.bf16 %v380_v41, %v372_v40 }
  0x4d   : > { %2163 = vmatpush.bf16.msrb.mxu3 %v4239_v48  ;;  %v4372_v34 = vld [vmem:[#allocation5 + $0x3d4] sm:$0xf0]  ;;  %v4031_v35 = vor.u32 %v4324_v32, %v4030_v30  ;;  %v381_v43 = vld [vmem:[%s4970_s11 + $0x1c8] sm:$0xff]  ;;  %v374_v44 = vld [vmem:[%s4970_s11 + $0x190] sm:$0xff] }
  0x4e   : > { %1897 = vmatpush.bf16.msrb.mxu0 %v4039_v63  ;;  %v4223_v36 = vor.u32 %v4372_v34, %v4222_v33  ;;  %v4340_v38 = vld [vmem:[#allocation5 + $0x2d4] sm:$0xf0]  ;;  %v382_v45 = vld [vmem:[%s4970_s11 + $0x1d0] sm:$0xff]  ;;  %v5050_v50 = vpack.c.bf16 %v381_v43, %v373_v42  ;;  %v388_v56 = vld [vmem:[%s4970_s11 + $0x200] sm:$0xff] }
  0x4f   : > { %1986 = vmatpush.bf16.msrb.mxu1 %v4103_v3  ;;  %v4095_v39 = vor.u32 %v4340_v38, %v4094_v37  ;;  %v375_v46 = vld [vmem:[%s4970_s11 + $0x198] sm:$0xff]  ;;  %v5052_v54 = vpack.c.bf16 %v382_v45, %v374_v44  ;;  %v396_v57 = vld [vmem:[%s4970_s11 + $0x240] sm:$0xff]  ;;  %v389_v58 = vld [vmem:[%s4970_s11 + $0x208] sm:$0xff] }
  0x50   : > { %2075 = vmatpush.bf16.msrb.mxu2 %v4167_v59  ;;  %v383_v48 = vld [vmem:[%s4970_s11 + $0x1d8] sm:$0xff]  ;;  %v397_v59 = vld [vmem:[%s4970_s11 + $0x248] sm:$0xff]  ;;  %v390_v60 = vld [vmem:[%s4970_s11 + $0x210] sm:$0xff] }
  0x51   : > { %2164 = vmatpush.bf16.msrb.mxu3 %v4231_v0  ;;  %v5054_v55 = vpack.c.bf16 %v383_v48, %v375_v46  ;;  %v398_v61 = vld [vmem:[%s4970_s11 + $0x250] sm:$0xff]  ;;  %v391_v62 = vld [vmem:[%s4970_s11 + $0x218] sm:$0xff]  ;;  %v5068_v0 = vpack.c.bf16 %v396_v57, %v388_v56  ;;  %v5070_v1 = vpack.c.bf16 %v397_v59, %v389_v58  ;;  %v4150_v4 = vld [vmem:[#allocation5 + $0x340] sm:$0xf] }
  0x52   : > { %1898 = vmatpush.bf16.msrb.mxu0 %v4031_v35  ;;  %v399_v63 = vld [vmem:[%s4970_s11 + $0x258] sm:$0xff]  ;;  %v5072_v2 = vpack.c.bf16 %v398_v61, %v390_v60  ;;  %v4354_v5 = vld [vmem:[#allocation5 + $0x344] sm:$0xf0]  ;;  %v4022_v6 = vld [vmem:[#allocation5 + $0x240] sm:$0xf] }
  0x53   : > { %1987 = vmatpush.bf16.msrb.mxu1 %v4095_v39  ;;  %6280 = vst [vmem:[#allocation10_spill] sm:$0xff] %v5070_v1  ;;  %v5074_v3 = vpack.c.bf16 %v399_v63, %v391_v62  ;;  %v4151_v7 = vor.u32 %v4354_v5, %v4150_v4  ;;  %v4322_v8 = vld [vmem:[#allocation5 + $0x244] sm:$0xf0]  ;;  %v4214_v9 = vld [vmem:[#allocation5 + $0x3c0] sm:$0xf]  ;;  %v406_v28 = vld [vmem:[%s4970_s11 + $0x290] sm:$0xff] }
  0x54   : > { %2076 = vmatpush.bf16.msrb.mxu2 %v4159_v31  ;;  %6281 = vst [vmem:[#allocation11_spill] sm:$0xff] %v5072_v2  ;;  %v4370_v10 = vld [vmem:[#allocation5 + $0x3c4] sm:$0xf0]  ;;  %v4023_v11 = vor.u32 %v4322_v8, %v4022_v6  ;;  %v4086_v17 = vld [vmem:[#allocation5 + $0x2c0] sm:$0xf]  ;;  %v414_v29 = vld [vmem:[%s4970_s11 + $0x2d0] sm:$0xff] }
  0x55   : > { %2165 = vmatpush.bf16.msrb.mxu3 %v4223_v36  ;;  %6282 = vst [vmem:[#allocation12_spill] sm:$0xff] %v5074_v3  ;;  %v4215_v16 = vor.u32 %v4370_v10, %v4214_v9  ;;  %v4338_v18 = vld [vmem:[#allocation5 + $0x2c4] sm:$0xf0]  ;;  %v404_v20 = vld [vmem:[%s4970_s11 + $0x280] sm:$0xff]  ;;  %v407_v30 = vld [vmem:[%s4970_s11 + $0x298] sm:$0xff]  ;;  %v5092_v34 = vpack.c.bf16 %v414_v29, %v406_v28 }
  0x56   : > { %v4087_v19 = vor.u32 %v4338_v18, %v4086_v17  ;;  %1899 = vmatpush.bf16.msrb.mxu0 %v4023_v11  ;;  %v412_v21 = vld [vmem:[%s4970_s11 + $0x2c0] sm:$0xff]  ;;  %v405_v22 = vld [vmem:[%s4970_s11 + $0x288] sm:$0xff]  ;;  %v415_v31 = vld [vmem:[%s4970_s11 + $0x2d8] sm:$0xff] }
  0x57   : > { %v413_v23 = vld [vmem:[%s4970_s11 + $0x2c8] sm:$0xff]  ;;  %v5088_v32 = vpack.c.bf16 %v412_v21, %v404_v20  ;;  %6285 = vst [vmem:[#allocation15_spill] sm:$0xff] %v5092_v34  ;;  %v5094_v35 = vpack.c.bf16 %v415_v31, %v407_v30  ;;  %v420_v36 = vld [vmem:[%s4970_s11 + $0x300] sm:$0xff]  ;;  %v422_v40 = vld [vmem:[%s4970_s11 + $0x310] sm:$0xff] }
  0x58   : > { %2077 = vmatpush.bf16.msrb.mxu2 %v4151_v7  ;;  %1988 = vmatpush.bf16.msrb.mxu1 %v4087_v19  ;;  %v5090_v33 = vpack.c.bf16 %v413_v23, %v405_v22  ;;  %v428_v37 = vld [vmem:[%s4970_s11 + $0x340] sm:$0xff]  ;;  %v421_v38 = vld [vmem:[%s4970_s11 + $0x308] sm:$0xff]  ;;  %v430_v41 = vld [vmem:[%s4970_s11 + $0x350] sm:$0xff] }
  0x59   : > { %1553 = vmatmul.bf16.gmra.mxu0 %v5008_v12  ;;  %2166 = vmatpush.bf16.msrb.mxu3 %v4215_v16  ;;  %6283 = vst [vmem:[#allocation13_spill] sm:$0xff] %v5088_v32  ;;  %v429_v39 = vld [vmem:[%s4970_s11 + $0x348] sm:$0xff]  ;;  %v423_v42 = vld [vmem:[%s4970_s11 + $0x318] sm:$0xff]  ;;  %v5108_v44 = vpack.c.bf16 %v428_v37, %v420_v36  ;;  %v5112_v46 = vpack.c.bf16 %v430_v41, %v422_v40  ;;  %v4142_v56 = vld [vmem:[#allocation5 + $0x330] sm:$0xf] }
  0x5a   : > { %1642 = vmatmul.bf16.gmra.mxu1 %v5010_v13  ;;  %6284 = vst [vmem:[#allocation14_spill] sm:$0xff] %v5090_v33  ;;  %v431_v43 = vld [vmem:[%s4970_s11 + $0x358] sm:$0xff]  ;;  %v5110_v45 = vpack.c.bf16 %v429_v39, %v421_v38  ;;  %v4014_v58 = vld [vmem:[#allocation5 + $0x230] sm:$0xf]  ;;  %v436_v8 = vld [vmem:[%s4970_s11 + $0x380] sm:$0xff] }
  0x5b   : > { %1731 = vmatmul.bf16.gmra.mxu2 %v5012_v14  ;;  %6286 = vst [vmem:[#allocation16_spill] sm:$0xff] %v5094_v35  ;;  %v5114_v48 = vpack.c.bf16 %v431_v43, %v423_v42  ;;  %v4352_v57 = vld [vmem:[#allocation5 + $0x334] sm:$0xf0]  ;;  %v4206_v61 = vld [vmem:[#allocation5 + $0x3b0] sm:$0xf]  ;;  %v444_v9 = vld [vmem:[%s4970_s11 + $0x3c0] sm:$0xff] }
  0x5c   : > { %1820 = vmatmul.bf16.gmra.mxu3 %v5014_v15  ;;  %6287 = vst [vmem:[#allocation17_spill] sm:$0xff] %v5108_v44  ;;  %v4143_v59 = vor.u32 %v4352_v57, %v4142_v56  ;;  %v4320_v60 = vld [vmem:[#allocation5 + $0x234] sm:$0xf0]  ;;  %v4078_v5 = vld [vmem:[#allocation5 + $0x2b0] sm:$0xf]  ;;  %v437_v10 = vld [vmem:[%s4970_s11 + $0x388] sm:$0xff]  ;;  %v5128_v20 = vpack.c.bf16 %v444_v9, %v436_v8 }
  0x5d   : > { %6288 = vst [vmem:[#allocation18_spill] sm:$0xff] %v5110_v45  ;;  %v4368_v62 = vld [vmem:[#allocation5 + $0x3b4] sm:$0xf0]  ;;  %v4015_v63 = vor.u32 %v4320_v60, %v4014_v58  ;;  %v445_v11 = vld [vmem:[%s4970_s11 + $0x3c8] sm:$0xff]  ;;  %v438_v16 = vld [vmem:[%s4970_s11 + $0x390] sm:$0xff] }
  0x5e   : > { %6289 = vst [vmem:[#allocation19_spill] sm:$0xff] %v5112_v46  ;;  %v4207_v4 = vor.u32 %v4368_v62, %v4206_v61  ;;  %2078 = vmatpush.bf16.msrb.mxu2 %v4143_v59  ;;  %v4336_v6 = vld [vmem:[#allocation5 + $0x2b4] sm:$0xf0]  ;;  %v446_v17 = vld [vmem:[%s4970_s11 + $0x3d0] sm:$0xff]  ;;  %v5130_v21 = vpack.c.bf16 %v445_v11, %v437_v10  ;;  %v452_v28 = vld [vmem:[%s4970_s11 + $0x400] sm:$0xff] }
  0x5f   : > { %6290 = vst [vmem:[#allocation20_spill] sm:$0xff] %v5114_v48  ;;  %1900 = vmatpush.bf16.msrb.mxu0 %v4015_v63  ;;  %v4079_v7 = vor.u32 %v4336_v6, %v4078_v5  ;;  %v439_v18 = vld [vmem:[%s4970_s11 + $0x398] sm:$0xff]  ;;  %v5132_v22 = vpack.c.bf16 %v446_v17, %v438_v16  ;;  %v460_v29 = vld [vmem:[%s4970_s11 + $0x440] sm:$0xff]  ;;  %v453_v30 = vld [vmem:[%s4970_s11 + $0x408] sm:$0xff] }
  0x60   : > { %2167 = vmatpush.bf16.msrb.mxu3 %v4207_v4  ;;  %v447_v19 = vld [vmem:[%s4970_s11 + $0x3d8] sm:$0xff]  ;;  %6291 = vst [vmem:[#allocation21_spill] sm:$0xff] %v5128_v20  ;;  %v461_v31 = vld [vmem:[%s4970_s11 + $0x448] sm:$0xff]  ;;  %v454_v36 = vld [vmem:[%s4970_s11 + $0x410] sm:$0xff]  ;;  %v5148_v40 = vpack.c.bf16 %v460_v29, %v452_v28 }
  0x61   : > { %1989 = vmatpush.bf16.msrb.mxu1 %v4079_v7  ;;  %6292 = vst [vmem:[#allocation22_spill] sm:$0xff] %v5130_v21  ;;  %v5134_v23 = vpack.c.bf16 %v447_v19, %v439_v18  ;;  %v462_v37 = vld [vmem:[%s4970_s11 + $0x450] sm:$0xff]  ;;  %v455_v38 = vld [vmem:[%s4970_s11 + $0x418] sm:$0xff]  ;;  %v5150_v42 = vpack.c.bf16 %v461_v31, %v453_v30  ;;  %v4134_v59 = vld [vmem:[#allocation5 + $0x320] sm:$0xf] }
  0x62   : > { %6293 = vst [vmem:[#allocation23_spill] sm:$0xff] %v5132_v22  ;;  %v463_v39 = vld [vmem:[%s4970_s11 + $0x458] sm:$0xff]  ;;  %v5152_v43 = vpack.c.bf16 %v462_v37, %v454_v36  ;;  %v4350_v60 = vld [vmem:[#allocation5 + $0x324] sm:$0xf0]  ;;  %v4006_v61 = vld [vmem:[#allocation5 + $0x220] sm:$0xf] }
  0x63   : > { %6294 = vst [vmem:[#allocation24_spill] sm:$0xff] %v5134_v23  ;;  %v5154_v57 = vpack.c.bf16 %v463_v39, %v455_v38  ;;  %v4135_v62 = vor.u32 %v4350_v60, %v4134_v59  ;;  %v4318_v63 = vld [vmem:[#allocation5 + $0x224] sm:$0xf0]  ;;  %v4198_v4 = vld [vmem:[#allocation5 + $0x3a0] sm:$0xf]  ;;  %v470_v38 = vld [vmem:[%s4970_s11 + $0x490] sm:$0xff] }
  0x64   : > { %6295 = vst [vmem:[#allocation25_spill] sm:$0xff] %v5148_v40  ;;  %v4366_v5 = vld [vmem:[#allocation5 + $0x3a4] sm:$0xf0]  ;;  %v4007_v7 = vor.u32 %v4318_v63, %v4006_v61  ;;  %v4070_v19 = vld [vmem:[#allocation5 + $0x2a0] sm:$0xf]  ;;  %v478_v39 = vld [vmem:[%s4970_s11 + $0x4d0] sm:$0xff] }
  0x65   : > { %6296 = vst [vmem:[#allocation26_spill] sm:$0xff] %v5150_v42  ;;  %v4199_v8 = vor.u32 %v4366_v5, %v4198_v4  ;;  %2079 = vmatpush.bf16.msrb.mxu2 %v4135_v62  ;;  %v4334_v28 = vld [vmem:[#allocation5 + $0x2a4] sm:$0xf0]  ;;  %v468_v30 = vld [vmem:[%s4970_s11 + $0x480] sm:$0xff]  ;;  %v5174_v4 = vpack.c.bf16 %v478_v39, %v470_v38  ;;  %v494_v38 = vld [vmem:[%s4970_s11 + $0x550] sm:$0xff] }
  0x66   : > { %6297 = vst [vmem:[#allocation27_spill] sm:$0xff] %v5152_v43  ;;  %1901 = vmatpush.bf16.msrb.mxu0 %v4007_v7  ;;  %v4071_v29 = vor.u32 %v4334_v28, %v4070_v19  ;;  %v476_v31 = vld [vmem:[%s4970_s11 + $0x4c0] sm:$0xff]  ;;  %v469_v36 = vld [vmem:[%s4970_s11 + $0x488] sm:$0xff]  ;;  %v487_v39 = vld [vmem:[%s4970_s11 + $0x518] sm:$0xff] }
  0x67   : > { %6298 = vst [vmem:[#allocation28_spill] sm:$0xff] %v5154_v57  ;;  %2168 = vmatpush.bf16.msrb.mxu3 %v4199_v8  ;;  %v477_v37 = vld [vmem:[%s4970_s11 + $0x4c8] sm:$0xff]  ;;  %v5170_v59 = vpack.c.bf16 %v476_v31, %v468_v30  ;;  %v492_v30 = vld [vmem:[%s4970_s11 + $0x540] sm:$0xff] }
  0x68   : > { %1990 = vmatpush.bf16.msrb.mxu1 %v4071_v29  ;;  %v5172_v63 = vpack.c.bf16 %v477_v37, %v469_v36  ;;  %6301 = vst [vmem:[#allocation31_spill] sm:$0xff] %v5174_v4  ;;  %v484_v29 = vld [vmem:[%s4970_s11 + $0x500] sm:$0xff]  ;;  %v485_v31 = vld [vmem:[%s4970_s11 + $0x508] sm:$0xff]  ;;  %v486_v37 = vld [vmem:[%s4970_s11 + $0x510] sm:$0xff] }
  0x69   : > { %1558 = vmatmul.bf16.gmra.mxu0 %v5028_v24  ;;  %6299 = vst [vmem:[#allocation29_spill] sm:$0xff] %v5170_v59  ;;  %v493_v36 = vld [vmem:[%s4970_s11 + $0x548] sm:$0xff] }
  0x6a   : > { %1647 = vmatmul.bf16.gmra.mxu1 %v5030_v25  ;;  %6300 = vst [vmem:[#allocation30_spill] sm:$0xff] %v5172_v63 }
  0x6b   : > { %1736 = vmatmul.bf16.gmra.mxu2 %v5032_v26 }
  0x6c   : > { %1825 = vmatmul.bf16.gmra.mxu3 %v5034_v27 }
  0x79   : > { %1563 = vmatmul.bf16.gmra.mxu0 %v5048_v49 }
  0x7a   : > { %1652 = vmatmul.bf16.gmra.mxu1 %v5050_v50 }
  0x7b   : > { %1741 = vmatmul.bf16.gmra.mxu2 %v5052_v54 }
  0x7c   : > { %1830 = vmatmul.bf16.gmra.mxu3 %v5054_v55 }
  0x89   : > { %1568 = vmatmul.bf16.gmra.mxu0 %v5068_v0 }
  0x8a   : > { %1657 = vmatmul.bf16.gmra.mxu1 %v5070_v1 }
  0x8b   : > { %1746 = vmatmul.bf16.gmra.mxu2 %v5072_v2 }
  0x8c   : > { %1835 = vmatmul.bf16.gmra.mxu3 %v5074_v3 }
  0x99   : > { %1573 = vmatmul.bf16.gmra.mxu0 %v5088_v32 }
  0x9a   : > { %1662 = vmatmul.bf16.gmra.mxu1 %v5090_v33 }
  0x9b   : > { %1751 = vmatmul.bf16.gmra.mxu2 %v5092_v34 }
  0x9c   : > { %1840 = vmatmul.bf16.gmra.mxu3 %v5094_v35 }
  0xa9   : > { %1578 = vmatmul.bf16.gmra.mxu0 %v5108_v44 }
  0xaa   : > { %1667 = vmatmul.bf16.gmra.mxu1 %v5110_v45 }
  0xab   : > { %1756 = vmatmul.bf16.gmra.mxu2 %v5112_v46 }
  0xac   : > { %1845 = vmatmul.bf16.gmra.mxu3 %v5114_v48 }
  0xb9   : > { %1583 = vmatmul.bf16.gmra.mxu0 %v5128_v20 }
  0xba   : > { %1672 = vmatmul.bf16.gmra.mxu1 %v5130_v21 }
  0xbb   : > { %1761 = vmatmul.bf16.gmra.mxu2 %v5132_v22 }
  0xbc   : > { %1850 = vmatmul.bf16.gmra.mxu3 %v5134_v23 }
  0xc6   : > { %v1549_v41 = vpop.f32.mrf.mxu0 }
  0xc7   : > { %v1638_v56 = vpop.f32.mrf.mxu1 }
  0xc8   : > { %v1639_v58 = vadd.f32 %v1638_v56, %v1549_v41  ;;  %v471_v41 = vld [vmem:[%s4970_s11 + $0x498] sm:$0xff] }
  0xc9   : > { %1588 = vmatmul.bf16.gmra.mxu0 %v5148_v40  ;;  %v479_v56 = vld [vmem:[%s4970_s11 + $0x4d8] sm:$0xff] }
  0xca   : > { %1677 = vmatmul.bf16.gmra.mxu1 %v5150_v42 }
  0xcb   : > { %1766 = vmatmul.bf16.gmra.mxu2 %v5152_v43 }
  0xcc   : > { %1855 = vmatmul.bf16.gmra.mxu3 %v5154_v57 }
  0xce   : > { %v1727_v6 = vpop.f32.mrf.mxu2  ;;  %v1551_v11 = vpop.f32.mrf.mxu0 }
  0xcf   : > { %v1728_v9 = vadd.f32 %v1727_v6, %v1639_v58  ;;  %v1816_v10 = vpop.f32.mrf.mxu3  ;;  %v1640_v16 = vpop.f32.mrf.mxu1  ;;  %v5176_v6 = vpack.c.bf16 %v479_v56, %v471_v41  ;;  %v495_v41 = vld [vmem:[%s4970_s11 + $0x558] sm:$0xff] }
  0xd0   : > { %v1641_v18 = vadd.f32 %v1640_v16, %v1551_v11 }
  0xd1   : > { %v5160_v17 = vadd.f32 %v1816_v10, %v1728_v9  ;;  %6302 = vst [vmem:[#allocation32_spill] sm:$0xff] %v5176_v6 }
  0xd6   : > { %v1729_v58 = vpop.f32.mrf.mxu2  ;;  %v1554_v62 = vpop.f32.mrf.mxu0 }
  0xd7   : > { %v1730_v60 = vadd.f32 %v1729_v58, %v1641_v18  ;;  %v1818_v61 = vpop.f32.mrf.mxu3  ;;  %v1643_v5 = vpop.f32.mrf.mxu1  ;;  %v5194_v58 = vpack.c.bf16 %v492_v30, %v484_v29  ;;  %v3998_v29 = vld [vmem:[#allocation5 + $0x210] sm:$0xf] }
  0xd8   : > { %v1644_v8 = vadd.f32 %v1643_v5, %v1554_v62  ;;  %v5196_v5 = vpack.c.bf16 %v493_v36, %v485_v31  ;;  %v4316_v31 = vld [vmem:[#allocation5 + $0x214] sm:$0xf0]  ;;  %v4190_v36 = vld [vmem:[#allocation5 + $0x390] sm:$0xf] }
  0xd9   : > { %v5178_v7 = vadd.f32 %v1818_v61, %v1730_v60  ;;  %1593 = vmatmul.bf16.gmra.mxu0 %v5170_v59  ;;  %6303 = vst [vmem:[#allocation33_spill] sm:$0xff] %v5194_v58 }
  0xda   : > { %1682 = vmatmul.bf16.gmra.mxu1 %v5172_v63  ;;  %6304 = vst [vmem:[#allocation34_spill] sm:$0xff] %v5196_v5 }
  0xdb   : > { %1771 = vmatmul.bf16.gmra.mxu2 %v5174_v4 }
  0xdc   : > { %1860 = vmatmul.bf16.gmra.mxu3 %v5176_v6 }
  0xde   : > { %v1732_v9 = vpop.f32.mrf.mxu2  ;;  %v1556_v16 = vpop.f32.mrf.mxu0 }
  0xdf   : > { %v1733_v10 = vadd.f32 %v1732_v9, %v1644_v8  ;;  %v1821_v11 = vpop.f32.mrf.mxu3  ;;  %v1645_v18 = vpop.f32.mrf.mxu1  ;;  %v5198_v8 = vpack.c.bf16 %v494_v38, %v486_v37  ;;  %v4364_v37 = vld [vmem:[#allocation5 + $0x394] sm:$0xf0] }
  0xe0   : > { %v1646_v28 = vadd.f32 %v1645_v18, %v1556_v16  ;;  %v4126_v18 = vld [vmem:[#allocation5 + $0x310] sm:$0xf] }
  0xe1   : > { %v5184_v19 = vadd.f32 %v1821_v11, %v1733_v10  ;;  %6305 = vst [vmem:[#allocation35_spill] sm:$0xff] %v5198_v8  ;;  %v5200_v10 = vpack.c.bf16 %v495_v41, %v487_v39  ;;  %v3999_v39 = vor.u32 %v4316_v31, %v3998_v29  ;;  %v4191_v41 = vor.u32 %v4364_v37, %v4190_v36  ;;  %v500_v31 = vld [vmem:[%s4970_s11 + $0x580] sm:$0xff]  ;;  %v501_v37 = vld [vmem:[%s4970_s11 + $0x588] sm:$0xff] }
  0xe2   : > { %v508_v36 = vld [vmem:[%s4970_s11 + $0x5c0] sm:$0xff] }
  0xe3   : > { %6306 = vst [vmem:[#allocation36_spill] sm:$0xff] %v5200_v10  ;;  %1902 = vmatpush.bf16.msrb.mxu0 %v3999_v39  ;;  %2169 = vmatpush.bf16.msrb.mxu3 %v4191_v41  ;;  %v5218_v6 = vpack.c.bf16 %v508_v36, %v500_v31 }
  0xe5   : > { %6307 = vst [vmem:[#allocation37_spill] sm:$0xff] %v5218_v6 }
  0xe6   : > { %v1734_v56 = vpop.f32.mrf.mxu2  ;;  %v1559_v62 = vpop.f32.mrf.mxu0 }
  0xe7   : > { %v1735_v60 = vadd.f32 %v1734_v56, %v1646_v28  ;;  %v1823_v61 = vpop.f32.mrf.mxu3  ;;  %v1648_v9 = vpop.f32.mrf.mxu1  ;;  %v4348_v28 = vld [vmem:[#allocation5 + $0x314] sm:$0xf0] }
  0xe8   : > { %v1649_v16 = vadd.f32 %v1648_v9, %v1559_v62  ;;  %v4127_v30 = vor.u32 %v4348_v28, %v4126_v18  ;;  %v4062_v28 = vld [vmem:[#allocation5 + $0x290] sm:$0xf] }
  0xe9   : > { %v5202_v11 = vadd.f32 %v1823_v61, %v1735_v60  ;;  %1598 = vmatmul.bf16.gmra.mxu0 %v5194_v58 }
  0xea   : > { %1687 = vmatmul.bf16.gmra.mxu1 %v5196_v5  ;;  %2080 = vmatpush.bf16.msrb.mxu2 %v4127_v30  ;;  %v503_v5 = vld [vmem:[%s4970_s11 + $0x598] sm:$0xff] }
  0xeb   : > { %1776 = vmatmul.bf16.gmra.mxu2 %v5198_v8  ;;  %v510_v8 = vld [vmem:[%s4970_s11 + $0x5d0] sm:$0xff]  ;;  %v511_v30 = vld [vmem:[%s4970_s11 + $0x5d8] sm:$0xff] }
  0xec   : > { %1865 = vmatmul.bf16.gmra.mxu3 %v5200_v10  ;;  %v4332_v10 = vld [vmem:[#allocation5 + $0x294] sm:$0xf0] }
  0xed   : > { %v4063_v29 = vor.u32 %v4332_v10, %v4062_v28 }
  0xee   : > { %v1737_v38 = vpop.f32.mrf.mxu2  ;;  %v1561_v61 = vpop.f32.mrf.mxu0 }
  0xef   : > { %v1738_v56 = vadd.f32 %v1737_v38, %v1649_v16  ;;  %v1826_v60 = vpop.f32.mrf.mxu3  ;;  %v1650_v62 = vpop.f32.mrf.mxu1  ;;  %v509_v16 = vld [vmem:[%s4970_s11 + $0x5c8] sm:$0xff]  ;;  %v502_v38 = vld [vmem:[%s4970_s11 + $0x590] sm:$0xff]  ;;  %1991 = vmatpush.bf16.msrb.mxu1 %v4063_v29 }
  0xf0   : > { %v1651_v18 = vadd.f32 %v1650_v62, %v1561_v61  ;;  %v5222_v61 = vpack.c.bf16 %v510_v8, %v502_v38  ;;  %v5224_v62 = vpack.c.bf16 %v511_v30, %v503_v5  ;;  %v524_v38 = vld [vmem:[%s4970_s11 + $0x640] sm:$0xff]  ;;  %v517_v30 = vld [vmem:[%s4970_s11 + $0x608] sm:$0xff] }
  0xf1   : > { %v5208_v9 = vadd.f32 %v1826_v60, %v1738_v56  ;;  %v5220_v60 = vpack.c.bf16 %v509_v16, %v501_v37  ;;  %v516_v16 = vld [vmem:[%s4970_s11 + $0x600] sm:$0xff] }
  0xf2   : > { %6309 = vst [vmem:[#allocation39_spill] sm:$0xff] %v5222_v61 }
  0xf3   : > { %6308 = vst [vmem:[#allocation38_spill] sm:$0xff] %v5220_v60 }
  0xf4   : > { %6310 = vst [vmem:[#allocation40_spill] sm:$0xff] %v5224_v62 }
  0xf6   : > { %v1739_v58 = vpop.f32.mrf.mxu2  ;;  %v1564_v56 = vpop.f32.mrf.mxu0 }
  0xf7   : > { %v1740_v39 = vadd.f32 %v1739_v58, %v1651_v18  ;;  %v1828_v41 = vpop.f32.mrf.mxu3  ;;  %v1653_v10 = vpop.f32.mrf.mxu1 }
  0xf8   : > { %v1654_v29 = vadd.f32 %v1653_v10, %v1564_v56  ;;  %v526_v56 = vld [vmem:[%s4970_s11 + $0x650] sm:$0xff]  ;;  %v519_v10 = vld [vmem:[%s4970_s11 + $0x618] sm:$0xff] }
  0xf9   : > { %v5226_v28 = vadd.f32 %v1828_v41, %v1740_v39  ;;  %1603 = vmatmul.bf16.gmra.mxu0 %v5218_v6  ;;  %v525_v39 = vld [vmem:[%s4970_s11 + $0x648] sm:$0xff]  ;;  %v518_v41 = vld [vmem:[%s4970_s11 + $0x610] sm:$0xff]  ;;  %v5242_v6 = vpack.c.bf16 %v524_v38, %v516_v16  ;;  %v3990_v16 = vld [vmem:[#allocation5 + $0x200] sm:$0xf] }
  0xfa   : > { %1692 = vmatmul.bf16.gmra.mxu1 %v5220_v60  ;;  %v527_v60 = vld [vmem:[%s4970_s11 + $0x658] sm:$0xff]  ;;  %v5246_v63 = vpack.c.bf16 %v526_v56, %v518_v41  ;;  %v4362_v41 = vld [vmem:[#allocation5 + $0x384] sm:$0xf0] }
  0xfb   : > { %1781 = vmatmul.bf16.gmra.mxu2 %v5222_v61  ;;  %6311 = vst [vmem:[#allocation41_spill] sm:$0xff] %v5242_v6 }
  0xfc   : > { %1870 = vmatmul.bf16.gmra.mxu3 %v5224_v62  ;;  %6313 = vst [vmem:[#allocation43_spill] sm:$0xff] %v5246_v63 }
  0xfe   : > { %v1742_v58 = vpop.f32.mrf.mxu2  ;;  %v1566_v18 = vpop.f32.mrf.mxu0 }
  0xff   : > { %v1743_v5 = vadd.f32 %v1742_v58, %v1654_v29  ;;  %v1831_v8 = vpop.f32.mrf.mxu3  ;;  %v1655_v31 = vpop.f32.mrf.mxu1  ;;  %v5244_v58 = vpack.c.bf16 %v525_v39, %v517_v30  ;;  %v4314_v30 = vld [vmem:[#allocation5 + $0x204] sm:$0xf0]  ;;  %v4182_v39 = vld [vmem:[#allocation5 + $0x380] sm:$0xf] }
 0x100   : > { %v1656_v37 = vadd.f32 %v1655_v31, %v1566_v18 }
 0x101   : > { %v5232_v36 = vadd.f32 %v1831_v8, %v1743_v5  ;;  %6312 = vst [vmem:[#allocation42_spill] sm:$0xff] %v5244_v58  ;;  %v5248_v8 = vpack.c.bf16 %v527_v60, %v519_v10 }
 0x103   : > { %6314 = vst [vmem:[#allocation44_spill] sm:$0xff] %v5248_v8 }
 0x106   : > { %v1744_v61 = vpop.f32.mrf.mxu2  ;;  %v1569_v29 = vpop.f32.mrf.mxu0 }
 0x107   : > { %v1745_v62 = vadd.f32 %v1744_v61, %v1656_v37  ;;  %v1833_v4 = vpop.f32.mrf.mxu3  ;;  %v1658_v5 = vpop.f32.mrf.mxu1  ;;  %v4118_v61 = vld [vmem:[#allocation5 + $0x300] sm:$0xf]  ;;  %v4346_v37 = vld [vmem:[#allocation5 + $0x304] sm:$0xf0] }
 0x108   : > { %v1659_v31 = vadd.f32 %v1658_v5, %v1569_v29  ;;  %v4119_v38 = vor.u32 %v4346_v37, %v4118_v61 }
 0x109   : > { %v5250_v18 = vadd.f32 %v1833_v4, %v1745_v62  ;;  %1608 = vmatmul.bf16.gmra.mxu0 %v5242_v6  ;;  %v3991_v4 = vor.u32 %v4314_v30, %v3990_v16  ;;  %v4183_v62 = vor.u32 %v4362_v41, %v4182_v39  ;;  %v532_v30 = vld [vmem:[%s4970_s11 + $0x680] sm:$0xff]  ;;  %v533_v41 = vld [vmem:[%s4970_s11 + $0x688] sm:$0xff]  ;;  %v535_v6 = vld [vmem:[%s4970_s11 + $0x698] sm:$0xff] }
 0x10a   : > { %1697 = vmatmul.bf16.gmra.mxu1 %v5244_v58  ;;  %2081 = vmatpush.bf16.msrb.mxu2 %v4119_v38  ;;  %v540_v39 = vld [vmem:[%s4970_s11 + $0x6c0] sm:$0xff]  ;;  %v542_v58 = vld [vmem:[%s4970_s11 + $0x6d0] sm:$0xff]  ;;  %v543_v38 = vld [vmem:[%s4970_s11 + $0x6d8] sm:$0xff] }
 0x10b   : > { %1786 = vmatmul.bf16.gmra.mxu2 %v5246_v63  ;;  %1903 = vmatpush.bf16.msrb.mxu0 %v3991_v4  ;;  %v4330_v63 = vld [vmem:[#allocation5 + $0x284] sm:$0xf0]  ;;  %v5266_v57 = vpack.c.bf16 %v540_v39, %v532_v30 }
 0x10c   : > { %1875 = vmatmul.bf16.gmra.mxu3 %v5248_v8  ;;  %v4054_v8 = vld [vmem:[#allocation5 + $0x280] sm:$0xf] }
 0x10d   : > { %2170 = vmatpush.bf16.msrb.mxu3 %v4183_v62  ;;  %v4055_v16 = vor.u32 %v4330_v63, %v4054_v8  ;;  %6315 = vst [vmem:[#allocation45_spill] sm:$0xff] %v5266_v57  ;;  %v5272_v8 = vpack.c.bf16 %v543_v38, %v535_v6  ;;  %v549_v38 = vld [vmem:[%s4970_s11 + $0x708] sm:$0xff] }
 0x10e   : > { %v1747_v60 = vpop.f32.mrf.mxu2  ;;  %v1571_v29 = vpop.f32.mrf.mxu0 }
 0x10f   : > { %v1748_v56 = vadd.f32 %v1747_v60, %v1659_v31  ;;  %v1836_v10 = vpop.f32.mrf.mxu3  ;;  %v1660_v5 = vpop.f32.mrf.mxu1  ;;  %v541_v31 = vld [vmem:[%s4970_s11 + $0x6c8] sm:$0xff]  ;;  %v534_v60 = vld [vmem:[%s4970_s11 + $0x690] sm:$0xff]  ;;  %1992 = vmatpush.bf16.msrb.mxu1 %v4055_v16  ;;  %6318 = vst [vmem:[#allocation48_spill] sm:$0xff] %v5272_v8 }
 0x110   : > { %v1661_v37 = vadd.f32 %v1660_v5, %v1571_v29  ;;  %v5270_v29 = vpack.c.bf16 %v542_v58, %v534_v60  ;;  %v556_v60 = vld [vmem:[%s4970_s11 + $0x740] sm:$0xff] }
 0x111   : > { %v5256_v61 = vadd.f32 %v1836_v10, %v1748_v56  ;;  %v5268_v10 = vpack.c.bf16 %v541_v31, %v533_v41  ;;  %v548_v31 = vld [vmem:[%s4970_s11 + $0x700] sm:$0xff] }
 0x112   : > { %6317 = vst [vmem:[#allocation47_spill] sm:$0xff] %v5270_v29 }
 0x113   : > { %6316 = vst [vmem:[#allocation46_spill] sm:$0xff] %v5268_v10 }
 0x116   : > { %v1749_v59 = vpop.f32.mrf.mxu2  ;;  %v1574_v56 = vpop.f32.mrf.mxu0 }
 0x117   : > { %v1750_v4 = vadd.f32 %v1749_v59, %v1661_v37  ;;  %v1838_v62 = vpop.f32.mrf.mxu3  ;;  %v1663_v63 = vpop.f32.mrf.mxu1 }
 0x118   : > { %v1664_v16 = vadd.f32 %v1663_v63, %v1574_v56  ;;  %v558_v56 = vld [vmem:[%s4970_s11 + $0x750] sm:$0xff]  ;;  %v551_v63 = vld [vmem:[%s4970_s11 + $0x718] sm:$0xff] }
 0x119   : > { %v5274_v5 = vadd.f32 %v1838_v62, %v1750_v4  ;;  %1613 = vmatmul.bf16.gmra.mxu0 %v5266_v57  ;;  %v557_v4 = vld [vmem:[%s4970_s11 + $0x748] sm:$0xff]  ;;  %v550_v62 = vld [vmem:[%s4970_s11 + $0x710] sm:$0xff]  ;;  %v5290_v57 = vpack.c.bf16 %v556_v60, %v548_v31 }
 0x11a   : > { %1702 = vmatmul.bf16.gmra.mxu1 %v5268_v10  ;;  %v559_v10 = vld [vmem:[%s4970_s11 + $0x758] sm:$0xff]  ;;  %v5294_v42 = vpack.c.bf16 %v558_v56, %v550_v62  ;;  %v4263_v31 = vld [vmem:[#allocation5 + $0x74] sm:$0xf] }
 0x11b   : > { %1791 = vmatmul.bf16.gmra.mxu2 %v5270_v29  ;;  %6319 = vst [vmem:[#allocation49_spill] sm:$0xff] %v5290_v57  ;;  %v3984_v62 = vld [vmem:[#allocation5 + $0x1f8] sm:$0xf0] }
 0x11c   : > { %1880 = vmatmul.bf16.gmra.mxu3 %v5272_v8  ;;  %6321 = vst [vmem:[#allocation51_spill] sm:$0xff] %v5294_v42 }
 0x11e   : > { %v1752_v59 = vpop.f32.mrf.mxu2  ;;  %v1576_v37 = vpop.f32.mrf.mxu0 }
 0x11f   : > { %v1753_v6 = vadd.f32 %v1752_v59, %v1664_v16  ;;  %v1841_v58 = vpop.f32.mrf.mxu3  ;;  %v1665_v30 = vpop.f32.mrf.mxu1  ;;  %v5292_v59 = vpack.c.bf16 %v557_v4, %v549_v38  ;;  %v3792_v38 = vld [vmem:[#allocation5 + $0x78] sm:$0xf0]  ;;  %v4311_v4 = vld [vmem:[#allocation5 + $0x1f4] sm:$0xf] }
 0x120   : > { %v1666_v41 = vadd.f32 %v1665_v30, %v1576_v37 }
 0x121   : > { %v5280_v39 = vadd.f32 %v1841_v58, %v1753_v6  ;;  %6320 = vst [vmem:[#allocation50_spill] sm:$0xff] %v5292_v59  ;;  %v5296_v58 = vpack.c.bf16 %v559_v10, %v551_v63 }
 0x123   : > { %6322 = vst [vmem:[#allocation52_spill] sm:$0xff] %v5296_v58 }
 0x126   : > { %v1754_v29 = vpop.f32.mrf.mxu2  ;;  %v1579_v16 = vpop.f32.mrf.mxu0 }
 0x127   : > { %v1755_v8 = vadd.f32 %v1754_v29, %v1666_v41  ;;  %v1843_v43 = vpop.f32.mrf.mxu3  ;;  %v1668_v6 = vpop.f32.mrf.mxu1  ;;  %v4295_v29 = vld [vmem:[#allocation5 + $0x174] sm:$0xf]  ;;  %v3920_v41 = vld [vmem:[#allocation5 + $0x178] sm:$0xf0] }
 0x128   : > { %v1669_v30 = vadd.f32 %v1668_v6, %v1579_v16  ;;  %v3923_v60 = vor.u32 %v4295_v29, %v3920_v41 }
 0x129   : > { %v5298_v37 = vadd.f32 %v1843_v43, %v1755_v8  ;;  %1618 = vmatmul.bf16.gmra.mxu0 %v5290_v57  ;;  %v3795_v43 = vor.u32 %v4263_v31, %v3792_v38  ;;  %v3987_v8 = vor.u32 %v4311_v4, %v3984_v62  ;;  %v564_v38 = vld [vmem:[%s4970_s11 + $0x780] sm:$0xff]  ;;  %v565_v62 = vld [vmem:[%s4970_s11 + $0x788] sm:$0xff]  ;;  %v567_v57 = vld [vmem:[%s4970_s11 + $0x798] sm:$0xff] }
 0x12a   : > { %1707 = vmatmul.bf16.gmra.mxu1 %v5292_v59  ;;  %2430 = vmatpush.bf16.msra.mxu2 %v3923_v60  ;;  %v572_v4 = vld [vmem:[%s4970_s11 + $0x7c0] sm:$0xff]  ;;  %v574_v59 = vld [vmem:[%s4970_s11 + $0x7d0] sm:$0xff]  ;;  %v575_v60 = vld [vmem:[%s4970_s11 + $0x7d8] sm:$0xff] }
 0x12b   : > { %1796 = vmatmul.bf16.gmra.mxu2 %v5294_v42  ;;  %2252 = vmatpush.bf16.msra.mxu0 %v3795_v43  ;;  %v3856_v42 = vld [vmem:[#allocation5 + $0xf8] sm:$0xf0]  ;;  %v5314_v23 = vpack.c.bf16 %v572_v4, %v564_v38 }
 0x12c   : > { %1885 = vmatmul.bf16.gmra.mxu3 %v5296_v58  ;;  %v4279_v58 = vld [vmem:[#allocation5 + $0xf4] sm:$0xf] }
 0x12d   : > { %2519 = vmatpush.bf16.msra.mxu3 %v3987_v8  ;;  %v3859_v31 = vor.u32 %v4279_v58, %v3856_v42  ;;  %6323 = vst [vmem:[#allocation53_spill] sm:$0xff] %v5314_v23  ;;  %v5320_v58 = vpack.c.bf16 %v575_v60, %v567_v57  ;;  %v329_v60 = vld [vmem:[%s4970_s11 + $0x28] sm:$0xff] }
 0x12e   : > { %v1757_v10 = vpop.f32.mrf.mxu2  ;;  %v1581_v16 = vpop.f32.mrf.mxu0 }
 0x12f   : > { %v1758_v56 = vadd.f32 %v1757_v10, %v1669_v30  ;;  %v1846_v63 = vpop.f32.mrf.mxu3  ;;  %v1670_v6 = vpop.f32.mrf.mxu1  ;;  %v573_v30 = vld [vmem:[%s4970_s11 + $0x7c8] sm:$0xff]  ;;  %v566_v10 = vld [vmem:[%s4970_s11 + $0x790] sm:$0xff]  ;;  %2341 = vmatpush.bf16.msra.mxu1 %v3859_v31  ;;  %6326 = vst [vmem:[#allocation56_spill] sm:$0xff] %v5320_v58 }
 0x130   : > { %v1671_v41 = vadd.f32 %v1670_v6, %v1581_v16  ;;  %v5318_v16 = vpack.c.bf16 %v574_v59, %v566_v10  ;;  %v336_v10 = vld [vmem:[%s4970_s11 + $0x60] sm:$0xff] }
 0x131   : > { %v5304_v29 = vadd.f32 %v1846_v63, %v1758_v56  ;;  %v5316_v63 = vpack.c.bf16 %v573_v30, %v565_v62  ;;  %v328_v30 = vld [vmem:[%s4970_s11 + $0x20] sm:$0xff] }
 0x132   : > { %6325 = vst [vmem:[#allocation55_spill] sm:$0xff] %v5318_v16 }
 0x133   : > { %6324 = vst [vmem:[#allocation54_spill] sm:$0xff] %v5316_v63 }
 0x136   : > { %v1759_v40 = vpop.f32.mrf.mxu2  ;;  %v1584_v56 = vpop.f32.mrf.mxu0 }
 0x137   : > { %v1760_v43 = vadd.f32 %v1759_v40, %v1671_v41  ;;  %v1848_v8 = vpop.f32.mrf.mxu3  ;;  %v1673_v42 = vpop.f32.mrf.mxu1 }
 0x138   : > { %v1674_v31 = vadd.f32 %v1673_v42, %v1584_v56  ;;  %v338_v56 = vld [vmem:[%s4970_s11 + $0x70] sm:$0xff]  ;;  %v331_v42 = vld [vmem:[%s4970_s11 + $0x38] sm:$0xff] }
 0x139   : > { %v5322_v6 = vadd.f32 %v1848_v8, %v1760_v43  ;;  %1623 = vmatmul.bf16.gmra.mxu0 %v5314_v23  ;;  %v337_v43 = vld [vmem:[%s4970_s11 + $0x68] sm:$0xff]  ;;  %v330_v8 = vld [vmem:[%s4970_s11 + $0x30] sm:$0xff]  ;;  %v5338_v23 = vpack.c.bf16 %v336_v10, %v328_v30  ;;  %v4261_v30 = vld [vmem:[#allocation5 + $0x64] sm:$0xf] }
 0x13a   : > { %1712 = vmatmul.bf16.gmra.mxu1 %v5316_v63  ;;  %v339_v63 = vld [vmem:[%s4970_s11 + $0x78] sm:$0xff]  ;;  %v5342_v21 = vpack.c.bf16 %v338_v56, %v330_v8  ;;  %v3976_v8 = vld [vmem:[#allocation5 + $0x1e8] sm:$0xf0] }
 0x13b   : > { %1801 = vmatmul.bf16.gmra.mxu2 %v5318_v16  ;;  %6327 = vst [vmem:[#allocation57_spill] sm:$0xff] %v5338_v23 }
 0x13c   : > { %1890 = vmatmul.bf16.gmra.mxu3 %v5320_v58  ;;  %6329 = vst [vmem:[#allocation59_spill] sm:$0xff] %v5342_v21 }
 0x13e   : > { %v1762_v40 = vpop.f32.mrf.mxu2  ;;  %v1586_v41 = vpop.f32.mrf.mxu0 }
 0x13f   : > { %v1763_v57 = vadd.f32 %v1762_v40, %v1674_v31  ;;  %v1851_v59 = vpop.f32.mrf.mxu3  ;;  %v1675_v38 = vpop.f32.mrf.mxu1  ;;  %v5340_v40 = vpack.c.bf16 %v337_v43, %v329_v60  ;;  %v3784_v60 = vld [vmem:[#allocation5 + $0x68] sm:$0xf0]  ;;  %v4309_v43 = vld [vmem:[#allocation5 + $0x1e4] sm:$0xf] }
 0x140   : > { %v1676_v62 = vadd.f32 %v1675_v38, %v1586_v41 }
 0x141   : > { %v5328_v4 = vadd.f32 %v1851_v59, %v1763_v57  ;;  %6328 = vst [vmem:[#allocation58_spill] sm:$0xff] %v5340_v40  ;;  %v5344_v59 = vpack.c.bf16 %v339_v63, %v331_v42 }
 0x143   : > { %6330 = vst [vmem:[#allocation60_spill] sm:$0xff] %v5344_v59 }
 0x146   : > { %v1764_v16 = vpop.f32.mrf.mxu2  ;;  %v1589_v31 = vpop.f32.mrf.mxu0 }
 0x147   : > { %v1765_v58 = vadd.f32 %v1764_v16, %v1676_v62  ;;  %v1853_v22 = vpop.f32.mrf.mxu3  ;;  %v1678_v57 = vpop.f32.mrf.mxu1  ;;  %v4293_v16 = vld [vmem:[#allocation5 + $0x164] sm:$0xf]  ;;  %v3912_v62 = vld [vmem:[#allocation5 + $0x168] sm:$0xf0] }
 0x148   : > { %v1679_v38 = vadd.f32 %v1678_v57, %v1589_v31  ;;  %v3915_v10 = vor.u32 %v4293_v16, %v3912_v62 }
 0x149   : > { %v5346_v41 = vadd.f32 %v1853_v22, %v1765_v58  ;;  %1904 = vmatmul.bf16.vlgmr.msrb.gmra.mxu0 %v5338_v23  ;;  %v3787_v22 = vor.u32 %v4261_v30, %v3784_v60  ;;  %v3979_v58 = vor.u32 %v4309_v43, %v3976_v8  ;;  %v344_v60 = vld [vmem:[%s4970_s11 + $0xa0] sm:$0xff]  ;;  %v345_v8 = vld [vmem:[%s4970_s11 + $0xa8] sm:$0xff]  ;;  %v347_v23 = vld [vmem:[%s4970_s11 + $0xb8] sm:$0xff] }
 0x14a   : > { %1993 = vmatmul.bf16.vlgmr.msrb.gmra.mxu1 %v5340_v40  ;;  %2431 = vmatpush.bf16.msra.mxu2 %v3915_v10  ;;  %v352_v43 = vld [vmem:[%s4970_s11 + $0xe0] sm:$0xff]  ;;  %v354_v40 = vld [vmem:[%s4970_s11 + $0xf0] sm:$0xff]  ;;  %v355_v10 = vld [vmem:[%s4970_s11 + $0xf8] sm:$0xff] }
 0x14b   : > { %2082 = vmatmul.bf16.vlgmr.msrb.gmra.mxu2 %v5342_v21  ;;  %2253 = vmatpush.bf16.msra.mxu0 %v3787_v22  ;;  %v3848_v21 = vld [vmem:[#allocation5 + $0xe8] sm:$0xf0]  ;;  %v5362_v48 = vpack.c.bf16 %v352_v43, %v344_v60 }
 0x14c   : > { %2171 = vmatmul.bf16.vlgmr.msrb.gmra.mxu3 %v5344_v59  ;;  %v4277_v59 = vld [vmem:[#allocation5 + $0xe4] sm:$0xf] }
 0x14d   : > { %2520 = vmatpush.bf16.msra.mxu3 %v3979_v58  ;;  %v3851_v30 = vor.u32 %v4277_v59, %v3848_v21  ;;  %6331 = vst [vmem:[#allocation61_spill] sm:$0xff] %v5362_v48  ;;  %v5368_v59 = vpack.c.bf16 %v355_v10, %v347_v23  ;;  %v361_v10 = vld [vmem:[%s4970_s11 + $0x128] sm:$0xff] }
 0x14e   : > { %v1767_v63 = vpop.f32.mrf.mxu2  ;;  %v1591_v31 = vpop.f32.mrf.mxu0 }
 0x14f   : > { %v1768_v56 = vadd.f32 %v1767_v63, %v1679_v38  ;;  %v1856_v42 = vpop.f32.mrf.mxu3  ;;  %v1680_v57 = vpop.f32.mrf.mxu1  ;;  %v353_v38 = vld [vmem:[%s4970_s11 + $0xe8] sm:$0xff]  ;;  %v346_v63 = vld [vmem:[%s4970_s11 + $0xb0] sm:$0xff]  ;;  %2342 = vmatpush.bf16.msra.mxu1 %v3851_v30  ;;  %6334 = vst [vmem:[#allocation64_spill] sm:$0xff] %v5368_v59 }
 0x150   : > { %v1681_v62 = vadd.f32 %v1680_v57, %v1591_v31  ;;  %v5366_v31 = vpack.c.bf16 %v354_v40, %v346_v63  ;;  %v368_v63 = vld [vmem:[%s4970_s11 + $0x160] sm:$0xff] }
 0x151   : > { %v5352_v16 = vadd.f32 %v1856_v42, %v1768_v56  ;;  %v5364_v42 = vpack.c.bf16 %v353_v38, %v345_v8  ;;  %v360_v38 = vld [vmem:[%s4970_s11 + $0x120] sm:$0xff] }
 0x152   : > { %6333 = vst [vmem:[#allocation63_spill] sm:$0xff] %v5366_v31 }
 0x153   : > { %6332 = vst [vmem:[#allocation62_spill] sm:$0xff] %v5364_v42 }
 0x156   : > { %v1769_v20 = vpop.f32.mrf.mxu2  ;;  %v1594_v56 = vpop.f32.mrf.mxu0 }
 0x157   : > { %v1770_v22 = vadd.f32 %v1769_v20, %v1681_v62  ;;  %v1858_v58 = vpop.f32.mrf.mxu3  ;;  %v1683_v21 = vpop.f32.mrf.mxu1 }
 0x158   : > { %v1684_v30 = vadd.f32 %v1683_v21, %v1594_v56  ;;  %v370_v56 = vld [vmem:[%s4970_s11 + $0x170] sm:$0xff]  ;;  %v363_v21 = vld [vmem:[%s4970_s11 + $0x138] sm:$0xff] }
 0x159   : > { %v5370_v57 = vadd.f32 %v1858_v58, %v1770_v22  ;;  %1909 = vmatmul.bf16.gmra.mxu0 %v5362_v48  ;;  %v369_v22 = vld [vmem:[%s4970_s11 + $0x168] sm:$0xff]  ;;  %v362_v58 = vld [vmem:[%s4970_s11 + $0x130] sm:$0xff]  ;;  %v5386_v48 = vpack.c.bf16 %v368_v63, %v360_v38 }
 0x15a   : > { %1998 = vmatmul.bf16.gmra.mxu1 %v5364_v42  ;;  %v371_v42 = vld [vmem:[%s4970_s11 + $0x178] sm:$0xff]  ;;  %v5390_v45 = vpack.c.bf16 %v370_v56, %v362_v58  ;;  %v4259_v38 = vld [vmem:[#allocation5 + $0x54] sm:$0xf] }
 0x15b   : > { %2087 = vmatmul.bf16.gmra.mxu2 %v5366_v31  ;;  %6335 = vst [vmem:[#allocation65_spill] sm:$0xff] %v5386_v48  ;;  %v3968_v58 = vld [vmem:[#allocation5 + $0x1d8] sm:$0xf0] }
 0x15c   : > { %2176 = vmatmul.bf16.gmra.mxu3 %v5368_v59  ;;  %6337 = vst [vmem:[#allocation67_spill] sm:$0xff] %v5390_v45 }
 0x15e   : > { %v1772_v20 = vpop.f32.mrf.mxu2  ;;  %v1596_v62 = vpop.f32.mrf.mxu0 }
 0x15f   : > { %v1773_v23 = vadd.f32 %v1772_v20, %v1684_v30  ;;  %v1861_v40 = vpop.f32.mrf.mxu3  ;;  %v1685_v60 = vpop.f32.mrf.mxu1  ;;  %v5388_v20 = vpack.c.bf16 %v369_v22, %v361_v10  ;;  %v3776_v10 = vld [vmem:[#allocation5 + $0x58] sm:$0xf0]  ;;  %v4307_v22 = vld [vmem:[#allocation5 + $0x1d4] sm:$0xf] }
 0x160   : > { %v1686_v8 = vadd.f32 %v1685_v60, %v1596_v62 }
 0x161   : > { %v5376_v43 = vadd.f32 %v1861_v40, %v1773_v23  ;;  %6336 = vst [vmem:[#allocation66_spill] sm:$0xff] %v5388_v20  ;;  %v5392_v40 = vpack.c.bf16 %v371_v42, %v363_v21 }
 0x163   : > { %6338 = vst [vmem:[#allocation68_spill] sm:$0xff] %v5392_v40 }
 0x166   : > { %v1774_v31 = vpop.f32.mrf.mxu2  ;;  %v1599_v30 = vpop.f32.mrf.mxu0 }
 0x167   : > { %v1775_v59 = vadd.f32 %v1774_v31, %v1686_v8  ;;  %v1863_v46 = vpop.f32.mrf.mxu3  ;;  %v1688_v23 = vpop.f32.mrf.mxu1  ;;  %v4291_v31 = vld [vmem:[#allocation5 + $0x154] sm:$0xf]  ;;  %v3904_v8 = vld [vmem:[#allocation5 + $0x158] sm:$0xf0] }
 0x168   : > { %v1689_v60 = vadd.f32 %v1688_v23, %v1599_v30  ;;  %v3907_v63 = vor.u32 %v4291_v31, %v3904_v8 }
 0x169   : > { %v5394_v62 = vadd.f32 %v1863_v46, %v1775_v59  ;;  %1914 = vmatmul.bf16.gmra.mxu0 %v5386_v48  ;;  %v3779_v46 = vor.u32 %v4259_v38, %v3776_v10  ;;  %v3971_v59 = vor.u32 %v4307_v22, %v3968_v58  ;;  %v376_v10 = vld [vmem:[%s4970_s11 + $0x1a0] sm:$0xff]  ;;  %v377_v58 = vld [vmem:[%s4970_s11 + $0x1a8] sm:$0xff]  ;;  %v379_v48 = vld [vmem:[%s4970_s11 + $0x1b8] sm:$0xff] }
 0x16a   : > { %2003 = vmatmul.bf16.gmra.mxu1 %v5388_v20  ;;  %2432 = vmatpush.bf16.msra.mxu2 %v3907_v63  ;;  %v384_v22 = vld [vmem:[%s4970_s11 + $0x1e0] sm:$0xff]  ;;  %v386_v20 = vld [vmem:[%s4970_s11 + $0x1f0] sm:$0xff]  ;;  %v387_v63 = vld [vmem:[%s4970_s11 + $0x1f8] sm:$0xff] }
 0x16b   : > { %2092 = vmatmul.bf16.gmra.mxu2 %v5390_v45  ;;  %2254 = vmatpush.bf16.msra.mxu0 %v3779_v46  ;;  %v3840_v45 = vld [vmem:[#allocation5 + $0xd8] sm:$0xf0]  ;;  %v5410_v35 = vpack.c.bf16 %v384_v22, %v376_v10 }
 0x16c   : > { %2181 = vmatmul.bf16.gmra.mxu3 %v5392_v40  ;;  %v4275_v40 = vld [vmem:[#allocation5 + $0xd4] sm:$0xf] }
 0x16d   : > { %2521 = vmatpush.bf16.msra.mxu3 %v3971_v59  ;;  %v3843_v38 = vor.u32 %v4275_v40, %v3840_v45  ;;  %6339 = vst [vmem:[#allocation69_spill] sm:$0xff] %v5410_v35  ;;  %v5416_v40 = vpack.c.bf16 %v387_v63, %v379_v48  ;;  %v393_v63 = vld [vmem:[%s4970_s11 + $0x228] sm:$0xff] }
 0x16e   : > { %v1777_v42 = vpop.f32.mrf.mxu2  ;;  %v1601_v30 = vpop.f32.mrf.mxu0 }
 0x16f   : > { %v1778_v56 = vadd.f32 %v1777_v42, %v1689_v60  ;;  %v1866_v21 = vpop.f32.mrf.mxu3  ;;  %v1690_v23 = vpop.f32.mrf.mxu1  ;;  %v385_v60 = vld [vmem:[%s4970_s11 + $0x1e8] sm:$0xff]  ;;  %v378_v42 = vld [vmem:[%s4970_s11 + $0x1b0] sm:$0xff]  ;;  %2343 = vmatpush.bf16.msra.mxu1 %v3843_v38  ;;  %6342 = vst [vmem:[#allocation72_spill] sm:$0xff] %v5416_v40 }
 0x170   : > { %v1691_v8 = vadd.f32 %v1690_v23, %v1601_v30  ;;  %v5414_v30 = vpack.c.bf16 %v386_v20, %v378_v42  ;;  %v400_v42 = vld [vmem:[%s4970_s11 + $0x260] sm:$0xff] }
 0x171   : > { %v5400_v31 = vadd.f32 %v1866_v21, %v1778_v56  ;;  %v5412_v21 = vpack.c.bf16 %v385_v60, %v377_v58  ;;  %v392_v60 = vld [vmem:[%s4970_s11 + $0x220] sm:$0xff] }
 0x172   : > { %6341 = vst [vmem:[#allocation71_spill] sm:$0xff] %v5414_v30 }
 0x173   : > { %6340 = vst [vmem:[#allocation70_spill] sm:$0xff] %v5412_v21 }
 0x176   : > { %v1779_v44 = vpop.f32.mrf.mxu2  ;;  %v1604_v56 = vpop.f32.mrf.mxu0 }
 0x177   : > { %v1780_v46 = vadd.f32 %v1779_v44, %v1691_v8  ;;  %v1868_v59 = vpop.f32.mrf.mxu3  ;;  %v1693_v45 = vpop.f32.mrf.mxu1 }
 0x178   : > { %v1694_v38 = vadd.f32 %v1693_v45, %v1604_v56  ;;  %v402_v56 = vld [vmem:[%s4970_s11 + $0x270] sm:$0xff]  ;;  %v395_v45 = vld [vmem:[%s4970_s11 + $0x238] sm:$0xff] }
 0x179   : > { %v5418_v23 = vadd.f32 %v1868_v59, %v1780_v46  ;;  %1919 = vmatmul.bf16.gmra.mxu0 %v5410_v35  ;;  %v401_v46 = vld [vmem:[%s4970_s11 + $0x268] sm:$0xff]  ;;  %v394_v59 = vld [vmem:[%s4970_s11 + $0x230] sm:$0xff]  ;;  %v5434_v35 = vpack.c.bf16 %v400_v42, %v392_v60  ;;  %v4257_v60 = vld [vmem:[#allocation5 + $0x44] sm:$0xf] }
 0x17a   : > { %2008 = vmatmul.bf16.gmra.mxu1 %v5412_v21  ;;  %v403_v21 = vld [vmem:[%s4970_s11 + $0x278] sm:$0xff]  ;;  %v5438_v33 = vpack.c.bf16 %v402_v56, %v394_v59  ;;  %v3960_v59 = vld [vmem:[#allocation5 + $0x1c8] sm:$0xf0] }
 0x17b   : > { %2097 = vmatmul.bf16.gmra.mxu2 %v5414_v30  ;;  %6343 = vst [vmem:[#allocation73_spill] sm:$0xff] %v5434_v35 }
 0x17c   : > { %2186 = vmatmul.bf16.gmra.mxu3 %v5416_v40  ;;  %6345 = vst [vmem:[#allocation75_spill] sm:$0xff] %v5438_v33 }
 0x17e   : > { %v1782_v44 = vpop.f32.mrf.mxu2  ;;  %v1606_v8 = vpop.f32.mrf.mxu0 }
 0x17f   : > { %v1783_v48 = vadd.f32 %v1782_v44, %v1694_v38  ;;  %v1871_v20 = vpop.f32.mrf.mxu3  ;;  %v1695_v10 = vpop.f32.mrf.mxu1  ;;  %v5436_v44 = vpack.c.bf16 %v401_v46, %v393_v63  ;;  %v3768_v63 = vld [vmem:[#allocation5 + $0x48] sm:$0xf0]  ;;  %v4305_v46 = vld [vmem:[#allocation5 + $0x1c4] sm:$0xf] }
 0x180   : > { %v1696_v58 = vadd.f32 %v1695_v10, %v1606_v8 }
 0x181   : > { %v5424_v22 = vadd.f32 %v1871_v20, %v1783_v48  ;;  %6344 = vst [vmem:[#allocation74_spill] sm:$0xff] %v5436_v44  ;;  %v5440_v20 = vpack.c.bf16 %v403_v21, %v395_v45 }
 0x183   : > { %6346 = vst [vmem:[#allocation76_spill] sm:$0xff] %v5440_v20 }
 0x186   : > { %v1784_v30 = vpop.f32.mrf.mxu2  ;;  %v1609_v38 = vpop.f32.mrf.mxu0 }
 0x187   : > { %v1785_v40 = vadd.f32 %v1784_v30, %v1696_v58  ;;  %v1873_v34 = vpop.f32.mrf.mxu3  ;;  %v1698_v48 = vpop.f32.mrf.mxu1  ;;  %v4289_v30 = vld [vmem:[#allocation5 + $0x144] sm:$0xf]  ;;  %v3896_v58 = vld [vmem:[#allocation5 + $0x148] sm:$0xf0] }
 0x188   : > { %v1699_v10 = vadd.f32 %v1698_v48, %v1609_v38  ;;  %v3899_v42 = vor.u32 %v4289_v30, %v3896_v58 }
 0x189   : > { %v5442_v8 = vadd.f32 %v1873_v34, %v1785_v40  ;;  %1924 = vmatmul.bf16.gmra.mxu0 %v5434_v35  ;;  %v3771_v34 = vor.u32 %v4257_v60, %v3768_v63  ;;  %v3963_v40 = vor.u32 %v4305_v46, %v3960_v59  ;;  %v408_v63 = vld [vmem:[%s4970_s11 + $0x2a0] sm:$0xff]  ;;  %v409_v59 = vld [vmem:[%s4970_s11 + $0x2a8] sm:$0xff]  ;;  %v411_v35 = vld [vmem:[%s4970_s11 + $0x2b8] sm:$0xff] }
 0x18a   : > { %2013 = vmatmul.bf16.gmra.mxu1 %v5436_v44  ;;  %2433 = vmatpush.bf16.msra.mxu2 %v3899_v42  ;;  %v416_v46 = vld [vmem:[%s4970_s11 + $0x2e0] sm:$0xff]  ;;  %v418_v44 = vld [vmem:[%s4970_s11 + $0x2f0] sm:$0xff]  ;;  %v419_v42 = vld [vmem:[%s4970_s11 + $0x2f8] sm:$0xff] }
 0x18b   : > { %2102 = vmatmul.bf16.gmra.mxu2 %v5438_v33  ;;  %2255 = vmatpush.bf16.msra.mxu0 %v3771_v34  ;;  %v3832_v33 = vld [vmem:[#allocation5 + $0xc8] sm:$0xf0]  ;;  %v5458_v3 = vpack.c.bf16 %v416_v46, %v408_v63 }
 0x18c   : > { %2191 = vmatmul.bf16.gmra.mxu3 %v5440_v20  ;;  %v4273_v20 = vld [vmem:[#allocation5 + $0xc4] sm:$0xf] }
 0x18d   : > { %2522 = vmatpush.bf16.msra.mxu3 %v3963_v40  ;;  %v3835_v60 = vor.u32 %v4273_v20, %v3832_v33  ;;  %6347 = vst [vmem:[#allocation77_spill] sm:$0xff] %v5458_v3  ;;  %v5464_v20 = vpack.c.bf16 %v419_v42, %v411_v35  ;;  %v425_v42 = vld [vmem:[%s4970_s11 + $0x328] sm:$0xff] }
 0x18e   : > { %v1787_v21 = vpop.f32.mrf.mxu2  ;;  %v1611_v38 = vpop.f32.mrf.mxu0 }
 0x18f   : > { %v1788_v56 = vadd.f32 %v1787_v21, %v1699_v10  ;;  %v1876_v45 = vpop.f32.mrf.mxu3  ;;  %v1700_v48 = vpop.f32.mrf.mxu1  ;;  %v417_v10 = vld [vmem:[%s4970_s11 + $0x2e8] sm:$0xff]  ;;  %v410_v21 = vld [vmem:[%s4970_s11 + $0x2b0] sm:$0xff]  ;;  %2344 = vmatpush.bf16.msra.mxu1 %v3835_v60  ;;  %6350 = vst [vmem:[#allocation80_spill] sm:$0xff] %v5464_v20 }
 0x190   : > { %v1701_v58 = vadd.f32 %v1700_v48, %v1611_v38  ;;  %v5462_v38 = vpack.c.bf16 %v418_v44, %v410_v21  ;;  %v432_v21 = vld [vmem:[%s4970_s11 + $0x360] sm:$0xff] }
 0x191   : > { %v5448_v30 = vadd.f32 %v1876_v45, %v1788_v56  ;;  %v5460_v45 = vpack.c.bf16 %v417_v10, %v409_v59  ;;  %v424_v10 = vld [vmem:[%s4970_s11 + $0x320] sm:$0xff] }
 0x192   : > { %6349 = vst [vmem:[#allocation79_spill] sm:$0xff] %v5462_v38 }
 0x193   : > { %6348 = vst [vmem:[#allocation78_spill] sm:$0xff] %v5460_v45 }
 0x196   : > { %v1789_v32 = vpop.f32.mrf.mxu2  ;;  %v1614_v56 = vpop.f32.mrf.mxu0 }
 0x197   : > { %v1790_v34 = vadd.f32 %v1789_v32, %v1701_v58  ;;  %v1878_v40 = vpop.f32.mrf.mxu3  ;;  %v1703_v33 = vpop.f32.mrf.mxu1 }
 0x198   : > { %v1704_v60 = vadd.f32 %v1703_v33, %v1614_v56  ;;  %v434_v56 = vld [vmem:[%s4970_s11 + $0x370] sm:$0xff]  ;;  %v427_v33 = vld [vmem:[%s4970_s11 + $0x338] sm:$0xff] }
 0x199   : > { %v5466_v48 = vadd.f32 %v1878_v40, %v1790_v34  ;;  %1929 = vmatmul.bf16.gmra.mxu0 %v5458_v3  ;;  %v433_v34 = vld [vmem:[%s4970_s11 + $0x368] sm:$0xff]  ;;  %v426_v40 = vld [vmem:[%s4970_s11 + $0x330] sm:$0xff]  ;;  %v5482_v3 = vpack.c.bf16 %v432_v21, %v424_v10 }
 0x19a   : > { %2018 = vmatmul.bf16.gmra.mxu1 %v5460_v45  ;;  %v435_v45 = vld [vmem:[%s4970_s11 + $0x378] sm:$0xff]  ;;  %v5486_v2 = vpack.c.bf16 %v434_v56, %v426_v40  ;;  %v4255_v10 = vld [vmem:[#allocation5 + $0x34] sm:$0xf] }
 0x19b   : > { %6351 = vst [vmem:[#allocation81_spill] sm:$0xff] %v5466_v48  ;;  %2107 = vmatmul.bf16.gmra.mxu2 %v5462_v38 }
 0x19c   : > { %2196 = vmatmul.bf16.gmra.mxu3 %v5464_v20  ;;  %6353 = vst [vmem:[#allocation83_spill] sm:$0xff] %v5482_v3 }
 0x19d   : > { %6355 = vst [vmem:[#allocation85_spill] sm:$0xff] %v5486_v2 }
 0x19e   : > { %v1792_v32 = vpop.f32.mrf.mxu2  ;;  %v1616_v58 = vpop.f32.mrf.mxu0 }
 0x19f   : > { %v1793_v35 = vadd.f32 %v1792_v32, %v1704_v60  ;;  %v1881_v44 = vpop.f32.mrf.mxu3  ;;  %v1705_v63 = vpop.f32.mrf.mxu1  ;;  %v5484_v32 = vpack.c.bf16 %v433_v34, %v425_v42  ;;  %v3760_v42 = vld [vmem:[#allocation5 + $0x38] sm:$0xf0] }
 0x1a0   : > { %v1706_v59 = vadd.f32 %v1705_v63, %v1616_v58  ;;  %v3763_v34 = vor.u32 %v4255_v10, %v3760_v42  ;;  %v450_v10 = vld [vmem:[%s4970_s11 + $0x3f0] sm:$0xff]  ;;  %v443_v42 = vld [vmem:[%s4970_s11 + $0x3b8] sm:$0xff] }
 0x1a1   : > { %v5472_v46 = vadd.f32 %v1881_v44, %v1793_v35  ;;  %6354 = vst [vmem:[#allocation84_spill] sm:$0xff] %v5484_v32  ;;  %v5488_v44 = vpack.c.bf16 %v435_v45, %v427_v33  ;;  %v4303_v45 = vld [vmem:[#allocation5 + $0x1b4] sm:$0xf] }
 0x1a2   : > { %2256 = vmatpush.bf16.msra.mxu0 %v3763_v34 }
 0x1a3   : > { %6352 = vst [vmem:[#allocation82_spill] sm:$0xff] %v5472_v46 }
 0x1a4   : > { %6356 = vst [vmem:[#allocation86_spill] sm:$0xff] %v5488_v44 }
 0x1a6   : > { %v1794_v38 = vpop.f32.mrf.mxu2  ;;  %v1619_v60 = vpop.f32.mrf.mxu0 }
 0x1a7   : > { %v1795_v20 = vadd.f32 %v1794_v38, %v1706_v59  ;;  %v1883_v48 = vpop.f32.mrf.mxu3  ;;  %v1708_v35 = vpop.f32.mrf.mxu1  ;;  %v4287_v38 = vld [vmem:[#allocation5 + $0x134] sm:$0xf]  ;;  %v3888_v59 = vld [vmem:[#allocation5 + $0x138] sm:$0xf0] }
 0x1a8   : > { %v1709_v63 = vadd.f32 %v1708_v35, %v1619_v60  ;;  %v3891_v21 = vor.u32 %v4287_v38, %v3888_v59 }
 0x1a9   : > { %v5490_v58 = vadd.f32 %v1883_v48, %v1795_v20  ;;  %1934 = vmatmul.bf16.gmra.mxu0 %v5482_v3  ;;  %v3952_v20 = vld [vmem:[#allocation5 + $0x1b8] sm:$0xf0]  ;;  %v449_v3 = vld [vmem:[%s4970_s11 + $0x3e8] sm:$0xff] }
 0x1aa   : > { %2023 = vmatmul.bf16.gmra.mxu1 %v5484_v32  ;;  %v3955_v40 = vor.u32 %v4303_v45, %v3952_v20  ;;  %2434 = vmatpush.bf16.msra.mxu2 %v3891_v21  ;;  %v441_v32 = vld [vmem:[%s4970_s11 + $0x3a8] sm:$0xff]  ;;  %v451_v45 = vld [vmem:[%s4970_s11 + $0x3f8] sm:$0xff] }
 0x1ab   : > { %6357 = vst [vmem:[#allocation87_spill] sm:$0xff] %v5490_v58  ;;  %2112 = vmatmul.bf16.gmra.mxu2 %v5486_v2  ;;  %v448_v2 = vld [vmem:[%s4970_s11 + $0x3e0] sm:$0xff]  ;;  %v442_v58 = vld [vmem:[%s4970_s11 + $0x3b0] sm:$0xff]  ;;  %v5508_v1 = vpack.c.bf16 %v449_v3, %v441_v32 }
 0x1ac   : > { %2201 = vmatmul.bf16.gmra.mxu3 %v5488_v44  ;;  %v440_v44 = vld [vmem:[%s4970_s11 + $0x3a0] sm:$0xff]  ;;  %v5510_v34 = vpack.c.bf16 %v450_v10, %v442_v58  ;;  %v3824_v10 = vld [vmem:[#allocation5 + $0xb8] sm:$0xf0] }
 0x1ad   : > { %2523 = vmatpush.bf16.msra.mxu3 %v3955_v40  ;;  %6359 = vst [vmem:[#allocation89_spill] sm:$0xff] %v5508_v1 }
 0x1ae   : > { %v1797_v48 = vpop.f32.mrf.mxu2  ;;  %v1621_v60 = vpop.f32.mrf.mxu0  ;;  %6360 = vst [vmem:[#allocation90_spill] sm:$0xff] %v5510_v34 }
 0x1af   : > { %v1798_v56 = vadd.f32 %v1797_v48, %v1709_v63  ;;  %v1886_v33 = vpop.f32.mrf.mxu3  ;;  %v1710_v35 = vpop.f32.mrf.mxu1  ;;  %v5506_v63 = vpack.c.bf16 %v448_v2, %v440_v44 }
 0x1b0   : > { %v1711_v59 = vadd.f32 %v1710_v35, %v1621_v60 }
 0x1b1   : > { %v5496_v38 = vadd.f32 %v1886_v33, %v1798_v56  ;;  %6358 = vst [vmem:[#allocation88_spill] sm:$0xff] %v5506_v63  ;;  %v5512_v56 = vpack.c.bf16 %v451_v45, %v443_v42  ;;  %v456_v42 = vld [vmem:[%s4970_s11 + $0x420] sm:$0xff] }
 0x1b2   : > { %v464_v45 = vld [vmem:[%s4970_s11 + $0x460] sm:$0xff] }
 0x1b3   : > { %6361 = vst [vmem:[#allocation91_spill] sm:$0xff] %v5512_v56 }
 0x1b6   : > { %v1799_v20 = vpop.f32.mrf.mxu2  ;;  %v1624_v21 = vpop.f32.mrf.mxu0 }
 0x1b7   : > { %v1800_v48 = vadd.f32 %v1799_v20, %v1711_v59  ;;  %v1888_v46 = vpop.f32.mrf.mxu3  ;;  %v1713_v40 = vpop.f32.mrf.mxu1  ;;  %v4271_v59 = vld [vmem:[#allocation5 + $0xb4] sm:$0xf]  ;;  %v457_v20 = vld [vmem:[%s4970_s11 + $0x428] sm:$0xff] }
 0x1b8   : > { %v1714_v60 = vadd.f32 %v1713_v40, %v1624_v21  ;;  %v465_v21 = vld [vmem:[%s4970_s11 + $0x468] sm:$0xff]  ;;  %v458_v40 = vld [vmem:[%s4970_s11 + $0x430] sm:$0xff] }
 0x1b9   : > { %v5514_v33 = vadd.f32 %v1888_v46, %v1800_v48  ;;  %1939 = vmatmul.bf16.gmra.mxu0 %v5506_v63  ;;  %v3827_v48 = vor.u32 %v4271_v59, %v3824_v10 }
 0x1ba   : > { %2028 = vmatmul.bf16.gmra.mxu1 %v5508_v1  ;;  %v467_v1 = vld [vmem:[%s4970_s11 + $0x478] sm:$0xff] }
 0x1bb   : > { %6362 = vst [vmem:[#allocation92_spill] sm:$0xff] %v5514_v33  ;;  %2117 = vmatmul.bf16.gmra.mxu2 %v5510_v34  ;;  %v459_v34 = vld [vmem:[%s4970_s11 + $0x438] sm:$0xff]  ;;  %2345 = vmatpush.bf16.msra.mxu1 %v3827_v48 }
 0x1bc   : > { %2206 = vmatmul.bf16.gmra.mxu3 %v5512_v56  ;;  %v466_v56 = vld [vmem:[%s4970_s11 + $0x470] sm:$0xff]  ;;  %v5537_v59 = vpack.c.bf16 %v467_v1, %v459_v34 }
 0x1be   : > { %v1802_v2 = vpop.f32.mrf.mxu2  ;;  %v1626_v32 = vpop.f32.mrf.mxu0  ;;  %6367 = vst [vmem:[#allocation97_spill] sm:$0xff] %v5537_v59 }
 0x1bf   : > { %v1803_v3 = vadd.f32 %v1802_v2, %v1714_v60  ;;  %v1891_v46 = vpop.f32.mrf.mxu3  ;;  %v1715_v44 = vpop.f32.mrf.mxu1  ;;  %v5530_v2 = vpack.c.bf16 %v464_v45, %v456_v42  ;;  %v472_v42 = vld [vmem:[%s4970_s11 + $0x4a0] sm:$0xff] }
 0x1c0   : > { %v1716_v35 = vadd.f32 %v1715_v44, %v1626_v32  ;;  %v5534_v32 = vpack.c.bf16 %v466_v56, %v458_v40  ;;  %v480_v45 = vld [vmem:[%s4970_s11 + $0x4e0] sm:$0xff]  ;;  %v474_v40 = vld [vmem:[%s4970_s11 + $0x4b0] sm:$0xff] }
 0x1c1   : > { %v5520_v58 = vadd.f32 %v1891_v46, %v1803_v3  ;;  %6364 = vst [vmem:[#allocation94_spill] sm:$0xff] %v5530_v2  ;;  %v5532_v46 = vpack.c.bf16 %v465_v21, %v457_v20  ;;  %v473_v20 = vld [vmem:[%s4970_s11 + $0x4a8] sm:$0xff] }
 0x1c2   : > { %6366 = vst [vmem:[#allocation96_spill] sm:$0xff] %v5534_v32  ;;  %v481_v21 = vld [vmem:[%s4970_s11 + $0x4e8] sm:$0xff] }
 0x1c3   : > { %6363 = vst [vmem:[#allocation93_spill] sm:$0xff] %v5520_v58 }
 0x1c4   : > { %6365 = vst [vmem:[#allocation95_spill] sm:$0xff] %v5532_v46 }
 0x1c6   : > { %v1804_v60 = vpop.f32.mrf.mxu2  ;;  %v1905_v3 = vpop.f32.mrf.mxu0 }
 0x1c7   : > { %v1805_v63 = vadd.f32 %v1804_v60, %v1716_v35  ;;  %v1893_v33 = vpop.f32.mrf.mxu3  ;;  %v1906_v44 = vadd.f32 %v1905_v3, %v5160_v17  ;;  %v1994_v58 = vpop.f32.mrf.mxu1  ;;  %v482_v60 = vld [vmem:[%s4970_s11 + $0x4f0] sm:$0xff]  ;;  %v475_v3 = vld [vmem:[%s4970_s11 + $0x4b8] sm:$0xff] }
 0x1c9   : > { %v5539_v10 = vadd.f32 %v1893_v33, %v1805_v63  ;;  %v1995_v48 = vadd.f32 %v1994_v58, %v1906_v44  ;;  %1944 = vmatmul.bf16.gmra.mxu0 %v5530_v2  ;;  %v483_v44 = vld [vmem:[%s4970_s11 + $0x4f8] sm:$0xff]  ;;  %v5558_v2 = vpack.c.bf16 %v481_v21, %v473_v20  ;;  %v4301_v20 = vld [vmem:[#allocation5 + $0x1a4] sm:$0xf]  ;;  %v3944_v21 = vld [vmem:[#allocation5 + $0x1a8] sm:$0xf0] }
 0x1ca   : > { %2033 = vmatmul.bf16.gmra.mxu1 %v5532_v46 }
 0x1cb   : > { %2122 = vmatmul.bf16.gmra.mxu2 %v5534_v32  ;;  %v5556_v32 = vpack.c.bf16 %v480_v45, %v472_v42  ;;  %6369 = vst [vmem:[#allocation99_spill] sm:$0xff] %v5558_v2  ;;  %v3880_v42 = vld [vmem:[#allocation5 + $0x128] sm:$0xf0]  ;;  %v4253_v45 = vld [vmem:[#allocation5 + $0x24] sm:$0xf] }
 0x1cc   : > { %2211 = vmatmul.bf16.gmra.mxu3 %v5537_v59 }
 0x1ce   : > { %v2083_v1 = vpop.f32.mrf.mxu2  ;;  %v1907_v63 = vpop.f32.mrf.mxu0 }
 0x1cf   : > { %v2084_v17 = vadd.f32 %v2083_v1, %v1995_v48  ;;  %v2172_v34 = vpop.f32.mrf.mxu3  ;;  %v1908_v56 = vadd.f32 %v1907_v63, %v5178_v7  ;;  %v1996_v33 = vpop.f32.mrf.mxu1  ;;  %v5560_v7 = vpack.c.bf16 %v482_v60, %v474_v40  ;;  %v5563_v63 = vpack.c.bf16 %v483_v44, %v475_v3 }
 0x1d1   : > { %v5546_v58 = vadd.f32 %v2172_v34, %v2084_v17  ;;  %v1997_v35 = vadd.f32 %v1996_v33, %v1908_v56  ;;  %6370 = vst [vmem:[#allocation100_spill] sm:$0xff] %v5560_v7 }
 0x1d2   : > { %6371 = vst [vmem:[#allocation101_spill] sm:$0xff] %v5563_v63 }
 0x1d3   : > { %6368 = vst [vmem:[#allocation98_spill] sm:$0xff] %v5546_v58  ;;  %v4285_v58 = vld [vmem:[#allocation5 + $0x124] sm:$0xf] }
 0x1d6   : > { %v2085_v59 = vpop.f32.mrf.mxu2  ;;  %v1910_v46 = vpop.f32.mrf.mxu0 }
 0x1d7   : > { %v2086_v48 = vadd.f32 %v2085_v59, %v1997_v35  ;;  %v2174_v1 = vpop.f32.mrf.mxu3  ;;  %v1911_v17 = vadd.f32 %v1910_v46, %v5184_v19  ;;  %v1999_v34 = vpop.f32.mrf.mxu1  ;;  %v3883_v59 = vor.u32 %v4285_v58, %v3880_v42  ;;  %v3752_v35 = vld [vmem:[#allocation5 + $0x28] sm:$0xf0]  ;;  %v3947_v46 = vor.u32 %v4301_v20, %v3944_v21 }
 0x1d8   : > { %v3755_v19 = vor.u32 %v4253_v45, %v3752_v35  ;;  %v3816_v42 = vld [vmem:[#allocation5 + $0xa8] sm:$0xf0]  ;;  %v488_v45 = vld [vmem:[%s4970_s11 + $0x520] sm:$0xff] }
 0x1d9   : > { %v5565_v56 = vadd.f32 %v2174_v1, %v2086_v48  ;;  %v2000_v33 = vadd.f32 %v1999_v34, %v1911_v17  ;;  %1949 = vmatmul.bf16.gmra.mxu0 %v5556_v32  ;;  %2435 = vmatpush.bf16.msra.mxu2 %v3883_v59  ;;  %v4269_v34 = vld [vmem:[#allocation5 + $0xa4] sm:$0xf]  ;;  %v489_v35 = vld [vmem:[%s4970_s11 + $0x528] sm:$0xff] }
 0x1da   : > { %2038 = vmatmul.bf16.gmra.mxu1 %v5558_v2  ;;  %2257 = vmatpush.bf16.msra.mxu0 %v3755_v19  ;;  %v496_v59 = vld [vmem:[%s4970_s11 + $0x560] sm:$0xff]  ;;  %v3819_v20 = vor.u32 %v4269_v34, %v3816_v42  ;;  %v497_v21 = vld [vmem:[%s4970_s11 + $0x568] sm:$0xff]  ;;  %v490_v19 = vld [vmem:[%s4970_s11 + $0x530] sm:$0xff] }
 0x1db   : > { %2127 = vmatmul.bf16.gmra.mxu2 %v5560_v7  ;;  %2524 = vmatpush.bf16.msra.mxu3 %v3947_v46  ;;  %v498_v46 = vld [vmem:[%s4970_s11 + $0x570] sm:$0xff]  ;;  %v5582_v7 = vpack.c.bf16 %v496_v59, %v488_v45 }
 0x1dc   : > { %2216 = vmatmul.bf16.gmra.mxu3 %v5563_v63  ;;  %2346 = vmatpush.bf16.msra.mxu1 %v3819_v20 }
 0x1dd   : > { %6372 = vst [vmem:[#allocation102_spill] sm:$0xff] %v5582_v7 }
 0x1de   : > { %v2088_v40 = vpop.f32.mrf.mxu2  ;;  %v1912_v3 = vpop.f32.mrf.mxu0 }
 0x1df   : > { %v2089_v60 = vadd.f32 %v2088_v40, %v2000_v33  ;;  %v2177_v58 = vpop.f32.mrf.mxu3  ;;  %v1913_v44 = vadd.f32 %v1912_v3, %v5202_v11  ;;  %v2001_v48 = vpop.f32.mrf.mxu1  ;;  %v491_v33 = vld [vmem:[%s4970_s11 + $0x538] sm:$0xff] }
 0x1e0   : > { %v499_v40 = vld [vmem:[%s4970_s11 + $0x578] sm:$0xff] }
 0x1e1   : > { %v5572_v1 = vadd.f32 %v2177_v58, %v2089_v60  ;;  %v2002_v17 = vadd.f32 %v2001_v48, %v1913_v44  ;;  %v5584_v58 = vpack.c.bf16 %v497_v21, %v489_v35  ;;  %v5586_v44 = vpack.c.bf16 %v498_v46, %v490_v19  ;;  %v504_v19 = vld [vmem:[%s4970_s11 + $0x5a0] sm:$0xff] }
 0x1e2   : > { %v5589_v34 = vpack.c.bf16 %v499_v40, %v491_v33  ;;  %v512_v46 = vld [vmem:[%s4970_s11 + $0x5e0] sm:$0xff]  ;;  %v505_v33 = vld [vmem:[%s4970_s11 + $0x5a8] sm:$0xff] }
 0x1e3   : > { %6373 = vst [vmem:[#allocation103_spill] sm:$0xff] %v5584_v58  ;;  %v513_v40 = vld [vmem:[%s4970_s11 + $0x5e8] sm:$0xff] }
 0x1e4   : > { %6374 = vst [vmem:[#allocation104_spill] sm:$0xff] %v5586_v44 }
 0x1e5   : > { %6375 = vst [vmem:[#allocation105_spill] sm:$0xff] %v5589_v34 }
 0x1e6   : > { %v2090_v63 = vpop.f32.mrf.mxu2  ;;  %v1915_v60 = vpop.f32.mrf.mxu0 }
 0x1e7   : > { %v2091_v11 = vadd.f32 %v2090_v63, %v2002_v17  ;;  %v2179_v3 = vpop.f32.mrf.mxu3  ;;  %v1916_v48 = vadd.f32 %v1915_v60, %v5208_v9  ;;  %v2004_v2 = vpop.f32.mrf.mxu1  ;;  %v507_v60 = vld [vmem:[%s4970_s11 + $0x5b8] sm:$0xff] }
 0x1e9   : > { %v5591_v42 = vadd.f32 %v2179_v3, %v2091_v11  ;;  %v2005_v20 = vadd.f32 %v2004_v2, %v1916_v48  ;;  %1954 = vmatmul.bf16.gmra.mxu0 %v5582_v7  ;;  %v506_v11 = vld [vmem:[%s4970_s11 + $0x5b0] sm:$0xff]  ;;  %v515_v48 = vld [vmem:[%s4970_s11 + $0x5f8] sm:$0xff]  ;;  %v5610_v7 = vpack.c.bf16 %v513_v40, %v505_v33 }
 0x1ea   : > { %2043 = vmatmul.bf16.gmra.mxu1 %v5584_v58  ;;  %v514_v3 = vld [vmem:[%s4970_s11 + $0x5f0] sm:$0xff]  ;;  %v3936_v40 = vld [vmem:[#allocation5 + $0x198] sm:$0xf0] }
 0x1eb   : > { %2132 = vmatmul.bf16.gmra.mxu2 %v5586_v44  ;;  %v5608_v44 = vpack.c.bf16 %v512_v46, %v504_v19  ;;  %6377 = vst [vmem:[#allocation107_spill] sm:$0xff] %v5610_v7  ;;  %v3872_v19 = vld [vmem:[#allocation5 + $0x118] sm:$0xf0]  ;;  %v4251_v46 = vld [vmem:[#allocation5 + $0x14] sm:$0xf] }
 0x1ec   : > { %2221 = vmatmul.bf16.gmra.mxu3 %v5589_v34  ;;  %v4299_v33 = vld [vmem:[#allocation5 + $0x194] sm:$0xf] }
 0x1ee   : > { %v2093_v9 = vpop.f32.mrf.mxu2  ;;  %v1917_v45 = vpop.f32.mrf.mxu0 }
 0x1ef   : > { %v2094_v63 = vadd.f32 %v2093_v9, %v2005_v20  ;;  %v2182_v17 = vpop.f32.mrf.mxu3  ;;  %v1918_v59 = vadd.f32 %v1917_v45, %v5226_v28  ;;  %v2006_v2 = vpop.f32.mrf.mxu1  ;;  %v5612_v28 = vpack.c.bf16 %v514_v3, %v506_v11  ;;  %v5615_v45 = vpack.c.bf16 %v515_v48, %v507_v60 }
 0x1f1   : > { %v5598_v35 = vadd.f32 %v2182_v17, %v2094_v63  ;;  %v2007_v21 = vadd.f32 %v2006_v2, %v1918_v59  ;;  %6378 = vst [vmem:[#allocation108_spill] sm:$0xff] %v5612_v28 }
 0x1f2   : > { %6379 = vst [vmem:[#allocation109_spill] sm:$0xff] %v5615_v45 }
 0x1f3   : > { %6376 = vst [vmem:[#allocation106_spill] sm:$0xff] %v5598_v35  ;;  %v4283_v35 = vld [vmem:[#allocation5 + $0x114] sm:$0xf] }
 0x1f6   : > { %v2095_v34 = vpop.f32.mrf.mxu2  ;;  %v1920_v58 = vpop.f32.mrf.mxu0 }
 0x1f7   : > { %v2096_v20 = vadd.f32 %v2095_v34, %v2007_v21  ;;  %v2184_v9 = vpop.f32.mrf.mxu3  ;;  %v1921_v63 = vadd.f32 %v1920_v58, %v5232_v36  ;;  %v2009_v17 = vpop.f32.mrf.mxu1  ;;  %v3875_v34 = vor.u32 %v4283_v35, %v3872_v19  ;;  %v3744_v21 = vld [vmem:[#allocation5 + $0x18] sm:$0xf0]  ;;  %v3939_v58 = vor.u32 %v4299_v33, %v3936_v40  ;;  %v529_v40 = vld [vmem:[%s4970_s11 + $0x668] sm:$0xff] }
 0x1f8   : > { %v3747_v36 = vor.u32 %v4251_v46, %v3744_v21  ;;  %v3808_v19 = vld [vmem:[#allocation5 + $0x98] sm:$0xf0]  ;;  %v520_v46 = vld [vmem:[%s4970_s11 + $0x620] sm:$0xff]  ;;  %v521_v21 = vld [vmem:[%s4970_s11 + $0x628] sm:$0xff] }
 0x1f9   : > { %v5617_v59 = vadd.f32 %v2184_v9, %v2096_v20  ;;  %v2010_v2 = vadd.f32 %v2009_v17, %v1921_v63  ;;  %1959 = vmatmul.bf16.gmra.mxu0 %v5608_v44  ;;  %2436 = vmatpush.bf16.msra.mxu2 %v3875_v34  ;;  %v4267_v17 = vld [vmem:[#allocation5 + $0x94] sm:$0xf]  ;;  %v528_v34 = vld [vmem:[%s4970_s11 + $0x660] sm:$0xff] }
 0x1fa   : > { %2048 = vmatmul.bf16.gmra.mxu1 %v5610_v7  ;;  %2258 = vmatpush.bf16.msra.mxu0 %v3747_v36  ;;  %v3811_v33 = vor.u32 %v4267_v17, %v3808_v19  ;;  %v522_v36 = vld [vmem:[%s4970_s11 + $0x630] sm:$0xff] }
 0x1fb   : > { %2137 = vmatmul.bf16.gmra.mxu2 %v5612_v28  ;;  %2525 = vmatpush.bf16.msra.mxu3 %v3939_v58  ;;  %v530_v58 = vld [vmem:[%s4970_s11 + $0x670] sm:$0xff]  ;;  %v5634_v28 = vpack.c.bf16 %v528_v34, %v520_v46 }
 0x1fc   : > { %2226 = vmatmul.bf16.gmra.mxu3 %v5615_v45  ;;  %2347 = vmatpush.bf16.msra.mxu1 %v3811_v33 }
 0x1fd   : > { %6380 = vst [vmem:[#allocation110_spill] sm:$0xff] %v5634_v28 }
 0x1fe   : > { %v2098_v11 = vpop.f32.mrf.mxu2  ;;  %v1922_v60 = vpop.f32.mrf.mxu0 }
 0x1ff   : > { %v2099_v3 = vadd.f32 %v2098_v11, %v2010_v2  ;;  %v2187_v35 = vpop.f32.mrf.mxu3  ;;  %v1923_v48 = vadd.f32 %v1922_v60, %v5250_v18  ;;  %v2011_v20 = vpop.f32.mrf.mxu1  ;;  %v523_v2 = vld [vmem:[%s4970_s11 + $0x638] sm:$0xff] }
 0x200   : > { %v531_v11 = vld [vmem:[%s4970_s11 + $0x678] sm:$0xff] }
 0x201   : > { %v5624_v9 = vadd.f32 %v2187_v35, %v2099_v3  ;;  %v2012_v63 = vadd.f32 %v2011_v20, %v1923_v48  ;;  %v5636_v35 = vpack.c.bf16 %v529_v40, %v521_v21  ;;  %v5638_v48 = vpack.c.bf16 %v530_v58, %v522_v36  ;;  %v536_v36 = vld [vmem:[%s4970_s11 + $0x6a0] sm:$0xff] }
 0x202   : > { %v5641_v17 = vpack.c.bf16 %v531_v11, %v523_v2  ;;  %v544_v58 = vld [vmem:[%s4970_s11 + $0x6e0] sm:$0xff]  ;;  %v537_v2 = vld [vmem:[%s4970_s11 + $0x6a8] sm:$0xff] }
 0x203   : > { %6381 = vst [vmem:[#allocation111_spill] sm:$0xff] %v5636_v35  ;;  %v545_v11 = vld [vmem:[%s4970_s11 + $0x6e8] sm:$0xff] }
 0x204   : > { %6382 = vst [vmem:[#allocation112_spill] sm:$0xff] %v5638_v48 }
 0x205   : > { %6383 = vst [vmem:[#allocation113_spill] sm:$0xff] %v5641_v17 }
 0x206   : > { %v2100_v45 = vpop.f32.mrf.mxu2  ;;  %v1925_v3 = vpop.f32.mrf.mxu0 }
 0x207   : > { %v2101_v18 = vadd.f32 %v2100_v45, %v2012_v63  ;;  %v2189_v60 = vpop.f32.mrf.mxu3  ;;  %v1926_v20 = vadd.f32 %v1925_v3, %v5256_v61  ;;  %v2014_v7 = vpop.f32.mrf.mxu1  ;;  %v539_v3 = vld [vmem:[%s4970_s11 + $0x6b8] sm:$0xff] }
 0x209   : > { %v5643_v19 = vadd.f32 %v2189_v60, %v2101_v18  ;;  %v2015_v33 = vadd.f32 %v2014_v7, %v1926_v20  ;;  %1964 = vmatmul.bf16.gmra.mxu0 %v5634_v28  ;;  %v538_v18 = vld [vmem:[%s4970_s11 + $0x6b0] sm:$0xff]  ;;  %v547_v20 = vld [vmem:[%s4970_s11 + $0x6f8] sm:$0xff]  ;;  %v5662_v28 = vpack.c.bf16 %v545_v11, %v537_v2  ;;  %v4297_v2 = vld [vmem:[#allocation5 + $0x184] sm:$0xf] }
 0x20a   : > { %2053 = vmatmul.bf16.gmra.mxu1 %v5636_v35  ;;  %v546_v60 = vld [vmem:[%s4970_s11 + $0x6f0] sm:$0xff]  ;;  %v3928_v11 = vld [vmem:[#allocation5 + $0x188] sm:$0xf0] }
 0x20b   : > { %2142 = vmatmul.bf16.gmra.mxu2 %v5638_v48  ;;  %v5660_v48 = vpack.c.bf16 %v544_v58, %v536_v36  ;;  %6385 = vst [vmem:[#allocation115_spill] sm:$0xff] %v5662_v28  ;;  %v3864_v36 = vld [vmem:[#allocation5 + $0x108] sm:$0xf0]  ;;  %v4249_v58 = vld [vmem:[#allocation5 + $0x4] sm:$0xf] }
 0x20c   : > { %2231 = vmatmul.bf16.gmra.mxu3 %v5641_v17 }
 0x20e   : > { %v2103_v61 = vpop.f32.mrf.mxu2  ;;  %v1927_v46 = vpop.f32.mrf.mxu0 }
 0x20f   : > { %v2104_v45 = vadd.f32 %v2103_v61, %v2015_v33  ;;  %v2192_v63 = vpop.f32.mrf.mxu3  ;;  %v1928_v34 = vadd.f32 %v1927_v46, %v5274_v5  ;;  %v2016_v7 = vpop.f32.mrf.mxu1  ;;  %v5664_v5 = vpack.c.bf16 %v546_v60, %v538_v18  ;;  %v5667_v46 = vpack.c.bf16 %v547_v20, %v539_v3 }
 0x211   : > { %v5650_v21 = vadd.f32 %v2192_v63, %v2104_v45  ;;  %v2017_v40 = vadd.f32 %v2016_v7, %v1928_v34  ;;  %6386 = vst [vmem:[#allocation116_spill] sm:$0xff] %v5664_v5 }
 0x212   : > { %6387 = vst [vmem:[#allocation117_spill] sm:$0xff] %v5667_v46 }
 0x213   : > { %6384 = vst [vmem:[#allocation114_spill] sm:$0xff] %v5650_v21  ;;  %v4281_v21 = vld [vmem:[#allocation5 + $0x104] sm:$0xf] }
 0x216   : > { %v2105_v17 = vpop.f32.mrf.mxu2  ;;  %v1930_v35 = vpop.f32.mrf.mxu0 }
 0x217   : > { %v2106_v33 = vadd.f32 %v2105_v17, %v2017_v40  ;;  %v2194_v61 = vpop.f32.mrf.mxu3  ;;  %v1931_v45 = vadd.f32 %v1930_v35, %v5280_v39  ;;  %v2019_v63 = vpop.f32.mrf.mxu1  ;;  %v3867_v17 = vor.u32 %v4281_v21, %v3864_v36  ;;  %v3736_v40 = vld [vmem:[#allocation5 + $0x8] sm:$0xf0]  ;;  %v3931_v35 = vor.u32 %v4297_v2, %v3928_v11 }
 0x218   : > { %v3739_v39 = vor.u32 %v4249_v58, %v3736_v40  ;;  %v3800_v36 = vld [vmem:[#allocation5 + $0x88] sm:$0xf0]  ;;  %v552_v58 = vld [vmem:[%s4970_s11 + $0x720] sm:$0xff] }
 0x219   : > { %v5669_v34 = vadd.f32 %v2194_v61, %v2106_v33  ;;  %v2020_v7 = vadd.f32 %v2019_v63, %v1931_v45  ;;  %1969 = vmatmul.bf16.gmra.mxu0 %v5660_v48  ;;  %2437 = vmatpush.bf16.msra.mxu2 %v3867_v17  ;;  %v4265_v63 = vld [vmem:[#allocation5 + $0x84] sm:$0xf]  ;;  %v553_v40 = vld [vmem:[%s4970_s11 + $0x728] sm:$0xff] }
 0x21a   : > { %2058 = vmatmul.bf16.gmra.mxu1 %v5662_v28  ;;  %2259 = vmatpush.bf16.msra.mxu0 %v3739_v39  ;;  %v560_v17 = vld [vmem:[%s4970_s11 + $0x760] sm:$0xff]  ;;  %v3803_v2 = vor.u32 %v4265_v63, %v3800_v36  ;;  %v561_v11 = vld [vmem:[%s4970_s11 + $0x768] sm:$0xff]  ;;  %v554_v39 = vld [vmem:[%s4970_s11 + $0x730] sm:$0xff] }
 0x21b   : > { %2147 = vmatmul.bf16.gmra.mxu2 %v5664_v5  ;;  %2526 = vmatpush.bf16.msra.mxu3 %v3931_v35  ;;  %v562_v35 = vld [vmem:[%s4970_s11 + $0x770] sm:$0xff]  ;;  %v5686_v5 = vpack.c.bf16 %v560_v17, %v552_v58 }
 0x21c   : > { %2236 = vmatmul.bf16.gmra.mxu3 %v5667_v46  ;;  %2348 = vmatpush.bf16.msra.mxu1 %v3803_v2 }
 0x21d   : > { %6388 = vst [vmem:[#allocation118_spill] sm:$0xff] %v5686_v5 }
 0x21e   : > { %v2108_v18 = vpop.f32.mrf.mxu2  ;;  %v1932_v3 = vpop.f32.mrf.mxu0 }
 0x21f   : > { %v2109_v60 = vadd.f32 %v2108_v18, %v2020_v7  ;;  %v2197_v21 = vpop.f32.mrf.mxu3  ;;  %v1933_v20 = vadd.f32 %v1932_v3, %v5298_v37  ;;  %v2021_v33 = vpop.f32.mrf.mxu1  ;;  %v555_v7 = vld [vmem:[%s4970_s11 + $0x738] sm:$0xff] }
 0x220   : > { %v563_v18 = vld [vmem:[%s4970_s11 + $0x778] sm:$0xff] }
 0x221   : > { %v5676_v61 = vadd.f32 %v2197_v21, %v2109_v60  ;;  %v2022_v45 = vadd.f32 %v2021_v33, %v1933_v20  ;;  %v5688_v21 = vpack.c.bf16 %v561_v11, %v553_v40  ;;  %v5690_v20 = vpack.c.bf16 %v562_v35, %v554_v39  ;;  %v568_v39 = vld [vmem:[%s4970_s11 + $0x7a0] sm:$0xff] }
 0x222   : > { %v5693_v63 = vpack.c.bf16 %v563_v18, %v555_v7  ;;  %v576_v35 = vld [vmem:[%s4970_s11 + $0x7e0] sm:$0xff]  ;;  %v569_v7 = vld [vmem:[%s4970_s11 + $0x7a8] sm:$0xff] }
 0x223   : > { %6389 = vst [vmem:[#allocation119_spill] sm:$0xff] %v5688_v21  ;;  %v577_v18 = vld [vmem:[%s4970_s11 + $0x7e8] sm:$0xff] }
 0x224   : > { %6390 = vst [vmem:[#allocation120_spill] sm:$0xff] %v5690_v20 }
 0x225   : > { %6391 = vst [vmem:[#allocation121_spill] sm:$0xff] %v5693_v63 }
 0x226   : > { %v2110_v46 = vpop.f32.mrf.mxu2  ;;  %v1935_v60 = vpop.f32.mrf.mxu0 }
 0x227   : > { %v2111_v37 = vadd.f32 %v2110_v46, %v2022_v45  ;;  %v2199_v3 = vpop.f32.mrf.mxu3  ;;  %v1936_v33 = vadd.f32 %v1935_v60, %v5304_v29  ;;  %v2024_v28 = vpop.f32.mrf.mxu1  ;;  %v571_v60 = vld [vmem:[%s4970_s11 + $0x7b8] sm:$0xff] }
 0x229   : > { %v5695_v36 = vadd.f32 %v2199_v3, %v2111_v37  ;;  %v2025_v2 = vadd.f32 %v2024_v28, %v1936_v33  ;;  %1974 = vmatmul.bf16.gmra.mxu0 %v5686_v5  ;;  %v570_v37 = vld [vmem:[%s4970_s11 + $0x7b0] sm:$0xff]  ;;  %v579_v33 = vld [vmem:[%s4970_s11 + $0x7f8] sm:$0xff]  ;;  %v5714_v5 = vpack.c.bf16 %v577_v18, %v569_v7 }
 0x22a   : > { %2063 = vmatmul.bf16.gmra.mxu1 %v5688_v21  ;;  %v578_v3 = vld [vmem:[%s4970_s11 + $0x7f0] sm:$0xff]  ;;  %v4240_v18 = vld [vmem:[#allocation5 + $0x3f8] sm:$0xf0] }
 0x22b   : > { %2152 = vmatmul.bf16.gmra.mxu2 %v5690_v20  ;;  %v5712_v20 = vpack.c.bf16 %v576_v35, %v568_v39  ;;  %v4176_v39 = vld [vmem:[#allocation5 + $0x378] sm:$0xf0]  ;;  %v4327_v35 = vld [vmem:[#allocation5 + $0x274] sm:$0xf] }
 0x22c   : > { %2241 = vmatmul.bf16.gmra.mxu3 %v5693_v63  ;;  %v4375_v7 = vld [vmem:[#allocation5 + $0x3f4] sm:$0xf] }
 0x22e   : > { %v2113_v29 = vpop.f32.mrf.mxu2  ;;  %v1937_v58 = vpop.f32.mrf.mxu0 }
 0x22f   : > { %v2114_v46 = vadd.f32 %v2113_v29, %v2025_v2  ;;  %v2202_v45 = vpop.f32.mrf.mxu3  ;;  %v1938_v17 = vadd.f32 %v1937_v58, %v5322_v6  ;;  %v2026_v28 = vpop.f32.mrf.mxu1  ;;  %v5716_v6 = vpack.c.bf16 %v578_v3, %v570_v37  ;;  %v5719_v58 = vpack.c.bf16 %v579_v33, %v571_v60 }
 0x231   : > { %v5702_v40 = vadd.f32 %v2202_v45, %v2114_v46  ;;  %v2027_v11 = vadd.f32 %v2026_v28, %v1938_v17  ;;  %6393 = vst [vmem:[#allocation123_spill] sm:$0xff] %v5716_v6 }
 0x232   : > { %6394 = vst [vmem:[#allocation124_spill] sm:$0xff] %v5719_v58 }
 0x233   : > { %6392 = vst [vmem:[#allocation122_spill] sm:$0xff] %v5702_v40  ;;  %v4359_v40 = vld [vmem:[#allocation5 + $0x374] sm:$0xf] }
 0x236   : > { %v2115_v63 = vpop.f32.mrf.mxu2  ;;  %v1940_v21 = vpop.f32.mrf.mxu0 }
 0x237   : > { %v2116_v2 = vadd.f32 %v2115_v63, %v2027_v11  ;;  %v2204_v29 = vpop.f32.mrf.mxu3  ;;  %v1941_v46 = vadd.f32 %v1940_v21, %v5328_v4  ;;  %v2029_v45 = vpop.f32.mrf.mxu1  ;;  %v4179_v63 = vor.u32 %v4359_v40, %v4176_v39  ;;  %v4048_v11 = vld [vmem:[#allocation5 + $0x278] sm:$0xf0]  ;;  %v4243_v21 = vor.u32 %v4375_v7, %v4240_v18 }
 0x238   : > { %v4051_v4 = vor.u32 %v4327_v35, %v4048_v11  ;;  %v4112_v39 = vld [vmem:[#allocation5 + $0x2f8] sm:$0xf0] }
 0x239   : > { %v5721_v17 = vadd.f32 %v2204_v29, %v2116_v2  ;;  %v2030_v28 = vadd.f32 %v2029_v45, %v1941_v46  ;;  %1979 = vmatmul.bf16.gmra.mxu0 %v5712_v20  ;;  %2786 = vmatpush.bf16.msrb.mxu2 %v4179_v63  ;;  %v4343_v45 = vld [vmem:[#allocation5 + $0x2f4] sm:$0xf] }
 0x23a   : > { %2068 = vmatmul.bf16.gmra.mxu1 %v5714_v5  ;;  %2608 = vmatpush.bf16.msrb.mxu0 %v4051_v4 }
 0x23b   : > { %2157 = vmatmul.bf16.gmra.mxu2 %v5716_v6  ;;  %2875 = vmatpush.bf16.msrb.mxu3 %v4243_v21  ;;  %v4115_v6 = vor.u32 %v4343_v45, %v4112_v39  ;;  %v4357_v45 = vld [vmem:[#allocation5 + $0x364] sm:$0xf]  ;;  %v4168_v39 = vld [vmem:[#allocation5 + $0x368] sm:$0xf0] }
 0x23c   : > { %2246 = vmatmul.bf16.gmra.mxu3 %v5719_v58 }
 0x23d   : > { %2697 = vmatpush.bf16.msrb.mxu1 %v4115_v6 }
 0x23e   : > { %v2118_v37 = vpop.f32.mrf.mxu2  ;;  %v1942_v33 = vpop.f32.mrf.mxu0 }
 0x23f   : > { %v2119_v3 = vadd.f32 %v2118_v37, %v2030_v28  ;;  %v2207_v60 = vpop.f32.mrf.mxu3  ;;  %v1943_v2 = vadd.f32 %v1942_v33, %v5346_v41  ;;  %v2031_v29 = vpop.f32.mrf.mxu1 }
 0x241   : > { %v5728_v46 = vadd.f32 %v2207_v60, %v2119_v3  ;;  %v2032_v40 = vadd.f32 %v2031_v29, %v1943_v2 }
 0x246   : > { %v2120_v58 = vpop.f32.mrf.mxu2  ;;  %v1945_v63 = vpop.f32.mrf.mxu0 }
 0x247   : > { %v2121_v35 = vadd.f32 %v2120_v58, %v2032_v40  ;;  %v2209_v11 = vpop.f32.mrf.mxu3  ;;  %v1946_v7 = vadd.f32 %v1945_v63, %v5352_v16  ;;  %v2034_v18 = vpop.f32.mrf.mxu1  ;;  %v4373_v63 = vld [vmem:[#allocation5 + $0x3e4] sm:$0xf] }
 0x249   : > { %v5731_v28 = vadd.f32 %v2209_v11, %v2121_v35  ;;  %v2035_v4 = vadd.f32 %v2034_v18, %v1946_v7  ;;  %2260 = vmatmul.bf16.vlgmr.msra.gmra.mxu0 %v4988_v47  ;;  %v4325_v35 = vld [vmem:[#allocation5 + $0x264] sm:$0xf]  ;;  %v4040_v11 = vld [vmem:[#allocation5 + $0x268] sm:$0xf0] }
 0x24a   : > { %2349 = vmatmul.bf16.vlgmr.msra.gmra.mxu1 %v4990_v51  ;;  %v4232_v7 = vld [vmem:[#allocation5 + $0x3e8] sm:$0xf0] }
 0x24b   : > { %2438 = vmatmul.bf16.vlgmr.msra.gmra.mxu2 %v4992_v52  ;;  %v4235_v18 = vor.u32 %v4373_v63, %v4232_v7 }
 0x24c   : > { %2527 = vmatmul.bf16.vlgmr.msra.gmra.mxu3 %v4994_v53 }
 0x24d   : > { %2876 = vmatpush.bf16.msrb.mxu3 %v4235_v18 }
 0x24e   : > { %v2123_v41 = vpop.f32.mrf.mxu2  ;;  %v1947_v58 = vpop.f32.mrf.mxu0 }
 0x24f   : > { %v2124_v6 = vadd.f32 %v2123_v41, %v2035_v4  ;;  %v2212_v21 = vpop.f32.mrf.mxu3  ;;  %v1948_v37 = vadd.f32 %v1947_v58, %v5370_v57  ;;  %v2036_v3 = vpop.f32.mrf.mxu1  ;;  %v4171_v57 = vor.u32 %v4357_v45, %v4168_v39 }
 0x251   : > { %v5738_v16 = vadd.f32 %v2212_v21, %v2124_v6  ;;  %v2037_v60 = vadd.f32 %v2036_v3, %v1948_v37  ;;  %2787 = vmatpush.bf16.msrb.mxu2 %v4171_v57  ;;  %v4341_v37 = vld [vmem:[#allocation5 + $0x2e4] sm:$0xf]  ;;  %v4104_v3 = vld [vmem:[#allocation5 + $0x2e8] sm:$0xf0] }
 0x256   : > { %v2125_v33 = vpop.f32.mrf.mxu2  ;;  %v1950_v47 = vpop.f32.mrf.mxu0 }
 0x257   : > { %v2126_v2 = vadd.f32 %v2125_v33, %v2037_v60  ;;  %v2214_v29 = vpop.f32.mrf.mxu3  ;;  %v1951_v51 = vadd.f32 %v1950_v47, %v5376_v43  ;;  %v2039_v40 = vpop.f32.mrf.mxu1  ;;  %v4043_v43 = vor.u32 %v4325_v35, %v4040_v11  ;;  %v4107_v60 = vor.u32 %v4341_v37, %v4104_v3 }
 0x259   : > { %v5741_v52 = vadd.f32 %v2214_v29, %v2126_v2  ;;  %v2040_v53 = vadd.f32 %v2039_v40, %v1951_v51  ;;  %2265 = vmatmul.bf16.gmra.mxu0 %v5008_v12  ;;  %2698 = vmatpush.bf16.msrb.mxu1 %v4107_v60 }
 0x25a   : > { %2354 = vmatmul.bf16.gmra.mxu1 %v5010_v13  ;;  %2609 = vmatpush.bf16.msrb.mxu0 %v4043_v43 }
 0x25b   : > { %2443 = vmatmul.bf16.gmra.mxu2 %v5012_v14 }
 0x25c   : > { %2532 = vmatmul.bf16.gmra.mxu3 %v5014_v15 }
 0x25e   : > { %v2128_v4 = vpop.f32.mrf.mxu2  ;;  %v1952_v6 = vpop.f32.mrf.mxu0 }
 0x25f   : > { %v2129_v12 = vadd.f32 %v2128_v4, %v2040_v53  ;;  %v2217_v41 = vpop.f32.mrf.mxu3  ;;  %v1953_v21 = vadd.f32 %v1952_v6, %v5394_v62  ;;  %v2041_v13 = vpop.f32.mrf.mxu1  ;;  %v4323_v6 = vld [vmem:[#allocation5 + $0x254] sm:$0xf] }
 0x261   : > { %v5748_v58 = vadd.f32 %v2217_v41, %v2129_v12  ;;  %v2042_v14 = vadd.f32 %v2041_v13, %v1953_v21  ;;  %v4355_v12 = vld [vmem:[#allocation5 + $0x354] sm:$0xf]  ;;  %v4160_v41 = vld [vmem:[#allocation5 + $0x358] sm:$0xf0] }
 0x262   : > { %v4032_v21 = vld [vmem:[#allocation5 + $0x258] sm:$0xf0]  ;;  %v4371_v13 = vld [vmem:[#allocation5 + $0x3d4] sm:$0xf] }
 0x266   : > { %v2130_v15 = vpop.f32.mrf.mxu2  ;;  %v1955_v29 = vpop.f32.mrf.mxu0 }
 0x267   : > { %v2131_v33 = vadd.f32 %v2130_v15, %v2042_v14  ;;  %v2219_v2 = vpop.f32.mrf.mxu3  ;;  %v1956_v47 = vadd.f32 %v1955_v29, %v5400_v31  ;;  %v2044_v51 = vpop.f32.mrf.mxu1  ;;  %v4224_v14 = vld [vmem:[#allocation5 + $0x3d8] sm:$0xf0]  ;;  %v4339_v29 = vld [vmem:[#allocation5 + $0x2d4] sm:$0xf] }
 0x268   : > { %v4227_v37 = vor.u32 %v4371_v13, %v4224_v14  ;;  %v6402_v13 = vld [vmem:[#allocation82_spill] sm:$0xff] }
 0x269   : > { %v5751_v40 = vadd.f32 %v2219_v2, %v2131_v33  ;;  %v2045_v53 = vadd.f32 %v2044_v51, %v1956_v47  ;;  %2270 = vmatmul.bf16.gmra.mxu0 %v5028_v24  ;;  %v4096_v47 = vld [vmem:[#allocation5 + $0x2d8] sm:$0xf0] }
 0x26a   : > { %2359 = vmatmul.bf16.gmra.mxu1 %v5030_v25  ;;  %2877 = vmatpush.bf16.msrb.mxu3 %v4227_v37  ;;  %v4099_v51 = vor.u32 %v4339_v29, %v4096_v47  ;;  %v4024_v47 = vld [vmem:[#allocation5 + $0x248] sm:$0xf0] }
 0x26b   : > { %2448 = vmatmul.bf16.gmra.mxu2 %v5032_v26 }
 0x26c   : > { %2537 = vmatmul.bf16.gmra.mxu3 %v5034_v27  ;;  %2699 = vmatpush.bf16.msrb.mxu1 %v4099_v51  ;;  %v4369_v51 = vld [vmem:[#allocation5 + $0x3c4] sm:$0xf] }
 0x26e   : > { %v2133_v62 = vpop.f32.mrf.mxu2  ;;  %v1957_v35 = vpop.f32.mrf.mxu0 }
 0x26f   : > { %v2134_v45 = vadd.f32 %v2133_v62, %v2045_v53  ;;  %v2222_v39 = vpop.f32.mrf.mxu3  ;;  %v1958_v57 = vadd.f32 %v1957_v35, %v5418_v23  ;;  %v2046_v11 = vpop.f32.mrf.mxu1  ;;  %v4163_v23 = vor.u32 %v4355_v12, %v4160_v41 }
 0x271   : > { %v5758_v31 = vadd.f32 %v2222_v39, %v2134_v45  ;;  %v2047_v63 = vadd.f32 %v2046_v11, %v1958_v57  ;;  %2788 = vmatpush.bf16.msrb.mxu2 %v4163_v23 }
 0x276   : > { %v2135_v7 = vpop.f32.mrf.mxu2  ;;  %v1960_v24 = vpop.f32.mrf.mxu0 }
 0x277   : > { %v2136_v43 = vadd.f32 %v2135_v7, %v2047_v63  ;;  %v2224_v18 = vpop.f32.mrf.mxu3  ;;  %v1961_v25 = vadd.f32 %v1960_v24, %v5424_v22  ;;  %v2049_v4 = vpop.f32.mrf.mxu1  ;;  %v4035_v22 = vor.u32 %v4323_v6, %v4032_v21  ;;  %v6398_v63 = vld [vmem:[#allocation11_spill] sm:$0xff]  ;;  %v6399_v7 = vld [vmem:[#allocation12_spill] sm:$0xff] }
 0x279   : > { %v5761_v26 = vadd.f32 %v2224_v18, %v2136_v43  ;;  %v2050_v27 = vadd.f32 %v2049_v4, %v1961_v25  ;;  %2275 = vmatmul.bf16.gmra.mxu0 %v5048_v49  ;;  %v6400_v4 = vld [vmem:[#allocation81_spill] sm:$0xff] }
 0x27a   : > { %2364 = vmatmul.bf16.gmra.mxu1 %v5050_v50  ;;  %2610 = vmatpush.bf16.msrb.mxu0 %v4035_v22 }
 0x27b   : > { %2453 = vmatmul.bf16.gmra.mxu2 %v5052_v54 }
 0x27c   : > { %2542 = vmatmul.bf16.gmra.mxu3 %v5054_v55 }
 0x27e   : > { %v2138_v3 = vpop.f32.mrf.mxu2  ;;  %v1962_v15 = vpop.f32.mrf.mxu0 }
 0x27f   : > { %v2139_v49 = vadd.f32 %v2138_v3, %v2050_v27  ;;  %v2227_v60 = vpop.f32.mrf.mxu3  ;;  %v1963_v33 = vadd.f32 %v1962_v15, %v5442_v8  ;;  %v2051_v50 = vpop.f32.mrf.mxu1  ;;  %v6397_v8 = vld [vmem:[#allocation10_spill] sm:$0xff]  ;;  %v4152_v15 = vld [vmem:[#allocation5 + $0x348] sm:$0xf0] }
 0x281   : > { %v5768_v2 = vadd.f32 %v2227_v60, %v2139_v49  ;;  %v2052_v54 = vadd.f32 %v2051_v50, %v1963_v33  ;;  %v6404_v49 = vld [vmem:[#allocation13_spill] sm:$0xff]  ;;  %v4353_v60 = vld [vmem:[#allocation5 + $0x344] sm:$0xf] }
 0x282   : > { %v4321_v33 = vld [vmem:[#allocation5 + $0x244] sm:$0xf]  ;;  %v4155_v29 = vor.u32 %v4353_v60, %v4152_v15  ;;  %v6414_v60 = vld [vmem:[#allocation20_spill] sm:$0xff] }
 0x283   : > { %6395 = vst [vmem:[#allocation125_spill] sm:$0xff] %v5768_v2  ;;  %v6405_v50 = vld [vmem:[#allocation14_spill] sm:$0xff] }
 0x284   : > { %2789 = vmatpush.bf16.msrb.mxu2 %v4155_v29  ;;  %v6415_v29 = vld [vmem:[#allocation92_spill] sm:$0xff] }
 0x286   : > { %v2140_v55 = vpop.f32.mrf.mxu2  ;;  %v1965_v45 = vpop.f32.mrf.mxu0 }
 0x287   : > { %v2141_v53 = vadd.f32 %v2140_v55, %v2052_v54  ;;  %v2229_v62 = vpop.f32.mrf.mxu3  ;;  %v1966_v39 = vadd.f32 %v1965_v45, %v5448_v30  ;;  %v2054_v35 = vpop.f32.mrf.mxu1  ;;  %v6406_v54 = vld [vmem:[#allocation15_spill] sm:$0xff] }
 0x288   : > { %v4216_v55 = vld [vmem:[#allocation5 + $0x3c8] sm:$0xf0] }
 0x289   : > { %v5771_v57 = vadd.f32 %v2229_v62, %v2141_v53  ;;  %v2055_v11 = vadd.f32 %v2054_v35, %v1966_v39  ;;  %2280 = vmatmul.bf16.gmra.mxu0 %v5068_v0  ;;  %v6407_v53 = vld [vmem:[#allocation16_spill] sm:$0xff]  ;;  %v4027_v62 = vor.u32 %v4321_v33, %v4024_v47  ;;  %v4219_v45 = vor.u32 %v4369_v51, %v4216_v55 }
 0x28a   : > { %2369 = vmatmul.bf16.gmra.mxu1 %v6397_v8 }
 0x28b   : > { %6396 = vst [vmem:[#allocation126_spill] sm:$0xff] %v5771_v57  ;;  %2458 = vmatmul.bf16.gmra.mxu2 %v6398_v63  ;;  %2611 = vmatpush.bf16.msrb.mxu0 %v4027_v62  ;;  %v6408_v63 = vld [vmem:[#allocation87_spill] sm:$0xff]  ;;  %v6476_v57 = vld [vmem:[#allocation73_spill] sm:$0xff] }
 0x28c   : > { %2547 = vmatmul.bf16.gmra.mxu3 %v6399_v7 }
 0x28d   : > { %2878 = vmatpush.bf16.msrb.mxu3 %v4219_v45 }
 0x28e   : > { %v2143_v43 = vpop.f32.mrf.mxu2  ;;  %v1967_v25 = vpop.f32.mrf.mxu0 }
 0x28f   : > { %v2144_v18 = vadd.f32 %v2143_v43, %v2055_v11  ;;  %v2232_v24 = vpop.f32.mrf.mxu3  ;;  %v1968_v27 = vadd.f32 %v1967_v25, %v6400_v4  ;;  %v2056_v12 = vpop.f32.mrf.mxu1  ;;  %v4337_v25 = vld [vmem:[#allocation5 + $0x2c4] sm:$0xf]  ;;  %v4088_v4 = vld [vmem:[#allocation5 + $0x2c8] sm:$0xf0] }
 0x291   : > { %v5778_v30 = vadd.f32 %v2232_v24, %v2144_v18  ;;  %v2057_v41 = vadd.f32 %v2056_v12, %v1968_v27  ;;  %v4091_v27 = vor.u32 %v4337_v25, %v4088_v4  ;;  %v4144_v25 = vld [vmem:[#allocation5 + $0x338] sm:$0xf0]  ;;  %v4319_v4 = vld [vmem:[#allocation5 + $0x234] sm:$0xf] }
 0x293   : > { %6401 = vst [vmem:[#allocation10_spill] sm:$0xff] %v5778_v30  ;;  %2700 = vmatpush.bf16.msrb.mxu1 %v4091_v27  ;;  %v6420_v27 = vld [vmem:[#allocation22_spill] sm:$0xff] }
 0x296   : > { %v2145_v6 = vpop.f32.mrf.mxu2  ;;  %v1970_v0 = vpop.f32.mrf.mxu0 }
 0x297   : > { %v2146_v23 = vadd.f32 %v2145_v6, %v2057_v41  ;;  %v2234_v21 = vpop.f32.mrf.mxu3  ;;  %v1971_v14 = vadd.f32 %v1970_v0, %v6402_v13  ;;  %v2059_v22 = vpop.f32.mrf.mxu1 }
 0x299   : > { %v5781_v37 = vadd.f32 %v2234_v21, %v2146_v23  ;;  %v2060_v3 = vadd.f32 %v2059_v22, %v1971_v14  ;;  %2285 = vmatmul.bf16.gmra.mxu0 %v6404_v49  ;;  %v6411_v22 = vld [vmem:[#allocation17_spill] sm:$0xff]  ;;  %v6413_v49 = vld [vmem:[#allocation19_spill] sm:$0xff] }
 0x29a   : > { %2374 = vmatmul.bf16.gmra.mxu1 %v6405_v50 }
 0x29b   : > { %6403 = vst [vmem:[#allocation11_spill] sm:$0xff] %v5781_v37  ;;  %2463 = vmatmul.bf16.gmra.mxu2 %v6406_v54  ;;  %v6470_v37 = vld [vmem:[#allocation69_spill] sm:$0xff] }
 0x29c   : > { %2552 = vmatmul.bf16.gmra.mxu3 %v6407_v53 }
 0x29e   : > { %v2148_v39 = vpop.f32.mrf.mxu2  ;;  %v1972_v8 = vpop.f32.mrf.mxu0 }
 0x29f   : > { %v2149_v35 = vadd.f32 %v2148_v39, %v2060_v3  ;;  %v2237_v11 = vpop.f32.mrf.mxu3  ;;  %v1973_v7 = vadd.f32 %v1972_v8, %v6408_v63  ;;  %v2061_v43 = vpop.f32.mrf.mxu1  ;;  %v6412_v3 = vld [vmem:[#allocation18_spill] sm:$0xff] }
 0x2a1   : > { %v5788_v18 = vadd.f32 %v2237_v11, %v2149_v35  ;;  %v2062_v24 = vadd.f32 %v2061_v43, %v1973_v7  ;;  %v6417_v35 = vld [vmem:[#allocation93_spill] sm:$0xff] }
 0x2a2   : > { %v6419_v43 = vld [vmem:[#allocation21_spill] sm:$0xff] }
 0x2a3   : > { %6409 = vst [vmem:[#allocation12_spill] sm:$0xff] %v5788_v18 }
 0x2a6   : > { %v2150_v12 = vpop.f32.mrf.mxu2  ;;  %v1975_v23 = vpop.f32.mrf.mxu0 }
 0x2a7   : > { %v2151_v41 = vadd.f32 %v2150_v12, %v2062_v24  ;;  %v2239_v6 = vpop.f32.mrf.mxu3  ;;  %v1976_v21 = vadd.f32 %v1975_v23, %v5496_v38  ;;  %v2064_v0 = vpop.f32.mrf.mxu1  ;;  %v4351_v24 = vld [vmem:[#allocation5 + $0x334] sm:$0xf]  ;;  %v6421_v12 = vld [vmem:[#allocation23_spill] sm:$0xff] }
 0x2a8   : > { %v4367_v23 = vld [vmem:[#allocation5 + $0x3b4] sm:$0xf] }
 0x2a9   : > { %v5791_v13 = vadd.f32 %v2239_v6, %v2151_v41  ;;  %v2065_v14 = vadd.f32 %v2064_v0, %v1976_v21  ;;  %2290 = vmatmul.bf16.gmra.mxu0 %v6411_v22  ;;  %v4147_v41 = vor.u32 %v4351_v24, %v4144_v25  ;;  %v4016_v6 = vld [vmem:[#allocation5 + $0x238] sm:$0xf0]  ;;  %v6422_v0 = vld [vmem:[#allocation24_spill] sm:$0xff]  ;;  %v6427_v24 = vld [vmem:[#allocation27_spill] sm:$0xff] }
 0x2aa   : > { %2379 = vmatmul.bf16.gmra.mxu1 %v6412_v3  ;;  %v4208_v21 = vld [vmem:[#allocation5 + $0x3b8] sm:$0xf0]  ;;  %v4335_v3 = vld [vmem:[#allocation5 + $0x2b4] sm:$0xf] }
 0x2ab   : > { %6410 = vst [vmem:[#allocation81_spill] sm:$0xff] %v5791_v13  ;;  %2468 = vmatmul.bf16.gmra.mxu2 %v6413_v49  ;;  %v4211_v22 = vor.u32 %v4367_v23, %v4208_v21  ;;  %v4080_v49 = vld [vmem:[#allocation5 + $0x2b8] sm:$0xf0]  ;;  %v6428_v25 = vld [vmem:[#allocation28_spill] sm:$0xff] }
 0x2ac   : > { %2557 = vmatmul.bf16.gmra.mxu3 %v6414_v60  ;;  %2790 = vmatpush.bf16.msrb.mxu2 %v4147_v41  ;;  %v4083_v60 = vor.u32 %v4335_v3, %v4080_v49  ;;  %v4008_v41 = vld [vmem:[#allocation5 + $0x228] sm:$0xf0]  ;;  %v6465_v13 = vld [vmem:[#allocation65_spill] sm:$0xff] }
 0x2ad   : > { %2879 = vmatpush.bf16.msrb.mxu3 %v4211_v22 }
 0x2ae   : > { %v2153_v15 = vpop.f32.mrf.mxu2  ;;  %v1977_v54 = vpop.f32.mrf.mxu0  ;;  %2701 = vmatpush.bf16.msrb.mxu1 %v4083_v60 }
 0x2af   : > { %v2154_v33 = vadd.f32 %v2153_v15, %v2065_v14  ;;  %v2242_v50 = vpop.f32.mrf.mxu3  ;;  %v1978_v47 = vadd.f32 %v1977_v54, %v6415_v29  ;;  %v2066_v51 = vpop.f32.mrf.mxu1  ;;  %v4019_v14 = vor.u32 %v4319_v4, %v4016_v6  ;;  %v4136_v4 = vld [vmem:[#allocation5 + $0x328] sm:$0xf0]  ;;  %v4365_v6 = vld [vmem:[#allocation5 + $0x3a4] sm:$0xf] }
 0x2b1   : > { %v5798_v38 = vadd.f32 %v2242_v50, %v2154_v33  ;;  %v2067_v55 = vadd.f32 %v2066_v51, %v1978_v47  ;;  %2612 = vmatpush.bf16.msrb.mxu0 %v4019_v14 }
 0x2b3   : > { %6416 = vst [vmem:[#allocation82_spill] sm:$0xff] %v5798_v38 }
 0x2b6   : > { %v2155_v53 = vpop.f32.mrf.mxu2  ;;  %v1980_v39 = vpop.f32.mrf.mxu0 }
 0x2b7   : > { %v2156_v62 = vadd.f32 %v2155_v53, %v2067_v55  ;;  %v2244_v45 = vpop.f32.mrf.mxu3  ;;  %v1981_v11 = vadd.f32 %v1980_v39, %v6417_v35  ;;  %v2069_v8 = vpop.f32.mrf.mxu1 }
 0x2b9   : > { %v5801_v63 = vadd.f32 %v2244_v45, %v2156_v62  ;;  %v2070_v7 = vadd.f32 %v2069_v8, %v1981_v11  ;;  %2295 = vmatmul.bf16.gmra.mxu0 %v6419_v43  ;;  %v6425_v43 = vld [vmem:[#allocation25_spill] sm:$0xff] }
 0x2ba   : > { %2384 = vmatmul.bf16.gmra.mxu1 %v6420_v27  ;;  %v4317_v27 = vld [vmem:[#allocation5 + $0x224] sm:$0xf] }
 0x2bb   : > { %6418 = vst [vmem:[#allocation13_spill] sm:$0xff] %v5801_v63  ;;  %2473 = vmatmul.bf16.gmra.mxu2 %v6421_v12  ;;  %v4011_v21 = vor.u32 %v4317_v27, %v4008_v41  ;;  %v6461_v63 = vld [vmem:[#allocation61_spill] sm:$0xff] }
 0x2bc   : > { %2562 = vmatmul.bf16.gmra.mxu3 %v6422_v0  ;;  %v4200_v0 = vld [vmem:[#allocation5 + $0x3a8] sm:$0xf0] }
 0x2bd   : > { %v4203_v49 = vor.u32 %v4365_v6, %v4200_v0  ;;  %2613 = vmatpush.bf16.msrb.mxu0 %v4011_v21 }
 0x2be   : > { %v2158_v15 = vpop.f32.mrf.mxu2  ;;  %v1982_v54 = vpop.f32.mrf.mxu0 }
 0x2bf   : > { %v2159_v33 = vadd.f32 %v2158_v15, %v2070_v7  ;;  %v2247_v50 = vpop.f32.mrf.mxu3  ;;  %v1983_v29 = vadd.f32 %v1982_v54, %v5539_v10  ;;  %v2071_v47 = vpop.f32.mrf.mxu1  ;;  %v6426_v7 = vld [vmem:[#allocation26_spill] sm:$0xff]  ;;  %2880 = vmatpush.bf16.msrb.mxu3 %v4203_v49  ;;  %v4072_v54 = vld [vmem:[#allocation5 + $0x2a8] sm:$0xf0] }
 0x2c0   : > { %v4349_v10 = vld [vmem:[#allocation5 + $0x324] sm:$0xf] }
 0x2c1   : > { %v5808_v51 = vadd.f32 %v2247_v50, %v2159_v33  ;;  %v2072_v55 = vadd.f32 %v2071_v47, %v1983_v29  ;;  %v4139_v12 = vor.u32 %v4349_v10, %v4136_v4  ;;  %v4333_v50 = vld [vmem:[#allocation5 + $0x2a4] sm:$0xf] }
 0x2c2   : > { %v4075_v29 = vor.u32 %v4333_v50, %v4072_v54  ;;  %v6435_v50 = vld [vmem:[#allocation35_spill] sm:$0xff]  ;;  %v6436_v54 = vld [vmem:[#allocation36_spill] sm:$0xff] }
 0x2c3   : > { %6423 = vst [vmem:[#allocation14_spill] sm:$0xff] %v5808_v51  ;;  %2791 = vmatpush.bf16.msrb.mxu2 %v4139_v12 }
 0x2c4   : > { %2702 = vmatpush.bf16.msrb.mxu1 %v4075_v29  ;;  %v4347_v29 = vld [vmem:[#allocation5 + $0x314] sm:$0xf] }
 0x2c6   : > { %v2160_v53 = vpop.f32.mrf.mxu2  ;;  %v2261_v39 = vpop.f32.mrf.mxu0 }
 0x2c7   : > { %v2161_v62 = vadd.f32 %v2160_v53, %v2072_v55  ;;  %v2249_v45 = vpop.f32.mrf.mxu3  ;;  %v2350_v35 = vpop.f32.mrf.mxu1 }
 0x2c8   : > { %v2351_v8 = vadd.f32 %v2350_v35, %v2261_v39 }
 0x2c9   : > { %v5810_v11 = vadd.f32 %v2249_v45, %v2161_v62  ;;  %2300 = vmatmul.bf16.gmra.mxu0 %v6425_v43  ;;  %v6430_v43 = vld [vmem:[#allocation30_spill] sm:$0xff] }
 0x2ca   : > { %2389 = vmatmul.bf16.gmra.mxu1 %v6426_v7  ;;  %v6431_v7 = vld [vmem:[#allocation31_spill] sm:$0xff] }
 0x2cb   : > { %6424 = vst [vmem:[#allocation15_spill] sm:$0xff] %v5810_v11  ;;  %2478 = vmatmul.bf16.gmra.mxu2 %v6427_v24  ;;  %v6432_v24 = vld [vmem:[#allocation32_spill] sm:$0xff]  ;;  %v6457_v11 = vld [vmem:[#allocation57_spill] sm:$0xff] }
 0x2cc   : > { %2567 = vmatmul.bf16.gmra.mxu3 %v6428_v25 }
 0x2ce   : > { %v2439_v23 = vpop.f32.mrf.mxu2  ;;  %v2263_v3 = vpop.f32.mrf.mxu0 }
 0x2cf   : > { %v2440_v14 = vadd.f32 %v2439_v23, %v2351_v8  ;;  %v2528_v22 = vpop.f32.mrf.mxu3  ;;  %v2352_v60 = vpop.f32.mrf.mxu1  ;;  %v6429_v8 = vld [vmem:[#allocation29_spill] sm:$0xff] }
 0x2d0   : > { %v2353_v33 = vadd.f32 %v2352_v60, %v2263_v3  ;;  %v6433_v60 = vld [vmem:[#allocation33_spill] sm:$0xff] }
 0x2d1   : > { %v5816_v15 = vadd.f32 %v2528_v22, %v2440_v14 }
 0x2d6   : > { %v2441_v47 = vpop.f32.mrf.mxu2  ;;  %v2266_v62 = vpop.f32.mrf.mxu0 }
 0x2d7   : > { %v2442_v55 = vadd.f32 %v2441_v47, %v2353_v33  ;;  %v2530_v53 = vpop.f32.mrf.mxu3  ;;  %v2355_v45 = vpop.f32.mrf.mxu1  ;;  %v6434_v33 = vld [vmem:[#allocation34_spill] sm:$0xff]  ;;  %v4128_v47 = vld [vmem:[#allocation5 + $0x318] sm:$0xf0] }
 0x2d8   : > { %v2356_v35 = vadd.f32 %v2355_v45, %v2266_v62  ;;  %v4000_v62 = vld [vmem:[#allocation5 + $0x218] sm:$0xf0]  ;;  %v4363_v45 = vld [vmem:[#allocation5 + $0x394] sm:$0xf] }
 0x2d9   : > { %v5818_v39 = vadd.f32 %v2530_v53, %v2442_v55  ;;  %2305 = vmatmul.bf16.gmra.mxu0 %v6429_v8  ;;  %v4315_v55 = vld [vmem:[#allocation5 + $0x214] sm:$0xf]  ;;  %v4131_v53 = vor.u32 %v4347_v29, %v4128_v47  ;;  %v6438_v29 = vld [vmem:[#allocation38_spill] sm:$0xff]  ;;  %v6439_v47 = vld [vmem:[#allocation39_spill] sm:$0xff] }
 0x2da   : > { %2394 = vmatmul.bf16.gmra.mxu1 %v6430_v43  ;;  %v4003_v43 = vor.u32 %v4315_v55, %v4000_v62  ;;  %v6440_v55 = vld [vmem:[#allocation40_spill] sm:$0xff] }
 0x2db   : > { %2483 = vmatmul.bf16.gmra.mxu2 %v6431_v7 }
 0x2dc   : > { %2572 = vmatmul.bf16.gmra.mxu3 %v6432_v24  ;;  %2792 = vmatpush.bf16.msrb.mxu2 %v4131_v53 }
 0x2dd   : > { %2614 = vmatpush.bf16.msrb.mxu0 %v4003_v43 }
 0x2de   : > { %v2444_v25 = vpop.f32.mrf.mxu2  ;;  %v2268_v27 = vpop.f32.mrf.mxu0 }
 0x2df   : > { %v2445_v10 = vadd.f32 %v2444_v25, %v2356_v35  ;;  %v2533_v4 = vpop.f32.mrf.mxu3  ;;  %v2357_v12 = vpop.f32.mrf.mxu1  ;;  %v4192_v35 = vld [vmem:[#allocation5 + $0x398] sm:$0xf0] }
 0x2e0   : > { %v2358_v6 = vadd.f32 %v2357_v12, %v2268_v27  ;;  %v4195_v7 = vor.u32 %v4363_v45, %v4192_v35 }
 0x2e1   : > { %v5824_v41 = vadd.f32 %v2533_v4, %v2445_v10 }
 0x2e2   : > { %2881 = vmatpush.bf16.msrb.mxu3 %v4195_v7 }
 0x2e6   : > { %v2446_v23 = vpop.f32.mrf.mxu2  ;;  %v2271_v14 = vpop.f32.mrf.mxu0 }
 0x2e7   : > { %v2447_v21 = vadd.f32 %v2446_v23, %v2358_v6  ;;  %v2535_v0 = vpop.f32.mrf.mxu3  ;;  %v2360_v22 = vpop.f32.mrf.mxu1  ;;  %v4331_v6 = vld [vmem:[#allocation5 + $0x294] sm:$0xf]  ;;  %v4064_v23 = vld [vmem:[#allocation5 + $0x298] sm:$0xf0] }
 0x2e8   : > { %v2361_v49 = vadd.f32 %v2360_v22, %v2271_v14 }
 0x2e9   : > { %v5826_v3 = vadd.f32 %v2535_v0, %v2447_v21  ;;  %2310 = vmatmul.bf16.gmra.mxu0 %v6433_v60  ;;  %v4067_v21 = vor.u32 %v4331_v6, %v4064_v23 }
 0x2ea   : > { %2399 = vmatmul.bf16.gmra.mxu1 %v6434_v33 }
 0x2eb   : > { %2488 = vmatmul.bf16.gmra.mxu2 %v6435_v50  ;;  %2703 = vmatpush.bf16.msrb.mxu1 %v4067_v21  ;;  %v6441_v21 = vld [vmem:[#allocation41_spill] sm:$0xff] }
 0x2ec   : > { %2577 = vmatmul.bf16.gmra.mxu3 %v6436_v54  ;;  %v6437_v54 = vld [vmem:[#allocation37_spill] sm:$0xff] }
 0x2ee   : > { %v2449_v8 = vpop.f32.mrf.mxu2  ;;  %v2273_v10 = vpop.f32.mrf.mxu0 }
 0x2ef   : > { %v2450_v24 = vadd.f32 %v2449_v8, %v2361_v49  ;;  %v2538_v25 = vpop.f32.mrf.mxu3  ;;  %v2362_v4 = vpop.f32.mrf.mxu1 }
 0x2f0   : > { %v2363_v12 = vadd.f32 %v2362_v4, %v2273_v10 }
 0x2f1   : > { %v5832_v27 = vadd.f32 %v2538_v25, %v2450_v24 }
 0x2f6   : > { %v2451_v0 = vpop.f32.mrf.mxu2  ;;  %v2276_v60 = vpop.f32.mrf.mxu0 }
 0x2f7   : > { %v2452_v14 = vadd.f32 %v2451_v0, %v2363_v12  ;;  %v2540_v22 = vpop.f32.mrf.mxu3  ;;  %v2365_v33 = vpop.f32.mrf.mxu1  ;;  %v6442_v0 = vld [vmem:[#allocation42_spill] sm:$0xff] }
 0x2f8   : > { %v2366_v49 = vadd.f32 %v2365_v33, %v2276_v60  ;;  %v4345_v60 = vld [vmem:[#allocation5 + $0x304] sm:$0xf]  ;;  %v4120_v33 = vld [vmem:[#allocation5 + $0x308] sm:$0xf0] }
 0x2f9   : > { %v5834_v50 = vadd.f32 %v2540_v22, %v2452_v14  ;;  %2315 = vmatmul.bf16.gmra.mxu0 %v6437_v54  ;;  %v6443_v14 = vld [vmem:[#allocation43_spill] sm:$0xff]  ;;  %v6444_v22 = vld [vmem:[#allocation44_spill] sm:$0xff]  ;;  %v4123_v54 = vor.u32 %v4345_v60, %v4120_v33 }
 0x2fa   : > { %2404 = vmatmul.bf16.gmra.mxu1 %v6438_v29  ;;  %v3992_v29 = vld [vmem:[#allocation5 + $0x208] sm:$0xf0] }
 0x2fb   : > { %2493 = vmatmul.bf16.gmra.mxu2 %v6439_v47  ;;  %v4361_v47 = vld [vmem:[#allocation5 + $0x384] sm:$0xf] }
 0x2fc   : > { %2582 = vmatmul.bf16.gmra.mxu3 %v6440_v55  ;;  %v4184_v55 = vld [vmem:[#allocation5 + $0x388] sm:$0xf0]  ;;  %2793 = vmatpush.bf16.msrb.mxu2 %v4123_v54  ;;  %v6446_v54 = vld [vmem:[#allocation46_spill] sm:$0xff] }
 0x2fe   : > { %v2454_v53 = vpop.f32.mrf.mxu2  ;;  %v2278_v35 = vpop.f32.mrf.mxu0 }
 0x2ff   : > { %v2455_v62 = vadd.f32 %v2454_v53, %v2366_v49  ;;  %v2543_v45 = vpop.f32.mrf.mxu3  ;;  %v2367_v8 = vpop.f32.mrf.mxu1  ;;  %v4313_v49 = vld [vmem:[#allocation5 + $0x204] sm:$0xf] }
 0x300   : > { %v2368_v7 = vadd.f32 %v2367_v8, %v2278_v35 }
 0x301   : > { %v5840_v43 = vadd.f32 %v2543_v45, %v2455_v62  ;;  %v3995_v62 = vor.u32 %v4313_v49, %v3992_v29  ;;  %v4187_v45 = vor.u32 %v4361_v47, %v4184_v55  ;;  %v6445_v29 = vld [vmem:[#allocation45_spill] sm:$0xff]  ;;  %v6447_v47 = vld [vmem:[#allocation47_spill] sm:$0xff]  ;;  %v6448_v55 = vld [vmem:[#allocation48_spill] sm:$0xff] }
 0x303   : > { %2615 = vmatpush.bf16.msrb.mxu0 %v3995_v62  ;;  %2882 = vmatpush.bf16.msrb.mxu3 %v4187_v45 }
 0x306   : > { %v2456_v24 = vpop.f32.mrf.mxu2  ;;  %v2281_v4 = vpop.f32.mrf.mxu0 }
 0x307   : > { %v2457_v25 = vadd.f32 %v2456_v24, %v2368_v7  ;;  %v2545_v10 = vpop.f32.mrf.mxu3  ;;  %v2370_v12 = vpop.f32.mrf.mxu1 }
 0x308   : > { %v2371_v23 = vadd.f32 %v2370_v12, %v2281_v4  ;;  %v4329_v4 = vld [vmem:[#allocation5 + $0x284] sm:$0xf]  ;;  %v4056_v12 = vld [vmem:[#allocation5 + $0x288] sm:$0xf0] }
 0x309   : > { %v5842_v6 = vadd.f32 %v2545_v10, %v2457_v25  ;;  %2320 = vmatmul.bf16.gmra.mxu0 %v6441_v21  ;;  %v4059_v21 = vor.u32 %v4329_v4, %v4056_v12 }
 0x30a   : > { %2409 = vmatmul.bf16.gmra.mxu1 %v6442_v0 }
 0x30b   : > { %2498 = vmatmul.bf16.gmra.mxu2 %v6443_v14  ;;  %2704 = vmatpush.bf16.msrb.mxu1 %v4059_v21 }
 0x30c   : > { %2587 = vmatmul.bf16.gmra.mxu3 %v6444_v22 }
 0x30e   : > { %v2459_v53 = vpop.f32.mrf.mxu2  ;;  %v2283_v7 = vpop.f32.mrf.mxu0 }
 0x30f   : > { %v2460_v35 = vadd.f32 %v2459_v53, %v2371_v23  ;;  %v2548_v8 = vpop.f32.mrf.mxu3  ;;  %v2372_v24 = vpop.f32.mrf.mxu1 }
 0x310   : > { %v2373_v10 = vadd.f32 %v2372_v24, %v2283_v7 }
 0x311   : > { %v5848_v25 = vadd.f32 %v2548_v8, %v2460_v35 }
 0x316   : > { %v2461_v0 = vpop.f32.mrf.mxu2  ;;  %v2286_v60 = vpop.f32.mrf.mxu0 }
 0x317   : > { %v2462_v14 = vadd.f32 %v2461_v0, %v2373_v10  ;;  %v2550_v22 = vpop.f32.mrf.mxu3  ;;  %v2375_v33 = vpop.f32.mrf.mxu1 }
 0x318   : > { %v2376_v23 = vadd.f32 %v2375_v33, %v2286_v60  ;;  %v6449_v60 = vld [vmem:[#allocation49_spill] sm:$0xff]  ;;  %v6450_v33 = vld [vmem:[#allocation50_spill] sm:$0xff] }
 0x319   : > { %v5850_v49 = vadd.f32 %v2550_v22, %v2462_v14  ;;  %2325 = vmatmul.bf16.gmra.mxu0 %v6445_v29  ;;  %v6451_v29 = vld [vmem:[#allocation51_spill] sm:$0xff] }
 0x31a   : > { %2414 = vmatmul.bf16.gmra.mxu1 %v6446_v54 }
 0x31b   : > { %2503 = vmatmul.bf16.gmra.mxu2 %v6447_v47 }
 0x31c   : > { %2592 = vmatmul.bf16.gmra.mxu3 %v6448_v55 }
 0x31e   : > { %v2464_v53 = vpop.f32.mrf.mxu2  ;;  %v2288_v35 = vpop.f32.mrf.mxu0 }
 0x31f   : > { %v2465_v62 = vadd.f32 %v2464_v53, %v2376_v23  ;;  %v2553_v45 = vpop.f32.mrf.mxu3  ;;  %v2377_v8 = vpop.f32.mrf.mxu1  ;;  %v6452_v23 = vld [vmem:[#allocation52_spill] sm:$0xff] }
 0x320   : > { %v2378_v24 = vadd.f32 %v2377_v8, %v2288_v35 }
 0x321   : > { %v5856_v7 = vadd.f32 %v2553_v45, %v2465_v62 }
 0x326   : > { %v2466_v10 = vpop.f32.mrf.mxu2  ;;  %v2291_v21 = vpop.f32.mrf.mxu0 }
 0x327   : > { %v2467_v4 = vadd.f32 %v2466_v10, %v2378_v24  ;;  %v2555_v12 = vpop.f32.mrf.mxu3  ;;  %v2380_v0 = vpop.f32.mrf.mxu1 }
 0x328   : > { %v2381_v22 = vadd.f32 %v2380_v0, %v2291_v21 }
 0x329   : > { %v5858_v14 = vadd.f32 %v2555_v12, %v2467_v4  ;;  %2330 = vmatmul.bf16.gmra.mxu0 %v6449_v60  ;;  %v6453_v60 = vld [vmem:[#allocation53_spill] sm:$0xff] }
 0x32a   : > { %2419 = vmatmul.bf16.gmra.mxu1 %v6450_v33  ;;  %v6454_v33 = vld [vmem:[#allocation54_spill] sm:$0xff] }
 0x32b   : > { %2508 = vmatmul.bf16.gmra.mxu2 %v6451_v29  ;;  %v6455_v29 = vld [vmem:[#allocation55_spill] sm:$0xff] }
 0x32c   : > { %2597 = vmatmul.bf16.gmra.mxu3 %v6452_v23 }
 0x32e   : > { %v2469_v54 = vpop.f32.mrf.mxu2  ;;  %v2293_v53 = vpop.f32.mrf.mxu0 }
 0x32f   : > { %v2470_v47 = vadd.f32 %v2469_v54, %v2381_v22  ;;  %v2558_v55 = vpop.f32.mrf.mxu3  ;;  %v2382_v62 = vpop.f32.mrf.mxu1  ;;  %v6456_v22 = vld [vmem:[#allocation56_spill] sm:$0xff] }
 0x330   : > { %v2383_v35 = vadd.f32 %v2382_v62, %v2293_v53 }
 0x331   : > { %v5864_v45 = vadd.f32 %v2558_v55, %v2470_v47 }
 0x336   : > { %v2471_v8 = vpop.f32.mrf.mxu2  ;;  %v2296_v4 = vpop.f32.mrf.mxu0 }
 0x337   : > { %v2472_v24 = vadd.f32 %v2471_v8, %v2383_v35  ;;  %v2560_v10 = vpop.f32.mrf.mxu3  ;;  %v2385_v12 = vpop.f32.mrf.mxu1 }
 0x338   : > { %v2386_v0 = vadd.f32 %v2385_v12, %v2296_v4 }
 0x339   : > { %v5866_v21 = vadd.f32 %v2560_v10, %v2472_v24  ;;  %2335 = vmatmul.bf16.gmra.mxu0 %v6453_v60 }
 0x33a   : > { %2424 = vmatmul.bf16.gmra.mxu1 %v6454_v33 }
 0x33b   : > { %2513 = vmatmul.bf16.gmra.mxu2 %v6455_v29  ;;  %v6458_v29 = vld [vmem:[#allocation58_spill] sm:$0xff] }
 0x33c   : > { %2602 = vmatmul.bf16.gmra.mxu3 %v6456_v22  ;;  %v6459_v22 = vld [vmem:[#allocation59_spill] sm:$0xff] }
 0x33e   : > { %v2474_v23 = vpop.f32.mrf.mxu2  ;;  %v2298_v55 = vpop.f32.mrf.mxu0 }
 0x33f   : > { %v2475_v54 = vadd.f32 %v2474_v23, %v2386_v0  ;;  %v2563_v47 = vpop.f32.mrf.mxu3  ;;  %v2387_v53 = vpop.f32.mrf.mxu1  ;;  %v6460_v0 = vld [vmem:[#allocation60_spill] sm:$0xff] }
 0x340   : > { %v2388_v35 = vadd.f32 %v2387_v53, %v2298_v55 }
 0x341   : > { %v5872_v62 = vadd.f32 %v2563_v47, %v2475_v54 }
 0x346   : > { %v2476_v8 = vpop.f32.mrf.mxu2  ;;  %v2301_v4 = vpop.f32.mrf.mxu0 }
 0x347   : > { %v2477_v24 = vadd.f32 %v2476_v8, %v2388_v35  ;;  %v2565_v10 = vpop.f32.mrf.mxu3  ;;  %v2390_v12 = vpop.f32.mrf.mxu1 }
 0x348   : > { %v2391_v33 = vadd.f32 %v2390_v12, %v2301_v4 }
 0x349   : > { %v5874_v60 = vadd.f32 %v2565_v10, %v2477_v24  ;;  %2616 = vmatmul.bf16.vlgmr.msrb.gmra.mxu0 %v6457_v11 }
 0x34a   : > { %2705 = vmatmul.bf16.vlgmr.msrb.gmra.mxu1 %v6458_v29 }
 0x34b   : > { %2794 = vmatmul.bf16.vlgmr.msrb.gmra.mxu2 %v6459_v22  ;;  %v6462_v22 = vld [vmem:[#allocation62_spill] sm:$0xff] }
 0x34c   : > { %2883 = vmatmul.bf16.vlgmr.msrb.gmra.mxu3 %v6460_v0  ;;  %v6463_v0 = vld [vmem:[#allocation63_spill] sm:$0xff] }
 0x34e   : > { %v2479_v23 = vpop.f32.mrf.mxu2  ;;  %v2303_v55 = vpop.f32.mrf.mxu0 }
 0x34f   : > { %v2480_v54 = vadd.f32 %v2479_v23, %v2391_v33  ;;  %v2568_v47 = vpop.f32.mrf.mxu3  ;;  %v2392_v53 = vpop.f32.mrf.mxu1  ;;  %v6464_v33 = vld [vmem:[#allocation64_spill] sm:$0xff] }
 0x350   : > { %v2393_v8 = vadd.f32 %v2392_v53, %v2303_v55 }
 0x351   : > { %v5880_v35 = vadd.f32 %v2568_v47, %v2480_v54 }
 0x356   : > { %v2481_v51 = vpop.f32.mrf.mxu2  ;;  %v2306_v4 = vpop.f32.mrf.mxu0 }
 0x357   : > { %v2482_v24 = vadd.f32 %v2481_v51, %v2393_v8  ;;  %v2570_v10 = vpop.f32.mrf.mxu3  ;;  %v2395_v12 = vpop.f32.mrf.mxu1 }
 0x358   : > { %v2396_v29 = vadd.f32 %v2395_v12, %v2306_v4 }
 0x359   : > { %v5882_v11 = vadd.f32 %v2570_v10, %v2482_v24  ;;  %2621 = vmatmul.bf16.gmra.mxu0 %v6461_v63 }
 0x35a   : > { %2710 = vmatmul.bf16.gmra.mxu1 %v6462_v22 }
 0x35b   : > { %2799 = vmatmul.bf16.gmra.mxu2 %v6463_v0  ;;  %v6466_v0 = vld [vmem:[#allocation66_spill] sm:$0xff] }
 0x35c   : > { %2888 = vmatmul.bf16.gmra.mxu3 %v6464_v33  ;;  %v6467_v33 = vld [vmem:[#allocation67_spill] sm:$0xff] }
 0x35e   : > { %v2484_v23 = vpop.f32.mrf.mxu2  ;;  %v2308_v55 = vpop.f32.mrf.mxu0 }
 0x35f   : > { %v2485_v54 = vadd.f32 %v2484_v23, %v2396_v29  ;;  %v2573_v47 = vpop.f32.mrf.mxu3  ;;  %v2397_v53 = vpop.f32.mrf.mxu1  ;;  %v6468_v29 = vld [vmem:[#allocation68_spill] sm:$0xff] }
 0x360   : > { %v2398_v8 = vadd.f32 %v2397_v53, %v2308_v55 }
 0x361   : > { %v5888_v51 = vadd.f32 %v2573_v47, %v2485_v54 }
 0x366   : > { %v2486_v38 = vpop.f32.mrf.mxu2  ;;  %v2311_v4 = vpop.f32.mrf.mxu0 }
 0x367   : > { %v2487_v24 = vadd.f32 %v2486_v38, %v2398_v8  ;;  %v2575_v10 = vpop.f32.mrf.mxu3  ;;  %v2400_v12 = vpop.f32.mrf.mxu1 }
 0x368   : > { %v2401_v22 = vadd.f32 %v2400_v12, %v2311_v4 }
 0x369   : > { %v5890_v63 = vadd.f32 %v2575_v10, %v2487_v24  ;;  %2626 = vmatmul.bf16.gmra.mxu0 %v6465_v13 }
 0x36a   : > { %2715 = vmatmul.bf16.gmra.mxu1 %v6466_v0 }
 0x36b   : > { %2804 = vmatmul.bf16.gmra.mxu2 %v6467_v33  ;;  %v6471_v33 = vld [vmem:[#allocation70_spill] sm:$0xff] }
 0x36c   : > { %2893 = vmatmul.bf16.gmra.mxu3 %v6468_v29  ;;  %v6472_v29 = vld [vmem:[#allocation71_spill] sm:$0xff] }
 0x36e   : > { %v2489_v23 = vpop.f32.mrf.mxu2  ;;  %v2313_v55 = vpop.f32.mrf.mxu0 }
 0x36f   : > { %v2490_v54 = vadd.f32 %v2489_v23, %v2401_v22  ;;  %v2578_v47 = vpop.f32.mrf.mxu3  ;;  %v2402_v53 = vpop.f32.mrf.mxu1  ;;  %v6473_v22 = vld [vmem:[#allocation72_spill] sm:$0xff] }
 0x370   : > { %v2403_v8 = vadd.f32 %v2402_v53, %v2313_v55 }
 0x371   : > { %v5896_v38 = vadd.f32 %v2578_v47, %v2490_v54 }
 0x376   : > { %v2491_v18 = vpop.f32.mrf.mxu2  ;;  %v2316_v4 = vpop.f32.mrf.mxu0 }
 0x377   : > { %v2492_v24 = vadd.f32 %v2491_v18, %v2403_v8  ;;  %v2580_v10 = vpop.f32.mrf.mxu3  ;;  %v2405_v12 = vpop.f32.mrf.mxu1 }
 0x378   : > { %v2406_v0 = vadd.f32 %v2405_v12, %v2316_v4 }
 0x379   : > { %v5898_v13 = vadd.f32 %v2580_v10, %v2492_v24  ;;  %2631 = vmatmul.bf16.gmra.mxu0 %v6470_v37 }
 0x37a   : > { %2720 = vmatmul.bf16.gmra.mxu1 %v6471_v33 }
 0x37b   : > { %6469 = vst [vmem:[#allocation16_spill] sm:$0xff] %v5898_v13  ;;  %2809 = vmatmul.bf16.gmra.mxu2 %v6472_v29  ;;  %v6477_v29 = vld [vmem:[#allocation74_spill] sm:$0xff] }
 0x37c   : > { %2898 = vmatmul.bf16.gmra.mxu3 %v6473_v22  ;;  %v6478_v22 = vld [vmem:[#allocation75_spill] sm:$0xff] }
 0x37e   : > { %v2494_v23 = vpop.f32.mrf.mxu2  ;;  %v2318_v55 = vpop.f32.mrf.mxu0 }
 0x37f   : > { %v2495_v54 = vadd.f32 %v2494_v23, %v2406_v0  ;;  %v2583_v47 = vpop.f32.mrf.mxu3  ;;  %v2407_v53 = vpop.f32.mrf.mxu1  ;;  %v6479_v0 = vld [vmem:[#allocation76_spill] sm:$0xff] }
 0x380   : > { %v2408_v8 = vadd.f32 %v2407_v53, %v2318_v55 }
 0x381   : > { %v5904_v18 = vadd.f32 %v2583_v47, %v2495_v54 }
 0x383   : > { %6474 = vst [vmem:[#allocation87_spill] sm:$0xff] %v5904_v18 }
 0x386   : > { %v2496_v30 = vpop.f32.mrf.mxu2  ;;  %v2321_v4 = vpop.f32.mrf.mxu0 }
 0x387   : > { %v2497_v24 = vadd.f32 %v2496_v30, %v2408_v8  ;;  %v2585_v10 = vpop.f32.mrf.mxu3  ;;  %v2410_v12 = vpop.f32.mrf.mxu1 }
 0x388   : > { %v2411_v33 = vadd.f32 %v2410_v12, %v2321_v4 }
 0x389   : > { %v5906_v37 = vadd.f32 %v2585_v10, %v2497_v24  ;;  %2636 = vmatmul.bf16.gmra.mxu0 %v6476_v57 }
 0x38a   : > { %2725 = vmatmul.bf16.gmra.mxu1 %v6477_v29 }
 0x38b   : > { %6475 = vst [vmem:[#allocation17_spill] sm:$0xff] %v5906_v37  ;;  %2814 = vmatmul.bf16.gmra.mxu2 %v6478_v22  ;;  %v6482_v37 = vld [vmem:[#allocation77_spill] sm:$0xff]  ;;  %v6483_v22 = vld [vmem:[#allocation78_spill] sm:$0xff] }
 0x38c   : > { %2903 = vmatmul.bf16.gmra.mxu3 %v6479_v0  ;;  %v6484_v0 = vld [vmem:[#allocation79_spill] sm:$0xff] }
 0x38e   : > { %v2499_v23 = vpop.f32.mrf.mxu2  ;;  %v2323_v55 = vpop.f32.mrf.mxu0 }
 0x38f   : > { %v2500_v54 = vadd.f32 %v2499_v23, %v2411_v33  ;;  %v2588_v47 = vpop.f32.mrf.mxu3  ;;  %v2412_v53 = vpop.f32.mrf.mxu1  ;;  %v6485_v33 = vld [vmem:[#allocation80_spill] sm:$0xff] }
 0x390   : > { %v2413_v8 = vadd.f32 %v2412_v53, %v2323_v55 }
 0x391   : > { %v5912_v30 = vadd.f32 %v2588_v47, %v2500_v54 }
 0x393   : > { %6480 = vst [vmem:[#allocation18_spill] sm:$0xff] %v5912_v30 }
 0x396   : > { %v2501_v18 = vpop.f32.mrf.mxu2  ;;  %v2326_v4 = vpop.f32.mrf.mxu0 }
 0x397   : > { %v2502_v24 = vadd.f32 %v2501_v18, %v2413_v8  ;;  %v2590_v10 = vpop.f32.mrf.mxu3  ;;  %v2415_v12 = vpop.f32.mrf.mxu1 }
 0x398   : > { %v2416_v29 = vadd.f32 %v2415_v12, %v2326_v4 }
 0x399   : > { %v5914_v57 = vadd.f32 %v2590_v10, %v2502_v24  ;;  %2641 = vmatmul.bf16.gmra.mxu0 %v6482_v37 }
 0x39a   : > { %2730 = vmatmul.bf16.gmra.mxu1 %v6483_v22 }
 0x39b   : > { %6481 = vst [vmem:[#allocation19_spill] sm:$0xff] %v5914_v57  ;;  %2819 = vmatmul.bf16.gmra.mxu2 %v6484_v0  ;;  %v6488_v57 = vld [vmem:[#allocation83_spill] sm:$0xff]  ;;  %v6489_v0 = vld [vmem:[#allocation84_spill] sm:$0xff] }
 0x39c   : > { %2908 = vmatmul.bf16.gmra.mxu3 %v6485_v33  ;;  %v6490_v33 = vld [vmem:[#allocation85_spill] sm:$0xff] }
 0x39e   : > { %v2504_v23 = vpop.f32.mrf.mxu2  ;;  %v2328_v55 = vpop.f32.mrf.mxu0 }
 0x39f   : > { %v2505_v54 = vadd.f32 %v2504_v23, %v2416_v29  ;;  %v2593_v47 = vpop.f32.mrf.mxu3  ;;  %v2417_v53 = vpop.f32.mrf.mxu1  ;;  %v6491_v29 = vld [vmem:[#allocation86_spill] sm:$0xff] }
 0x3a0   : > { %v2418_v8 = vadd.f32 %v2417_v53, %v2328_v55 }
 0x3a1   : > { %v5920_v18 = vadd.f32 %v2593_v47, %v2505_v54 }
 0x3a3   : > { %6486 = vst [vmem:[#allocation20_spill] sm:$0xff] %v5920_v18 }
 0x3a6   : > { %v2506_v30 = vpop.f32.mrf.mxu2  ;;  %v2331_v4 = vpop.f32.mrf.mxu0 }
 0x3a7   : > { %v2507_v24 = vadd.f32 %v2506_v30, %v2418_v8  ;;  %v2595_v10 = vpop.f32.mrf.mxu3  ;;  %v2420_v12 = vpop.f32.mrf.mxu1 }
 0x3a8   : > { %v2421_v22 = vadd.f32 %v2420_v12, %v2331_v4 }
 0x3a9   : > { %v5922_v37 = vadd.f32 %v2595_v10, %v2507_v24  ;;  %2646 = vmatmul.bf16.gmra.mxu0 %v6488_v57 }
 0x3aa   : > { %2735 = vmatmul.bf16.gmra.mxu1 %v6489_v0 }
 0x3ab   : > { %6487 = vst [vmem:[#allocation92_spill] sm:$0xff] %v5922_v37  ;;  %2824 = vmatmul.bf16.gmra.mxu2 %v6490_v33  ;;  %v6494_v37 = vld [vmem:[#allocation88_spill] sm:$0xff]  ;;  %v6495_v33 = vld [vmem:[#allocation89_spill] sm:$0xff] }
 0x3ac   : > { %2913 = vmatmul.bf16.gmra.mxu3 %v6491_v29  ;;  %v6496_v29 = vld [vmem:[#allocation90_spill] sm:$0xff] }
 0x3ae   : > { %v2509_v23 = vpop.f32.mrf.mxu2  ;;  %v2333_v55 = vpop.f32.mrf.mxu0 }
 0x3af   : > { %v2510_v54 = vadd.f32 %v2509_v23, %v2421_v22  ;;  %v2598_v47 = vpop.f32.mrf.mxu3  ;;  %v2422_v53 = vpop.f32.mrf.mxu1  ;;  %v6497_v22 = vld [vmem:[#allocation91_spill] sm:$0xff] }
 0x3b0   : > { %v2423_v8 = vadd.f32 %v2422_v53, %v2333_v55  ;;  %v3159_v53 = vld [vmem:[#allocation7] sm:$0x3] }
 0x3b1   : > { %v5928_v30 = vadd.f32 %v2598_v47, %v2510_v54 }
 0x3b3   : > { %6492 = vst [vmem:[#allocation93_spill] sm:$0xff] %v5928_v30 }
 0x3b6   : > { %v2511_v18 = vpop.f32.mrf.mxu2  ;;  %v2336_v4 = vpop.f32.mrf.mxu0 }
 0x3b7   : > { %v2512_v24 = vadd.f32 %v2511_v18, %v2423_v8  ;;  %v2600_v10 = vpop.f32.mrf.mxu3  ;;  %v2425_v12 = vpop.f32.mrf.mxu1 }
 0x3b8   : > { %v2426_v0 = vadd.f32 %v2425_v12, %v2336_v4  ;;  %v6499_v4 = vld [vmem:[#allocation98_spill] sm:$0xff] }
 0x3b9   : > { %v5930_v57 = vadd.f32 %v2600_v10, %v2512_v24  ;;  %2651 = vmatmul.bf16.gmra.mxu0 %v6494_v37  ;;  %v5938_v24 = vperm.slane %v3159_v53, 0 }
 0x3ba   : > { %2740 = vmatmul.bf16.gmra.mxu1 %v6495_v33 }
 0x3bb   : > { %6493 = vst [vmem:[#allocation21_spill] sm:$0xff] %v5930_v57  ;;  %2829 = vmatmul.bf16.gmra.mxu2 %v6496_v29  ;;  %v3165_v37 = vadd.f32 %v5938_v24, %v6499_v4 }
 0x3bc   : > { %2918 = vmatmul.bf16.gmra.mxu3 %v6497_v22 }
 0x3bd   : > { %v3229_v2 = vsub.f32 0.0, %v3165_v37 }
 0x3be   : > { %v2514_v23 = vpop.f32.mrf.mxu2  ;;  %v2338_v55 = vpop.f32.mrf.mxu0 }
 0x3bf   : > { %v2515_v54 = vadd.f32 %v2514_v23, %v2426_v0  ;;  %v2603_v47 = vpop.f32.mrf.mxu3  ;;  %v2427_v18 = vpop.f32.mrf.mxu1  ;;  %v6501_v23 = vld [vmem:[#allocation94_spill] sm:$0xff]  ;;  %v3293_v4 = vmul.f32 1.442695, %v3229_v2 }
 0x3c0   : > { %v2428_v30 = vadd.f32 %v2427_v18, %v2338_v55  ;;  %v6504_v55 = vld [vmem:[#allocation97_spill] sm:$0xff] }
 0x3c1   : > { %v5936_v8 = vadd.f32 %v2603_v47, %v2515_v54  ;;  %v6502_v54 = vld [vmem:[#allocation95_spill] sm:$0xff]  ;;  %v6503_v47 = vld [vmem:[#allocation96_spill] sm:$0xff]  ;;  %4457 = vpow2.f32 %v3293_v4 }
 0x3c3   : > { %6498 = vst [vmem:[#allocation22_spill] sm:$0xff] %v5936_v8 }
 0x3c6   : > { %v2516_v10 = vpop.f32.mrf.mxu2  ;;  %v2617_v29 = vpop.f32.mrf.mxu0 }
 0x3c7   : > { %v2517_v12 = vadd.f32 %v2516_v10, %v2428_v30  ;;  %v2605_v33 = vpop.f32.mrf.mxu3  ;;  %v2706_v57 = vpop.f32.mrf.mxu1  ;;  %v2618_v0 = vadd.f32 %v2617_v29, %v5816_v15  ;;  %v3167_v30 = vadd.f32 %v5938_v24, %v5565_v56  ;;  %v3169_v56 = vadd.f32 %v5938_v24, %v5572_v1  ;;  %v6506_v1 = vld [vmem:[#allocation100_spill] sm:$0xff] }
 0x3c9   : > { %v5942_v22 = vadd.f32 %v2605_v33, %v2517_v12  ;;  %2656 = vmatmul.bf16.gmra.mxu0 %v6501_v23  ;;  %v2707_v18 = vadd.f32 %v2706_v57, %v2618_v0  ;;  %v5951_v33 = vperm.slane %v3159_v53, 1 }
 0x3ca   : > { %2745 = vmatmul.bf16.gmra.mxu1 %v6502_v54  ;;  %v3231_v54 = vsub.f32 0.0, %v3167_v30  ;;  %v3233_v30 = vsub.f32 0.0, %v3169_v56 }
 0x3cb   : > { %6500 = vst [vmem:[#allocation23_spill] sm:$0xff] %v5942_v22  ;;  %2834 = vmatmul.bf16.gmra.mxu2 %v6503_v47 }
 0x3cc   : > { %2923 = vmatmul.bf16.gmra.mxu3 %v6504_v55  ;;  %v3297_v55 = vmul.f32 1.442695, %v3231_v54  ;;  %v3301_v54 = vmul.f32 1.442695, %v3233_v30 }
 0x3ce   : > { %v2795_v8 = vpop.f32.mrf.mxu2  ;;  %v2619_v15 = vpop.f32.mrf.mxu0 }
 0x3cf   : > { %v2796_v10 = vadd.f32 %v2795_v8, %v2707_v18  ;;  %v2884_v12 = vpop.f32.mrf.mxu3  ;;  %v2708_v29 = vpop.f32.mrf.mxu1  ;;  %v2620_v37 = vadd.f32 %v2619_v15, %v5818_v39  ;;  %v6505_v15 = vld [vmem:[#allocation99_spill] sm:$0xff] }
 0x3d1   : > { %v2885_v23 = vadd.f32 %v2884_v12, %v2796_v10  ;;  %v2709_v0 = vadd.f32 %v2708_v29, %v2620_v37  ;;  %v4458_v10 = vpop.eup %4457 }
 0x3d2   : > { %v3421_v29 = vadd.f32 1.0, %v4458_v10 }
 0x3d3   : > { %v3166_v47 = vadd.f32 %v5951_v33, %v2885_v23  ;;  %v6507_v23 = vld [vmem:[#allocation101_spill] sm:$0xff] }
 0x3d5   : > { %v3230_v57 = vsub.f32 0.0, %v3166_v47  ;;  %v3171_v47 = vadd.f32 %v5938_v24, %v5591_v42 }
 0x3d6   : > { %v2797_v2 = vpop.f32.mrf.mxu2  ;;  %v2622_v22 = vpop.f32.mrf.mxu0 }
 0x3d7   : > { %v3295_v8 = vmul.f32 1.442695, %v3230_v57  ;;  %v2798_v53 = vadd.f32 %v2797_v2, %v2709_v0  ;;  %v2886_v18 = vpop.f32.mrf.mxu3  ;;  %v2711_v13 = vpop.f32.mrf.mxu1  ;;  %v2623_v4 = vadd.f32 %v2622_v22, %v5824_v41  ;;  %v3235_v10 = vsub.f32 0.0, %v3171_v47 }
 0x3d9   : > { %4459 = vpow2.f32 %v3295_v8  ;;  %v2887_v39 = vadd.f32 %v2886_v18, %v2798_v53  ;;  %2661 = vmatmul.bf16.gmra.mxu0 %v5556_v32  ;;  %v2712_v22 = vadd.f32 %v2711_v13, %v2623_v4 }
 0x3da   : > { %4461 = vpow2.f32 %v3297_v55  ;;  %2750 = vmatmul.bf16.gmra.mxu1 %v6505_v15 }
 0x3db   : > { %v3168_v12 = vadd.f32 %v5951_v33, %v2887_v39  ;;  %2839 = vmatmul.bf16.gmra.mxu2 %v6506_v1  ;;  %4463 = vrcp.f32 %v3421_v29  ;;  %v3305_v29 = vmul.f32 1.442695, %v3235_v10  ;;  %v6512_v10 = vld [vmem:[#allocation104_spill] sm:$0xff] }
 0x3dc   : > { %2928 = vmatmul.bf16.gmra.mxu3 %v6507_v23  ;;  %v6509_v23 = vld [vmem:[#allocation106_spill] sm:$0xff] }
 0x3dd   : > { %v3232_v41 = vsub.f32 0.0, %v3168_v12 }
 0x3de   : > { %v2800_v37 = vpop.f32.mrf.mxu2  ;;  %v2624_v55 = vpop.f32.mrf.mxu0 }
 0x3df   : > { %v4460_v32 = vpop.eup %4459  ;;  %v3299_v57 = vmul.f32 1.442695, %v3232_v41  ;;  %v2801_v0 = vadd.f32 %v2800_v37, %v2712_v22  ;;  %v2889_v2 = vpop.f32.mrf.mxu3  ;;  %v2625_v13 = vadd.f32 %v2624_v55, %v5826_v3  ;;  %v3173_v41 = vadd.f32 %v5938_v24, %v6509_v23 }
 0x3e0   : > { %v3422_v56 = vadd.f32 1.0, %v4460_v32  ;;  %v2713_v8 = vpop.f32.mrf.mxu1  ;;  %v4462_v53 = vpop.eup %4461 }
 0x3e1   : > { %4465 = vpow2.f32 %v3299_v57  ;;  %v2890_v18 = vadd.f32 %v2889_v2, %v2801_v0  ;;  %v3423_v42 = vadd.f32 1.0, %v4462_v53  ;;  %v2714_v30 = vadd.f32 %v2713_v8, %v2625_v13  ;;  %v4464_v12 = vpop.eup %4463  ;;  %v6510_v8 = vld [vmem:[#allocation102_spill] sm:$0xff]  ;;  %v6511_v13 = vld [vmem:[#allocation103_spill] sm:$0xff] }
 0x3e2   : > { %4467 = vrcp.f32 %v3422_v56  ;;  %v3237_v53 = vsub.f32 0.0, %v3173_v41 }
 0x3e3   : > { %4469 = vpow2.f32 %v3301_v54  ;;  %v3170_v39 = vadd.f32 %v5951_v33, %v2890_v18 }
 0x3e4   : > { %4471 = vrcp.f32 %v3423_v42  ;;  %v6513_v42 = vld [vmem:[#allocation105_spill] sm:$0xff] }
 0x3e5   : > { %v3234_v4 = vsub.f32 0.0, %v3170_v39 }
 0x3e6   : > { %v2802_v15 = vpop.f32.mrf.mxu2  ;;  %v2627_v3 = vpop.f32.mrf.mxu0 }
 0x3e7   : > { %v4466_v1 = vpop.eup %4465  ;;  %v3303_v22 = vmul.f32 1.442695, %v3234_v4  ;;  %v2803_v37 = vadd.f32 %v2802_v15, %v2714_v30  ;;  %v2891_v32 = vpop.f32.mrf.mxu3  ;;  %v2628_v56 = vadd.f32 %v2627_v3, %v5832_v27 }
 0x3e8   : > { %v4468_v57 = vpop.eup %4467  ;;  %v3424_v54 = vadd.f32 1.0, %v4466_v1  ;;  %v2716_v47 = vpop.f32.mrf.mxu1  ;;  %v3309_v1 = vmul.f32 1.442695, %v3237_v53 }
 0x3e9   : > { %v4470_v0 = vpop.eup %4469  ;;  %v3549_v2 = vpack.c.bf16 %v4468_v57, %v4464_v12  ;;  %4473 = vpow2.f32 %v3303_v22  ;;  %v2892_v55 = vadd.f32 %v2891_v32, %v2803_v37  ;;  %2666 = vmatmul.bf16.gmra.mxu0 %v6510_v8  ;;  %v2717_v30 = vadd.f32 %v2716_v47, %v2628_v56 }
 0x3ea   : > { %4475 = vrcp.f32 %v3424_v54  ;;  %2755 = vmatmul.bf16.gmra.mxu1 %v6511_v13  ;;  %v3425_v39 = vadd.f32 1.0, %v4470_v0  ;;  %v4472_v12 = vpop.eup %4471 }
 0x3eb   : > { %4477 = vpow2.f32 %v3305_v29  ;;  %3581 = vst [vmem:[%s5979_s10] sm:$0xff] %v3549_v2  ;;  %v3172_v18 = vadd.f32 %v5951_v33, %v2892_v55  ;;  %2844 = vmatmul.bf16.gmra.mxu2 %v6512_v10  ;;  %v3175_v29 = vadd.f32 %v5938_v24, %v5617_v59 }
 0x3ec   : > { %2933 = vmatmul.bf16.gmra.mxu3 %v6513_v42  ;;  %4479 = vrcp.f32 %v3425_v39  ;;  %v3177_v42 = vadd.f32 %v5938_v24, %v5624_v9 }
 0x3ed   : > { %v3236_v4 = vsub.f32 0.0, %v3172_v18  ;;  %v3239_v55 = vsub.f32 0.0, %v3175_v29 }
 0x3ee   : > { %v2805_v15 = vpop.f32.mrf.mxu2  ;;  %v2629_v37 = vpop.f32.mrf.mxu0  ;;  %v3241_v9 = vsub.f32 0.0, %v3177_v42 }
 0x3ef   : > { %v4474_v27 = vpop.eup %4473  ;;  %v3307_v23 = vmul.f32 1.442695, %v3236_v4  ;;  %v2806_v41 = vadd.f32 %v2805_v15, %v2717_v30  ;;  %v2894_v22 = vpop.f32.mrf.mxu3  ;;  %v2630_v2 = vadd.f32 %v2629_v37, %v5834_v50  ;;  %v3313_v39 = vmul.f32 1.442695, %v3239_v55 }
 0x3f0   : > { %v4476_v32 = vpop.eup %4475  ;;  %v3426_v3 = vadd.f32 1.0, %v4474_v27  ;;  %v2718_v57 = vpop.f32.mrf.mxu1 }
 0x3f1   : > { %v4478_v54 = vpop.eup %4477  ;;  %v3550_v0 = vpack.c.bf16 %v4476_v32, %v4472_v12  ;;  %4481 = vpow2.f32 %v3307_v23  ;;  %v2895_v47 = vadd.f32 %v2894_v22, %v2806_v41  ;;  %v2719_v53 = vadd.f32 %v2718_v57, %v2630_v2  ;;  %v6514_v32 = vld [vmem:[#allocation107_spill] sm:$0xff] }
 0x3f2   : > { %4483 = vrcp.f32 %v3426_v3  ;;  %v3427_v56 = vadd.f32 1.0, %v4478_v54  ;;  %v4480_v18 = vpop.eup %4479  ;;  %v6515_v3 = vld [vmem:[#allocation108_spill] sm:$0xff]  ;;  %v6516_v54 = vld [vmem:[#allocation109_spill] sm:$0xff] }
 0x3f3   : > { %4485 = vpow2.f32 %v3309_v1  ;;  %3582 = vst [vmem:[%s5979_s10 + $0x8] sm:$0xff] %v3550_v0  ;;  %v3174_v59 = vadd.f32 %v5951_v33, %v2895_v47 }
 0x3f4   : > { %4487 = vrcp.f32 %v3427_v56 }
 0x3f5   : > { %v3238_v8 = vsub.f32 0.0, %v3174_v59  ;;  %v3317_v59 = vmul.f32 1.442695, %v3241_v9  ;;  %v6517_v9 = vld [vmem:[#allocation114_spill] sm:$0xff] }
 0x3f6   : > { %v2807_v13 = vpop.f32.mrf.mxu2  ;;  %v2632_v12 = vpop.f32.mrf.mxu0 }
 0x3f7   : > { %v4482_v10 = vpop.eup %4481  ;;  %v3311_v4 = vmul.f32 1.442695, %v3238_v8  ;;  %v2808_v30 = vadd.f32 %v2807_v13, %v2719_v53  ;;  %v2896_v50 = vpop.f32.mrf.mxu3  ;;  %v2633_v22 = vadd.f32 %v2632_v12, %v5840_v43 }
 0x3f8   : > { %v4484_v15 = vpop.eup %4483  ;;  %v3428_v27 = vadd.f32 1.0, %v4482_v10  ;;  %v2721_v1 = vpop.f32.mrf.mxu1 }
 0x3f9   : > { %v4486_v29 = vpop.eup %4485  ;;  %v3551_v23 = vpack.c.bf16 %v4484_v15, %v4480_v18  ;;  %4489 = vpow2.f32 %v3311_v4  ;;  %v2897_v41 = vadd.f32 %v2896_v50, %v2808_v30  ;;  %2671 = vmatmul.bf16.gmra.mxu0 %v5608_v44  ;;  %v2722_v47 = vadd.f32 %v2721_v1, %v2633_v22 }
 0x3fa   : > { %4491 = vrcp.f32 %v3428_v27  ;;  %2760 = vmatmul.bf16.gmra.mxu1 %v6514_v32  ;;  %v3429_v57 = vadd.f32 1.0, %v4486_v29  ;;  %v4488_v2 = vpop.eup %4487  ;;  %v3179_v44 = vadd.f32 %v5938_v24, %v5643_v19 }
 0x3fb   : > { %4493 = vpow2.f32 %v3313_v39  ;;  %3583 = vst [vmem:[%s5979_s10 + $0x10] sm:$0xff] %v3551_v23  ;;  %v3176_v37 = vadd.f32 %v5951_v33, %v2897_v41  ;;  %2849 = vmatmul.bf16.gmra.mxu2 %v6515_v3 }
 0x3fc   : > { %2938 = vmatmul.bf16.gmra.mxu3 %v6516_v54  ;;  %4495 = vrcp.f32 %v3429_v57  ;;  %v3243_v12 = vsub.f32 0.0, %v3179_v44  ;;  %v6518_v44 = vld [vmem:[#allocation110_spill] sm:$0xff] }
 0x3fd   : > { %v3240_v0 = vsub.f32 0.0, %v3176_v37  ;;  %v3181_v37 = vadd.f32 %v5938_v24, %v6517_v9 }
 0x3fe   : > { %v2810_v55 = vpop.f32.mrf.mxu2  ;;  %v2634_v18 = vpop.f32.mrf.mxu0  ;;  %v3321_v22 = vmul.f32 1.442695, %v3243_v12  ;;  %v3183_v12 = vadd.f32 %v5938_v24, %v5669_v34 }
 0x3ff   : > { %v4490_v43 = vpop.eup %4489  ;;  %v3315_v56 = vmul.f32 1.442695, %v3240_v0  ;;  %v2811_v8 = vadd.f32 %v2810_v55, %v2722_v47  ;;  %v2899_v53 = vpop.f32.mrf.mxu3  ;;  %v2635_v50 = vadd.f32 %v2634_v18, %v5842_v6  ;;  %v6520_v18 = vld [vmem:[#allocation112_spill] sm:$0xff] }
 0x400   : > { %v4492_v13 = vpop.eup %4491  ;;  %v3430_v10 = vadd.f32 1.0, %v4490_v43  ;;  %v2723_v39 = vpop.f32.mrf.mxu1 }
 0x401   : > { %v4494_v42 = vpop.eup %4493  ;;  %v3552_v4 = vpack.c.bf16 %v4492_v13, %v4488_v2  ;;  %4497 = vpow2.f32 %v3315_v56  ;;  %v2900_v30 = vadd.f32 %v2899_v53, %v2811_v8  ;;  %v2724_v1 = vadd.f32 %v2723_v39, %v2635_v50  ;;  %v6519_v53 = vld [vmem:[#allocation111_spill] sm:$0xff] }
 0x402   : > { %4499 = vrcp.f32 %v3430_v10  ;;  %v3431_v15 = vadd.f32 1.0, %v4494_v42  ;;  %v4496_v29 = vpop.eup %4495  ;;  %v3245_v56 = vsub.f32 0.0, %v3181_v37  ;;  %v6521_v10 = vld [vmem:[#allocation113_spill] sm:$0xff] }
 0x403   : > { %4501 = vpow2.f32 %v3317_v59  ;;  %3584 = vst [vmem:[%s5979_s10 + $0x18] sm:$0xff] %v3552_v4  ;;  %v3178_v19 = vadd.f32 %v5951_v33, %v2900_v30 }
 0x404   : > { %4503 = vrcp.f32 %v3431_v15  ;;  %v3325_v50 = vmul.f32 1.442695, %v3245_v56 }
 0x405   : > { %v3242_v27 = vsub.f32 0.0, %v3178_v19 }
 0x406   : > { %v2812_v23 = vpop.f32.mrf.mxu2  ;;  %v2637_v57 = vpop.f32.mrf.mxu0 }
 0x407   : > { %v4498_v41 = vpop.eup %4497  ;;  %v3319_v32 = vmul.f32 1.442695, %v3242_v27  ;;  %v2813_v3 = vadd.f32 %v2812_v23, %v2724_v1  ;;  %v2901_v6 = vpop.f32.mrf.mxu3  ;;  %v2638_v59 = vadd.f32 %v2637_v57, %v5848_v25 }
 0x408   : > { %v4500_v54 = vpop.eup %4499  ;;  %v3432_v0 = vadd.f32 1.0, %v4498_v41  ;;  %v2726_v47 = vpop.f32.mrf.mxu1 }
 0x409   : > { %v4502_v2 = vpop.eup %4501  ;;  %v3553_v55 = vpack.c.bf16 %v4500_v54, %v4496_v29  ;;  %4505 = vpow2.f32 %v3319_v32  ;;  %v2902_v43 = vadd.f32 %v2901_v6, %v2813_v3  ;;  %2676 = vmatmul.bf16.gmra.mxu0 %v6518_v44  ;;  %v2727_v42 = vadd.f32 %v2726_v47, %v2638_v59 }
 0x40a   : > { %4507 = vrcp.f32 %v3432_v0  ;;  %2765 = vmatmul.bf16.gmra.mxu1 %v6519_v53  ;;  %v3433_v13 = vadd.f32 1.0, %v4502_v2  ;;  %v4504_v4 = vpop.eup %4503  ;;  %v3247_v3 = vsub.f32 0.0, %v3183_v12  ;;  %v6524_v12 = vld [vmem:[#allocation117_spill] sm:$0xff] }
 0x40b   : > { %4509 = vpow2.f32 %v3321_v22  ;;  %3585 = vst [vmem:[%s5979_s10 + $0x20] sm:$0xff] %v3553_v55  ;;  %v3180_v8 = vadd.f32 %v5951_v33, %v2902_v43  ;;  %2854 = vmatmul.bf16.gmra.mxu2 %v6520_v18  ;;  %v3185_v43 = vadd.f32 %v5938_v24, %v5676_v61 }
 0x40c   : > { %2943 = vmatmul.bf16.gmra.mxu3 %v6521_v10  ;;  %4511 = vrcp.f32 %v3433_v13  ;;  %v3329_v55 = vmul.f32 1.442695, %v3247_v3 }
 0x40d   : > { %v3244_v39 = vsub.f32 0.0, %v3180_v8  ;;  %v3249_v61 = vsub.f32 0.0, %v3185_v43 }
 0x40e   : > { %v2815_v30 = vpop.f32.mrf.mxu2  ;;  %v2639_v1 = vpop.f32.mrf.mxu0 }
 0x40f   : > { %v4506_v25 = vpop.eup %4505  ;;  %v3323_v19 = vmul.f32 1.442695, %v3244_v39  ;;  %v2816_v15 = vadd.f32 %v2815_v30, %v2727_v42  ;;  %v2904_v27 = vpop.f32.mrf.mxu3  ;;  %v2640_v32 = vadd.f32 %v2639_v1, %v5850_v49  ;;  %v6522_v30 = vld [vmem:[#allocation115_spill] sm:$0xff] }
 0x410   : > { %v4508_v29 = vpop.eup %4507  ;;  %v3434_v23 = vadd.f32 1.0, %v4506_v25  ;;  %v2728_v41 = vpop.f32.mrf.mxu1  ;;  %v6523_v25 = vld [vmem:[#allocation116_spill] sm:$0xff] }
 0x411   : > { %v4510_v22 = vpop.eup %4509  ;;  %v3554_v9 = vpack.c.bf16 %v4508_v29, %v4504_v4  ;;  %4513 = vpow2.f32 %v3323_v19  ;;  %v2905_v37 = vadd.f32 %v2904_v27, %v2816_v15  ;;  %v2729_v54 = vadd.f32 %v2728_v41, %v2640_v32 }
 0x412   : > { %4515 = vrcp.f32 %v3434_v23  ;;  %v3435_v6 = vadd.f32 1.0, %v4510_v22  ;;  %v4512_v0 = vpop.eup %4511  ;;  %v3333_v29 = vmul.f32 1.442695, %v3249_v61 }
 0x413   : > { %4517 = vpow2.f32 %v3325_v50  ;;  %3586 = vst [vmem:[%s5979_s10 + $0x28] sm:$0xff] %v3554_v9  ;;  %v3182_v34 = vadd.f32 %v5951_v33, %v2905_v37 }
 0x414   : > { %4519 = vrcp.f32 %v3435_v6 }
 0x415   : > { %v3246_v57 = vsub.f32 0.0, %v3182_v34 }
 0x416   : > { %v2817_v47 = vpop.f32.mrf.mxu2  ;;  %v2642_v56 = vpop.f32.mrf.mxu0 }
 0x417   : > { %v4514_v2 = vpop.eup %4513  ;;  %v3327_v59 = vmul.f32 1.442695, %v3246_v57  ;;  %v2818_v44 = vadd.f32 %v2817_v47, %v2729_v54  ;;  %v2906_v49 = vpop.f32.mrf.mxu3  ;;  %v2643_v42 = vadd.f32 %v2642_v56, %v5856_v7  ;;  %v6525_v56 = vld [vmem:[#allocation122_spill] sm:$0xff] }
 0x418   : > { %v4516_v8 = vpop.eup %4515  ;;  %v3436_v53 = vadd.f32 1.0, %v4514_v2  ;;  %v2731_v18 = vpop.f32.mrf.mxu1 }
 0x419   : > { %v4518_v13 = vpop.eup %4517  ;;  %v3555_v10 = vpack.c.bf16 %v4516_v8, %v4512_v0  ;;  %4521 = vpow2.f32 %v3327_v59  ;;  %v2907_v39 = vadd.f32 %v2906_v49, %v2818_v44  ;;  %2681 = vmatmul.bf16.gmra.mxu0 %v5660_v48  ;;  %v2732_v15 = vadd.f32 %v2731_v18, %v2643_v42 }
 0x41a   : > { %4523 = vrcp.f32 %v3436_v53  ;;  %2770 = vmatmul.bf16.gmra.mxu1 %v6522_v30  ;;  %v3437_v50 = vadd.f32 1.0, %v4518_v13  ;;  %v4520_v27 = vpop.eup %4519  ;;  %v3187_v48 = vadd.f32 %v5938_v24, %v5695_v36  ;;  %v3189_v8 = vadd.f32 %v5938_v24, %v6525_v56 }
 0x41b   : > { %4525 = vpow2.f32 %v3329_v55  ;;  %3587 = vst [vmem:[%s5979_s10 + $0x30] sm:$0xff] %v3555_v10  ;;  %v3184_v4 = vadd.f32 %v5951_v33, %v2907_v39  ;;  %2859 = vmatmul.bf16.gmra.mxu2 %v6523_v25 }
 0x41c   : > { %2948 = vmatmul.bf16.gmra.mxu3 %v6524_v12  ;;  %4527 = vrcp.f32 %v3437_v50  ;;  %v3251_v0 = vsub.f32 0.0, %v3187_v48  ;;  %v6526_v50 = vld [vmem:[#allocation118_spill] sm:$0xff]  ;;  %v3253_v12 = vsub.f32 0.0, %v3189_v8 }
 0x41d   : > { %v3248_v19 = vsub.f32 0.0, %v3184_v4 }
 0x41e   : > { %v2820_v1 = vpop.f32.mrf.mxu2  ;;  %v2644_v9 = vpop.f32.mrf.mxu0  ;;  %v3337_v49 = vmul.f32 1.442695, %v3251_v0 }
 0x41f   : > { %v4522_v7 = vpop.eup %4521  ;;  %v3331_v23 = vmul.f32 1.442695, %v3248_v19  ;;  %v2821_v41 = vadd.f32 %v2820_v1, %v2732_v15  ;;  %v2909_v22 = vpop.f32.mrf.mxu3  ;;  %v2645_v54 = vadd.f32 %v2644_v9, %v5858_v14  ;;  %v6527_v15 = vld [vmem:[#allocation119_spill] sm:$0xff]  ;;  %v3191_v9 = vadd.f32 %v5938_v24, %v5721_v17 }
 0x420   : > { %v4524_v37 = vpop.eup %4523  ;;  %v3438_v32 = vadd.f32 1.0, %v4522_v7  ;;  %v2733_v3 = vpop.f32.mrf.mxu1  ;;  %v6529_v7 = vld [vmem:[#allocation121_spill] sm:$0xff] }
 0x421   : > { %v4526_v34 = vpop.eup %4525  ;;  %v3556_v6 = vpack.c.bf16 %v4524_v37, %v4520_v27  ;;  %4529 = vpow2.f32 %v3331_v23  ;;  %v2910_v57 = vadd.f32 %v2909_v22, %v2821_v41  ;;  %v2734_v55 = vadd.f32 %v2733_v3, %v2645_v54  ;;  %v6528_v27 = vld [vmem:[#allocation120_spill] sm:$0xff] }
 0x422   : > { %4531 = vrcp.f32 %v3438_v32  ;;  %v3439_v47 = vadd.f32 1.0, %v4526_v34  ;;  %v4528_v43 = vpop.eup %4527  ;;  %v3341_v22 = vmul.f32 1.442695, %v3253_v12 }
 0x423   : > { %4533 = vpow2.f32 %v3333_v29  ;;  %3588 = vst [vmem:[%s5979_s10 + $0x38] sm:$0xff] %v3556_v6  ;;  %v3186_v36 = vadd.f32 %v5951_v33, %v2910_v57 }
 0x424   : > { %4535 = vrcp.f32 %v3439_v47 }
 0x425   : > { %v3250_v2 = vsub.f32 0.0, %v3186_v36 }
 0x426   : > { %v2822_v59 = vpop.f32.mrf.mxu2  ;;  %v2647_v13 = vpop.f32.mrf.mxu0 }
 0x427   : > { %v4530_v44 = vpop.eup %4529  ;;  %v3335_v53 = vmul.f32 1.442695, %v3250_v2  ;;  %v2823_v18 = vadd.f32 %v2822_v59, %v2734_v55  ;;  %v2911_v14 = vpop.f32.mrf.mxu3  ;;  %v2648_v25 = vadd.f32 %v2647_v13, %v5864_v45  ;;  %v3255_v55 = vsub.f32 0.0, %v3191_v9 }
 0x428   : > { %v4532_v10 = vpop.eup %4531  ;;  %v3440_v39 = vadd.f32 1.0, %v4530_v44  ;;  %v2736_v42 = vpop.f32.mrf.mxu1 }
 0x429   : > { %v4534_v61 = vpop.eup %4533  ;;  %v3557_v4 = vpack.c.bf16 %v4532_v10, %v4528_v43  ;;  %4537 = vpow2.f32 %v3335_v53  ;;  %v2912_v30 = vadd.f32 %v2911_v14, %v2823_v18  ;;  %2686 = vmatmul.bf16.gmra.mxu0 %v6526_v50  ;;  %v2737_v48 = vadd.f32 %v2736_v42, %v2648_v25 }
 0x42a   : > { %4539 = vrcp.f32 %v3440_v39  ;;  %2775 = vmatmul.bf16.gmra.mxu1 %v6527_v15  ;;  %v3441_v1 = vadd.f32 1.0, %v4534_v61  ;;  %v4536_v23 = vpop.eup %4535  ;;  %v3345_v53 = vmul.f32 1.442695, %v3255_v55  ;;  %v3193_v18 = vadd.f32 %v5938_v24, %v5728_v46 }
 0x42b   : > { %4541 = vpow2.f32 %v3337_v49  ;;  %3589 = vst [vmem:[%s5979_s10 + $0x40] sm:$0xff] %v3557_v4  ;;  %v3188_v19 = vadd.f32 %v5951_v33, %v2912_v30  ;;  %2864 = vmatmul.bf16.gmra.mxu2 %v6528_v27  ;;  %v6531_v27 = vld [vmem:[#allocation124_spill] sm:$0xff] }
 0x42c   : > { %2953 = vmatmul.bf16.gmra.mxu3 %v6529_v7  ;;  %4543 = vrcp.f32 %v3441_v1  ;;  %v3257_v46 = vsub.f32 0.0, %v3193_v18 }
 0x42d   : > { %v3252_v29 = vsub.f32 0.0, %v3188_v19  ;;  %v6530_v19 = vld [vmem:[#allocation123_spill] sm:$0xff] }
 0x42e   : > { %v2825_v41 = vpop.f32.mrf.mxu2  ;;  %v2649_v34 = vpop.f32.mrf.mxu0 }
 0x42f   : > { %v4538_v45 = vpop.eup %4537  ;;  %v3339_v37 = vmul.f32 1.442695, %v3252_v29  ;;  %v2826_v32 = vadd.f32 %v2825_v41, %v2737_v48  ;;  %v2914_v3 = vpop.f32.mrf.mxu3  ;;  %v2650_v2 = vadd.f32 %v2649_v34, %v5866_v21 }
 0x430   : > { %v4540_v6 = vpop.eup %4539  ;;  %v3442_v57 = vadd.f32 1.0, %v4538_v45  ;;  %v2738_v54 = vpop.f32.mrf.mxu1 }
 0x431   : > { %v4542_v0 = vpop.eup %4541  ;;  %v3558_v36 = vpack.c.bf16 %v4540_v6, %v4536_v23  ;;  %4545 = vpow2.f32 %v3339_v37  ;;  %v2915_v47 = vadd.f32 %v2914_v3, %v2826_v32  ;;  %v2739_v44 = vadd.f32 %v2738_v54, %v2650_v2 }
 0x432   : > { %4547 = vrcp.f32 %v3442_v57  ;;  %v3443_v43 = vadd.f32 1.0, %v4542_v0  ;;  %v4544_v49 = vpop.eup %4543  ;;  %v3349_v23 = vmul.f32 1.442695, %v3257_v46 }
 0x433   : > { %4549 = vpow2.f32 %v3341_v22  ;;  %3590 = vst [vmem:[%s5979_s10 + $0x48] sm:$0xff] %v3558_v36  ;;  %v3190_v17 = vadd.f32 %v5951_v33, %v2915_v47 }
 0x434   : > { %4551 = vrcp.f32 %v3443_v43 }
 0x435   : > { %v3254_v59 = vsub.f32 0.0, %v3190_v17 }
 0x436   : > { %v2827_v56 = vpop.f32.mrf.mxu2  ;;  %v2652_v10 = vpop.f32.mrf.mxu0 }
 0x437   : > { %v4546_v8 = vpop.eup %4545  ;;  %v3343_v14 = vmul.f32 1.442695, %v3254_v59  ;;  %v2828_v13 = vadd.f32 %v2827_v56, %v2739_v44  ;;  %v2916_v21 = vpop.f32.mrf.mxu3  ;;  %v2653_v50 = vadd.f32 %v2652_v10, %v5872_v62  ;;  %v3197_v59 = vadd.f32 %v5938_v24, %v5738_v16 }
 0x438   : > { %v4548_v39 = vpop.eup %4547  ;;  %v3444_v42 = vadd.f32 1.0, %v4546_v8  ;;  %v2741_v61 = vpop.f32.mrf.mxu1 }
 0x439   : > { %v4550_v4 = vpop.eup %4549  ;;  %v3559_v30 = vpack.c.bf16 %v4548_v39, %v4544_v49  ;;  %4553 = vpow2.f32 %v3343_v14  ;;  %v2917_v25 = vadd.f32 %v2916_v21, %v2828_v13  ;;  %2691 = vmatmul.bf16.gmra.mxu0 %v5712_v20  ;;  %v2742_v7 = vadd.f32 %v2741_v61, %v2653_v50 }
 0x43a   : > { %4555 = vrcp.f32 %v3444_v42  ;;  %2780 = vmatmul.bf16.gmra.mxu1 %v5714_v5  ;;  %v3445_v15 = vadd.f32 1.0, %v4550_v4  ;;  %v4552_v29 = vpop.eup %4551  ;;  %v3195_v20 = vadd.f32 %v5938_v24, %v5731_v28  ;;  %v3261_v39 = vsub.f32 0.0, %v3197_v59 }
 0x43b   : > { %4557 = vpow2.f32 %v3345_v53  ;;  %3591 = vst [vmem:[%s5979_s10 + $0x50] sm:$0xff] %v3559_v30  ;;  %v3192_v12 = vadd.f32 %v5951_v33, %v2917_v25  ;;  %2869 = vmatmul.bf16.gmra.mxu2 %v6530_v19 }
 0x43c   : > { %2958 = vmatmul.bf16.gmra.mxu3 %v6531_v27  ;;  %4559 = vrcp.f32 %v3445_v15  ;;  %v3259_v54 = vsub.f32 0.0, %v3195_v20  ;;  %v3357_v46 = vmul.f32 1.442695, %v3261_v39 }
 0x43d   : > { %v3256_v1 = vsub.f32 0.0, %v3192_v12  ;;  %v3199_v12 = vadd.f32 %v5938_v24, %v5741_v52 }
 0x43e   : > { %v2830_v48 = vpop.f32.mrf.mxu2  ;;  %v2654_v9 = vpop.f32.mrf.mxu0  ;;  %v3353_v43 = vmul.f32 1.442695, %v3259_v54 }
 0x43f   : > { %v4554_v62 = vpop.eup %4553  ;;  %v3347_v41 = vmul.f32 1.442695, %v3256_v1  ;;  %v2831_v45 = vadd.f32 %v2830_v48, %v2742_v7  ;;  %v2919_v22 = vpop.f32.mrf.mxu3  ;;  %v2655_v57 = vadd.f32 %v2654_v9, %v5874_v60 }
 0x440   : > { %v4556_v5 = vpop.eup %4555  ;;  %v3446_v37 = vadd.f32 1.0, %v4554_v62  ;;  %v2743_v32 = vpop.f32.mrf.mxu1 }
 0x441   : > { %v4558_v3 = vpop.eup %4557  ;;  %v3560_v34 = vpack.c.bf16 %v4556_v5, %v4552_v29  ;;  %4561 = vpow2.f32 %v3347_v41  ;;  %v2920_v6 = vadd.f32 %v2919_v22, %v2831_v45  ;;  %v2744_v47 = vadd.f32 %v2743_v32, %v2655_v57 }
 0x442   : > { %4563 = vrcp.f32 %v3446_v37  ;;  %v3447_v0 = vadd.f32 1.0, %v4558_v3  ;;  %v4560_v2 = vpop.eup %4559  ;;  %v3263_v41 = vsub.f32 0.0, %v3199_v12 }
 0x443   : > { %4565 = vpow2.f32 %v3349_v23  ;;  %3592 = vst [vmem:[%s5979_s10 + $0x58] sm:$0xff] %v3560_v34  ;;  %v3194_v28 = vadd.f32 %v5951_v33, %v2920_v6  ;;  %v3201_v34 = vadd.f32 %v5938_v24, %v5748_v58 }
 0x444   : > { %4567 = vrcp.f32 %v3447_v0  ;;  %v3361_v3 = vmul.f32 1.442695, %v3263_v41 }
 0x445   : > { %v3258_v36 = vsub.f32 0.0, %v3194_v28 }
 0x446   : > { %v2832_v55 = vpop.f32.mrf.mxu2  ;;  %v2657_v56 = vpop.f32.mrf.mxu0 }
 0x447   : > { %v4562_v17 = vpop.eup %4561  ;;  %v3351_v44 = vmul.f32 1.442695, %v3258_v36  ;;  %v2833_v49 = vadd.f32 %v2832_v55, %v2744_v47  ;;  %v2921_v60 = vpop.f32.mrf.mxu3  ;;  %v2658_v10 = vadd.f32 %v2657_v56, %v5880_v35 }
 0x448   : > { %v4564_v8 = vpop.eup %4563  ;;  %v3448_v53 = vadd.f32 1.0, %v4562_v17  ;;  %v2746_v18 = vpop.f32.mrf.mxu1 }
 0x449   : > { %v4566_v14 = vpop.eup %4565  ;;  %v3561_v13 = vpack.c.bf16 %v4564_v8, %v4560_v2  ;;  %4569 = vpow2.f32 %v3351_v44  ;;  %v2922_v21 = vadd.f32 %v2921_v60, %v2833_v49  ;;  %v2747_v4 = vadd.f32 %v2746_v18, %v2658_v10 }
 0x44a   : > { %4571 = vrcp.f32 %v3448_v53  ;;  %v3449_v42 = vadd.f32 1.0, %v4566_v14  ;;  %v4568_v30 = vpop.eup %4567  ;;  %v3203_v18 = vadd.f32 %v5938_v24, %v5751_v40 }
 0x44b   : > { %4573 = vpow2.f32 %v3353_v43  ;;  %3593 = vst [vmem:[%s5979_s10 + $0x60] sm:$0xff] %v3561_v13  ;;  %v3196_v16 = vadd.f32 %v5951_v33, %v2922_v21  ;;  %v3265_v43 = vsub.f32 0.0, %v3201_v34 }
 0x44c   : > { %4575 = vrcp.f32 %v3449_v42 }
 0x44d   : > { %v3260_v61 = vsub.f32 0.0, %v3196_v16  ;;  %v3365_v53 = vmul.f32 1.442695, %v3265_v43 }
 0x44e   : > { %v2835_v25 = vpop.f32.mrf.mxu2  ;;  %v2659_v27 = vpop.f32.mrf.mxu0 }
 0x44f   : > { %v4570_v50 = vpop.eup %4569  ;;  %v3355_v19 = vmul.f32 1.442695, %v3260_v61  ;;  %v2836_v15 = vadd.f32 %v2835_v25, %v2747_v4  ;;  %v2924_v35 = vpop.f32.mrf.mxu3  ;;  %v2660_v20 = vadd.f32 %v2659_v27, %v5882_v11  ;;  %v3267_v25 = vsub.f32 0.0, %v3203_v18 }
 0x450   : > { %v4572_v1 = vpop.eup %4571  ;;  %v3450_v7 = vadd.f32 1.0, %v4570_v50  ;;  %v2748_v29 = vpop.f32.mrf.mxu1 }
 0x451   : > { %v4574_v48 = vpop.eup %4573  ;;  %v3562_v62 = vpack.c.bf16 %v4572_v1, %v4568_v30  ;;  %4577 = vpow2.f32 %v3355_v19  ;;  %v2925_v23 = vadd.f32 %v2924_v35, %v2836_v15  ;;  %v2749_v9 = vadd.f32 %v2748_v29, %v2660_v20 }
 0x452   : > { %4579 = vrcp.f32 %v3450_v7  ;;  %v3451_v45 = vadd.f32 1.0, %v4574_v48  ;;  %v4576_v5 = vpop.eup %4575  ;;  %v3369_v27 = vmul.f32 1.442695, %v3267_v25  ;;  %v3205_v1 = vadd.f32 %v5938_v24, %v5758_v31 }
 0x453   : > { %4581 = vpow2.f32 %v3357_v46  ;;  %3594 = vst [vmem:[%s5979_s10 + $0x68] sm:$0xff] %v3562_v62  ;;  %v3198_v52 = vadd.f32 %v5951_v33, %v2925_v23 }
 0x454   : > { %4583 = vrcp.f32 %v3451_v45 }
 0x455   : > { %v3262_v22 = vsub.f32 0.0, %v3198_v52 }
 0x456   : > { %v2837_v37 = vpop.f32.mrf.mxu2  ;;  %v2662_v54 = vpop.f32.mrf.mxu0 }
 0x457   : > { %v4578_v32 = vpop.eup %4577  ;;  %v3359_v6 = vmul.f32 1.442695, %v3262_v22  ;;  %v2838_v57 = vadd.f32 %v2837_v37, %v2749_v9  ;;  %v2926_v11 = vpop.f32.mrf.mxu3  ;;  %v2663_v17 = vadd.f32 %v2662_v54, %v5888_v51  ;;  %v3269_v9 = vsub.f32 0.0, %v3205_v1 }
 0x458   : > { %v4580_v28 = vpop.eup %4579  ;;  %v3452_v0 = vadd.f32 1.0, %v4578_v32  ;;  %v2751_v36 = vpop.f32.mrf.mxu1 }
 0x459   : > { %v4582_v47 = vpop.eup %4581  ;;  %v3563_v2 = vpack.c.bf16 %v4580_v28, %v4576_v5  ;;  %4585 = vpow2.f32 %v3359_v6  ;;  %v2927_v55 = vadd.f32 %v2926_v11, %v2838_v57  ;;  %v2752_v49 = vadd.f32 %v2751_v36, %v2663_v17 }
 0x45a   : > { %4587 = vrcp.f32 %v3452_v0  ;;  %v3453_v59 = vadd.f32 1.0, %v4582_v47  ;;  %v4584_v60 = vpop.eup %4583  ;;  %v3373_v57 = vmul.f32 1.442695, %v3269_v9  ;;  %v3207_v11 = vadd.f32 %v5938_v24, %v5761_v26 }
 0x45b   : > { %4589 = vpow2.f32 %v3361_v3  ;;  %3595 = vst [vmem:[%s5979_s10 + $0x70] sm:$0xff] %v3563_v2  ;;  %v3200_v58 = vadd.f32 %v5951_v33, %v2927_v55 }
 0x45c   : > { %4591 = vrcp.f32 %v3453_v59 }
 0x45d   : > { %v3264_v44 = vsub.f32 0.0, %v3200_v58  ;;  %v6532_v58 = vld [vmem:[#allocation16_spill] sm:$0xff] }
 0x45e   : > { %v2840_v56 = vpop.f32.mrf.mxu2  ;;  %v2664_v21 = vpop.f32.mrf.mxu0 }
 0x45f   : > { %v4586_v8 = vpop.eup %4585  ;;  %v3363_v14 = vmul.f32 1.442695, %v3264_v44  ;;  %v2841_v13 = vadd.f32 %v2840_v56, %v2752_v49  ;;  %v2929_v51 = vpop.f32.mrf.mxu3  ;;  %v2665_v30 = vadd.f32 %v2664_v21, %v5890_v63  ;;  %v3271_v44 = vsub.f32 0.0, %v3207_v11 }
 0x460   : > { %v4588_v10 = vpop.eup %4587  ;;  %v3454_v39 = vadd.f32 1.0, %v4586_v8  ;;  %v2753_v16 = vpop.f32.mrf.mxu1 }
 0x461   : > { %v4590_v42 = vpop.eup %4589  ;;  %v3564_v61 = vpack.c.bf16 %v4588_v10, %v4584_v60  ;;  %4593 = vpow2.f32 %v3363_v14  ;;  %v2930_v4 = vadd.f32 %v2929_v51, %v2841_v13  ;;  %v2754_v12 = vadd.f32 %v2753_v16, %v2665_v30  ;;  %v6533_v13 = vld [vmem:[#allocation125_spill] sm:$0xff] }
 0x462   : > { %4595 = vrcp.f32 %v3454_v39  ;;  %v3455_v50 = vadd.f32 1.0, %v4590_v42  ;;  %v4592_v19 = vpop.eup %4591  ;;  %v3377_v14 = vmul.f32 1.442695, %v3271_v44  ;;  %v3209_v51 = vadd.f32 %v5938_v24, %v6533_v13 }
 0x463   : > { %4597 = vpow2.f32 %v3365_v53  ;;  %3596 = vst [vmem:[%s5979_s10 + $0x78] sm:$0xff] %v3564_v61  ;;  %v3202_v40 = vadd.f32 %v5951_v33, %v2930_v4 }
 0x464   : > { %4599 = vrcp.f32 %v3455_v50  ;;  %v6534_v50 = vld [vmem:[#allocation87_spill] sm:$0xff] }
 0x465   : > { %v3266_v46 = vsub.f32 0.0, %v3202_v40 }
 0x466   : > { %v2842_v15 = vpop.f32.mrf.mxu2  ;;  %v2667_v48 = vpop.f32.mrf.mxu0 }
 0x467   : > { %v4594_v35 = vpop.eup %4593  ;;  %v3367_v7 = vmul.f32 1.442695, %v3266_v46  ;;  %v2843_v29 = vadd.f32 %v2842_v15, %v2754_v12  ;;  %v2931_v63 = vpop.f32.mrf.mxu3  ;;  %v2668_v22 = vadd.f32 %v2667_v48, %v5896_v38  ;;  %v3273_v12 = vsub.f32 0.0, %v3209_v51  ;;  %v6535_v48 = vld [vmem:[#allocation126_spill] sm:$0xff] }
 0x468   : > { %v4596_v62 = vpop.eup %4595  ;;  %v3456_v23 = vadd.f32 1.0, %v4594_v35  ;;  %v2756_v20 = vpop.f32.mrf.mxu1 }
 0x469   : > { %v4598_v41 = vpop.eup %4597  ;;  %v3565_v52 = vpack.c.bf16 %v4596_v62, %v4592_v19  ;;  %4601 = vpow2.f32 %v3367_v7  ;;  %v2932_v45 = vadd.f32 %v2931_v63, %v2843_v29  ;;  %v2757_v32 = vadd.f32 %v2756_v20, %v2668_v22 }
 0x46a   : > { %4603 = vrcp.f32 %v3456_v23  ;;  %v3457_v5 = vadd.f32 1.0, %v4598_v41  ;;  %v4600_v3 = vpop.eup %4599  ;;  %v3381_v63 = vmul.f32 1.442695, %v3273_v12  ;;  %v3211_v62 = vadd.f32 %v5938_v24, %v6535_v48 }
 0x46b   : > { %4605 = vpow2.f32 %v3369_v27  ;;  %3597 = vst [vmem:[%s5979_s10 + $0x80] sm:$0xff] %v3565_v52  ;;  %v3204_v31 = vadd.f32 %v5951_v33, %v2932_v45 }
 0x46c   : > { %4607 = vrcp.f32 %v3457_v5 }
 0x46d   : > { %v3268_v37 = vsub.f32 0.0, %v3204_v31 }
 0x46e   : > { %v2845_v34 = vpop.f32.mrf.mxu2  ;;  %v2669_v0 = vpop.f32.mrf.mxu0 }
 0x46f   : > { %v4602_v6 = vpop.eup %4601  ;;  %v3371_v54 = vmul.f32 1.442695, %v3268_v37  ;;  %v2846_v28 = vadd.f32 %v2845_v34, %v2757_v32  ;;  %v2934_v38 = vpop.f32.mrf.mxu3  ;;  %v2670_v59 = vadd.f32 %v2669_v0, %v6532_v58  ;;  %v6536_v32 = vld [vmem:[#allocation17_spill] sm:$0xff]  ;;  %v3275_v34 = vsub.f32 0.0, %v3211_v62 }
 0x470   : > { %v4604_v36 = vpop.eup %4603  ;;  %v3458_v47 = vadd.f32 1.0, %v4602_v6  ;;  %v2758_v2 = vpop.f32.mrf.mxu1 }
 0x471   : > { %v4606_v55 = vpop.eup %4605  ;;  %v3566_v17 = vpack.c.bf16 %v4604_v36, %v4600_v3  ;;  %4609 = vpow2.f32 %v3371_v54  ;;  %v2935_v43 = vadd.f32 %v2934_v38, %v2846_v28  ;;  %v2759_v56 = vadd.f32 %v2758_v2, %v2670_v59 }
 0x472   : > { %4611 = vrcp.f32 %v3458_v47  ;;  %v3459_v49 = vadd.f32 1.0, %v4606_v55  ;;  %v4608_v8 = vpop.eup %4607  ;;  %v3385_v36 = vmul.f32 1.442695, %v3275_v34  ;;  %v6537_v47 = vld [vmem:[#allocation10_spill] sm:$0xff] }
 0x473   : > { %4613 = vpow2.f32 %v3373_v57  ;;  %3598 = vst [vmem:[%s5979_s10 + $0x88] sm:$0xff] %v3566_v17  ;;  %v3206_v26 = vadd.f32 %v5951_v33, %v2935_v43  ;;  %v3213_v2 = vadd.f32 %v5938_v24, %v6537_v47 }
 0x474   : > { %4615 = vrcp.f32 %v3459_v49 }
 0x475   : > { %v3270_v60 = vsub.f32 0.0, %v3206_v26 }
 0x476   : > { %v2847_v53 = vpop.f32.mrf.mxu2  ;;  %v2672_v16 = vpop.f32.mrf.mxu0 }
 0x477   : > { %v4610_v18 = vpop.eup %4609  ;;  %v3375_v21 = vmul.f32 1.442695, %v3270_v60  ;;  %v2848_v10 = vadd.f32 %v2847_v53, %v2759_v56  ;;  %v2936_v39 = vpop.f32.mrf.mxu3  ;;  %v2673_v46 = vadd.f32 %v2672_v16, %v6534_v50 }
 0x478   : > { %v4612_v42 = vpop.eup %4611  ;;  %v3460_v61 = vadd.f32 1.0, %v4610_v18  ;;  %v2761_v4 = vpop.f32.mrf.mxu1  ;;  %v3277_v18 = vsub.f32 0.0, %v3213_v2 }
 0x479   : > { %v4614_v30 = vpop.eup %4613  ;;  %v3567_v25 = vpack.c.bf16 %v4612_v42, %v4608_v8  ;;  %4617 = vpow2.f32 %v3375_v21  ;;  %v2937_v40 = vadd.f32 %v2936_v39, %v2848_v10  ;;  %v2762_v27 = vadd.f32 %v2761_v4, %v2673_v46  ;;  %v6538_v8 = vld [vmem:[#allocation18_spill] sm:$0xff] }
 0x47a   : > { %4619 = vrcp.f32 %v3460_v61  ;;  %v3461_v15 = vadd.f32 1.0, %v4614_v30  ;;  %v4616_v1 = vpop.eup %4615  ;;  %v3389_v42 = vmul.f32 1.442695, %v3277_v18  ;;  %v6539_v61 = vld [vmem:[#allocation11_spill] sm:$0xff] }
 0x47b   : > { %4621 = vpow2.f32 %v3377_v14  ;;  %3599 = vst [vmem:[%s5979_s10 + $0x90] sm:$0xff] %v3567_v25  ;;  %v3208_v19 = vadd.f32 %v5951_v33, %v2937_v40  ;;  %v3215_v4 = vadd.f32 %v5938_v24, %v6539_v61 }
 0x47c   : > { %4623 = vrcp.f32 %v3461_v15 }
 0x47d   : > { %v3272_v35 = vsub.f32 0.0, %v3208_v19 }
 0x47e   : > { %v2850_v7 = vpop.f32.mrf.mxu2  ;;  %v2674_v52 = vpop.f32.mrf.mxu0 }
 0x47f   : > { %v4618_v29 = vpop.eup %4617  ;;  %v3379_v23 = vmul.f32 1.442695, %v3272_v35  ;;  %v2851_v20 = vadd.f32 %v2850_v7, %v2762_v27  ;;  %v2939_v41 = vpop.f32.mrf.mxu3  ;;  %v2675_v3 = vadd.f32 %v2674_v52, %v6536_v32 }
 0x480   : > { %v4620_v45 = vpop.eup %4619  ;;  %v3462_v22 = vadd.f32 1.0, %v4618_v29  ;;  %v2763_v9 = vpop.f32.mrf.mxu1  ;;  %v3279_v29 = vsub.f32 0.0, %v3215_v4 }
 0x481   : > { %v4622_v31 = vpop.eup %4621  ;;  %v3568_v5 = vpack.c.bf16 %v4620_v45, %v4616_v1  ;;  %4625 = vpow2.f32 %v3379_v23  ;;  %v2940_v37 = vadd.f32 %v2939_v41, %v2851_v20  ;;  %v2764_v54 = vadd.f32 %v2763_v9, %v2675_v3  ;;  %v6540_v1 = vld [vmem:[#allocation19_spill] sm:$0xff] }
 0x482   : > { %4627 = vrcp.f32 %v3462_v22  ;;  %v3463_v57 = vadd.f32 1.0, %v4622_v31  ;;  %v4624_v28 = vpop.eup %4623  ;;  %v3393_v45 = vmul.f32 1.442695, %v3279_v29  ;;  %v6541_v22 = vld [vmem:[#allocation12_spill] sm:$0xff] }
 0x483   : > { %4629 = vpow2.f32 %v3381_v63  ;;  %3600 = vst [vmem:[%s5979_s10 + $0x98] sm:$0xff] %v3568_v5  ;;  %v3210_v6 = vadd.f32 %v5951_v33, %v2940_v37  ;;  %v3217_v9 = vadd.f32 %v5938_v24, %v6541_v22 }
 0x484   : > { %4631 = vrcp.f32 %v3463_v57 }
 0x485   : > { %v3274_v11 = vsub.f32 0.0, %v3210_v6 }
 0x486   : > { %v2852_v38 = vpop.f32.mrf.mxu2  ;;  %v2677_v58 = vpop.f32.mrf.mxu0 }
 0x487   : > { %v4626_v0 = vpop.eup %4625  ;;  %v3383_v55 = vmul.f32 1.442695, %v3274_v11  ;;  %v2853_v17 = vadd.f32 %v2852_v38, %v2764_v54  ;;  %v2941_v43 = vpop.f32.mrf.mxu3  ;;  %v2678_v53 = vadd.f32 %v2677_v58, %v6538_v8 }
 0x488   : > { %v4628_v59 = vpop.eup %4627  ;;  %v3464_v44 = vadd.f32 1.0, %v4626_v0  ;;  %v2766_v26 = vpop.f32.mrf.mxu1  ;;  %v3281_v0 = vsub.f32 0.0, %v3217_v9 }
 0x489   : > { %v4630_v49 = vpop.eup %4629  ;;  %v3569_v60 = vpack.c.bf16 %v4628_v59, %v4624_v28  ;;  %4633 = vpow2.f32 %v3383_v55  ;;  %v2942_v56 = vadd.f32 %v2941_v43, %v2853_v17  ;;  %v2767_v21 = vadd.f32 %v2766_v26, %v2678_v53  ;;  %v6542_v28 = vld [vmem:[#allocation20_spill] sm:$0xff] }
 0x48a   : > { %4635 = vrcp.f32 %v3464_v44  ;;  %v3465_v13 = vadd.f32 1.0, %v4630_v49  ;;  %v4632_v10 = vpop.eup %4631  ;;  %v3397_v59 = vmul.f32 1.442695, %v3281_v0  ;;  %v6543_v44 = vld [vmem:[#allocation81_spill] sm:$0xff] }
 0x48b   : > { %4637 = vpow2.f32 %v3385_v36  ;;  %3601 = vst [vmem:[%s5979_s10 + $0xa0] sm:$0xff] %v3569_v60  ;;  %v3212_v14 = vadd.f32 %v5951_v33, %v2942_v56  ;;  %v3219_v26 = vadd.f32 %v5938_v24, %v6543_v44 }
 0x48c   : > { %4639 = vrcp.f32 %v3465_v13 }
 0x48d   : > { %v3276_v51 = vsub.f32 0.0, %v3212_v14 }
 0x48e   : > { %v2855_v39 = vpop.f32.mrf.mxu2  ;;  %v2679_v50 = vpop.f32.mrf.mxu0 }
 0x48f   : > { %v4634_v16 = vpop.eup %4633  ;;  %v3387_v30 = vmul.f32 1.442695, %v3276_v51  ;;  %v2856_v25 = vadd.f32 %v2855_v39, %v2767_v21  ;;  %v2944_v40 = vpop.f32.mrf.mxu3  ;;  %v2680_v7 = vadd.f32 %v2679_v50, %v6540_v1 }
 0x490   : > { %v4636_v46 = vpop.eup %4635  ;;  %v3466_v12 = vadd.f32 1.0, %v4634_v16  ;;  %v2768_v19 = vpop.f32.mrf.mxu1  ;;  %v3283_v16 = vsub.f32 0.0, %v3219_v26 }
 0x491   : > { %v4638_v15 = vpop.eup %4637  ;;  %v3570_v35 = vpack.c.bf16 %v4636_v46, %v4632_v10  ;;  %4641 = vpow2.f32 %v3387_v30  ;;  %v2945_v27 = vadd.f32 %v2944_v40, %v2856_v25  ;;  %v2769_v23 = vadd.f32 %v2768_v19, %v2680_v7  ;;  %v6544_v10 = vld [vmem:[#allocation92_spill] sm:$0xff] }
 0x492   : > { %4643 = vrcp.f32 %v3466_v12  ;;  %v3467_v48 = vadd.f32 1.0, %v4638_v15  ;;  %v4640_v20 = vpop.eup %4639  ;;  %v3401_v46 = vmul.f32 1.442695, %v3283_v16  ;;  %v6545_v12 = vld [vmem:[#allocation82_spill] sm:$0xff] }
 0x493   : > { %4645 = vpow2.f32 %v3389_v42  ;;  %3602 = vst [vmem:[%s5979_s10 + $0xa8] sm:$0xff] %v3570_v35  ;;  %v3214_v63 = vadd.f32 %v5951_v33, %v2945_v27  ;;  %v3221_v19 = vadd.f32 %v5938_v24, %v6545_v12 }
 0x494   : > { %4647 = vrcp.f32 %v3467_v48 }
 0x495   : > { %v3278_v62 = vsub.f32 0.0, %v3214_v63 }
 0x496   : > { %v2857_v41 = vpop.f32.mrf.mxu2  ;;  %v2682_v32 = vpop.f32.mrf.mxu0 }
 0x497   : > { %v4642_v52 = vpop.eup %4641  ;;  %v3391_v31 = vmul.f32 1.442695, %v3278_v62  ;;  %v2858_v5 = vadd.f32 %v2857_v41, %v2769_v23  ;;  %v2946_v37 = vpop.f32.mrf.mxu3  ;;  %v2683_v38 = vadd.f32 %v2682_v32, %v6542_v28 }
 0x498   : > { %v4644_v3 = vpop.eup %4643  ;;  %v3468_v34 = vadd.f32 1.0, %v4642_v52  ;;  %v2771_v6 = vpop.f32.mrf.mxu1  ;;  %v3285_v52 = vsub.f32 0.0, %v3221_v19 }
 0x499   : > { %v4646_v57 = vpop.eup %4645  ;;  %v3571_v11 = vpack.c.bf16 %v4644_v3, %v4640_v20  ;;  %4649 = vpow2.f32 %v3391_v31  ;;  %v2947_v54 = vadd.f32 %v2946_v37, %v2858_v5  ;;  %v2772_v55 = vadd.f32 %v2771_v6, %v2683_v38  ;;  %v6546_v20 = vld [vmem:[#allocation93_spill] sm:$0xff] }
 0x49a   : > { %4651 = vrcp.f32 %v3468_v34  ;;  %v3469_v47 = vadd.f32 1.0, %v4646_v57  ;;  %v4648_v17 = vpop.eup %4647  ;;  %v3405_v3 = vmul.f32 1.442695, %v3285_v52  ;;  %v6547_v34 = vld [vmem:[#allocation13_spill] sm:$0xff] }
 0x49b   : > { %4653 = vpow2.f32 %v3393_v45  ;;  %3603 = vst [vmem:[%s5979_s10 + $0xb0] sm:$0xff] %v3571_v11  ;;  %v3216_v36 = vadd.f32 %v5951_v33, %v2947_v54  ;;  %v3223_v6 = vadd.f32 %v5938_v24, %v6547_v34 }
 0x49c   : > { %4655 = vrcp.f32 %v3469_v47 }
 0x49d   : > { %v3280_v2 = vsub.f32 0.0, %v3216_v36 }
 0x49e   : > { %v2860_v43 = vpop.f32.mrf.mxu2  ;;  %v2684_v8 = vpop.f32.mrf.mxu0 }
 0x49f   : > { %v4650_v58 = vpop.eup %4649  ;;  %v3395_v49 = vmul.f32 1.442695, %v3280_v2  ;;  %v2861_v60 = vadd.f32 %v2860_v43, %v2772_v55  ;;  %v2949_v56 = vpop.f32.mrf.mxu3  ;;  %v2685_v39 = vadd.f32 %v2684_v8, %v6544_v10 }
 0x4a0   : > { %v4652_v53 = vpop.eup %4651  ;;  %v3470_v18 = vadd.f32 1.0, %v4650_v58  ;;  %v2773_v14 = vpop.f32.mrf.mxu1  ;;  %v3287_v58 = vsub.f32 0.0, %v3223_v6 }
 0x4a1   : > { %v4654_v13 = vpop.eup %4653  ;;  %v3572_v51 = vpack.c.bf16 %v4652_v53, %v4648_v17  ;;  %4657 = vpow2.f32 %v3395_v49  ;;  %v2950_v21 = vadd.f32 %v2949_v56, %v2861_v60  ;;  %v2774_v30 = vadd.f32 %v2773_v14, %v2685_v39  ;;  %v6548_v17 = vld [vmem:[#allocation21_spill] sm:$0xff] }
 0x4a2   : > { %4659 = vrcp.f32 %v3470_v18  ;;  %v3471_v61 = vadd.f32 1.0, %v4654_v13  ;;  %v4656_v25 = vpop.eup %4655  ;;  %v3409_v53 = vmul.f32 1.442695, %v3287_v58  ;;  %v6549_v18 = vld [vmem:[#allocation14_spill] sm:$0xff] }
 0x4a3   : > { %4661 = vpow2.f32 %v3397_v59  ;;  %3604 = vst [vmem:[%s5979_s10 + $0xb8] sm:$0xff] %v3572_v51  ;;  %v3218_v42 = vadd.f32 %v5951_v33, %v2950_v21  ;;  %v3225_v14 = vadd.f32 %v5938_v24, %v6549_v18 }
 0x4a4   : > { %4663 = vrcp.f32 %v3471_v61 }
 0x4a5   : > { %v3282_v4 = vsub.f32 0.0, %v3218_v42 }
 0x4a6   : > { %v2862_v40 = vpop.f32.mrf.mxu2  ;;  %v2687_v1 = vpop.f32.mrf.mxu0 }
 0x4a7   : > { %v4658_v50 = vpop.eup %4657  ;;  %v3399_v15 = vmul.f32 1.442695, %v3282_v4  ;;  %v2863_v35 = vadd.f32 %v2862_v40, %v2774_v30  ;;  %v2951_v27 = vpop.f32.mrf.mxu3  ;;  %v2688_v41 = vadd.f32 %v2687_v1, %v6546_v20  ;;  %v6550_v30 = vld [vmem:[#allocation22_spill] sm:$0xff]  ;;  %v6551_v20 = vld [vmem:[#allocation15_spill] sm:$0xff] }
 0x4a8   : > { %v4660_v7 = vpop.eup %4659  ;;  %v3472_v29 = vadd.f32 1.0, %v4658_v50  ;;  %v2776_v63 = vpop.f32.mrf.mxu1  ;;  %v3289_v50 = vsub.f32 0.0, %v3225_v14 }
 0x4a9   : > { %v4662_v48 = vpop.eup %4661  ;;  %v3573_v62 = vpack.c.bf16 %v4660_v7, %v4656_v25  ;;  %4665 = vpow2.f32 %v3399_v15  ;;  %v2952_v23 = vadd.f32 %v2951_v27, %v2863_v35  ;;  %v2777_v31 = vadd.f32 %v2776_v63, %v2688_v41 }
 0x4aa   : > { %4667 = vrcp.f32 %v3472_v29  ;;  %v3473_v22 = vadd.f32 1.0, %v4662_v48  ;;  %v4664_v5 = vpop.eup %4663  ;;  %v3413_v7 = vmul.f32 1.442695, %v3289_v50  ;;  %v3227_v41 = vadd.f32 %v5938_v24, %v6551_v20 }
 0x4ab   : > { %4669 = vpow2.f32 %v3401_v46  ;;  %3605 = vst [vmem:[%s5979_s10 + $0xc0] sm:$0xff] %v3573_v62  ;;  %v3220_v45 = vadd.f32 %v5951_v33, %v2952_v23 }
 0x4ac   : > { %4671 = vrcp.f32 %v3473_v22 }
 0x4ad   : > { %v3284_v9 = vsub.f32 0.0, %v3220_v45 }
 0x4ae   : > { %v2865_v37 = vpop.f32.mrf.mxu2  ;;  %v2689_v28 = vpop.f32.mrf.mxu0 }
 0x4af   : > { %v4666_v32 = vpop.eup %4665  ;;  %v3403_v57 = vmul.f32 1.442695, %v3284_v9  ;;  %v2866_v11 = vadd.f32 %v2865_v37, %v2777_v31  ;;  %v2954_v54 = vpop.f32.mrf.mxu3  ;;  %v2690_v43 = vadd.f32 %v2689_v28, %v6548_v17  ;;  %v6552_v31 = vld [vmem:[#allocation23_spill] sm:$0xff] }
 0x4b0   : > { %v4668_v38 = vpop.eup %4667  ;;  %v3474_v0 = vadd.f32 1.0, %v4666_v32  ;;  %v2778_v36 = vpop.f32.mrf.mxu1 }
 0x4b1   : > { %v4670_v47 = vpop.eup %4669  ;;  %v3574_v2 = vpack.c.bf16 %v4668_v38, %v4664_v5  ;;  %4673 = vpow2.f32 %v3403_v57  ;;  %v2955_v55 = vadd.f32 %v2954_v54, %v2866_v11  ;;  %v2779_v49 = vadd.f32 %v2778_v36, %v2690_v43 }
 0x4b2   : > { %4675 = vrcp.f32 %v3474_v0  ;;  %v3475_v44 = vadd.f32 1.0, %v4670_v47  ;;  %v4672_v60 = vpop.eup %4671 }
 0x4b3   : > { %4677 = vpow2.f32 %v3405_v3  ;;  %3606 = vst [vmem:[%s5979_s10 + $0xc8] sm:$0xff] %v3574_v2  ;;  %v3222_v59 = vadd.f32 %v5951_v33, %v2955_v55  ;;  %v3291_v3 = vsub.f32 0.0, %v3227_v41 }
 0x4b4   : > { %4679 = vrcp.f32 %v3475_v44 }
 0x4b5   : > { %v3286_v26 = vsub.f32 0.0, %v3222_v59  ;;  %v3417_v36 = vmul.f32 1.442695, %v3291_v3 }
 0x4b6   : > { %v2867_v56 = vpop.f32.mrf.mxu2  ;;  %v2692_v10 = vpop.f32.mrf.mxu0 }
 0x4b7   : > { %v4674_v8 = vpop.eup %4673  ;;  %v3407_v13 = vmul.f32 1.442695, %v3286_v26  ;;  %v2868_v51 = vadd.f32 %v2867_v56, %v2779_v49  ;;  %v2956_v21 = vpop.f32.mrf.mxu3  ;;  %v2693_v25 = vadd.f32 %v2692_v10, %v6550_v30 }
 0x4b8   : > { %v4676_v39 = vpop.eup %4675  ;;  %v3476_v16 = vadd.f32 1.0, %v4674_v8  ;;  %v2781_v40 = vpop.f32.mrf.mxu1 }
 0x4b9   : > { %v4678_v42 = vpop.eup %4677  ;;  %v3575_v61 = vpack.c.bf16 %v4676_v39, %v4672_v60  ;;  %4681 = vpow2.f32 %v3407_v13  ;;  %v2957_v4 = vadd.f32 %v2956_v21, %v2868_v51  ;;  %v2782_v15 = vadd.f32 %v2781_v40, %v2693_v25 }
 0x4ba   : > { %4683 = vrcp.f32 %v3476_v16  ;;  %v3477_v12 = vadd.f32 1.0, %v4678_v42  ;;  %v4680_v35 = vpop.eup %4679 }
 0x4bb   : > { %4685 = vpow2.f32 %v3409_v53  ;;  %3607 = vst [vmem:[%s5979_s10 + $0xd0] sm:$0xff] %v3575_v61  ;;  %v3224_v46 = vadd.f32 %v5951_v33, %v2957_v4 }
 0x4bc   : > { %4687 = vrcp.f32 %v3477_v12 }
 0x4bd   : > { %v3288_v19 = vsub.f32 0.0, %v3224_v46 }
 0x4be   : > { %v2870_v27 = vpop.f32.mrf.mxu2  ;;  %v2694_v62 = vpop.f32.mrf.mxu0 }
 0x4bf   : > { %v4682_v1 = vpop.eup %4681  ;;  %v3411_v29 = vmul.f32 1.442695, %v3288_v19  ;;  %v2871_v63 = vadd.f32 %v2870_v27, %v2782_v15  ;;  %v2959_v48 = vpop.f32.mrf.mxu3  ;;  %v2695_v5 = vadd.f32 %v2694_v62, %v6552_v31 }
 0x4c0   : > { %v4684_v23 = vpop.eup %4683  ;;  %v3478_v52 = vadd.f32 1.0, %v4682_v1  ;;  %v2783_v34 = vpop.f32.mrf.mxu1 }
 0x4c1   : > { %v4686_v45 = vpop.eup %4685  ;;  %v3576_v22 = vpack.c.bf16 %v4684_v23, %v4680_v35  ;;  %4689 = vpow2.f32 %v3411_v29  ;;  %v2960_v9 = vadd.f32 %v2959_v48, %v2871_v63  ;;  %v2784_v57 = vadd.f32 %v2783_v34, %v2695_v5 }
 0x4c2   : > { %4691 = vrcp.f32 %v3478_v52  ;;  %v3479_v32 = vadd.f32 1.0, %v4686_v45  ;;  %v4688_v11 = vpop.eup %4687 }
 0x4c3   : > { %4693 = vpow2.f32 %v3413_v7  ;;  %3608 = vst [vmem:[%s5979_s10 + $0xd8] sm:$0xff] %v3576_v22  ;;  %v3226_v37 = vadd.f32 %v5951_v33, %v2960_v9 }
 0x4c4   : > { %4695 = vrcp.f32 %v3479_v32 }
 0x4c5   : > { %v3290_v6 = vsub.f32 0.0, %v3226_v37 }
 0x4c6   : > { %v2872_v24 = vpop.f32.mrf.mxu2 }
 0x4c7   : > { %v4690_v54 = vpop.eup %4689  ;;  %v3415_v28 = vmul.f32 1.442695, %v3290_v6  ;;  %v2873_v38 = vadd.f32 %v2872_v24, %v2784_v57  ;;  %v2961_v2 = vpop.f32.mrf.mxu3 }
 0x4c8   : > { %v4692_v0 = vpop.eup %4691  ;;  %v3480_v47 = vadd.f32 1.0, %v4690_v54 }
 0x4c9   : > { %v4694_v55 = vpop.eup %4693  ;;  %v3577_v17 = vpack.c.bf16 %v4692_v0, %v4688_v11  ;;  %4697 = vpow2.f32 %v3415_v28  ;;  %v2962_v43 = vadd.f32 %v2961_v2, %v2873_v38 }
 0x4ca   : > { %4699 = vrcp.f32 %v3480_v47  ;;  %v3481_v59 = vadd.f32 1.0, %v4694_v55  ;;  %v4696_v26 = vpop.eup %4695 }
 0x4cb   : > { %3609 = vst [vmem:[%s5979_s10 + $0xe0] sm:$0xff] %v3577_v17  ;;  %v3228_v58 = vadd.f32 %v5951_v33, %v2962_v43  ;;  %4701 = vpow2.f32 %v3417_v36 }
 0x4cc   : > { %4703 = vrcp.f32 %v3481_v59 }
 0x4cd   : > { %v3292_v44 = vsub.f32 0.0, %v3228_v58 }
 0x4cf   : > { %v4698_v49 = vpop.eup %4697  ;;  %v3419_v60 = vmul.f32 1.442695, %v3292_v44 }
 0x4d0   : > { %v4700_v56 = vpop.eup %4699  ;;  %v3482_v8 = vadd.f32 1.0, %v4698_v49 }
 0x4d1   : > { %v3578_v53 = vpack.c.bf16 %v4700_v56, %v4696_v26  ;;  %4705 = vpow2.f32 %v3419_v60  ;;  %v4702_v18 = vpop.eup %4701 }
 0x4d2   : > { %4707 = vrcp.f32 %v3482_v8  ;;  %v3483_v14 = vadd.f32 1.0, %v4702_v18  ;;  %v4704_v13 = vpop.eup %4703 }
 0x4d3   : > { %3610 = vst [vmem:[%s5979_s10 + $0xe8] sm:$0xff] %v3578_v53 }
 0x4d4   : > { %4709 = vrcp.f32 %v3483_v14 }
 0x4d7   : > { %v4706_v51 = vpop.eup %4705 }
 0x4d8   : > { %v4708_v33 = vpop.eup %4707  ;;  %v3484_v21 = vadd.f32 1.0, %v4706_v51 }
 0x4d9   : > { %v3579_v10 = vpack.c.bf16 %v4708_v33, %v4704_v13 }
 0x4da   : > { %4711 = vrcp.f32 %v3484_v21  ;;  %v4710_v39 = vpop.eup %4709 }
 0x4db   : > { %3611 = vst [vmem:[%s5979_s10 + $0xf0] sm:$0xff] %v3579_v10 }
 0x4e0   : > { %v4712_v16 = vpop.eup %4711 }
 0x4e1   : > { %v3580_v42 = vpack.c.bf16 %v4712_v16, %v4710_v39 }
 0x4e3   : > { %3612 = vst [vmem:[%s5979_s10 + $0xf8] sm:$0xff] %v3580_v42 }
 0x4e4 PF: > { %s17_s17 = sadd.s32 1, %s4857_s17   ;;  %s6553_s12 = smov %s4841_s13 }
 0x4e5   : > { %p14_p2 = scmp.ge.s32.totalorder %s17_s17, 4   ;;  %s6554_s13 = smov %s4845_s14 }
 0x4e6   : > { %s6555_s14 = smov %s4958_s21  ;;  %s6556_s15 = smov %s4853_s16 }
 0x4e7   : > { %s6557_s16 = smov %s6559_s7  ;;  %16 = sbr.rel (!%p14_p2) target bundleno = 5 (0x5), region = 89 }
 0x4ec   :  { %3637 = vsyncpa [#allocation4], 1 }
 0x4ed   :  { %3639 = vsyncpa [#allocation4 + $0x1], 1 }
 0x4ee   :  { %3640 = vsyncpa [#allocation6], 1 }

</bundles_post_ra>
